<compile_context>
chip_gen: v7x
topology: tpu7x:2x2x1
jax: 0.10.0
libtpu: 0.0.40
codegen_flags: <defaults>
</compile_context>

<pallas_src>
import math

import numpy as np
import jax
import jax.numpy as jnp
from jax.experimental import pallas as pl
from jax.experimental.pallas import tpu as pltpu


# ----------------------------------------------------------------------------
# Static geometry helpers.  Padded-flat convention: pixel (h, w) of the padded
# image (rows 0..H+1, cols 0..W+1, plus guard row H+2) sits at flat index
# h * Wp + w with Wp = W + 2.  The guard row keeps the kh=2,kw=2 tap slice
# in-bounds; it is always zero so it never contributes to valid outputs.
# ----------------------------------------------------------------------------
def _geom(H, W):
    Wp = W + 2
    return {"H": H, "W": W, "Wp": Wp, "M": H * Wp, "L": (H + 3) * Wp}


def _sel_store(H, W, stride):
    """(H*Wp_in, L_out) 0/1 matrix: full-res stride-1 conv output (width Wp_in
    layout, garbage cols ignored) -> zero-padded flat layout of the
    (H//stride, W//stride) activation (includes pad ring + guard row = zeros)."""
    Wp_in = W + 2
    Ho, Wo = H // stride, W // stride
    Wp_out = Wo + 2
    S = np.zeros((H * Wp_in, (Ho + 3) * Wp_out), np.float32)
    for ho in range(Ho):
        for wo in range(Wo):
            S[(stride * ho) * Wp_in + stride * wo, (1 + ho) * Wp_out + (1 + wo)] = 1.0
    return S


def _sel_shortcut(H, W, stride):
    """(L_in, Ho*Wp_mid) 0/1 matrix: padded-flat input -> the 1x1/stride-s
    subsampled input laid out like the conv2 pre-activation (garbage cols = 0)."""
    Wp_in = W + 2
    Ho, Wo = H // stride, W // stride
    Wp_mid = Wo + 2
    S = np.zeros(((H + 3) * Wp_in, Ho * Wp_mid), np.float32)
    for ho in range(Ho):
        for wo in range(Wo):
            S[(1 + stride * ho) * Wp_in + (1 + stride * wo), ho * Wp_mid + wo] = 1.0
    return S


# ------------------------- parameter construction ----------------------------
def make_conv_bn_params(key, cin, cout, ksize):
    kw_, kg, kb, km, kv = jax.random.split(key, 5)
    fan_in = ksize * ksize * cin
    w = jax.random.normal(kw_, (cout, cin, ksize, ksize), jnp.float32) / math.sqrt(fan_in)
    gamma = 1.0 + 0.1 * jax.random.normal(kg, (cout,), jnp.float32)
    beta = 0.1 * jax.random.normal(kb, (cout,), jnp.float32)
    mean = 0.1 * jax.random.normal(km, (cout,), jnp.float32)
    var = 1.0 + 0.1 * jnp.abs(jax.random.normal(kv, (cout,), jnp.float32))
    scale = gamma / jnp.sqrt(var + 1e-5)              # BN folded (inference)
    bias = (beta - mean * scale).reshape(cout, 1)     # (Cout, 1) f32 bias
    wf = w * scale[:, None, None, None]               # fold BN scale into f32 weights
    if ksize == 3:
        w_k = jnp.transpose(wf, (2, 3, 0, 1))         # (3, 3, Cout, Cin) per-tap matrices
    else:
        w_k = wf.reshape(cout, cin)                   # 1x1 shortcut: (Cout, Cin)
    return {"w": w_k, "b": bias, "cin": cin, "cout": cout, "ksize": ksize}


def make_resnet_params(key, in_planes, num_blocks, in_ch):
    keys = jax.random.split(key, 1 + 3 * sum(num_blocks))
    ki = 0
    params = {"stem": make_conv_bn_params(keys[ki], in_ch, in_planes, 3)}
    ki += 1
    blocks, cur = [], in_planes
    for li, (nb, s0) in enumerate(zip(num_blocks, (1, 2, 2, 2))):
        planes = in_planes * (2 ** li)
        for s in [s0] + [1] * (nb - 1):
            blk = {"stride": s,
                   "conv1": make_conv_bn_params(keys[ki], cur, planes, 3),
                   "conv2": make_conv_bn_params(keys[ki + 1], planes, planes, 3),
                   "shortcut": None}
            if s != 1 or cur != planes:
                blk["shortcut"] = make_conv_bn_params(keys[ki + 2], cur, planes, 1)
            ki += 3
            blocks.append(blk)
            cur = planes
    params["blocks"] = blocks
    return params


# ------------------------------ kernel builder --------------------------------
def build_resnet_forward(params, N, H, W):
    in_ch = params["stem"]["cin"]

    const_names, const_arrays = [], []

    def add_const(name, arr):
        const_names.append(name)
        const_arrays.append(jnp.asarray(arr, jnp.float32))
        return name

    sel_cache = {}

    def sel_store_const(Hh, Ww, stride):
        key = ("store", Hh, Ww, stride)
        if key not in sel_cache:
            sel_cache[key] = add_const(f"sel_store_{Hh}x{Ww}_s{stride}",
                                       _sel_store(Hh, Ww, stride))
        return sel_cache[key]

    def sel_shortcut_const(Hh, Ww, stride):
        key = ("sc", Hh, Ww, stride)
        if key not in sel_cache:
            sel_cache[key] = add_const(f"sel_sc_{Hh}x{Ww}_s{stride}",
                                       _sel_shortcut(Hh, Ww, stride))
        return sel_cache[key]

    scratch_shapes = []

    def add_scratch(c, l):
        scratch_shapes.append(pltpu.VMEM((c, l), jnp.float32))
        return len(scratch_shapes) - 1

    # ---- static execution plan ------------------------------------------------
    plan = []
    g0 = _geom(H, W)
    stem_dst = add_scratch(params["stem"]["cout"], g0["L"])
    plan.append({"kind": "stem", "g": g0, "dst": stem_dst,
                 "w": add_const("w_stem", params["stem"]["w"]),
                 "b": add_const("b_stem", params["stem"]["b"]),
                 "sel": sel_store_const(H, W, 1)})

    Hc, Wc = H, W
    src = stem_dst
    nblk = len(params["blocks"])
    for bi, blk in enumerate(params["blocks"]):
        s = blk["stride"]
        gin = _geom(Hc, Wc)
        Ho, Wo = Hc // s, Wc // s
        gout = _geom(Ho, Wo)
        last = bi == nblk - 1
        op = {"kind": "block", "gin": gin, "gout": gout, "src": src,
              "h": add_scratch(blk["conv1"]["cout"], gout["L"]),
              "dst": None if last else add_scratch(blk["conv2"]["cout"], gout["L"]),
              "w1": add_const(f"w1_{bi}", blk["conv1"]["w"]),
              "b1": add_const(f"b1_{bi}", blk["conv1"]["b"]),
              "w2": add_const(f"w2_{bi}", blk["conv2"]["w"]),
              "b2": add_const(f"b2_{bi}", blk["conv2"]["b"]),
              "sel_down": sel_store_const(Hc, Wc, s),
              "sel_out": None if last else sel_store_const(Ho, Wo, 1),
              "shortcut": blk["shortcut"] is not None}
        if blk["shortcut"] is not None:
            op["ws"] = add_const(f"ws_{bi}", blk["shortcut"]["w"])
            op["bs"] = add_const(f"bs_{bi}", blk["shortcut"]["b"])
            op["sel_sc"] = sel_shortcut_const(Hc, Wc, s)
        plan.append(op)
        src = op["dst"]
        Hc, Wc = Ho, Wo

    cout_f = params["blocks"][-1]["conv2"]["cout"]
    Hf, Wf = Hc, Wc
    L0 = g0["L"]
    n_const = len(const_arrays)

    # ---- the fused kernel -------------------------------------------------------
    def kernel(*refs):
        x_ref = refs[0]                                   # (in_ch, L0) padded flat input
        cref = dict(zip(const_names, refs[1:1 + n_const]))
        out_ref = refs[1 + n_const]                       # (Cout_f, Hf, Wf)
        scr = refs[2 + n_const:]

        def conv3x3(src_ref, w_name, g):
            # 3x3 stride-1 conv on a padded-flat buffer: 9 contiguous shifted
            # slices + 9 accumulating MXU matmuls -> (Cout, H*Wp) pre-activation.
            Wp, M = g["Wp"], g["M"]
            cin = src_ref.shape[0]
            w_ref = cref[w_name]
            acc = None
            for kh in range(3):
                for kw in range(3):
                    off = kh * Wp + kw
                    xs = src_ref[:, off:off + M]          # (Cin, M) contiguous slice
                    wt = w_ref[kh, kw]                    # (Cout, Cin)
                    if cin == 1:                          # stem: K=1, keep on the VPU
                        term = wt * xs
                    else:
                        term = jnp.dot(wt, xs, preferred_element_type=jnp.float32)
                    acc = term if acc is None else acc + term
            return acc

        def sel_mm(a, name):                               # subsample / re-pad via 0/1 matrix
            return jnp.dot(a, cref[name][...], preferred_element_type=jnp.float32)

        for op in plan:
            if op["kind"] == "stem":
                g = op["g"]
                act = jnp.maximum(conv3x3(x_ref, op["w"], g) + cref[op["b"]][...], 0.0)
                scr[op["dst"]][...] = sel_mm(act, op["sel"])
                continue

            gin, gout = op["gin"], op["gout"]
            src_ref = scr[op["src"]]
            # conv1 + BN + ReLU (full-res compute; sel_down subsamples for stride 2)
            act1 = jnp.maximum(conv3x3(src_ref, op["w1"], gin) + cref[op["b1"]][...], 0.0)
            scr[op["h"]][...] = sel_mm(act1, op["sel_down"])
            # conv2 + BN at the block's output resolution
            pre2 = conv3x3(scr[op["h"]], op["w2"], gout) + cref[op["b2"]][...]
            # residual path
            if op["shortcut"]:
                xsub = sel_mm(src_ref[...], op["sel_sc"])          # (Cin, Ho*Wp_out)
                sc = jnp.dot(cref[op["ws"]][...], xsub, preferred_element_type=jnp.float32)
                pre2 = pre2 + sc + cref[op["bs"]][...]
            else:
                Wp, M = gin["Wp"], gin["M"]
                pre2 = pre2 + src_ref[:, Wp + 1: Wp + 1 + M]       # identity residual
            act2 = jnp.maximum(pre2, 0.0)
            if op["dst"] is None:
                # final block: write only the valid (Ho, Wo) window to the output ref
                Ho_, Wo_, Wp_o = gout["H"], gout["W"], gout["Wp"]
                for ho in range(Ho_):
                    out_ref[:, ho, :] = act2[:, ho * Wp_o: ho * Wp_o + Wo_]
            else:
                scr[op["dst"]][...] = sel_mm(act2, op["sel_out"])

    # ---- pallas_call wiring ------------------------------------------------------
    in_specs = [pl.BlockSpec((None, in_ch, L0), lambda i: (i, 0, 0))]
    for arr in const_arrays:
        nd = arr.ndim
        in_specs.append(pl.BlockSpec(arr.shape, lambda i, _nd=nd: (0,) * _nd))
    out_specs = pl.BlockSpec((None, cout_f, Hf, Wf), lambda i: (i, 0, 0, 0))

    call = pl.pallas_call(
        kernel,
        out_shape=jax.ShapeDtypeStruct((N, cout_f, Hf, Wf), jnp.float32),
        grid_spec=pltpu.PrefetchScalarGridSpec(
            num_scalar_prefetch=0,
            grid=(N,),                                    # one sample per step -> megacore on v7x
            in_specs=in_specs,
            out_specs=out_specs,
            scratch_shapes=scratch_shapes,
        ),
        compiler_params=pltpu.CompilerParams(dimension_semantics=("parallel",)),
    )

    def forward(x_nchw):
        # Only XLA-side data movement: zero-pad (pad=1) + guard row and flatten the
        # spatial dims of the raw input (1x the data, not a 9x im2col expansion).
        xp = jnp.pad(x_nchw.astype(jnp.float32), ((0, 0), (0, 0), (1, 2), (1, 1)))
        return call(xp.reshape(N, in_ch, L0), *const_arrays)

    return forward


# ------------------------- plain-XLA reference (for validation) ----------------
def reference_forward(x, params):
    def conv_bn(h, p, stride):
        if p["ksize"] == 3:
            w = jnp.transpose(p["w"], (2, 3, 0, 1))            # (Cout, Cin, 3, 3)
            pad = [(1, 1), (1, 1)]
        else:
            w = p["w"][:, :, None, None]
            pad = [(0, 0), (0, 0)]
        y = jax.lax.conv_general_dilated(
            h, w, (stride, stride), pad,
            dimension_numbers=("NCHW", "OIHW", "NCHW"),
            precision=jax.lax.Precision.HIGHEST)
        return y + p["b"].reshape(1, -1, 1, 1)

    h = jax.nn.relu(conv_bn(x, params["stem"], 1))
    for blk in params["blocks"]:
        s = blk["stride"]
        out = jax.nn.relu(conv_bn(h, blk["conv1"], s))
        out = conv_bn(out, blk["conv2"], 1)
        res = conv_bn(h, blk["shortcut"], s) if blk["shortcut"] is not None else h
        h = jax.nn.relu(out + res)
    return h


# ----------------------------------- main --------------------------------------
if __name__ == "__main__":
    key = jax.random.PRNGKey(0)
    kx, kp = jax.random.split(key)

    # ResNet(in_planes=4, block=BasicBlock, num_blocks=[1,1,1,1], in_ch=1, feat_dim='2d')
    N, in_ch, H, W = 2, 1, 16, 16
    in_planes, num_blocks = 4, [1, 1, 1, 1]

    params = make_resnet_params(kp, in_planes, num_blocks, in_ch)
    x = jax.random.normal(kx, (N, in_ch, H, W), jnp.float32)        # NCHW, like PyTorch

    forward = jax.jit(build_resnet_forward(params, N, H, W))
    out = jax.block_until_ready(forward(x))
    assert out.shape == (N, in_planes * 8, H // 8, W // 8), out.shape

    # validate the fused kernel against a plain-XLA reference of the same folded-BN model
    ref = jax.block_until_ready(jax.jit(lambda a: reference_forward(a, params))(x))
    np.testing.assert_allclose(np.asarray(out), np.asarray(ref), rtol=5e-2, atol=5e-2)

    print("KERNEL_OK")
</pallas_src>

<mosaic_0001>
module attributes {stable_mosaic.version = 11 : i64} {
  func.func @kernel(%arg0: i32, %arg1: memref<1x1x342xf32, #tpu.memory_space<vmem>>, %arg2: memref<3x3x4x1xf32, #tpu.memory_space<vmem>>, %arg3: memref<4x1xf32, #tpu.memory_space<vmem>>, %arg4: memref<288x342xf32, #tpu.memory_space<vmem>>, %arg5: memref<3x3x4x4xf32, #tpu.memory_space<vmem>>, %arg6: memref<4x1xf32, #tpu.memory_space<vmem>>, %arg7: memref<3x3x4x4xf32, #tpu.memory_space<vmem>>, %arg8: memref<4x1xf32, #tpu.memory_space<vmem>>, %arg9: memref<3x3x8x4xf32, #tpu.memory_space<vmem>>, %arg10: memref<8x1xf32, #tpu.memory_space<vmem>>, %arg11: memref<3x3x8x8xf32, #tpu.memory_space<vmem>>, %arg12: memref<8x1xf32, #tpu.memory_space<vmem>>, %arg13: memref<288x110xf32, #tpu.memory_space<vmem>>, %arg14: memref<80x110xf32, #tpu.memory_space<vmem>>, %arg15: memref<8x4xf32, #tpu.memory_space<vmem>>, %arg16: memref<8x1xf32, #tpu.memory_space<vmem>>, %arg17: memref<342x80xf32, #tpu.memory_space<vmem>>, %arg18: memref<3x3x16x8xf32, #tpu.memory_space<vmem>>, %arg19: memref<16x1xf32, #tpu.memory_space<vmem>>, %arg20: memref<3x3x16x16xf32, #tpu.memory_space<vmem>>, %arg21: memref<16x1xf32, #tpu.memory_space<vmem>>, %arg22: memref<80x42xf32, #tpu.memory_space<vmem>>, %arg23: memref<24x42xf32, #tpu.memory_space<vmem>>, %arg24: memref<16x8xf32, #tpu.memory_space<vmem>>, %arg25: memref<16x1xf32, #tpu.memory_space<vmem>>, %arg26: memref<110x24xf32, #tpu.memory_space<vmem>>, %arg27: memref<3x3x32x16xf32, #tpu.memory_space<vmem>>, %arg28: memref<32x1xf32, #tpu.memory_space<vmem>>, %arg29: memref<3x3x32x32xf32, #tpu.memory_space<vmem>>, %arg30: memref<32x1xf32, #tpu.memory_space<vmem>>, %arg31: memref<24x20xf32, #tpu.memory_space<vmem>>, %arg32: memref<32x16xf32, #tpu.memory_space<vmem>>, %arg33: memref<32x1xf32, #tpu.memory_space<vmem>>, %arg34: memref<42x8xf32, #tpu.memory_space<vmem>>, %arg35: memref<1x32x2x2xf32, #tpu.memory_space<vmem>>, %arg36: memref<4x342xf32, #tpu.memory_space<vmem>>, %arg37: memref<4x342xf32, #tpu.memory_space<vmem>>, %arg38: memref<4x342xf32, #tpu.memory_space<vmem>>, %arg39: memref<8x110xf32, #tpu.memory_space<vmem>>, %arg40: memref<8x110xf32, #tpu.memory_space<vmem>>, %arg41: memref<16x42xf32, #tpu.memory_space<vmem>>, %arg42: memref<16x42xf32, #tpu.memory_space<vmem>>, %arg43: memref<32x20xf32, #tpu.memory_space<vmem>>) attributes {dimension_semantics = [#tpu.dimension_semantics<parallel>], iteration_bounds = array<i64: 2>, scalar_prefetch = 0 : i64, scratch_operands = 8 : i64, tpu.core_type = #tpu.core_type<tc>, window_params = [{transform_indices = @transform_0, window_bounds = array<i64: 1, 1, 342>}, {pipeline_mode = #tpu.pipeline_mode<synchronous>, transform_indices = @transform_1, window_bounds = array<i64: 3, 3, 4, 1>}, {pipeline_mode = #tpu.pipeline_mode<synchronous>, transform_indices = @transform_2, window_bounds = array<i64: 4, 1>}, {pipeline_mode = #tpu.pipeline_mode<synchronous>, transform_indices = @transform_3, window_bounds = array<i64: 288, 342>}, {pipeline_mode = #tpu.pipeline_mode<synchronous>, transform_indices = @transform_4, window_bounds = array<i64: 3, 3, 4, 4>}, {pipeline_mode = #tpu.pipeline_mode<synchronous>, transform_indices = @transform_5, window_bounds = array<i64: 4, 1>}, {pipeline_mode = #tpu.pipeline_mode<synchronous>, transform_indices = @transform_6, window_bounds = array<i64: 3, 3, 4, 4>}, {pipeline_mode = #tpu.pipeline_mode<synchronous>, transform_indices = @transform_7, window_bounds = array<i64: 4, 1>}, {pipeline_mode = #tpu.pipeline_mode<synchronous>, transform_indices = @transform_8, window_bounds = array<i64: 3, 3, 8, 4>}, {pipeline_mode = #tpu.pipeline_mode<synchronous>, transform_indices = @transform_9, window_bounds = array<i64: 8, 1>}, {pipeline_mode = #tpu.pipeline_mode<synchronous>, transform_indices = @transform_10, window_bounds = array<i64: 3, 3, 8, 8>}, {pipeline_mode = #tpu.pipeline_mode<synchronous>, transform_indices = @transform_11, window_bounds = array<i64: 8, 1>}, {pipeline_mode = #tpu.pipeline_mode<synchronous>, transform_indices = @transform_12, window_bounds = array<i64: 288, 110>}, {pipeline_mode = #tpu.pipeline_mode<synchronous>, transform_indices = @transform_13, window_bounds = array<i64: 80, 110>}, {pipeline_mode = #tpu.pipeline_mode<synchronous>, transform_indices = @transform_14, window_bounds = array<i64: 8, 4>}, {pipeline_mode = #tpu.pipeline_mode<synchronous>, transform_indices = @transform_15, window_bounds = array<i64: 8, 1>}, {pipeline_mode = #tpu.pipeline_mode<synchronous>, transform_indices = @transform_16, window_bounds = array<i64: 342, 80>}, {pipeline_mode = #tpu.pipeline_mode<synchronous>, transform_indices = @transform_17, window_bounds = array<i64: 3, 3, 16, 8>}, {pipeline_mode = #tpu.pipeline_mode<synchronous>, transform_indices = @transform_18, window_bounds = array<i64: 16, 1>}, {pipeline_mode = #tpu.pipeline_mode<synchronous>, transform_indices = @transform_19, window_bounds = array<i64: 3, 3, 16, 16>}, {pipeline_mode = #tpu.pipeline_mode<synchronous>, transform_indices = @transform_20, window_bounds = array<i64: 16, 1>}, {pipeline_mode = #tpu.pipeline_mode<synchronous>, transform_indices = @transform_21, window_bounds = array<i64: 80, 42>}, {pipeline_mode = #tpu.pipeline_mode<synchronous>, transform_indices = @transform_22, window_bounds = array<i64: 24, 42>}, {pipeline_mode = #tpu.pipeline_mode<synchronous>, transform_indices = @transform_23, window_bounds = array<i64: 16, 8>}, {pipeline_mode = #tpu.pipeline_mode<synchronous>, transform_indices = @transform_24, window_bounds = array<i64: 16, 1>}, {pipeline_mode = #tpu.pipeline_mode<synchronous>, transform_indices = @transform_25, window_bounds = array<i64: 110, 24>}, {pipeline_mode = #tpu.pipeline_mode<synchronous>, transform_indices = @transform_26, window_bounds = array<i64: 3, 3, 32, 16>}, {pipeline_mode = #tpu.pipeline_mode<synchronous>, transform_indices = @transform_27, window_bounds = array<i64: 32, 1>}, {pipeline_mode = #tpu.pipeline_mode<synchronous>, transform_indices = @transform_28, window_bounds = array<i64: 3, 3, 32, 32>}, {pipeline_mode = #tpu.pipeline_mode<synchronous>, transform_indices = @transform_29, window_bounds = array<i64: 32, 1>}, {pipeline_mode = #tpu.pipeline_mode<synchronous>, transform_indices = @transform_30, window_bounds = array<i64: 24, 20>}, {pipeline_mode = #tpu.pipeline_mode<synchronous>, transform_indices = @transform_31, window_bounds = array<i64: 32, 16>}, {pipeline_mode = #tpu.pipeline_mode<synchronous>, transform_indices = @transform_32, window_bounds = array<i64: 32, 1>}, {pipeline_mode = #tpu.pipeline_mode<synchronous>, transform_indices = @transform_33, window_bounds = array<i64: 42, 8>}, {transform_indices = @transform_34, window_bounds = array<i64: 1, 32, 2, 2>}]} {
    %c0 = arith.constant 0 : index
    %c0_0 = arith.constant 0 : index
    %c0_1 = arith.constant 0 : index
    %0 = vector.load %arg1[%c0, %c0_0, %c0_1] : memref<1x1x342xf32, #tpu.memory_space<vmem>>, vector<1x1x288xf32>
    %1 = vector.shape_cast %0 : vector<1x1x288xf32> to vector<1x288xf32>
    %c0_2 = arith.constant 0 : index
    %c0_3 = arith.constant 0 : index
    %c0_4 = arith.constant 0 : index
    %c0_5 = arith.constant 0 : index
    %2 = vector.load %arg2[%c0_2, %c0_3, %c0_4, %c0_5] : memref<3x3x4x1xf32, #tpu.memory_space<vmem>>, vector<1x1x4x1xf32>
    %3 = vector.shape_cast %2 : vector<1x1x4x1xf32> to vector<4x1xf32>
    %4 = vector.broadcast %3 : vector<4x1xf32> to vector<4x288xf32>
    %5 = vector.broadcast %1 : vector<1x288xf32> to vector<4x288xf32>
    %6 = arith.mulf %4, %5 : vector<4x288xf32>
    %c0_6 = arith.constant 0 : index
    %c0_7 = arith.constant 0 : index
    %c1 = arith.constant 1 : index
    %7 = vector.load %arg1[%c0_6, %c0_7, %c1] : memref<1x1x342xf32, #tpu.memory_space<vmem>>, vector<1x1x288xf32>
    %8 = vector.shape_cast %7 : vector<1x1x288xf32> to vector<1x288xf32>
    %c0_8 = arith.constant 0 : index
    %c1_9 = arith.constant 1 : index
    %c0_10 = arith.constant 0 : index
    %c0_11 = arith.constant 0 : index
    %9 = vector.load %arg2[%c0_8, %c1_9, %c0_10, %c0_11] : memref<3x3x4x1xf32, #tpu.memory_space<vmem>>, vector<1x1x4x1xf32>
    %10 = vector.shape_cast %9 : vector<1x1x4x1xf32> to vector<4x1xf32>
    %11 = vector.broadcast %10 : vector<4x1xf32> to vector<4x288xf32>
    %12 = vector.broadcast %8 : vector<1x288xf32> to vector<4x288xf32>
    %13 = arith.mulf %11, %12 : vector<4x288xf32>
    %14 = arith.addf %6, %13 : vector<4x288xf32>
    %c0_12 = arith.constant 0 : index
    %c0_13 = arith.constant 0 : index
    %c2 = arith.constant 2 : index
    %15 = vector.load %arg1[%c0_12, %c0_13, %c2] : memref<1x1x342xf32, #tpu.memory_space<vmem>>, vector<1x1x288xf32>
    %16 = vector.shape_cast %15 : vector<1x1x288xf32> to vector<1x288xf32>
    %c0_14 = arith.constant 0 : index
    %c2_15 = arith.constant 2 : index
    %c0_16 = arith.constant 0 : index
    %c0_17 = arith.constant 0 : index
    %17 = vector.load %arg2[%c0_14, %c2_15, %c0_16, %c0_17] : memref<3x3x4x1xf32, #tpu.memory_space<vmem>>, vector<1x1x4x1xf32>
    %18 = vector.shape_cast %17 : vector<1x1x4x1xf32> to vector<4x1xf32>
    %19 = vector.broadcast %18 : vector<4x1xf32> to vector<4x288xf32>
    %20 = vector.broadcast %16 : vector<1x288xf32> to vector<4x288xf32>
    %21 = arith.mulf %19, %20 : vector<4x288xf32>
    %22 = arith.addf %14, %21 : vector<4x288xf32>
    %c0_18 = arith.constant 0 : index
    %c0_19 = arith.constant 0 : index
    %c18 = arith.constant 18 : index
    %23 = vector.load %arg1[%c0_18, %c0_19, %c18] : memref<1x1x342xf32, #tpu.memory_space<vmem>>, vector<1x1x288xf32>
    %24 = vector.shape_cast %23 : vector<1x1x288xf32> to vector<1x288xf32>
    %c1_20 = arith.constant 1 : index
    %c0_21 = arith.constant 0 : index
    %c0_22 = arith.constant 0 : index
    %c0_23 = arith.constant 0 : index
    %25 = vector.load %arg2[%c1_20, %c0_21, %c0_22, %c0_23] : memref<3x3x4x1xf32, #tpu.memory_space<vmem>>, vector<1x1x4x1xf32>
    %26 = vector.shape_cast %25 : vector<1x1x4x1xf32> to vector<4x1xf32>
    %27 = vector.broadcast %26 : vector<4x1xf32> to vector<4x288xf32>
    %28 = vector.broadcast %24 : vector<1x288xf32> to vector<4x288xf32>
    %29 = arith.mulf %27, %28 : vector<4x288xf32>
    %30 = arith.addf %22, %29 : vector<4x288xf32>
    %c0_24 = arith.constant 0 : index
    %c0_25 = arith.constant 0 : index
    %c19 = arith.constant 19 : index
    %31 = vector.load %arg1[%c0_24, %c0_25, %c19] : memref<1x1x342xf32, #tpu.memory_space<vmem>>, vector<1x1x288xf32>
    %32 = vector.shape_cast %31 : vector<1x1x288xf32> to vector<1x288xf32>
    %c1_26 = arith.constant 1 : index
    %c1_27 = arith.constant 1 : index
    %c0_28 = arith.constant 0 : index
    %c0_29 = arith.constant 0 : index
    %33 = vector.load %arg2[%c1_26, %c1_27, %c0_28, %c0_29] : memref<3x3x4x1xf32, #tpu.memory_space<vmem>>, vector<1x1x4x1xf32>
    %34 = vector.shape_cast %33 : vector<1x1x4x1xf32> to vector<4x1xf32>
    %35 = vector.broadcast %34 : vector<4x1xf32> to vector<4x288xf32>
    %36 = vector.broadcast %32 : vector<1x288xf32> to vector<4x288xf32>
    %37 = arith.mulf %35, %36 : vector<4x288xf32>
    %38 = arith.addf %30, %37 : vector<4x288xf32>
    %c0_30 = arith.constant 0 : index
    %c0_31 = arith.constant 0 : index
    %c20 = arith.constant 20 : index
    %39 = vector.load %arg1[%c0_30, %c0_31, %c20] : memref<1x1x342xf32, #tpu.memory_space<vmem>>, vector<1x1x288xf32>
    %40 = vector.shape_cast %39 : vector<1x1x288xf32> to vector<1x288xf32>
    %c1_32 = arith.constant 1 : index
    %c2_33 = arith.constant 2 : index
    %c0_34 = arith.constant 0 : index
    %c0_35 = arith.constant 0 : index
    %41 = vector.load %arg2[%c1_32, %c2_33, %c0_34, %c0_35] : memref<3x3x4x1xf32, #tpu.memory_space<vmem>>, vector<1x1x4x1xf32>
    %42 = vector.shape_cast %41 : vector<1x1x4x1xf32> to vector<4x1xf32>
    %43 = vector.broadcast %42 : vector<4x1xf32> to vector<4x288xf32>
    %44 = vector.broadcast %40 : vector<1x288xf32> to vector<4x288xf32>
    %45 = arith.mulf %43, %44 : vector<4x288xf32>
    %46 = arith.addf %38, %45 : vector<4x288xf32>
    %c0_36 = arith.constant 0 : index
    %c0_37 = arith.constant 0 : index
    %c36 = arith.constant 36 : index
    %47 = vector.load %arg1[%c0_36, %c0_37, %c36] : memref<1x1x342xf32, #tpu.memory_space<vmem>>, vector<1x1x288xf32>
    %48 = vector.shape_cast %47 : vector<1x1x288xf32> to vector<1x288xf32>
    %c2_38 = arith.constant 2 : index
    %c0_39 = arith.constant 0 : index
    %c0_40 = arith.constant 0 : index
    %c0_41 = arith.constant 0 : index
    %49 = vector.load %arg2[%c2_38, %c0_39, %c0_40, %c0_41] : memref<3x3x4x1xf32, #tpu.memory_space<vmem>>, vector<1x1x4x1xf32>
    %50 = vector.shape_cast %49 : vector<1x1x4x1xf32> to vector<4x1xf32>
    %51 = vector.broadcast %50 : vector<4x1xf32> to vector<4x288xf32>
    %52 = vector.broadcast %48 : vector<1x288xf32> to vector<4x288xf32>
    %53 = arith.mulf %51, %52 : vector<4x288xf32>
    %54 = arith.addf %46, %53 : vector<4x288xf32>
    %c0_42 = arith.constant 0 : index
    %c0_43 = arith.constant 0 : index
    %c37 = arith.constant 37 : index
    %55 = vector.load %arg1[%c0_42, %c0_43, %c37] : memref<1x1x342xf32, #tpu.memory_space<vmem>>, vector<1x1x288xf32>
    %56 = vector.shape_cast %55 : vector<1x1x288xf32> to vector<1x288xf32>
    %c2_44 = arith.constant 2 : index
    %c1_45 = arith.constant 1 : index
    %c0_46 = arith.constant 0 : index
    %c0_47 = arith.constant 0 : index
    %57 = vector.load %arg2[%c2_44, %c1_45, %c0_46, %c0_47] : memref<3x3x4x1xf32, #tpu.memory_space<vmem>>, vector<1x1x4x1xf32>
    %58 = vector.shape_cast %57 : vector<1x1x4x1xf32> to vector<4x1xf32>
    %59 = vector.broadcast %58 : vector<4x1xf32> to vector<4x288xf32>
    %60 = vector.broadcast %56 : vector<1x288xf32> to vector<4x288xf32>
    %61 = arith.mulf %59, %60 : vector<4x288xf32>
    %62 = arith.addf %54, %61 : vector<4x288xf32>
    %c0_48 = arith.constant 0 : index
    %c0_49 = arith.constant 0 : index
    %c38 = arith.constant 38 : index
    %63 = vector.load %arg1[%c0_48, %c0_49, %c38] : memref<1x1x342xf32, #tpu.memory_space<vmem>>, vector<1x1x288xf32>
    %64 = vector.shape_cast %63 : vector<1x1x288xf32> to vector<1x288xf32>
    %c2_50 = arith.constant 2 : index
    %c2_51 = arith.constant 2 : index
    %c0_52 = arith.constant 0 : index
    %c0_53 = arith.constant 0 : index
    %65 = vector.load %arg2[%c2_50, %c2_51, %c0_52, %c0_53] : memref<3x3x4x1xf32, #tpu.memory_space<vmem>>, vector<1x1x4x1xf32>
    %66 = vector.shape_cast %65 : vector<1x1x4x1xf32> to vector<4x1xf32>
    %67 = vector.broadcast %66 : vector<4x1xf32> to vector<4x288xf32>
    %68 = vector.broadcast %64 : vector<1x288xf32> to vector<4x288xf32>
    %69 = arith.mulf %67, %68 : vector<4x288xf32>
    %70 = arith.addf %62, %69 : vector<4x288xf32>
    %c0_54 = arith.constant 0 : index
    %c0_55 = arith.constant 0 : index
    %71 = vector.load %arg3[%c0_54, %c0_55] : memref<4x1xf32, #tpu.memory_space<vmem>>, vector<4x1xf32>
    %72 = vector.broadcast %71 : vector<4x1xf32> to vector<4x288xf32>
    %73 = arith.addf %70, %72 : vector<4x288xf32>
    %cst = arith.constant 0.000000e+00 : f32
    %74 = vector.broadcast %cst : f32 to vector<4x288xf32>
    %75 = arith.maximumf %73, %74 : vector<4x288xf32>
    %c0_56 = arith.constant 0 : index
    %c0_57 = arith.constant 0 : index
    %76 = vector.load %arg4[%c0_56, %c0_57] : memref<288x342xf32, #tpu.memory_space<vmem>>, vector<288x342xf32>
    %cst_58 = arith.constant dense<0.000000e+00> : vector<4x342xf32>
    %77 = tpu.matmul %75, %76, %cst_58 {dimension_numbers = #tpu.dot_dimension_numbers<[1], [0], [0], [1], [0, 0, 1, 1], [], []>} : vector<4x288xf32>, vector<288x342xf32>, vector<4x342xf32> -> vector<4x342xf32>
    %c0_59 = arith.constant 0 : index
    %c0_60 = arith.constant 0 : index
    %78 = vector.load %arg36[%c0_59, %c0_60] : memref<4x342xf32, #tpu.memory_space<vmem>>, vector<4x342xf32>
    tpu.vector_store %arg36[%c0_59, %c0_60], %77 {strides = array<i32>} : memref<4x342xf32, #tpu.memory_space<vmem>>, vector<4x342xf32>,
    %c0_61 = arith.constant 0 : index
    %c0_62 = arith.constant 0 : index
    %79 = vector.load %arg36[%c0_61, %c0_62] : memref<4x342xf32, #tpu.memory_space<vmem>>, vector<4x288xf32>
    %c0_63 = arith.constant 0 : index
    %c0_64 = arith.constant 0 : index
    %c0_65 = arith.constant 0 : index
    %c0_66 = arith.constant 0 : index
    %80 = vector.load %arg5[%c0_63, %c0_64, %c0_65, %c0_66] : memref<3x3x4x4xf32, #tpu.memory_space<vmem>>, vector<1x1x4x4xf32>
    %81 = vector.shape_cast %80 : vector<1x1x4x4xf32> to vector<4x4xf32>
    %cst_67 = arith.constant dense<0.000000e+00> : vector<4x288xf32>
    %82 = tpu.matmul %81, %79, %cst_67 {dimension_numbers = #tpu.dot_dimension_numbers<[1], [0], [0], [1], [0, 0, 1, 1], [], []>} : vector<4x4xf32>, vector<4x288xf32>, vector<4x288xf32> -> vector<4x288xf32>
    %c0_68 = arith.constant 0 : index
    %c1_69 = arith.constant 1 : index
    %83 = vector.load %arg36[%c0_68, %c1_69] : memref<4x342xf32, #tpu.memory_space<vmem>>, vector<4x288xf32>
    %c0_70 = arith.constant 0 : index
    %c1_71 = arith.constant 1 : index
    %c0_72 = arith.constant 0 : index
    %c0_73 = arith.constant 0 : index
    %84 = vector.load %arg5[%c0_70, %c1_71, %c0_72, %c0_73] : memref<3x3x4x4xf32, #tpu.memory_space<vmem>>, vector<1x1x4x4xf32>
    %85 = vector.shape_cast %84 : vector<1x1x4x4xf32> to vector<4x4xf32>
    %cst_74 = arith.constant dense<0.000000e+00> : vector<4x288xf32>
    %86 = tpu.matmul %85, %83, %cst_74 {dimension_numbers = #tpu.dot_dimension_numbers<[1], [0], [0], [1], [0, 0, 1, 1], [], []>} : vector<4x4xf32>, vector<4x288xf32>, vector<4x288xf32> -> vector<4x288xf32>
    %87 = arith.addf %82, %86 : vector<4x288xf32>
    %c0_75 = arith.constant 0 : index
    %c2_76 = arith.constant 2 : index
    %88 = vector.load %arg36[%c0_75, %c2_76] : memref<4x342xf32, #tpu.memory_space<vmem>>, vector<4x288xf32>
    %c0_77 = arith.constant 0 : index
    %c2_78 = arith.constant 2 : index
    %c0_79 = arith.constant 0 : index
    %c0_80 = arith.constant 0 : index
    %89 = vector.load %arg5[%c0_77, %c2_78, %c0_79, %c0_80] : memref<3x3x4x4xf32, #tpu.memory_space<vmem>>, vector<1x1x4x4xf32>
    %90 = vector.shape_cast %89 : vector<1x1x4x4xf32> to vector<4x4xf32>
    %cst_81 = arith.constant dense<0.000000e+00> : vector<4x288xf32>
    %91 = tpu.matmul %90, %88, %cst_81 {dimension_numbers = #tpu.dot_dimension_numbers<[1], [0], [0], [1], [0, 0, 1, 1], [], []>} : vector<4x4xf32>, vector<4x288xf32>, vector<4x288xf32> -> vector<4x288xf32>
    %92 = arith.addf %87, %91 : vector<4x288xf32>
    %c0_82 = arith.constant 0 : index
    %c18_83 = arith.constant 18 : index
    %93 = vector.load %arg36[%c0_82, %c18_83] : memref<4x342xf32, #tpu.memory_space<vmem>>, vector<4x288xf32>
    %c1_84 = arith.constant 1 : index
    %c0_85 = arith.constant 0 : index
    %c0_86 = arith.constant 0 : index
    %c0_87 = arith.constant 0 : index
    %94 = vector.load %arg5[%c1_84, %c0_85, %c0_86, %c0_87] : memref<3x3x4x4xf32, #tpu.memory_space<vmem>>, vector<1x1x4x4xf32>
    %95 = vector.shape_cast %94 : vector<1x1x4x4xf32> to vector<4x4xf32>
    %cst_88 = arith.constant dense<0.000000e+00> : vector<4x288xf32>
    %96 = tpu.matmul %95, %93, %cst_88 {dimension_numbers = #tpu.dot_dimension_numbers<[1], [0], [0], [1], [0, 0, 1, 1], [], []>} : vector<4x4xf32>, vector<4x288xf32>, vector<4x288xf32> -> vector<4x288xf32>
    %97 = arith.addf %92, %96 : vector<4x288xf32>
    %c0_89 = arith.constant 0 : index
    %c19_90 = arith.constant 19 : index
    %98 = vector.load %arg36[%c0_89, %c19_90] : memref<4x342xf32, #tpu.memory_space<vmem>>, vector<4x288xf32>
    %c1_91 = arith.constant 1 : index
    %c1_92 = arith.constant 1 : index
    %c0_93 = arith.constant 0 : index
    %c0_94 = arith.constant 0 : index
    %99 = vector.load %arg5[%c1_91, %c1_92, %c0_93, %c0_94] : memref<3x3x4x4xf32, #tpu.memory_space<vmem>>, vector<1x1x4x4xf32>
    %100 = vector.shape_cast %99 : vector<1x1x4x4xf32> to vector<4x4xf32>
    %cst_95 = arith.constant dense<0.000000e+00> : vector<4x288xf32>
    %101 = tpu.matmul %100, %98, %cst_95 {dimension_numbers = #tpu.dot_dimension_numbers<[1], [0], [0], [1], [0, 0, 1, 1], [], []>} : vector<4x4xf32>, vector<4x288xf32>, vector<4x288xf32> -> vector<4x288xf32>
    %102 = arith.addf %97, %101 : vector<4x288xf32>
    %c0_96 = arith.constant 0 : index
    %c20_97 = arith.constant 20 : index
    %103 = vector.load %arg36[%c0_96, %c20_97] : memref<4x342xf32, #tpu.memory_space<vmem>>, vector<4x288xf32>
    %c1_98 = arith.constant 1 : index
    %c2_99 = arith.constant 2 : index
    %c0_100 = arith.constant 0 : index
    %c0_101 = arith.constant 0 : index
    %104 = vector.load %arg5[%c1_98, %c2_99, %c0_100, %c0_101] : memref<3x3x4x4xf32, #tpu.memory_space<vmem>>, vector<1x1x4x4xf32>
    %105 = vector.shape_cast %104 : vector<1x1x4x4xf32> to vector<4x4xf32>
    %cst_102 = arith.constant dense<0.000000e+00> : vector<4x288xf32>
    %106 = tpu.matmul %105, %103, %cst_102 {dimension_numbers = #tpu.dot_dimension_numbers<[1], [0], [0], [1], [0, 0, 1, 1], [], []>} : vector<4x4xf32>, vector<4x288xf32>, vector<4x288xf32> -> vector<4x288xf32>
    %107 = arith.addf %102, %106 : vector<4x288xf32>
    %c0_103 = arith.constant 0 : index
    %c36_104 = arith.constant 36 : index
    %108 = vector.load %arg36[%c0_103, %c36_104] : memref<4x342xf32, #tpu.memory_space<vmem>>, vector<4x288xf32>
    %c2_105 = arith.constant 2 : index
    %c0_106 = arith.constant 0 : index
    %c0_107 = arith.constant 0 : index
    %c0_108 = arith.constant 0 : index
    %109 = vector.load %arg5[%c2_105, %c0_106, %c0_107, %c0_108] : memref<3x3x4x4xf32, #tpu.memory_space<vmem>>, vector<1x1x4x4xf32>
    %110 = vector.shape_cast %109 : vector<1x1x4x4xf32> to vector<4x4xf32>
    %cst_109 = arith.constant dense<0.000000e+00> : vector<4x288xf32>
    %111 = tpu.matmul %110, %108, %cst_109 {dimension_numbers = #tpu.dot_dimension_numbers<[1], [0], [0], [1], [0, 0, 1, 1], [], []>} : vector<4x4xf32>, vector<4x288xf32>, vector<4x288xf32> -> vector<4x288xf32>
    %112 = arith.addf %107, %111 : vector<4x288xf32>
    %c0_110 = arith.constant 0 : index
    %c37_111 = arith.constant 37 : index
    %113 = vector.load %arg36[%c0_110, %c37_111] : memref<4x342xf32, #tpu.memory_space<vmem>>, vector<4x288xf32>
    %c2_112 = arith.constant 2 : index
    %c1_113 = arith.constant 1 : index
    %c0_114 = arith.constant 0 : index
    %c0_115 = arith.constant 0 : index
    %114 = vector.load %arg5[%c2_112, %c1_113, %c0_114, %c0_115] : memref<3x3x4x4xf32, #tpu.memory_space<vmem>>, vector<1x1x4x4xf32>
    %115 = vector.shape_cast %114 : vector<1x1x4x4xf32> to vector<4x4xf32>
    %cst_116 = arith.constant dense<0.000000e+00> : vector<4x288xf32>
    %116 = tpu.matmul %115, %113, %cst_116 {dimension_numbers = #tpu.dot_dimension_numbers<[1], [0], [0], [1], [0, 0, 1, 1], [], []>} : vector<4x4xf32>, vector<4x288xf32>, vector<4x288xf32> -> vector<4x288xf32>
    %117 = arith.addf %112, %116 : vector<4x288xf32>
    %c0_117 = arith.constant 0 : index
    %c38_118 = arith.constant 38 : index
    %118 = vector.load %arg36[%c0_117, %c38_118] : memref<4x342xf32, #tpu.memory_space<vmem>>, vector<4x288xf32>
    %c2_119 = arith.constant 2 : index
    %c2_120 = arith.constant 2 : index
    %c0_121 = arith.constant 0 : index
    %c0_122 = arith.constant 0 : index
    %119 = vector.load %arg5[%c2_119, %c2_120, %c0_121, %c0_122] : memref<3x3x4x4xf32, #tpu.memory_space<vmem>>, vector<1x1x4x4xf32>
    %120 = vector.shape_cast %119 : vector<1x1x4x4xf32> to vector<4x4xf32>
    %cst_123 = arith.constant dense<0.000000e+00> : vector<4x288xf32>
    %121 = tpu.matmul %120, %118, %cst_123 {dimension_numbers = #tpu.dot_dimension_numbers<[1], [0], [0], [1], [0, 0, 1, 1], [], []>} : vector<4x4xf32>, vector<4x288xf32>, vector<4x288xf32> -> vector<4x288xf32>
    %122 = arith.addf %117, %121 : vector<4x288xf32>
    %c0_124 = arith.constant 0 : index
    %c0_125 = arith.constant 0 : index
    %123 = vector.load %arg6[%c0_124, %c0_125] : memref<4x1xf32, #tpu.memory_space<vmem>>, vector<4x1xf32>
    %124 = vector.broadcast %123 : vector<4x1xf32> to vector<4x288xf32>
    %125 = arith.addf %122, %124 : vector<4x288xf32>
    %cst_126 = arith.constant 0.000000e+00 : f32
    %126 = vector.broadcast %cst_126 : f32 to vector<4x288xf32>
    %127 = arith.maximumf %125, %126 : vector<4x288xf32>
    %c0_127 = arith.constant 0 : index
    %c0_128 = arith.constant 0 : index
    %128 = vector.load %arg4[%c0_127, %c0_128] : memref<288x342xf32, #tpu.memory_space<vmem>>, vector<288x342xf32>
    %cst_129 = arith.constant dense<0.000000e+00> : vector<4x342xf32>
    %129 = tpu.matmul %127, %128, %cst_129 {dimension_numbers = #tpu.dot_dimension_numbers<[1], [0], [0], [1], [0, 0, 1, 1], [], []>} : vector<4x288xf32>, vector<288x342xf32>, vector<4x342xf32> -> vector<4x342xf32>
    %c0_130 = arith.constant 0 : index
    %c0_131 = arith.constant 0 : index
    %130 = vector.load %arg37[%c0_130, %c0_131] : memref<4x342xf32, #tpu.memory_space<vmem>>, vector<4x342xf32>
    tpu.vector_store %arg37[%c0_130, %c0_131], %129 {strides = array<i32>} : memref<4x342xf32, #tpu.memory_space<vmem>>, vector<4x342xf32>,
    %c0_132 = arith.constant 0 : index
    %c0_133 = arith.constant 0 : index
    %131 = vector.load %arg37[%c0_132, %c0_133] : memref<4x342xf32, #tpu.memory_space<vmem>>, vector<4x288xf32>
    %c0_134 = arith.constant 0 : index
    %c0_135 = arith.constant 0 : index
    %c0_136 = arith.constant 0 : index
    %c0_137 = arith.constant 0 : index
    %132 = vector.load %arg7[%c0_134, %c0_135, %c0_136, %c0_137] : memref<3x3x4x4xf32, #tpu.memory_space<vmem>>, vector<1x1x4x4xf32>
    %133 = vector.shape_cast %132 : vector<1x1x4x4xf32> to vector<4x4xf32>
    %cst_138 = arith.constant dense<0.000000e+00> : vector<4x288xf32>
    %134 = tpu.matmul %133, %131, %cst_138 {dimension_numbers = #tpu.dot_dimension_numbers<[1], [0], [0], [1], [0, 0, 1, 1], [], []>} : vector<4x4xf32>, vector<4x288xf32>, vector<4x288xf32> -> vector<4x288xf32>
    %c0_139 = arith.constant 0 : index
    %c1_140 = arith.constant 1 : index
    %135 = vector.load %arg37[%c0_139, %c1_140] : memref<4x342xf32, #tpu.memory_space<vmem>>, vector<4x288xf32>
    %c0_141 = arith.constant 0 : index
    %c1_142 = arith.constant 1 : index
    %c0_143 = arith.constant 0 : index
    %c0_144 = arith.constant 0 : index
    %136 = vector.load %arg7[%c0_141, %c1_142, %c0_143, %c0_144] : memref<3x3x4x4xf32, #tpu.memory_space<vmem>>, vector<1x1x4x4xf32>
    %137 = vector.shape_cast %136 : vector<1x1x4x4xf32> to vector<4x4xf32>
    %cst_145 = arith.constant dense<0.000000e+00> : vector<4x288xf32>
    %138 = tpu.matmul %137, %135, %cst_145 {dimension_numbers = #tpu.dot_dimension_numbers<[1], [0], [0], [1], [0, 0, 1, 1], [], []>} : vector<4x4xf32>, vector<4x288xf32>, vector<4x288xf32> -> vector<4x288xf32>
    %139 = arith.addf %134, %138 : vector<4x288xf32>
    %c0_146 = arith.constant 0 : index
    %c2_147 = arith.constant 2 : index
    %140 = vector.load %arg37[%c0_146, %c2_147] : memref<4x342xf32, #tpu.memory_space<vmem>>, vector<4x288xf32>
    %c0_148 = arith.constant 0 : index
    %c2_149 = arith.constant 2 : index
    %c0_150 = arith.constant 0 : index
    %c0_151 = arith.constant 0 : index
    %141 = vector.load %arg7[%c0_148, %c2_149, %c0_150, %c0_151] : memref<3x3x4x4xf32, #tpu.memory_space<vmem>>, vector<1x1x4x4xf32>
    %142 = vector.shape_cast %141 : vector<1x1x4x4xf32> to vector<4x4xf32>
    %cst_152 = arith.constant dense<0.000000e+00> : vector<4x288xf32>
    %143 = tpu.matmul %142, %140, %cst_152 {dimension_numbers = #tpu.dot_dimension_numbers<[1], [0], [0], [1], [0, 0, 1, 1], [], []>} : vector<4x4xf32>, vector<4x288xf32>, vector<4x288xf32> -> vector<4x288xf32>
    %144 = arith.addf %139, %143 : vector<4x288xf32>
    %c0_153 = arith.constant 0 : index
    %c18_154 = arith.constant 18 : index
    %145 = vector.load %arg37[%c0_153, %c18_154] : memref<4x342xf32, #tpu.memory_space<vmem>>, vector<4x288xf32>
    %c1_155 = arith.constant 1 : index
    %c0_156 = arith.constant 0 : index
    %c0_157 = arith.constant 0 : index
    %c0_158 = arith.constant 0 : index
    %146 = vector.load %arg7[%c1_155, %c0_156, %c0_157, %c0_158] : memref<3x3x4x4xf32, #tpu.memory_space<vmem>>, vector<1x1x4x4xf32>
    %147 = vector.shape_cast %146 : vector<1x1x4x4xf32> to vector<4x4xf32>
    %cst_159 = arith.constant dense<0.000000e+00> : vector<4x288xf32>
    %148 = tpu.matmul %147, %145, %cst_159 {dimension_numbers = #tpu.dot_dimension_numbers<[1], [0], [0], [1], [0, 0, 1, 1], [], []>} : vector<4x4xf32>, vector<4x288xf32>, vector<4x288xf32> -> vector<4x288xf32>
    %149 = arith.addf %144, %148 : vector<4x288xf32>
    %c0_160 = arith.constant 0 : index
    %c19_161 = arith.constant 19 : index
    %150 = vector.load %arg37[%c0_160, %c19_161] : memref<4x342xf32, #tpu.memory_space<vmem>>, vector<4x288xf32>
    %c1_162 = arith.constant 1 : index
    %c1_163 = arith.constant 1 : index
    %c0_164 = arith.constant 0 : index
    %c0_165 = arith.constant 0 : index
    %151 = vector.load %arg7[%c1_162, %c1_163, %c0_164, %c0_165] : memref<3x3x4x4xf32, #tpu.memory_space<vmem>>, vector<1x1x4x4xf32>
    %152 = vector.shape_cast %151 : vector<1x1x4x4xf32> to vector<4x4xf32>
    %cst_166 = arith.constant dense<0.000000e+00> : vector<4x288xf32>
    %153 = tpu.matmul %152, %150, %cst_166 {dimension_numbers = #tpu.dot_dimension_numbers<[1], [0], [0], [1], [0, 0, 1, 1], [], []>} : vector<4x4xf32>, vector<4x288xf32>, vector<4x288xf32> -> vector<4x288xf32>
    %154 = arith.addf %149, %153 : vector<4x288xf32>
    %c0_167 = arith.constant 0 : index
    %c20_168 = arith.constant 20 : index
    %155 = vector.load %arg37[%c0_167, %c20_168] : memref<4x342xf32, #tpu.memory_space<vmem>>, vector<4x288xf32>
    %c1_169 = arith.constant 1 : index
    %c2_170 = arith.constant 2 : index
    %c0_171 = arith.constant 0 : index
    %c0_172 = arith.constant 0 : index
    %156 = vector.load %arg7[%c1_169, %c2_170, %c0_171, %c0_172] : memref<3x3x4x4xf32, #tpu.memory_space<vmem>>, vector<1x1x4x4xf32>
    %157 = vector.shape_cast %156 : vector<1x1x4x4xf32> to vector<4x4xf32>
    %cst_173 = arith.constant dense<0.000000e+00> : vector<4x288xf32>
    %158 = tpu.matmul %157, %155, %cst_173 {dimension_numbers = #tpu.dot_dimension_numbers<[1], [0], [0], [1], [0, 0, 1, 1], [], []>} : vector<4x4xf32>, vector<4x288xf32>, vector<4x288xf32> -> vector<4x288xf32>
    %159 = arith.addf %154, %158 : vector<4x288xf32>
    %c0_174 = arith.constant 0 : index
    %c36_175 = arith.constant 36 : index
    %160 = vector.load %arg37[%c0_174, %c36_175] : memref<4x342xf32, #tpu.memory_space<vmem>>, vector<4x288xf32>
    %c2_176 = arith.constant 2 : index
    %c0_177 = arith.constant 0 : index
    %c0_178 = arith.constant 0 : index
    %c0_179 = arith.constant 0 : index
    %161 = vector.load %arg7[%c2_176, %c0_177, %c0_178, %c0_179] : memref<3x3x4x4xf32, #tpu.memory_space<vmem>>, vector<1x1x4x4xf32>
    %162 = vector.shape_cast %161 : vector<1x1x4x4xf32> to vector<4x4xf32>
    %cst_180 = arith.constant dense<0.000000e+00> : vector<4x288xf32>
    %163 = tpu.matmul %162, %160, %cst_180 {dimension_numbers = #tpu.dot_dimension_numbers<[1], [0], [0], [1], [0, 0, 1, 1], [], []>} : vector<4x4xf32>, vector<4x288xf32>, vector<4x288xf32> -> vector<4x288xf32>
    %164 = arith.addf %159, %163 : vector<4x288xf32>
    %c0_181 = arith.constant 0 : index
    %c37_182 = arith.constant 37 : index
    %165 = vector.load %arg37[%c0_181, %c37_182] : memref<4x342xf32, #tpu.memory_space<vmem>>, vector<4x288xf32>
    %c2_183 = arith.constant 2 : index
    %c1_184 = arith.constant 1 : index
    %c0_185 = arith.constant 0 : index
    %c0_186 = arith.constant 0 : index
    %166 = vector.load %arg7[%c2_183, %c1_184, %c0_185, %c0_186] : memref<3x3x4x4xf32, #tpu.memory_space<vmem>>, vector<1x1x4x4xf32>
    %167 = vector.shape_cast %166 : vector<1x1x4x4xf32> to vector<4x4xf32>
    %cst_187 = arith.constant dense<0.000000e+00> : vector<4x288xf32>
    %168 = tpu.matmul %167, %165, %cst_187 {dimension_numbers = #tpu.dot_dimension_numbers<[1], [0], [0], [1], [0, 0, 1, 1], [], []>} : vector<4x4xf32>, vector<4x288xf32>, vector<4x288xf32> -> vector<4x288xf32>
    %169 = arith.addf %164, %168 : vector<4x288xf32>
    %c0_188 = arith.constant 0 : index
    %c38_189 = arith.constant 38 : index
    %170 = vector.load %arg37[%c0_188, %c38_189] : memref<4x342xf32, #tpu.memory_space<vmem>>, vector<4x288xf32>
    %c2_190 = arith.constant 2 : index
    %c2_191 = arith.constant 2 : index
    %c0_192 = arith.constant 0 : index
    %c0_193 = arith.constant 0 : index
    %171 = vector.load %arg7[%c2_190, %c2_191, %c0_192, %c0_193] : memref<3x3x4x4xf32, #tpu.memory_space<vmem>>, vector<1x1x4x4xf32>
    %172 = vector.shape_cast %171 : vector<1x1x4x4xf32> to vector<4x4xf32>
    %cst_194 = arith.constant dense<0.000000e+00> : vector<4x288xf32>
    %173 = tpu.matmul %172, %170, %cst_194 {dimension_numbers = #tpu.dot_dimension_numbers<[1], [0], [0], [1], [0, 0, 1, 1], [], []>} : vector<4x4xf32>, vector<4x288xf32>, vector<4x288xf32> -> vector<4x288xf32>
    %174 = arith.addf %169, %173 : vector<4x288xf32>
    %c0_195 = arith.constant 0 : index
    %c0_196 = arith.constant 0 : index
    %175 = vector.load %arg8[%c0_195, %c0_196] : memref<4x1xf32, #tpu.memory_space<vmem>>, vector<4x1xf32>
    %176 = vector.broadcast %175 : vector<4x1xf32> to vector<4x288xf32>
    %177 = arith.addf %174, %176 : vector<4x288xf32>
    %c0_197 = arith.constant 0 : index
    %c19_198 = arith.constant 19 : index
    %178 = vector.load %arg36[%c0_197, %c19_198] : memref<4x342xf32, #tpu.memory_space<vmem>>, vector<4x288xf32>
    %179 = arith.addf %177, %178 : vector<4x288xf32>
    %cst_199 = arith.constant 0.000000e+00 : f32
    %180 = vector.broadcast %cst_199 : f32 to vector<4x288xf32>
    %181 = arith.maximumf %179, %180 : vector<4x288xf32>
    %c0_200 = arith.constant 0 : index
    %c0_201 = arith.constant 0 : index
    %182 = vector.load %arg4[%c0_200, %c0_201] : memref<288x342xf32, #tpu.memory_space<vmem>>, vector<288x342xf32>
    %cst_202 = arith.constant dense<0.000000e+00> : vector<4x342xf32>
    %183 = tpu.matmul %181, %182, %cst_202 {dimension_numbers = #tpu.dot_dimension_numbers<[1], [0], [0], [1], [0, 0, 1, 1], [], []>} : vector<4x288xf32>, vector<288x342xf32>, vector<4x342xf32> -> vector<4x342xf32>
    %c0_203 = arith.constant 0 : index
    %c0_204 = arith.constant 0 : index
    %184 = vector.load %arg38[%c0_203, %c0_204] : memref<4x342xf32, #tpu.memory_space<vmem>>, vector<4x342xf32>
    tpu.vector_store %arg38[%c0_203, %c0_204], %183 {strides = array<i32>} : memref<4x342xf32, #tpu.memory_space<vmem>>, vector<4x342xf32>,
    %c0_205 = arith.constant 0 : index
    %c0_206 = arith.constant 0 : index
    %185 = vector.load %arg38[%c0_205, %c0_206] : memref<4x342xf32, #tpu.memory_space<vmem>>, vector<4x288xf32>
    %c0_207 = arith.constant 0 : index
    %c0_208 = arith.constant 0 : index
    %c0_209 = arith.constant 0 : index
    %c0_210 = arith.constant 0 : index
    %186 = vector.load %arg9[%c0_207, %c0_208, %c0_209, %c0_210] : memref<3x3x8x4xf32, #tpu.memory_space<vmem>>, vector<1x1x8x4xf32>
    %187 = vector.shape_cast %186 : vector<1x1x8x4xf32> to vector<8x4xf32>
    %cst_211 = arith.constant dense<0.000000e+00> : vector<8x288xf32>
    %188 = tpu.matmul %187, %185, %cst_211 {dimension_numbers = #tpu.dot_dimension_numbers<[1], [0], [0], [1], [0, 0, 1, 1], [], []>} : vector<8x4xf32>, vector<4x288xf32>, vector<8x288xf32> -> vector<8x288xf32>
    %c0_212 = arith.constant 0 : index
    %c1_213 = arith.constant 1 : index
    %189 = vector.load %arg38[%c0_212, %c1_213] : memref<4x342xf32, #tpu.memory_space<vmem>>, vector<4x288xf32>
    %c0_214 = arith.constant 0 : index
    %c1_215 = arith.constant 1 : index
    %c0_216 = arith.constant 0 : index
    %c0_217 = arith.constant 0 : index
    %190 = vector.load %arg9[%c0_214, %c1_215, %c0_216, %c0_217] : memref<3x3x8x4xf32, #tpu.memory_space<vmem>>, vector<1x1x8x4xf32>
    %191 = vector.shape_cast %190 : vector<1x1x8x4xf32> to vector<8x4xf32>
    %cst_218 = arith.constant dense<0.000000e+00> : vector<8x288xf32>
    %192 = tpu.matmul %191, %189, %cst_218 {dimension_numbers = #tpu.dot_dimension_numbers<[1], [0], [0], [1], [0, 0, 1, 1], [], []>} : vector<8x4xf32>, vector<4x288xf32>, vector<8x288xf32> -> vector<8x288xf32>
    %193 = arith.addf %188, %192 : vector<8x288xf32>
    %c0_219 = arith.constant 0 : index
    %c2_220 = arith.constant 2 : index
    %194 = vector.load %arg38[%c0_219, %c2_220] : memref<4x342xf32, #tpu.memory_space<vmem>>, vector<4x288xf32>
    %c0_221 = arith.constant 0 : index
    %c2_222 = arith.constant 2 : index
    %c0_223 = arith.constant 0 : index
    %c0_224 = arith.constant 0 : index
    %195 = vector.load %arg9[%c0_221, %c2_222, %c0_223, %c0_224] : memref<3x3x8x4xf32, #tpu.memory_space<vmem>>, vector<1x1x8x4xf32>
    %196 = vector.shape_cast %195 : vector<1x1x8x4xf32> to vector<8x4xf32>
    %cst_225 = arith.constant dense<0.000000e+00> : vector<8x288xf32>
    %197 = tpu.matmul %196, %194, %cst_225 {dimension_numbers = #tpu.dot_dimension_numbers<[1], [0], [0], [1], [0, 0, 1, 1], [], []>} : vector<8x4xf32>, vector<4x288xf32>, vector<8x288xf32> -> vector<8x288xf32>
    %198 = arith.addf %193, %197 : vector<8x288xf32>
    %c0_226 = arith.constant 0 : index
    %c18_227 = arith.constant 18 : index
    %199 = vector.load %arg38[%c0_226, %c18_227] : memref<4x342xf32, #tpu.memory_space<vmem>>, vector<4x288xf32>
    %c1_228 = arith.constant 1 : index
    %c0_229 = arith.constant 0 : index
    %c0_230 = arith.constant 0 : index
    %c0_231 = arith.constant 0 : index
    %200 = vector.load %arg9[%c1_228, %c0_229, %c0_230, %c0_231] : memref<3x3x8x4xf32, #tpu.memory_space<vmem>>, vector<1x1x8x4xf32>
    %201 = vector.shape_cast %200 : vector<1x1x8x4xf32> to vector<8x4xf32>
    %cst_232 = arith.constant dense<0.000000e+00> : vector<8x288xf32>
    %202 = tpu.matmul %201, %199, %cst_232 {dimension_numbers = #tpu.dot_dimension_numbers<[1], [0], [0], [1], [0, 0, 1, 1], [], []>} : vector<8x4xf32>, vector<4x288xf32>, vector<8x288xf32> -> vector<8x288xf32>
    %203 = arith.addf %198, %202 : vector<8x288xf32>
    %c0_233 = arith.constant 0 : index
    %c19_234 = arith.constant 19 : index
    %204 = vector.load %arg38[%c0_233, %c19_234] : memref<4x342xf32, #tpu.memory_space<vmem>>, vector<4x288xf32>
    %c1_235 = arith.constant 1 : index
    %c1_236 = arith.constant 1 : index
    %c0_237 = arith.constant 0 : index
    %c0_238 = arith.constant 0 : index
    %205 = vector.load %arg9[%c1_235, %c1_236, %c0_237, %c0_238] : memref<3x3x8x4xf32, #tpu.memory_space<vmem>>, vector<1x1x8x4xf32>
    %206 = vector.shape_cast %205 : vector<1x1x8x4xf32> to vector<8x4xf32>
    %cst_239 = arith.constant dense<0.000000e+00> : vector<8x288xf32>
    %207 = tpu.matmul %206, %204, %cst_239 {dimension_numbers = #tpu.dot_dimension_numbers<[1], [0], [0], [1], [0, 0, 1, 1], [], []>} : vector<8x4xf32>, vector<4x288xf32>, vector<8x288xf32> -> vector<8x288xf32>
    %208 = arith.addf %203, %207 : vector<8x288xf32>
    %c0_240 = arith.constant 0 : index
    %c20_241 = arith.constant 20 : index
    %209 = vector.load %arg38[%c0_240, %c20_241] : memref<4x342xf32, #tpu.memory_space<vmem>>, vector<4x288xf32>
    %c1_242 = arith.constant 1 : index
    %c2_243 = arith.constant 2 : index
    %c0_244 = arith.constant 0 : index
    %c0_245 = arith.constant 0 : index
    %210 = vector.load %arg9[%c1_242, %c2_243, %c0_244, %c0_245] : memref<3x3x8x4xf32, #tpu.memory_space<vmem>>, vector<1x1x8x4xf32>
    %211 = vector.shape_cast %210 : vector<1x1x8x4xf32> to vector<8x4xf32>
    %cst_246 = arith.constant dense<0.000000e+00> : vector<8x288xf32>
    %212 = tpu.matmul %211, %209, %cst_246 {dimension_numbers = #tpu.dot_dimension_numbers<[1], [0], [0], [1], [0, 0, 1, 1], [], []>} : vector<8x4xf32>, vector<4x288xf32>, vector<8x288xf32> -> vector<8x288xf32>
    %213 = arith.addf %208, %212 : vector<8x288xf32>
    %c0_247 = arith.constant 0 : index
    %c36_248 = arith.constant 36 : index
    %214 = vector.load %arg38[%c0_247, %c36_248] : memref<4x342xf32, #tpu.memory_space<vmem>>, vector<4x288xf32>
    %c2_249 = arith.constant 2 : index
    %c0_250 = arith.constant 0 : index
    %c0_251 = arith.constant 0 : index
    %c0_252 = arith.constant 0 : index
    %215 = vector.load %arg9[%c2_249, %c0_250, %c0_251, %c0_252] : memref<3x3x8x4xf32, #tpu.memory_space<vmem>>, vector<1x1x8x4xf32>
    %216 = vector.shape_cast %215 : vector<1x1x8x4xf32> to vector<8x4xf32>
    %cst_253 = arith.constant dense<0.000000e+00> : vector<8x288xf32>
    %217 = tpu.matmul %216, %214, %cst_253 {dimension_numbers = #tpu.dot_dimension_numbers<[1], [0], [0], [1], [0, 0, 1, 1], [], []>} : vector<8x4xf32>, vector<4x288xf32>, vector<8x288xf32> -> vector<8x288xf32>
    %218 = arith.addf %213, %217 : vector<8x288xf32>
    %c0_254 = arith.constant 0 : index
    %c37_255 = arith.constant 37 : index
    %219 = vector.load %arg38[%c0_254, %c37_255] : memref<4x342xf32, #tpu.memory_space<vmem>>, vector<4x288xf32>
    %c2_256 = arith.constant 2 : index
    %c1_257 = arith.constant 1 : index
    %c0_258 = arith.constant 0 : index
    %c0_259 = arith.constant 0 : index
    %220 = vector.load %arg9[%c2_256, %c1_257, %c0_258, %c0_259] : memref<3x3x8x4xf32, #tpu.memory_space<vmem>>, vector<1x1x8x4xf32>
    %221 = vector.shape_cast %220 : vector<1x1x8x4xf32> to vector<8x4xf32>
    %cst_260 = arith.constant dense<0.000000e+00> : vector<8x288xf32>
    %222 = tpu.matmul %221, %219, %cst_260 {dimension_numbers = #tpu.dot_dimension_numbers<[1], [0], [0], [1], [0, 0, 1, 1], [], []>} : vector<8x4xf32>, vector<4x288xf32>, vector<8x288xf32> -> vector<8x288xf32>
    %223 = arith.addf %218, %222 : vector<8x288xf32>
    %c0_261 = arith.constant 0 : index
    %c38_262 = arith.constant 38 : index
    %224 = vector.load %arg38[%c0_261, %c38_262] : memref<4x342xf32, #tpu.memory_space<vmem>>, vector<4x288xf32>
    %c2_263 = arith.constant 2 : index
    %c2_264 = arith.constant 2 : index
    %c0_265 = arith.constant 0 : index
    %c0_266 = arith.constant 0 : index
    %225 = vector.load %arg9[%c2_263, %c2_264, %c0_265, %c0_266] : memref<3x3x8x4xf32, #tpu.memory_space<vmem>>, vector<1x1x8x4xf32>
    %226 = vector.shape_cast %225 : vector<1x1x8x4xf32> to vector<8x4xf32>
    %cst_267 = arith.constant dense<0.000000e+00> : vector<8x288xf32>
    %227 = tpu.matmul %226, %224, %cst_267 {dimension_numbers = #tpu.dot_dimension_numbers<[1], [0], [0], [1], [0, 0, 1, 1], [], []>} : vector<8x4xf32>, vector<4x288xf32>, vector<8x288xf32> -> vector<8x288xf32>
    %228 = arith.addf %223, %227 : vector<8x288xf32>
    %c0_268 = arith.constant 0 : index
    %c0_269 = arith.constant 0 : index
    %229 = vector.load %arg10[%c0_268, %c0_269] : memref<8x1xf32, #tpu.memory_space<vmem>>, vector<8x1xf32>
    %230 = vector.broadcast %229 : vector<8x1xf32> to vector<8x288xf32>
    %231 = arith.addf %228, %230 : vector<8x288xf32>
    %cst_270 = arith.constant 0.000000e+00 : f32
    %232 = vector.broadcast %cst_270 : f32 to vector<8x288xf32>
    %233 = arith.maximumf %231, %232 : vector<8x288xf32>
    %c0_271 = arith.constant 0 : index
    %c0_272 = arith.constant 0 : index
    %234 = vector.load %arg13[%c0_271, %c0_272] : memref<288x110xf32, #tpu.memory_space<vmem>>, vector<288x110xf32>
    %cst_273 = arith.constant dense<0.000000e+00> : vector<8x110xf32>
    %235 = tpu.matmul %233, %234, %cst_273 {dimension_numbers = #tpu.dot_dimension_numbers<[1], [0], [0], [1], [0, 0, 1, 1], [], []>} : vector<8x288xf32>, vector<288x110xf32>, vector<8x110xf32> -> vector<8x110xf32>
    %c0_274 = arith.constant 0 : index
    %c0_275 = arith.constant 0 : index
    %236 = vector.load %arg39[%c0_274, %c0_275] : memref<8x110xf32, #tpu.memory_space<vmem>>, vector<8x110xf32>
    tpu.vector_store %arg39[%c0_274, %c0_275], %235 {strides = array<i32>} : memref<8x110xf32, #tpu.memory_space<vmem>>, vector<8x110xf32>,
    %c0_276 = arith.constant 0 : index
    %c0_277 = arith.constant 0 : index
    %237 = vector.load %arg39[%c0_276, %c0_277] : memref<8x110xf32, #tpu.memory_space<vmem>>, vector<8x80xf32>
    %c0_278 = arith.constant 0 : index
    %c0_279 = arith.constant 0 : index
    %c0_280 = arith.constant 0 : index
    %c0_281 = arith.constant 0 : index
    %238 = vector.load %arg11[%c0_278, %c0_279, %c0_280, %c0_281] : memref<3x3x8x8xf32, #tpu.memory_space<vmem>>, vector<1x1x8x8xf32>
    %239 = vector.shape_cast %238 : vector<1x1x8x8xf32> to vector<8x8xf32>
    %cst_282 = arith.constant dense<0.000000e+00> : vector<8x80xf32>
    %240 = tpu.matmul %239, %237, %cst_282 {dimension_numbers = #tpu.dot_dimension_numbers<[1], [0], [0], [1], [0, 0, 1, 1], [], []>} : vector<8x8xf32>, vector<8x80xf32>, vector<8x80xf32> -> vector<8x80xf32>
    %c0_283 = arith.constant 0 : index
    %c1_284 = arith.constant 1 : index
    %241 = vector.load %arg39[%c0_283, %c1_284] : memref<8x110xf32, #tpu.memory_space<vmem>>, vector<8x80xf32>
    %c0_285 = arith.constant 0 : index
    %c1_286 = arith.constant 1 : index
    %c0_287 = arith.constant 0 : index
    %c0_288 = arith.constant 0 : index
    %242 = vector.load %arg11[%c0_285, %c1_286, %c0_287, %c0_288] : memref<3x3x8x8xf32, #tpu.memory_space<vmem>>, vector<1x1x8x8xf32>
    %243 = vector.shape_cast %242 : vector<1x1x8x8xf32> to vector<8x8xf32>
    %cst_289 = arith.constant dense<0.000000e+00> : vector<8x80xf32>
    %244 = tpu.matmul %243, %241, %cst_289 {dimension_numbers = #tpu.dot_dimension_numbers<[1], [0], [0], [1], [0, 0, 1, 1], [], []>} : vector<8x8xf32>, vector<8x80xf32>, vector<8x80xf32> -> vector<8x80xf32>
    %245 = arith.addf %240, %244 : vector<8x80xf32>
    %c0_290 = arith.constant 0 : index
    %c2_291 = arith.constant 2 : index
    %246 = vector.load %arg39[%c0_290, %c2_291] : memref<8x110xf32, #tpu.memory_space<vmem>>, vector<8x80xf32>
    %c0_292 = arith.constant 0 : index
    %c2_293 = arith.constant 2 : index
    %c0_294 = arith.constant 0 : index
    %c0_295 = arith.constant 0 : index
    %247 = vector.load %arg11[%c0_292, %c2_293, %c0_294, %c0_295] : memref<3x3x8x8xf32, #tpu.memory_space<vmem>>, vector<1x1x8x8xf32>
    %248 = vector.shape_cast %247 : vector<1x1x8x8xf32> to vector<8x8xf32>
    %cst_296 = arith.constant dense<0.000000e+00> : vector<8x80xf32>
    %249 = tpu.matmul %248, %246, %cst_296 {dimension_numbers = #tpu.dot_dimension_numbers<[1], [0], [0], [1], [0, 0, 1, 1], [], []>} : vector<8x8xf32>, vector<8x80xf32>, vector<8x80xf32> -> vector<8x80xf32>
    %250 = arith.addf %245, %249 : vector<8x80xf32>
    %c0_297 = arith.constant 0 : index
    %c10 = arith.constant 10 : index
    %251 = vector.load %arg39[%c0_297, %c10] : memref<8x110xf32, #tpu.memory_space<vmem>>, vector<8x80xf32>
    %c1_298 = arith.constant 1 : index
    %c0_299 = arith.constant 0 : index
    %c0_300 = arith.constant 0 : index
    %c0_301 = arith.constant 0 : index
    %252 = vector.load %arg11[%c1_298, %c0_299, %c0_300, %c0_301] : memref<3x3x8x8xf32, #tpu.memory_space<vmem>>, vector<1x1x8x8xf32>
    %253 = vector.shape_cast %252 : vector<1x1x8x8xf32> to vector<8x8xf32>
    %cst_302 = arith.constant dense<0.000000e+00> : vector<8x80xf32>
    %254 = tpu.matmul %253, %251, %cst_302 {dimension_numbers = #tpu.dot_dimension_numbers<[1], [0], [0], [1], [0, 0, 1, 1], [], []>} : vector<8x8xf32>, vector<8x80xf32>, vector<8x80xf32> -> vector<8x80xf32>
    %255 = arith.addf %250, %254 : vector<8x80xf32>
    %c0_303 = arith.constant 0 : index
    %c11 = arith.constant 11 : index
    %256 = vector.load %arg39[%c0_303, %c11] : memref<8x110xf32, #tpu.memory_space<vmem>>, vector<8x80xf32>
    %c1_304 = arith.constant 1 : index
    %c1_305 = arith.constant 1 : index
    %c0_306 = arith.constant 0 : index
    %c0_307 = arith.constant 0 : index
    %257 = vector.load %arg11[%c1_304, %c1_305, %c0_306, %c0_307] : memref<3x3x8x8xf32, #tpu.memory_space<vmem>>, vector<1x1x8x8xf32>
    %258 = vector.shape_cast %257 : vector<1x1x8x8xf32> to vector<8x8xf32>
    %cst_308 = arith.constant dense<0.000000e+00> : vector<8x80xf32>
    %259 = tpu.matmul %258, %256, %cst_308 {dimension_numbers = #tpu.dot_dimension_numbers<[1], [0], [0], [1], [0, 0, 1, 1], [], []>} : vector<8x8xf32>, vector<8x80xf32>, vector<8x80xf32> -> vector<8x80xf32>
    %260 = arith.addf %255, %259 : vector<8x80xf32>
    %c0_309 = arith.constant 0 : index
    %c12 = arith.constant 12 : index
    %261 = vector.load %arg39[%c0_309, %c12] : memref<8x110xf32, #tpu.memory_space<vmem>>, vector<8x80xf32>
    %c1_310 = arith.constant 1 : index
    %c2_311 = arith.constant 2 : index
    %c0_312 = arith.constant 0 : index
    %c0_313 = arith.constant 0 : index
    %262 = vector.load %arg11[%c1_310, %c2_311, %c0_312, %c0_313] : memref<3x3x8x8xf32, #tpu.memory_space<vmem>>, vector<1x1x8x8xf32>
    %263 = vector.shape_cast %262 : vector<1x1x8x8xf32> to vector<8x8xf32>
    %cst_314 = arith.constant dense<0.000000e+00> : vector<8x80xf32>
    %264 = tpu.matmul %263, %261, %cst_314 {dimension_numbers = #tpu.dot_dimension_numbers<[1], [0], [0], [1], [0, 0, 1, 1], [], []>} : vector<8x8xf32>, vector<8x80xf32>, vector<8x80xf32> -> vector<8x80xf32>
    %265 = arith.addf %260, %264 : vector<8x80xf32>
    %c0_315 = arith.constant 0 : index
    %c20_316 = arith.constant 20 : index
    %266 = vector.load %arg39[%c0_315, %c20_316] : memref<8x110xf32, #tpu.memory_space<vmem>>, vector<8x80xf32>
    %c2_317 = arith.constant 2 : index
    %c0_318 = arith.constant 0 : index
    %c0_319 = arith.constant 0 : index
    %c0_320 = arith.constant 0 : index
    %267 = vector.load %arg11[%c2_317, %c0_318, %c0_319, %c0_320] : memref<3x3x8x8xf32, #tpu.memory_space<vmem>>, vector<1x1x8x8xf32>
    %268 = vector.shape_cast %267 : vector<1x1x8x8xf32> to vector<8x8xf32>
    %cst_321 = arith.constant dense<0.000000e+00> : vector<8x80xf32>
    %269 = tpu.matmul %268, %266, %cst_321 {dimension_numbers = #tpu.dot_dimension_numbers<[1], [0], [0], [1], [0, 0, 1, 1], [], []>} : vector<8x8xf32>, vector<8x80xf32>, vector<8x80xf32> -> vector<8x80xf32>
    %270 = arith.addf %265, %269 : vector<8x80xf32>
    %c0_322 = arith.constant 0 : index
    %c21 = arith.constant 21 : index
    %271 = vector.load %arg39[%c0_322, %c21] : memref<8x110xf32, #tpu.memory_space<vmem>>, vector<8x80xf32>
    %c2_323 = arith.constant 2 : index
    %c1_324 = arith.constant 1 : index
    %c0_325 = arith.constant 0 : index
    %c0_326 = arith.constant 0 : index
    %272 = vector.load %arg11[%c2_323, %c1_324, %c0_325, %c0_326] : memref<3x3x8x8xf32, #tpu.memory_space<vmem>>, vector<1x1x8x8xf32>
    %273 = vector.shape_cast %272 : vector<1x1x8x8xf32> to vector<8x8xf32>
    %cst_327 = arith.constant dense<0.000000e+00> : vector<8x80xf32>
    %274 = tpu.matmul %273, %271, %cst_327 {dimension_numbers = #tpu.dot_dimension_numbers<[1], [0], [0], [1], [0, 0, 1, 1], [], []>} : vector<8x8xf32>, vector<8x80xf32>, vector<8x80xf32> -> vector<8x80xf32>
    %275 = arith.addf %270, %274 : vector<8x80xf32>
    %c0_328 = arith.constant 0 : index
    %c22 = arith.constant 22 : index
    %276 = vector.load %arg39[%c0_328, %c22] : memref<8x110xf32, #tpu.memory_space<vmem>>, vector<8x80xf32>
    %c2_329 = arith.constant 2 : index
    %c2_330 = arith.constant 2 : index
    %c0_331 = arith.constant 0 : index
    %c0_332 = arith.constant 0 : index
    %277 = vector.load %arg11[%c2_329, %c2_330, %c0_331, %c0_332] : memref<3x3x8x8xf32, #tpu.memory_space<vmem>>, vector<1x1x8x8xf32>
    %278 = vector.shape_cast %277 : vector<1x1x8x8xf32> to vector<8x8xf32>
    %cst_333 = arith.constant dense<0.000000e+00> : vector<8x80xf32>
    %279 = tpu.matmul %278, %276, %cst_333 {dimension_numbers = #tpu.dot_dimension_numbers<[1], [0], [0], [1], [0, 0, 1, 1], [], []>} : vector<8x8xf32>, vector<8x80xf32>, vector<8x80xf32> -> vector<8x80xf32>
    %280 = arith.addf %275, %279 : vector<8x80xf32>
    %c0_334 = arith.constant 0 : index
    %c0_335 = arith.constant 0 : index
    %281 = vector.load %arg12[%c0_334, %c0_335] : memref<8x1xf32, #tpu.memory_space<vmem>>, vector<8x1xf32>
    %282 = vector.broadcast %281 : vector<8x1xf32> to vector<8x80xf32>
    %283 = arith.addf %280, %282 : vector<8x80xf32>
    %c0_336 = arith.constant 0 : index
    %c0_337 = arith.constant 0 : index
    %284 = vector.load %arg38[%c0_336, %c0_337] : memref<4x342xf32, #tpu.memory_space<vmem>>, vector<4x342xf32>
    %c0_338 = arith.constant 0 : index
    %c0_339 = arith.constant 0 : index
    %285 = vector.load %arg17[%c0_338, %c0_339] : memref<342x80xf32, #tpu.memory_space<vmem>>, vector<342x80xf32>
    %cst_340 = arith.constant dense<0.000000e+00> : vector<4x80xf32>
    %286 = tpu.matmul %284, %285, %cst_340 {dimension_numbers = #tpu.dot_dimension_numbers<[1], [0], [0], [1], [0, 0, 1, 1], [], []>} : vector<4x342xf32>, vector<342x80xf32>, vector<4x80xf32> -> vector<4x80xf32>
    %c0_341 = arith.constant 0 : index
    %c0_342 = arith.constant 0 : index
    %287 = vector.load %arg15[%c0_341, %c0_342] : memref<8x4xf32, #tpu.memory_space<vmem>>, vector<8x4xf32>
    %cst_343 = arith.constant dense<0.000000e+00> : vector<8x80xf32>
    %288 = tpu.matmul %287, %286, %cst_343 {dimension_numbers = #tpu.dot_dimension_numbers<[1], [0], [0], [1], [0, 0, 1, 1], [], []>} : vector<8x4xf32>, vector<4x80xf32>, vector<8x80xf32> -> vector<8x80xf32>
    %289 = arith.addf %283, %288 : vector<8x80xf32>
    %c0_344 = arith.constant 0 : index
    %c0_345 = arith.constant 0 : index
    %290 = vector.load %arg16[%c0_344, %c0_345] : memref<8x1xf32, #tpu.memory_space<vmem>>, vector<8x1xf32>
    %291 = vector.broadcast %290 : vector<8x1xf32> to vector<8x80xf32>
    %292 = arith.addf %289, %291 : vector<8x80xf32>
    %cst_346 = arith.constant 0.000000e+00 : f32
    %293 = vector.broadcast %cst_346 : f32 to vector<8x80xf32>
    %294 = arith.maximumf %292, %293 : vector<8x80xf32>
    %c0_347 = arith.constant 0 : index
    %c0_348 = arith.constant 0 : index
    %295 = vector.load %arg14[%c0_347, %c0_348] : memref<80x110xf32, #tpu.memory_space<vmem>>, vector<80x110xf32>
    %cst_349 = arith.constant dense<0.000000e+00> : vector<8x110xf32>
    %296 = tpu.matmul %294, %295, %cst_349 {dimension_numbers = #tpu.dot_dimension_numbers<[1], [0], [0], [1], [0, 0, 1, 1], [], []>} : vector<8x80xf32>, vector<80x110xf32>, vector<8x110xf32> -> vector<8x110xf32>
    %c0_350 = arith.constant 0 : index
    %c0_351 = arith.constant 0 : index
    %297 = vector.load %arg40[%c0_350, %c0_351] : memref<8x110xf32, #tpu.memory_space<vmem>>, vector<8x110xf32>
    tpu.vector_store %arg40[%c0_350, %c0_351], %296 {strides = array<i32>} : memref<8x110xf32, #tpu.memory_space<vmem>>, vector<8x110xf32>,
    %c0_352 = arith.constant 0 : index
    %c0_353 = arith.constant 0 : index
    %298 = vector.load %arg40[%c0_352, %c0_353] : memref<8x110xf32, #tpu.memory_space<vmem>>, vector<8x80xf32>
    %c0_354 = arith.constant 0 : index
    %c0_355 = arith.constant 0 : index
    %c0_356 = arith.constant 0 : index
    %c0_357 = arith.constant 0 : index
    %299 = vector.load %arg18[%c0_354, %c0_355, %c0_356, %c0_357] : memref<3x3x16x8xf32, #tpu.memory_space<vmem>>, vector<1x1x16x8xf32>
    %300 = vector.shape_cast %299 : vector<1x1x16x8xf32> to vector<16x8xf32>
    %cst_358 = arith.constant dense<0.000000e+00> : vector<16x80xf32>
    %301 = tpu.matmul %300, %298, %cst_358 {dimension_numbers = #tpu.dot_dimension_numbers<[1], [0], [0], [1], [0, 0, 1, 1], [], []>} : vector<16x8xf32>, vector<8x80xf32>, vector<16x80xf32> -> vector<16x80xf32>
    %c0_359 = arith.constant 0 : index
    %c1_360 = arith.constant 1 : index
    %302 = vector.load %arg40[%c0_359, %c1_360] : memref<8x110xf32, #tpu.memory_space<vmem>>, vector<8x80xf32>
    %c0_361 = arith.constant 0 : index
    %c1_362 = arith.constant 1 : index
    %c0_363 = arith.constant 0 : index
    %c0_364 = arith.constant 0 : index
    %303 = vector.load %arg18[%c0_361, %c1_362, %c0_363, %c0_364] : memref<3x3x16x8xf32, #tpu.memory_space<vmem>>, vector<1x1x16x8xf32>
    %304 = vector.shape_cast %303 : vector<1x1x16x8xf32> to vector<16x8xf32>
    %cst_365 = arith.constant dense<0.000000e+00> : vector<16x80xf32>
    %305 = tpu.matmul %304, %302, %cst_365 {dimension_numbers = #tpu.dot_dimension_numbers<[1], [0], [0], [1], [0, 0, 1, 1], [], []>} : vector<16x8xf32>, vector<8x80xf32>, vector<16x80xf32> -> vector<16x80xf32>
    %306 = arith.addf %301, %305 : vector<16x80xf32>
    %c0_366 = arith.constant 0 : index
    %c2_367 = arith.constant 2 : index
    %307 = vector.load %arg40[%c0_366, %c2_367] : memref<8x110xf32, #tpu.memory_space<vmem>>, vector<8x80xf32>
    %c0_368 = arith.constant 0 : index
    %c2_369 = arith.constant 2 : index
    %c0_370 = arith.constant 0 : index
    %c0_371 = arith.constant 0 : index
    %308 = vector.load %arg18[%c0_368, %c2_369, %c0_370, %c0_371] : memref<3x3x16x8xf32, #tpu.memory_space<vmem>>, vector<1x1x16x8xf32>
    %309 = vector.shape_cast %308 : vector<1x1x16x8xf32> to vector<16x8xf32>
    %cst_372 = arith.constant dense<0.000000e+00> : vector<16x80xf32>
    %310 = tpu.matmul %309, %307, %cst_372 {dimension_numbers = #tpu.dot_dimension_numbers<[1], [0], [0], [1], [0, 0, 1, 1], [], []>} : vector<16x8xf32>, vector<8x80xf32>, vector<16x80xf32> -> vector<16x80xf32>
    %311 = arith.addf %306, %310 : vector<16x80xf32>
    %c0_373 = arith.constant 0 : index
    %c10_374 = arith.constant 10 : index
    %312 = vector.load %arg40[%c0_373, %c10_374] : memref<8x110xf32, #tpu.memory_space<vmem>>, vector<8x80xf32>
    %c1_375 = arith.constant 1 : index
    %c0_376 = arith.constant 0 : index
    %c0_377 = arith.constant 0 : index
    %c0_378 = arith.constant 0 : index
    %313 = vector.load %arg18[%c1_375, %c0_376, %c0_377, %c0_378] : memref<3x3x16x8xf32, #tpu.memory_space<vmem>>, vector<1x1x16x8xf32>
    %314 = vector.shape_cast %313 : vector<1x1x16x8xf32> to vector<16x8xf32>
    %cst_379 = arith.constant dense<0.000000e+00> : vector<16x80xf32>
    %315 = tpu.matmul %314, %312, %cst_379 {dimension_numbers = #tpu.dot_dimension_numbers<[1], [0], [0], [1], [0, 0, 1, 1], [], []>} : vector<16x8xf32>, vector<8x80xf32>, vector<16x80xf32> -> vector<16x80xf32>
    %316 = arith.addf %311, %315 : vector<16x80xf32>
    %c0_380 = arith.constant 0 : index
    %c11_381 = arith.constant 11 : index
    %317 = vector.load %arg40[%c0_380, %c11_381] : memref<8x110xf32, #tpu.memory_space<vmem>>, vector<8x80xf32>
    %c1_382 = arith.constant 1 : index
    %c1_383 = arith.constant 1 : index
    %c0_384 = arith.constant 0 : index
    %c0_385 = arith.constant 0 : index
    %318 = vector.load %arg18[%c1_382, %c1_383, %c0_384, %c0_385] : memref<3x3x16x8xf32, #tpu.memory_space<vmem>>, vector<1x1x16x8xf32>
    %319 = vector.shape_cast %318 : vector<1x1x16x8xf32> to vector<16x8xf32>
    %cst_386 = arith.constant dense<0.000000e+00> : vector<16x80xf32>
    %320 = tpu.matmul %319, %317, %cst_386 {dimension_numbers = #tpu.dot_dimension_numbers<[1], [0], [0], [1], [0, 0, 1, 1], [], []>} : vector<16x8xf32>, vector<8x80xf32>, vector<16x80xf32> -> vector<16x80xf32>
    %321 = arith.addf %316, %320 : vector<16x80xf32>
    %c0_387 = arith.constant 0 : index
    %c12_388 = arith.constant 12 : index
    %322 = vector.load %arg40[%c0_387, %c12_388] : memref<8x110xf32, #tpu.memory_space<vmem>>, vector<8x80xf32>
    %c1_389 = arith.constant 1 : index
    %c2_390 = arith.constant 2 : index
    %c0_391 = arith.constant 0 : index
    %c0_392 = arith.constant 0 : index
    %323 = vector.load %arg18[%c1_389, %c2_390, %c0_391, %c0_392] : memref<3x3x16x8xf32, #tpu.memory_space<vmem>>, vector<1x1x16x8xf32>
    %324 = vector.shape_cast %323 : vector<1x1x16x8xf32> to vector<16x8xf32>
    %cst_393 = arith.constant dense<0.000000e+00> : vector<16x80xf32>
    %325 = tpu.matmul %324, %322, %cst_393 {dimension_numbers = #tpu.dot_dimension_numbers<[1], [0], [0], [1], [0, 0, 1, 1], [], []>} : vector<16x8xf32>, vector<8x80xf32>, vector<16x80xf32> -> vector<16x80xf32>
    %326 = arith.addf %321, %325 : vector<16x80xf32>
    %c0_394 = arith.constant 0 : index
    %c20_395 = arith.constant 20 : index
    %327 = vector.load %arg40[%c0_394, %c20_395] : memref<8x110xf32, #tpu.memory_space<vmem>>, vector<8x80xf32>
    %c2_396 = arith.constant 2 : index
    %c0_397 = arith.constant 0 : index
    %c0_398 = arith.constant 0 : index
    %c0_399 = arith.constant 0 : index
    %328 = vector.load %arg18[%c2_396, %c0_397, %c0_398, %c0_399] : memref<3x3x16x8xf32, #tpu.memory_space<vmem>>, vector<1x1x16x8xf32>
    %329 = vector.shape_cast %328 : vector<1x1x16x8xf32> to vector<16x8xf32>
    %cst_400 = arith.constant dense<0.000000e+00> : vector<16x80xf32>
    %330 = tpu.matmul %329, %327, %cst_400 {dimension_numbers = #tpu.dot_dimension_numbers<[1], [0], [0], [1], [0, 0, 1, 1], [], []>} : vector<16x8xf32>, vector<8x80xf32>, vector<16x80xf32> -> vector<16x80xf32>
    %331 = arith.addf %326, %330 : vector<16x80xf32>
    %c0_401 = arith.constant 0 : index
    %c21_402 = arith.constant 21 : index
    %332 = vector.load %arg40[%c0_401, %c21_402] : memref<8x110xf32, #tpu.memory_space<vmem>>, vector<8x80xf32>
    %c2_403 = arith.constant 2 : index
    %c1_404 = arith.constant 1 : index
    %c0_405 = arith.constant 0 : index
    %c0_406 = arith.constant 0 : index
    %333 = vector.load %arg18[%c2_403, %c1_404, %c0_405, %c0_406] : memref<3x3x16x8xf32, #tpu.memory_space<vmem>>, vector<1x1x16x8xf32>
    %334 = vector.shape_cast %333 : vector<1x1x16x8xf32> to vector<16x8xf32>
    %cst_407 = arith.constant dense<0.000000e+00> : vector<16x80xf32>
    %335 = tpu.matmul %334, %332, %cst_407 {dimension_numbers = #tpu.dot_dimension_numbers<[1], [0], [0], [1], [0, 0, 1, 1], [], []>} : vector<16x8xf32>, vector<8x80xf32>, vector<16x80xf32> -> vector<16x80xf32>
    %336 = arith.addf %331, %335 : vector<16x80xf32>
    %c0_408 = arith.constant 0 : index
    %c22_409 = arith.constant 22 : index
    %337 = vector.load %arg40[%c0_408, %c22_409] : memref<8x110xf32, #tpu.memory_space<vmem>>, vector<8x80xf32>
    %c2_410 = arith.constant 2 : index
    %c2_411 = arith.constant 2 : index
    %c0_412 = arith.constant 0 : index
    %c0_413 = arith.constant 0 : index
    %338 = vector.load %arg18[%c2_410, %c2_411, %c0_412, %c0_413] : memref<3x3x16x8xf32, #tpu.memory_space<vmem>>, vector<1x1x16x8xf32>
    %339 = vector.shape_cast %338 : vector<1x1x16x8xf32> to vector<16x8xf32>
    %cst_414 = arith.constant dense<0.000000e+00> : vector<16x80xf32>
    %340 = tpu.matmul %339, %337, %cst_414 {dimension_numbers = #tpu.dot_dimension_numbers<[1], [0], [0], [1], [0, 0, 1, 1], [], []>} : vector<16x8xf32>, vector<8x80xf32>, vector<16x80xf32> -> vector<16x80xf32>
    %341 = arith.addf %336, %340 : vector<16x80xf32>
    %c0_415 = arith.constant 0 : index
    %c0_416 = arith.constant 0 : index
    %342 = vector.load %arg19[%c0_415, %c0_416] : memref<16x1xf32, #tpu.memory_space<vmem>>, vector<16x1xf32>
    %343 = vector.broadcast %342 : vector<16x1xf32> to vector<16x80xf32>
    %344 = arith.addf %341, %343 : vector<16x80xf32>
    %cst_417 = arith.constant 0.000000e+00 : f32
    %345 = vector.broadcast %cst_417 : f32 to vector<16x80xf32>
    %346 = arith.maximumf %344, %345 : vector<16x80xf32>
    %c0_418 = arith.constant 0 : index
    %c0_419 = arith.constant 0 : index
    %347 = vector.load %arg22[%c0_418, %c0_419] : memref<80x42xf32, #tpu.memory_space<vmem>>, vector<80x42xf32>
    %cst_420 = arith.constant dense<0.000000e+00> : vector<16x42xf32>
    %348 = tpu.matmul %346, %347, %cst_420 {dimension_numbers = #tpu.dot_dimension_numbers<[1], [0], [0], [1], [0, 0, 1, 1], [], []>} : vector<16x80xf32>, vector<80x42xf32>, vector<16x42xf32> -> vector<16x42xf32>
    %c0_421 = arith.constant 0 : index
    %c0_422 = arith.constant 0 : index
    %349 = vector.load %arg41[%c0_421, %c0_422] : memref<16x42xf32, #tpu.memory_space<vmem>>, vector<16x42xf32>
    tpu.vector_store %arg41[%c0_421, %c0_422], %348 {strides = array<i32>} : memref<16x42xf32, #tpu.memory_space<vmem>>, vector<16x42xf32>,
    %c0_423 = arith.constant 0 : index
    %c0_424 = arith.constant 0 : index
    %350 = vector.load %arg41[%c0_423, %c0_424] : memref<16x42xf32, #tpu.memory_space<vmem>>, vector<16x24xf32>
    %c0_425 = arith.constant 0 : index
    %c0_426 = arith.constant 0 : index
    %c0_427 = arith.constant 0 : index
    %c0_428 = arith.constant 0 : index
    %351 = vector.load %arg20[%c0_425, %c0_426, %c0_427, %c0_428] : memref<3x3x16x16xf32, #tpu.memory_space<vmem>>, vector<1x1x16x16xf32>
    %352 = vector.shape_cast %351 : vector<1x1x16x16xf32> to vector<16x16xf32>
    %cst_429 = arith.constant dense<0.000000e+00> : vector<16x24xf32>
    %353 = tpu.matmul %352, %350, %cst_429 {dimension_numbers = #tpu.dot_dimension_numbers<[1], [0], [0], [1], [0, 0, 1, 1], [], []>} : vector<16x16xf32>, vector<16x24xf32>, vector<16x24xf32> -> vector<16x24xf32>
    %c0_430 = arith.constant 0 : index
    %c1_431 = arith.constant 1 : index
    %354 = vector.load %arg41[%c0_430, %c1_431] : memref<16x42xf32, #tpu.memory_space<vmem>>, vector<16x24xf32>
    %c0_432 = arith.constant 0 : index
    %c1_433 = arith.constant 1 : index
    %c0_434 = arith.constant 0 : index
    %c0_435 = arith.constant 0 : index
    %355 = vector.load %arg20[%c0_432, %c1_433, %c0_434, %c0_435] : memref<3x3x16x16xf32, #tpu.memory_space<vmem>>, vector<1x1x16x16xf32>
    %356 = vector.shape_cast %355 : vector<1x1x16x16xf32> to vector<16x16xf32>
    %cst_436 = arith.constant dense<0.000000e+00> : vector<16x24xf32>
    %357 = tpu.matmul %356, %354, %cst_436 {dimension_numbers = #tpu.dot_dimension_numbers<[1], [0], [0], [1], [0, 0, 1, 1], [], []>} : vector<16x16xf32>, vector<16x24xf32>, vector<16x24xf32> -> vector<16x24xf32>
    %358 = arith.addf %353, %357 : vector<16x24xf32>
    %c0_437 = arith.constant 0 : index
    %c2_438 = arith.constant 2 : index
    %359 = vector.load %arg41[%c0_437, %c2_438] : memref<16x42xf32, #tpu.memory_space<vmem>>, vector<16x24xf32>
    %c0_439 = arith.constant 0 : index
    %c2_440 = arith.constant 2 : index
    %c0_441 = arith.constant 0 : index
    %c0_442 = arith.constant 0 : index
    %360 = vector.load %arg20[%c0_439, %c2_440, %c0_441, %c0_442] : memref<3x3x16x16xf32, #tpu.memory_space<vmem>>, vector<1x1x16x16xf32>
    %361 = vector.shape_cast %360 : vector<1x1x16x16xf32> to vector<16x16xf32>
    %cst_443 = arith.constant dense<0.000000e+00> : vector<16x24xf32>
    %362 = tpu.matmul %361, %359, %cst_443 {dimension_numbers = #tpu.dot_dimension_numbers<[1], [0], [0], [1], [0, 0, 1, 1], [], []>} : vector<16x16xf32>, vector<16x24xf32>, vector<16x24xf32> -> vector<16x24xf32>
    %363 = arith.addf %358, %362 : vector<16x24xf32>
    %c0_444 = arith.constant 0 : index
    %c6 = arith.constant 6 : index
    %364 = vector.load %arg41[%c0_444, %c6] : memref<16x42xf32, #tpu.memory_space<vmem>>, vector<16x24xf32>
    %c1_445 = arith.constant 1 : index
    %c0_446 = arith.constant 0 : index
    %c0_447 = arith.constant 0 : index
    %c0_448 = arith.constant 0 : index
    %365 = vector.load %arg20[%c1_445, %c0_446, %c0_447, %c0_448] : memref<3x3x16x16xf32, #tpu.memory_space<vmem>>, vector<1x1x16x16xf32>
    %366 = vector.shape_cast %365 : vector<1x1x16x16xf32> to vector<16x16xf32>
    %cst_449 = arith.constant dense<0.000000e+00> : vector<16x24xf32>
    %367 = tpu.matmul %366, %364, %cst_449 {dimension_numbers = #tpu.dot_dimension_numbers<[1], [0], [0], [1], [0, 0, 1, 1], [], []>} : vector<16x16xf32>, vector<16x24xf32>, vector<16x24xf32> -> vector<16x24xf32>
    %368 = arith.addf %363, %367 : vector<16x24xf32>
    %c0_450 = arith.constant 0 : index
    %c7 = arith.constant 7 : index
    %369 = vector.load %arg41[%c0_450, %c7] : memref<16x42xf32, #tpu.memory_space<vmem>>, vector<16x24xf32>
    %c1_451 = arith.constant 1 : index
    %c1_452 = arith.constant 1 : index
    %c0_453 = arith.constant 0 : index
    %c0_454 = arith.constant 0 : index
    %370 = vector.load %arg20[%c1_451, %c1_452, %c0_453, %c0_454] : memref<3x3x16x16xf32, #tpu.memory_space<vmem>>, vector<1x1x16x16xf32>
    %371 = vector.shape_cast %370 : vector<1x1x16x16xf32> to vector<16x16xf32>
    %cst_455 = arith.constant dense<0.000000e+00> : vector<16x24xf32>
    %372 = tpu.matmul %371, %369, %cst_455 {dimension_numbers = #tpu.dot_dimension_numbers<[1], [0], [0], [1], [0, 0, 1, 1], [], []>} : vector<16x16xf32>, vector<16x24xf32>, vector<16x24xf32> -> vector<16x24xf32>
    %373 = arith.addf %368, %372 : vector<16x24xf32>
    %c0_456 = arith.constant 0 : index
    %c8 = arith.constant 8 : index
    %374 = vector.load %arg41[%c0_456, %c8] : memref<16x42xf32, #tpu.memory_space<vmem>>, vector<16x24xf32>
    %c1_457 = arith.constant 1 : index
    %c2_458 = arith.constant 2 : index
    %c0_459 = arith.constant 0 : index
    %c0_460 = arith.constant 0 : index
    %375 = vector.load %arg20[%c1_457, %c2_458, %c0_459, %c0_460] : memref<3x3x16x16xf32, #tpu.memory_space<vmem>>, vector<1x1x16x16xf32>
    %376 = vector.shape_cast %375 : vector<1x1x16x16xf32> to vector<16x16xf32>
    %cst_461 = arith.constant dense<0.000000e+00> : vector<16x24xf32>
    %377 = tpu.matmul %376, %374, %cst_461 {dimension_numbers = #tpu.dot_dimension_numbers<[1], [0], [0], [1], [0, 0, 1, 1], [], []>} : vector<16x16xf32>, vector<16x24xf32>, vector<16x24xf32> -> vector<16x24xf32>
    %378 = arith.addf %373, %377 : vector<16x24xf32>
    %c0_462 = arith.constant 0 : index
    %c12_463 = arith.constant 12 : index
    %379 = vector.load %arg41[%c0_462, %c12_463] : memref<16x42xf32, #tpu.memory_space<vmem>>, vector<16x24xf32>
    %c2_464 = arith.constant 2 : index
    %c0_465 = arith.constant 0 : index
    %c0_466 = arith.constant 0 : index
    %c0_467 = arith.constant 0 : index
    %380 = vector.load %arg20[%c2_464, %c0_465, %c0_466, %c0_467] : memref<3x3x16x16xf32, #tpu.memory_space<vmem>>, vector<1x1x16x16xf32>
    %381 = vector.shape_cast %380 : vector<1x1x16x16xf32> to vector<16x16xf32>
    %cst_468 = arith.constant dense<0.000000e+00> : vector<16x24xf32>
    %382 = tpu.matmul %381, %379, %cst_468 {dimension_numbers = #tpu.dot_dimension_numbers<[1], [0], [0], [1], [0, 0, 1, 1], [], []>} : vector<16x16xf32>, vector<16x24xf32>, vector<16x24xf32> -> vector<16x24xf32>
    %383 = arith.addf %378, %382 : vector<16x24xf32>
    %c0_469 = arith.constant 0 : index
    %c13 = arith.constant 13 : index
    %384 = vector.load %arg41[%c0_469, %c13] : memref<16x42xf32, #tpu.memory_space<vmem>>, vector<16x24xf32>
    %c2_470 = arith.constant 2 : index
    %c1_471 = arith.constant 1 : index
    %c0_472 = arith.constant 0 : index
    %c0_473 = arith.constant 0 : index
    %385 = vector.load %arg20[%c2_470, %c1_471, %c0_472, %c0_473] : memref<3x3x16x16xf32, #tpu.memory_space<vmem>>, vector<1x1x16x16xf32>
    %386 = vector.shape_cast %385 : vector<1x1x16x16xf32> to vector<16x16xf32>
    %cst_474 = arith.constant dense<0.000000e+00> : vector<16x24xf32>
    %387 = tpu.matmul %386, %384, %cst_474 {dimension_numbers = #tpu.dot_dimension_numbers<[1], [0], [0], [1], [0, 0, 1, 1], [], []>} : vector<16x16xf32>, vector<16x24xf32>, vector<16x24xf32> -> vector<16x24xf32>
    %388 = arith.addf %383, %387 : vector<16x24xf32>
    %c0_475 = arith.constant 0 : index
    %c14 = arith.constant 14 : index
    %389 = vector.load %arg41[%c0_475, %c14] : memref<16x42xf32, #tpu.memory_space<vmem>>, vector<16x24xf32>
    %c2_476 = arith.constant 2 : index
    %c2_477 = arith.constant 2 : index
    %c0_478 = arith.constant 0 : index
    %c0_479 = arith.constant 0 : index
    %390 = vector.load %arg20[%c2_476, %c2_477, %c0_478, %c0_479] : memref<3x3x16x16xf32, #tpu.memory_space<vmem>>, vector<1x1x16x16xf32>
    %391 = vector.shape_cast %390 : vector<1x1x16x16xf32> to vector<16x16xf32>
    %cst_480 = arith.constant dense<0.000000e+00> : vector<16x24xf32>
    %392 = tpu.matmul %391, %389, %cst_480 {dimension_numbers = #tpu.dot_dimension_numbers<[1], [0], [0], [1], [0, 0, 1, 1], [], []>} : vector<16x16xf32>, vector<16x24xf32>, vector<16x24xf32> -> vector<16x24xf32>
    %393 = arith.addf %388, %392 : vector<16x24xf32>
    %c0_481 = arith.constant 0 : index
    %c0_482 = arith.constant 0 : index
    %394 = vector.load %arg21[%c0_481, %c0_482] : memref<16x1xf32, #tpu.memory_space<vmem>>, vector<16x1xf32>
    %395 = vector.broadcast %394 : vector<16x1xf32> to vector<16x24xf32>
    %396 = arith.addf %393, %395 : vector<16x24xf32>
    %c0_483 = arith.constant 0 : index
    %c0_484 = arith.constant 0 : index
    %397 = vector.load %arg40[%c0_483, %c0_484] : memref<8x110xf32, #tpu.memory_space<vmem>>, vector<8x110xf32>
    %c0_485 = arith.constant 0 : index
    %c0_486 = arith.constant 0 : index
    %398 = vector.load %arg26[%c0_485, %c0_486] : memref<110x24xf32, #tpu.memory_space<vmem>>, vector<110x24xf32>
    %cst_487 = arith.constant dense<0.000000e+00> : vector<8x24xf32>
    %399 = tpu.matmul %397, %398, %cst_487 {dimension_numbers = #tpu.dot_dimension_numbers<[1], [0], [0], [1], [0, 0, 1, 1], [], []>} : vector<8x110xf32>, vector<110x24xf32>, vector<8x24xf32> -> vector<8x24xf32>
    %c0_488 = arith.constant 0 : index
    %c0_489 = arith.constant 0 : index
    %400 = vector.load %arg24[%c0_488, %c0_489] : memref<16x8xf32, #tpu.memory_space<vmem>>, vector<16x8xf32>
    %cst_490 = arith.constant dense<0.000000e+00> : vector<16x24xf32>
    %401 = tpu.matmul %400, %399, %cst_490 {dimension_numbers = #tpu.dot_dimension_numbers<[1], [0], [0], [1], [0, 0, 1, 1], [], []>} : vector<16x8xf32>, vector<8x24xf32>, vector<16x24xf32> -> vector<16x24xf32>
    %402 = arith.addf %396, %401 : vector<16x24xf32>
    %c0_491 = arith.constant 0 : index
    %c0_492 = arith.constant 0 : index
    %403 = vector.load %arg25[%c0_491, %c0_492] : memref<16x1xf32, #tpu.memory_space<vmem>>, vector<16x1xf32>
    %404 = vector.broadcast %403 : vector<16x1xf32> to vector<16x24xf32>
    %405 = arith.addf %402, %404 : vector<16x24xf32>
    %cst_493 = arith.constant 0.000000e+00 : f32
    %406 = vector.broadcast %cst_493 : f32 to vector<16x24xf32>
    %407 = arith.maximumf %405, %406 : vector<16x24xf32>
    %c0_494 = arith.constant 0 : index
    %c0_495 = arith.constant 0 : index
    %408 = vector.load %arg23[%c0_494, %c0_495] : memref<24x42xf32, #tpu.memory_space<vmem>>, vector<24x42xf32>
    %cst_496 = arith.constant dense<0.000000e+00> : vector<16x42xf32>
    %409 = tpu.matmul %407, %408, %cst_496 {dimension_numbers = #tpu.dot_dimension_numbers<[1], [0], [0], [1], [0, 0, 1, 1], [], []>} : vector<16x24xf32>, vector<24x42xf32>, vector<16x42xf32> -> vector<16x42xf32>
    %c0_497 = arith.constant 0 : index
    %c0_498 = arith.constant 0 : index
    %410 = vector.load %arg42[%c0_497, %c0_498] : memref<16x42xf32, #tpu.memory_space<vmem>>, vector<16x42xf32>
    tpu.vector_store %arg42[%c0_497, %c0_498], %409 {strides = array<i32>} : memref<16x42xf32, #tpu.memory_space<vmem>>, vector<16x42xf32>,
    %c0_499 = arith.constant 0 : index
    %c0_500 = arith.constant 0 : index
    %411 = vector.load %arg42[%c0_499, %c0_500] : memref<16x42xf32, #tpu.memory_space<vmem>>, vector<16x24xf32>
    %c0_501 = arith.constant 0 : index
    %c0_502 = arith.constant 0 : index
    %c0_503 = arith.constant 0 : index
    %c0_504 = arith.constant 0 : index
    %412 = vector.load %arg27[%c0_501, %c0_502, %c0_503, %c0_504] : memref<3x3x32x16xf32, #tpu.memory_space<vmem>>, vector<1x1x32x16xf32>
    %413 = vector.shape_cast %412 : vector<1x1x32x16xf32> to vector<32x16xf32>
    %cst_505 = arith.constant dense<0.000000e+00> : vector<32x24xf32>
    %414 = tpu.matmul %413, %411, %cst_505 {dimension_numbers = #tpu.dot_dimension_numbers<[1], [0], [0], [1], [0, 0, 1, 1], [], []>} : vector<32x16xf32>, vector<16x24xf32>, vector<32x24xf32> -> vector<32x24xf32>
    %c0_506 = arith.constant 0 : index
    %c1_507 = arith.constant 1 : index
    %415 = vector.load %arg42[%c0_506, %c1_507] : memref<16x42xf32, #tpu.memory_space<vmem>>, vector<16x24xf32>
    %c0_508 = arith.constant 0 : index
    %c1_509 = arith.constant 1 : index
    %c0_510 = arith.constant 0 : index
    %c0_511 = arith.constant 0 : index
    %416 = vector.load %arg27[%c0_508, %c1_509, %c0_510, %c0_511] : memref<3x3x32x16xf32, #tpu.memory_space<vmem>>, vector<1x1x32x16xf32>
    %417 = vector.shape_cast %416 : vector<1x1x32x16xf32> to vector<32x16xf32>
    %cst_512 = arith.constant dense<0.000000e+00> : vector<32x24xf32>
    %418 = tpu.matmul %417, %415, %cst_512 {dimension_numbers = #tpu.dot_dimension_numbers<[1], [0], [0], [1], [0, 0, 1, 1], [], []>} : vector<32x16xf32>, vector<16x24xf32>, vector<32x24xf32> -> vector<32x24xf32>
    %419 = arith.addf %414, %418 : vector<32x24xf32>
    %c0_513 = arith.constant 0 : index
    %c2_514 = arith.constant 2 : index
    %420 = vector.load %arg42[%c0_513, %c2_514] : memref<16x42xf32, #tpu.memory_space<vmem>>, vector<16x24xf32>
    %c0_515 = arith.constant 0 : index
    %c2_516 = arith.constant 2 : index
    %c0_517 = arith.constant 0 : index
    %c0_518 = arith.constant 0 : index
    %421 = vector.load %arg27[%c0_515, %c2_516, %c0_517, %c0_518] : memref<3x3x32x16xf32, #tpu.memory_space<vmem>>, vector<1x1x32x16xf32>
    %422 = vector.shape_cast %421 : vector<1x1x32x16xf32> to vector<32x16xf32>
    %cst_519 = arith.constant dense<0.000000e+00> : vector<32x24xf32>
    %423 = tpu.matmul %422, %420, %cst_519 {dimension_numbers = #tpu.dot_dimension_numbers<[1], [0], [0], [1], [0, 0, 1, 1], [], []>} : vector<32x16xf32>, vector<16x24xf32>, vector<32x24xf32> -> vector<32x24xf32>
    %424 = arith.addf %419, %423 : vector<32x24xf32>
    %c0_520 = arith.constant 0 : index
    %c6_521 = arith.constant 6 : index
    %425 = vector.load %arg42[%c0_520, %c6_521] : memref<16x42xf32, #tpu.memory_space<vmem>>, vector<16x24xf32>
    %c1_522 = arith.constant 1 : index
    %c0_523 = arith.constant 0 : index
    %c0_524 = arith.constant 0 : index
    %c0_525 = arith.constant 0 : index
    %426 = vector.load %arg27[%c1_522, %c0_523, %c0_524, %c0_525] : memref<3x3x32x16xf32, #tpu.memory_space<vmem>>, vector<1x1x32x16xf32>
    %427 = vector.shape_cast %426 : vector<1x1x32x16xf32> to vector<32x16xf32>
    %cst_526 = arith.constant dense<0.000000e+00> : vector<32x24xf32>
    %428 = tpu.matmul %427, %425, %cst_526 {dimension_numbers = #tpu.dot_dimension_numbers<[1], [0], [0], [1], [0, 0, 1, 1], [], []>} : vector<32x16xf32>, vector<16x24xf32>, vector<32x24xf32> -> vector<32x24xf32>
    %429 = arith.addf %424, %428 : vector<32x24xf32>
    %c0_527 = arith.constant 0 : index
    %c7_528 = arith.constant 7 : index
    %430 = vector.load %arg42[%c0_527, %c7_528] : memref<16x42xf32, #tpu.memory_space<vmem>>, vector<16x24xf32>
    %c1_529 = arith.constant 1 : index
    %c1_530 = arith.constant 1 : index
    %c0_531 = arith.constant 0 : index
    %c0_532 = arith.constant 0 : index
    %431 = vector.load %arg27[%c1_529, %c1_530, %c0_531, %c0_532] : memref<3x3x32x16xf32, #tpu.memory_space<vmem>>, vector<1x1x32x16xf32>
    %432 = vector.shape_cast %431 : vector<1x1x32x16xf32> to vector<32x16xf32>
    %cst_533 = arith.constant dense<0.000000e+00> : vector<32x24xf32>
    %433 = tpu.matmul %432, %430, %cst_533 {dimension_numbers = #tpu.dot_dimension_numbers<[1], [0], [0], [1], [0, 0, 1, 1], [], []>} : vector<32x16xf32>, vector<16x24xf32>, vector<32x24xf32> -> vector<32x24xf32>
    %434 = arith.addf %429, %433 : vector<32x24xf32>
    %c0_534 = arith.constant 0 : index
    %c8_535 = arith.constant 8 : index
    %435 = vector.load %arg42[%c0_534, %c8_535] : memref<16x42xf32, #tpu.memory_space<vmem>>, vector<16x24xf32>
    %c1_536 = arith.constant 1 : index
    %c2_537 = arith.constant 2 : index
    %c0_538 = arith.constant 0 : index
    %c0_539 = arith.constant 0 : index
    %436 = vector.load %arg27[%c1_536, %c2_537, %c0_538, %c0_539] : memref<3x3x32x16xf32, #tpu.memory_space<vmem>>, vector<1x1x32x16xf32>
    %437 = vector.shape_cast %436 : vector<1x1x32x16xf32> to vector<32x16xf32>
    %cst_540 = arith.constant dense<0.000000e+00> : vector<32x24xf32>
    %438 = tpu.matmul %437, %435, %cst_540 {dimension_numbers = #tpu.dot_dimension_numbers<[1], [0], [0], [1], [0, 0, 1, 1], [], []>} : vector<32x16xf32>, vector<16x24xf32>, vector<32x24xf32> -> vector<32x24xf32>
    %439 = arith.addf %434, %438 : vector<32x24xf32>
    %c0_541 = arith.constant 0 : index
    %c12_542 = arith.constant 12 : index
    %440 = vector.load %arg42[%c0_541, %c12_542] : memref<16x42xf32, #tpu.memory_space<vmem>>, vector<16x24xf32>
    %c2_543 = arith.constant 2 : index
    %c0_544 = arith.constant 0 : index
    %c0_545 = arith.constant 0 : index
    %c0_546 = arith.constant 0 : index
    %441 = vector.load %arg27[%c2_543, %c0_544, %c0_545, %c0_546] : memref<3x3x32x16xf32, #tpu.memory_space<vmem>>, vector<1x1x32x16xf32>
    %442 = vector.shape_cast %441 : vector<1x1x32x16xf32> to vector<32x16xf32>
    %cst_547 = arith.constant dense<0.000000e+00> : vector<32x24xf32>
    %443 = tpu.matmul %442, %440, %cst_547 {dimension_numbers = #tpu.dot_dimension_numbers<[1], [0], [0], [1], [0, 0, 1, 1], [], []>} : vector<32x16xf32>, vector<16x24xf32>, vector<32x24xf32> -> vector<32x24xf32>
    %444 = arith.addf %439, %443 : vector<32x24xf32>
    %c0_548 = arith.constant 0 : index
    %c13_549 = arith.constant 13 : index
    %445 = vector.load %arg42[%c0_548, %c13_549] : memref<16x42xf32, #tpu.memory_space<vmem>>, vector<16x24xf32>
    %c2_550 = arith.constant 2 : index
    %c1_551 = arith.constant 1 : index
    %c0_552 = arith.constant 0 : index
    %c0_553 = arith.constant 0 : index
    %446 = vector.load %arg27[%c2_550, %c1_551, %c0_552, %c0_553] : memref<3x3x32x16xf32, #tpu.memory_space<vmem>>, vector<1x1x32x16xf32>
    %447 = vector.shape_cast %446 : vector<1x1x32x16xf32> to vector<32x16xf32>
    %cst_554 = arith.constant dense<0.000000e+00> : vector<32x24xf32>
    %448 = tpu.matmul %447, %445, %cst_554 {dimension_numbers = #tpu.dot_dimension_numbers<[1], [0], [0], [1], [0, 0, 1, 1], [], []>} : vector<32x16xf32>, vector<16x24xf32>, vector<32x24xf32> -> vector<32x24xf32>
    %449 = arith.addf %444, %448 : vector<32x24xf32>
    %c0_555 = arith.constant 0 : index
    %c14_556 = arith.constant 14 : index
    %450 = vector.load %arg42[%c0_555, %c14_556] : memref<16x42xf32, #tpu.memory_space<vmem>>, vector<16x24xf32>
    %c2_557 = arith.constant 2 : index
    %c2_558 = arith.constant 2 : index
    %c0_559 = arith.constant 0 : index
    %c0_560 = arith.constant 0 : index
    %451 = vector.load %arg27[%c2_557, %c2_558, %c0_559, %c0_560] : memref<3x3x32x16xf32, #tpu.memory_space<vmem>>, vector<1x1x32x16xf32>
    %452 = vector.shape_cast %451 : vector<1x1x32x16xf32> to vector<32x16xf32>
    %cst_561 = arith.constant dense<0.000000e+00> : vector<32x24xf32>
    %453 = tpu.matmul %452, %450, %cst_561 {dimension_numbers = #tpu.dot_dimension_numbers<[1], [0], [0], [1], [0, 0, 1, 1], [], []>} : vector<32x16xf32>, vector<16x24xf32>, vector<32x24xf32> -> vector<32x24xf32>
    %454 = arith.addf %449, %453 : vector<32x24xf32>
    %c0_562 = arith.constant 0 : index
    %c0_563 = arith.constant 0 : index
    %455 = vector.load %arg28[%c0_562, %c0_563] : memref<32x1xf32, #tpu.memory_space<vmem>>, vector<32x1xf32>
    %456 = vector.broadcast %455 : vector<32x1xf32> to vector<32x24xf32>
    %457 = arith.addf %454, %456 : vector<32x24xf32>
    %cst_564 = arith.constant 0.000000e+00 : f32
    %458 = vector.broadcast %cst_564 : f32 to vector<32x24xf32>
    %459 = arith.maximumf %457, %458 : vector<32x24xf32>
    %c0_565 = arith.constant 0 : index
    %c0_566 = arith.constant 0 : index
    %460 = vector.load %arg31[%c0_565, %c0_566] : memref<24x20xf32, #tpu.memory_space<vmem>>, vector<24x20xf32>
    %cst_567 = arith.constant dense<0.000000e+00> : vector<32x20xf32>
    %461 = tpu.matmul %459, %460, %cst_567 {dimension_numbers = #tpu.dot_dimension_numbers<[1], [0], [0], [1], [0, 0, 1, 1], [], []>} : vector<32x24xf32>, vector<24x20xf32>, vector<32x20xf32> -> vector<32x20xf32>
    %c0_568 = arith.constant 0 : index
    %c0_569 = arith.constant 0 : index
    %462 = vector.load %arg43[%c0_568, %c0_569] : memref<32x20xf32, #tpu.memory_space<vmem>>, vector<32x20xf32>
    tpu.vector_store %arg43[%c0_568, %c0_569], %461 {strides = array<i32>} : memref<32x20xf32, #tpu.memory_space<vmem>>, vector<32x20xf32>,
    %c0_570 = arith.constant 0 : index
    %c0_571 = arith.constant 0 : index
    %463 = vector.load %arg43[%c0_570, %c0_571] : memref<32x20xf32, #tpu.memory_space<vmem>>, vector<32x8xf32>
    %c0_572 = arith.constant 0 : index
    %c0_573 = arith.constant 0 : index
    %c0_574 = arith.constant 0 : index
    %c0_575 = arith.constant 0 : index
    %464 = vector.load %arg29[%c0_572, %c0_573, %c0_574, %c0_575] : memref<3x3x32x32xf32, #tpu.memory_space<vmem>>, vector<1x1x32x32xf32>
    %465 = vector.shape_cast %464 : vector<1x1x32x32xf32> to vector<32x32xf32>
    %cst_576 = arith.constant dense<0.000000e+00> : vector<32x8xf32>
    %466 = tpu.matmul %465, %463, %cst_576 {dimension_numbers = #tpu.dot_dimension_numbers<[1], [0], [0], [1], [0, 0, 1, 1], [], []>} : vector<32x32xf32>, vector<32x8xf32>, vector<32x8xf32> -> vector<32x8xf32>
    %c0_577 = arith.constant 0 : index
    %c1_578 = arith.constant 1 : index
    %467 = vector.load %arg43[%c0_577, %c1_578] : memref<32x20xf32, #tpu.memory_space<vmem>>, vector<32x8xf32>
    %c0_579 = arith.constant 0 : index
    %c1_580 = arith.constant 1 : index
    %c0_581 = arith.constant 0 : index
    %c0_582 = arith.constant 0 : index
    %468 = vector.load %arg29[%c0_579, %c1_580, %c0_581, %c0_582] : memref<3x3x32x32xf32, #tpu.memory_space<vmem>>, vector<1x1x32x32xf32>
    %469 = vector.shape_cast %468 : vector<1x1x32x32xf32> to vector<32x32xf32>
    %cst_583 = arith.constant dense<0.000000e+00> : vector<32x8xf32>
    %470 = tpu.matmul %469, %467, %cst_583 {dimension_numbers = #tpu.dot_dimension_numbers<[1], [0], [0], [1], [0, 0, 1, 1], [], []>} : vector<32x32xf32>, vector<32x8xf32>, vector<32x8xf32> -> vector<32x8xf32>
    %471 = arith.addf %466, %470 : vector<32x8xf32>
    %c0_584 = arith.constant 0 : index
    %c2_585 = arith.constant 2 : index
    %472 = vector.load %arg43[%c0_584, %c2_585] : memref<32x20xf32, #tpu.memory_space<vmem>>, vector<32x8xf32>
    %c0_586 = arith.constant 0 : index
    %c2_587 = arith.constant 2 : index
    %c0_588 = arith.constant 0 : index
    %c0_589 = arith.constant 0 : index
    %473 = vector.load %arg29[%c0_586, %c2_587, %c0_588, %c0_589] : memref<3x3x32x32xf32, #tpu.memory_space<vmem>>, vector<1x1x32x32xf32>
    %474 = vector.shape_cast %473 : vector<1x1x32x32xf32> to vector<32x32xf32>
    %cst_590 = arith.constant dense<0.000000e+00> : vector<32x8xf32>
    %475 = tpu.matmul %474, %472, %cst_590 {dimension_numbers = #tpu.dot_dimension_numbers<[1], [0], [0], [1], [0, 0, 1, 1], [], []>} : vector<32x32xf32>, vector<32x8xf32>, vector<32x8xf32> -> vector<32x8xf32>
    %476 = arith.addf %471, %475 : vector<32x8xf32>
    %c0_591 = arith.constant 0 : index
    %c4 = arith.constant 4 : index
    %477 = vector.load %arg43[%c0_591, %c4] : memref<32x20xf32, #tpu.memory_space<vmem>>, vector<32x8xf32>
    %c1_592 = arith.constant 1 : index
    %c0_593 = arith.constant 0 : index
    %c0_594 = arith.constant 0 : index
    %c0_595 = arith.constant 0 : index
    %478 = vector.load %arg29[%c1_592, %c0_593, %c0_594, %c0_595] : memref<3x3x32x32xf32, #tpu.memory_space<vmem>>, vector<1x1x32x32xf32>
    %479 = vector.shape_cast %478 : vector<1x1x32x32xf32> to vector<32x32xf32>
    %cst_596 = arith.constant dense<0.000000e+00> : vector<32x8xf32>
    %480 = tpu.matmul %479, %477, %cst_596 {dimension_numbers = #tpu.dot_dimension_numbers<[1], [0], [0], [1], [0, 0, 1, 1], [], []>} : vector<32x32xf32>, vector<32x8xf32>, vector<32x8xf32> -> vector<32x8xf32>
    %481 = arith.addf %476, %480 : vector<32x8xf32>
    %c0_597 = arith.constant 0 : index
    %c5 = arith.constant 5 : index
    %482 = vector.load %arg43[%c0_597, %c5] : memref<32x20xf32, #tpu.memory_space<vmem>>, vector<32x8xf32>
    %c1_598 = arith.constant 1 : index
    %c1_599 = arith.constant 1 : index
    %c0_600 = arith.constant 0 : index
    %c0_601 = arith.constant 0 : index
    %483 = vector.load %arg29[%c1_598, %c1_599, %c0_600, %c0_601] : memref<3x3x32x32xf32, #tpu.memory_space<vmem>>, vector<1x1x32x32xf32>
    %484 = vector.shape_cast %483 : vector<1x1x32x32xf32> to vector<32x32xf32>
    %cst_602 = arith.constant dense<0.000000e+00> : vector<32x8xf32>
    %485 = tpu.matmul %484, %482, %cst_602 {dimension_numbers = #tpu.dot_dimension_numbers<[1], [0], [0], [1], [0, 0, 1, 1], [], []>} : vector<32x32xf32>, vector<32x8xf32>, vector<32x8xf32> -> vector<32x8xf32>
    %486 = arith.addf %481, %485 : vector<32x8xf32>
    %c0_603 = arith.constant 0 : index
    %c6_604 = arith.constant 6 : index
    %487 = vector.load %arg43[%c0_603, %c6_604] : memref<32x20xf32, #tpu.memory_space<vmem>>, vector<32x8xf32>
    %c1_605 = arith.constant 1 : index
    %c2_606 = arith.constant 2 : index
    %c0_607 = arith.constant 0 : index
    %c0_608 = arith.constant 0 : index
    %488 = vector.load %arg29[%c1_605, %c2_606, %c0_607, %c0_608] : memref<3x3x32x32xf32, #tpu.memory_space<vmem>>, vector<1x1x32x32xf32>
    %489 = vector.shape_cast %488 : vector<1x1x32x32xf32> to vector<32x32xf32>
    %cst_609 = arith.constant dense<0.000000e+00> : vector<32x8xf32>
    %490 = tpu.matmul %489, %487, %cst_609 {dimension_numbers = #tpu.dot_dimension_numbers<[1], [0], [0], [1], [0, 0, 1, 1], [], []>} : vector<32x32xf32>, vector<32x8xf32>, vector<32x8xf32> -> vector<32x8xf32>
    %491 = arith.addf %486, %490 : vector<32x8xf32>
    %c0_610 = arith.constant 0 : index
    %c8_611 = arith.constant 8 : index
    %492 = vector.load %arg43[%c0_610, %c8_611] : memref<32x20xf32, #tpu.memory_space<vmem>>, vector<32x8xf32>
    %c2_612 = arith.constant 2 : index
    %c0_613 = arith.constant 0 : index
    %c0_614 = arith.constant 0 : index
    %c0_615 = arith.constant 0 : index
    %493 = vector.load %arg29[%c2_612, %c0_613, %c0_614, %c0_615] : memref<3x3x32x32xf32, #tpu.memory_space<vmem>>, vector<1x1x32x32xf32>
    %494 = vector.shape_cast %493 : vector<1x1x32x32xf32> to vector<32x32xf32>
    %cst_616 = arith.constant dense<0.000000e+00> : vector<32x8xf32>
    %495 = tpu.matmul %494, %492, %cst_616 {dimension_numbers = #tpu.dot_dimension_numbers<[1], [0], [0], [1], [0, 0, 1, 1], [], []>} : vector<32x32xf32>, vector<32x8xf32>, vector<32x8xf32> -> vector<32x8xf32>
    %496 = arith.addf %491, %495 : vector<32x8xf32>
    %c0_617 = arith.constant 0 : index
    %c9 = arith.constant 9 : index
    %497 = vector.load %arg43[%c0_617, %c9] : memref<32x20xf32, #tpu.memory_space<vmem>>, vector<32x8xf32>
    %c2_618 = arith.constant 2 : index
    %c1_619 = arith.constant 1 : index
    %c0_620 = arith.constant 0 : index
    %c0_621 = arith.constant 0 : index
    %498 = vector.load %arg29[%c2_618, %c1_619, %c0_620, %c0_621] : memref<3x3x32x32xf32, #tpu.memory_space<vmem>>, vector<1x1x32x32xf32>
    %499 = vector.shape_cast %498 : vector<1x1x32x32xf32> to vector<32x32xf32>
    %cst_622 = arith.constant dense<0.000000e+00> : vector<32x8xf32>
    %500 = tpu.matmul %499, %497, %cst_622 {dimension_numbers = #tpu.dot_dimension_numbers<[1], [0], [0], [1], [0, 0, 1, 1], [], []>} : vector<32x32xf32>, vector<32x8xf32>, vector<32x8xf32> -> vector<32x8xf32>
    %501 = arith.addf %496, %500 : vector<32x8xf32>
    %c0_623 = arith.constant 0 : index
    %c10_624 = arith.constant 10 : index
    %502 = vector.load %arg43[%c0_623, %c10_624] : memref<32x20xf32, #tpu.memory_space<vmem>>, vector<32x8xf32>
    %c2_625 = arith.constant 2 : index
    %c2_626 = arith.constant 2 : index
    %c0_627 = arith.constant 0 : index
    %c0_628 = arith.constant 0 : index
    %503 = vector.load %arg29[%c2_625, %c2_626, %c0_627, %c0_628] : memref<3x3x32x32xf32, #tpu.memory_space<vmem>>, vector<1x1x32x32xf32>
    %504 = vector.shape_cast %503 : vector<1x1x32x32xf32> to vector<32x32xf32>
    %cst_629 = arith.constant dense<0.000000e+00> : vector<32x8xf32>
    %505 = tpu.matmul %504, %502, %cst_629 {dimension_numbers = #tpu.dot_dimension_numbers<[1], [0], [0], [1], [0, 0, 1, 1], [], []>} : vector<32x32xf32>, vector<32x8xf32>, vector<32x8xf32> -> vector<32x8xf32>
    %506 = arith.addf %501, %505 : vector<32x8xf32>
    %c0_630 = arith.constant 0 : index
    %c0_631 = arith.constant 0 : index
    %507 = vector.load %arg30[%c0_630, %c0_631] : memref<32x1xf32, #tpu.memory_space<vmem>>, vector<32x1xf32>
    %508 = vector.broadcast %507 : vector<32x1xf32> to vector<32x8xf32>
    %509 = arith.addf %506, %508 : vector<32x8xf32>
    %c0_632 = arith.constant 0 : index
    %c0_633 = arith.constant 0 : index
    %510 = vector.load %arg42[%c0_632, %c0_633] : memref<16x42xf32, #tpu.memory_space<vmem>>, vector<16x42xf32>
    %c0_634 = arith.constant 0 : index
    %c0_635 = arith.constant 0 : index
    %511 = vector.load %arg34[%c0_634, %c0_635] : memref<42x8xf32, #tpu.memory_space<vmem>>, vector<42x8xf32>
    %cst_636 = arith.constant dense<0.000000e+00> : vector<16x8xf32>
    %512 = tpu.matmul %510, %511, %cst_636 {dimension_numbers = #tpu.dot_dimension_numbers<[1], [0], [0], [1], [0, 0, 1, 1], [], []>} : vector<16x42xf32>, vector<42x8xf32>, vector<16x8xf32> -> vector<16x8xf32>
    %c0_637 = arith.constant 0 : index
    %c0_638 = arith.constant 0 : index
    %513 = vector.load %arg32[%c0_637, %c0_638] : memref<32x16xf32, #tpu.memory_space<vmem>>, vector<32x16xf32>
    %cst_639 = arith.constant dense<0.000000e+00> : vector<32x8xf32>
    %514 = tpu.matmul %513, %512, %cst_639 {dimension_numbers = #tpu.dot_dimension_numbers<[1], [0], [0], [1], [0, 0, 1, 1], [], []>} : vector<32x16xf32>, vector<16x8xf32>, vector<32x8xf32> -> vector<32x8xf32>
    %515 = arith.addf %509, %514 : vector<32x8xf32>
    %c0_640 = arith.constant 0 : index
    %c0_641 = arith.constant 0 : index
    %516 = vector.load %arg33[%c0_640, %c0_641] : memref<32x1xf32, #tpu.memory_space<vmem>>, vector<32x1xf32>
    %517 = vector.broadcast %516 : vector<32x1xf32> to vector<32x8xf32>
    %518 = arith.addf %515, %517 : vector<32x8xf32>
    %cst_642 = arith.constant 0.000000e+00 : f32
    %519 = vector.broadcast %cst_642 : f32 to vector<32x8xf32>
    %520 = arith.maximumf %518, %519 : vector<32x8xf32>
    %521 = vector.extract_strided_slice %520 {offsets = [0, 0], sizes = [32, 2], strides = [1, 1]} : vector<32x8xf32> to vector<32x2xf32>
    %c0_643 = arith.constant 0 : index
    %c0_644 = arith.constant 0 : index
    %c0_645 = arith.constant 0 : index
    %c0_646 = arith.constant 0 : index
    %522 = vector.load %arg35[%c0_643, %c0_644, %c0_645, %c0_646] : memref<1x32x2x2xf32, #tpu.memory_space<vmem>>, vector<1x32x1x2xf32>
    %523 = vector.shape_cast %522 : vector<1x32x1x2xf32> to vector<32x2xf32>
    %524 = vector.shape_cast %521 : vector<32x2xf32> to vector<1x32x1x2xf32>
    tpu.vector_store %arg35[%c0_643, %c0_644, %c0_645, %c0_646], %524 {strides = array<i32>} : memref<1x32x2x2xf32, #tpu.memory_space<vmem>>, vector<1x32x1x2xf32>,
    %525 = vector.extract_strided_slice %520 {offsets = [0, 4], sizes = [32, 2], strides = [1, 1]} : vector<32x8xf32> to vector<32x2xf32>
    %c0_647 = arith.constant 0 : index
    %c0_648 = arith.constant 0 : index
    %c1_649 = arith.constant 1 : index
    %c0_650 = arith.constant 0 : index
    %526 = vector.load %arg35[%c0_647, %c0_648, %c1_649, %c0_650] : memref<1x32x2x2xf32, #tpu.memory_space<vmem>>, vector<1x32x1x2xf32>
    %527 = vector.shape_cast %526 : vector<1x32x1x2xf32> to vector<32x2xf32>
    %528 = vector.shape_cast %525 : vector<32x2xf32> to vector<1x32x1x2xf32>
    tpu.vector_store %arg35[%c0_647, %c0_648, %c1_649, %c0_650], %528 {strides = array<i32>} : memref<1x32x2x2xf32, #tpu.memory_space<vmem>>, vector<1x32x1x2xf32>,
    return
  }
  func.func @transform_0(%arg0: i32) -> (i32, i32, i32) {
    %c0_i32 = arith.constant 0 : i32
    %c0_i32_0 = arith.constant 0 : i32
    %c0_i32_1 = arith.constant 0 : i32
    return %arg0, %c0_i32, %c0_i32_0 : i32, i32, i32
  }
  func.func @transform_1(%arg0: i32) -> (i32, i32, i32, i32) {
    %c0_i32 = arith.constant 0 : i32
    %c0_i32_0 = arith.constant 0 : i32
    %c0_i32_1 = arith.constant 0 : i32
    %c0_i32_2 = arith.constant 0 : i32
    %c0_i32_3 = arith.constant 0 : i32
    return %c0_i32, %c0_i32_0, %c0_i32_1, %c0_i32_2 : i32, i32, i32, i32
  }
  func.func @transform_2(%arg0: i32) -> (i32, i32) {
    %c0_i32 = arith.constant 0 : i32
    %c0_i32_0 = arith.constant 0 : i32
    %c0_i32_1 = arith.constant 0 : i32
    return %c0_i32, %c0_i32_0 : i32, i32
  }
  func.func @transform_3(%arg0: i32) -> (i32, i32) {
    %c0_i32 = arith.constant 0 : i32
    %c0_i32_0 = arith.constant 0 : i32
    %c0_i32_1 = arith.constant 0 : i32
    return %c0_i32, %c0_i32_0 : i32, i32
  }
  func.func @transform_4(%arg0: i32) -> (i32, i32, i32, i32) {
    %c0_i32 = arith.constant 0 : i32
    %c0_i32_0 = arith.constant 0 : i32
    %c0_i32_1 = arith.constant 0 : i32
    %c0_i32_2 = arith.constant 0 : i32
    %c0_i32_3 = arith.constant 0 : i32
    return %c0_i32, %c0_i32_0, %c0_i32_1, %c0_i32_2 : i32, i32, i32, i32
  }
  func.func @transform_5(%arg0: i32) -> (i32, i32) {
    %c0_i32 = arith.constant 0 : i32
    %c0_i32_0 = arith.constant 0 : i32
    %c0_i32_1 = arith.constant 0 : i32
    return %c0_i32, %c0_i32_0 : i32, i32
  }
  func.func @transform_6(%arg0: i32) -> (i32, i32, i32, i32) {
    %c0_i32 = arith.constant 0 : i32
    %c0_i32_0 = arith.constant 0 : i32
    %c0_i32_1 = arith.constant 0 : i32
    %c0_i32_2 = arith.constant 0 : i32
    %c0_i32_3 = arith.constant 0 : i32
    return %c0_i32, %c0_i32_0, %c0_i32_1, %c0_i32_2 : i32, i32, i32, i32
  }
  func.func @transform_7(%arg0: i32) -> (i32, i32) {
    %c0_i32 = arith.constant 0 : i32
    %c0_i32_0 = arith.constant 0 : i32
    %c0_i32_1 = arith.constant 0 : i32
    return %c0_i32, %c0_i32_0 : i32, i32
  }
  func.func @transform_8(%arg0: i32) -> (i32, i32, i32, i32) {
    %c0_i32 = arith.constant 0 : i32
    %c0_i32_0 = arith.constant 0 : i32
    %c0_i32_1 = arith.constant 0 : i32
    %c0_i32_2 = arith.constant 0 : i32
    %c0_i32_3 = arith.constant 0 : i32
    return %c0_i32, %c0_i32_0, %c0_i32_1, %c0_i32_2 : i32, i32, i32, i32
  }
  func.func @transform_9(%arg0: i32) -> (i32, i32) {
    %c0_i32 = arith.constant 0 : i32
    %c0_i32_0 = arith.constant 0 : i32
    %c0_i32_1 = arith.constant 0 : i32
    return %c0_i32, %c0_i32_0 : i32, i32
  }
  func.func @transform_10(%arg0: i32) -> (i32, i32, i32, i32) {
    %c0_i32 = arith.constant 0 : i32
    %c0_i32_0 = arith.constant 0 : i32
    %c0_i32_1 = arith.constant 0 : i32
    %c0_i32_2 = arith.constant 0 : i32
    %c0_i32_3 = arith.constant 0 : i32
    return %c0_i32, %c0_i32_0, %c0_i32_1, %c0_i32_2 : i32, i32, i32, i32
  }
  func.func @transform_11(%arg0: i32) -> (i32, i32) {
    %c0_i32 = arith.constant 0 : i32
    %c0_i32_0 = arith.constant 0 : i32
    %c0_i32_1 = arith.constant 0 : i32
    return %c0_i32, %c0_i32_0 : i32, i32
  }
  func.func @transform_12(%arg0: i32) -> (i32, i32) {
    %c0_i32 = arith.constant 0 : i32
    %c0_i32_0 = arith.constant 0 : i32
    %c0_i32_1 = arith.constant 0 : i32
    return %c0_i32, %c0_i32_0 : i32, i32
  }
  func.func @transform_13(%arg0: i32) -> (i32, i32) {
    %c0_i32 = arith.constant 0 : i32
    %c0_i32_0 = arith.constant 0 : i32
    %c0_i32_1 = arith.constant 0 : i32
    return %c0_i32, %c0_i32_0 : i32, i32
  }
  func.func @transform_14(%arg0: i32) -> (i32, i32) {
    %c0_i32 = arith.constant 0 : i32
    %c0_i32_0 = arith.constant 0 : i32
    %c0_i32_1 = arith.constant 0 : i32
    return %c0_i32, %c0_i32_0 : i32, i32
  }
  func.func @transform_15(%arg0: i32) -> (i32, i32) {
    %c0_i32 = arith.constant 0 : i32
    %c0_i32_0 = arith.constant 0 : i32
    %c0_i32_1 = arith.constant 0 : i32
    return %c0_i32, %c0_i32_0 : i32, i32
  }
  func.func @transform_16(%arg0: i32) -> (i32, i32) {
    %c0_i32 = arith.constant 0 : i32
    %c0_i32_0 = arith.constant 0 : i32
    %c0_i32_1 = arith.constant 0 : i32
    return %c0_i32, %c0_i32_0 : i32, i32
  }
  func.func @transform_17(%arg0: i32) -> (i32, i32, i32, i32) {
    %c0_i32 = arith.constant 0 : i32
    %c0_i32_0 = arith.constant 0 : i32
    %c0_i32_1 = arith.constant 0 : i32
    %c0_i32_2 = arith.constant 0 : i32
    %c0_i32_3 = arith.constant 0 : i32
    return %c0_i32, %c0_i32_0, %c0_i32_1, %c0_i32_2 : i32, i32, i32, i32
  }
  func.func @transform_18(%arg0: i32) -> (i32, i32) {
    %c0_i32 = arith.constant 0 : i32
    %c0_i32_0 = arith.constant 0 : i32
    %c0_i32_1 = arith.constant 0 : i32
    return %c0_i32, %c0_i32_0 : i32, i32
  }
  func.func @transform_19(%arg0: i32) -> (i32, i32, i32, i32) {
    %c0_i32 = arith.constant 0 : i32
    %c0_i32_0 = arith.constant 0 : i32
    %c0_i32_1 = arith.constant 0 : i32
    %c0_i32_2 = arith.constant 0 : i32
    %c0_i32_3 = arith.constant 0 : i32
    return %c0_i32, %c0_i32_0, %c0_i32_1, %c0_i32_2 : i32, i32, i32, i32
  }
  func.func @transform_20(%arg0: i32) -> (i32, i32) {
    %c0_i32 = arith.constant 0 : i32
    %c0_i32_0 = arith.constant 0 : i32
    %c0_i32_1 = arith.constant 0 : i32
    return %c0_i32, %c0_i32_0 : i32, i32
  }
  func.func @transform_21(%arg0: i32) -> (i32, i32) {
    %c0_i32 = arith.constant 0 : i32
    %c0_i32_0 = arith.constant 0 : i32
    %c0_i32_1 = arith.constant 0 : i32
    return %c0_i32, %c0_i32_0 : i32, i32
  }
  func.func @transform_22(%arg0: i32) -> (i32, i32) {
    %c0_i32 = arith.constant 0 : i32
    %c0_i32_0 = arith.constant 0 : i32
    %c0_i32_1 = arith.constant 0 : i32
    return %c0_i32, %c0_i32_0 : i32, i32
  }
  func.func @transform_23(%arg0: i32) -> (i32, i32) {
    %c0_i32 = arith.constant 0 : i32
    %c0_i32_0 = arith.constant 0 : i32
    %c0_i32_1 = arith.constant 0 : i32
    return %c0_i32, %c0_i32_0 : i32, i32
  }
  func.func @transform_24(%arg0: i32) -> (i32, i32) {
    %c0_i32 = arith.constant 0 : i32
    %c0_i32_0 = arith.constant 0 : i32
    %c0_i32_1 = arith.constant 0 : i32
    return %c0_i32, %c0_i32_0 : i32, i32
  }
  func.func @transform_25(%arg0: i32) -> (i32, i32) {
    %c0_i32 = arith.constant 0 : i32
    %c0_i32_0 = arith.constant 0 : i32
    %c0_i32_1 = arith.constant 0 : i32
    return %c0_i32, %c0_i32_0 : i32, i32
  }
  func.func @transform_26(%arg0: i32) -> (i32, i32, i32, i32) {
    %c0_i32 = arith.constant 0 : i32
    %c0_i32_0 = arith.constant 0 : i32
    %c0_i32_1 = arith.constant 0 : i32
    %c0_i32_2 = arith.constant 0 : i32
    %c0_i32_3 = arith.constant 0 : i32
    return %c0_i32, %c0_i32_0, %c0_i32_1, %c0_i32_2 : i32, i32, i32, i32
  }
  func.func @transform_27(%arg0: i32) -> (i32, i32) {
    %c0_i32 = arith.constant 0 : i32
    %c0_i32_0 = arith.constant 0 : i32
    %c0_i32_1 = arith.constant 0 : i32
    return %c0_i32, %c0_i32_0 : i32, i32
  }
  func.func @transform_28(%arg0: i32) -> (i32, i32, i32, i32) {
    %c0_i32 = arith.constant 0 : i32
    %c0_i32_0 = arith.constant 0 : i32
    %c0_i32_1 = arith.constant 0 : i32
    %c0_i32_2 = arith.constant 0 : i32
    %c0_i32_3 = arith.constant 0 : i32
    return %c0_i32, %c0_i32_0, %c0_i32_1, %c0_i32_2 : i32, i32, i32, i32
  }
  func.func @transform_29(%arg0: i32) -> (i32, i32) {
    %c0_i32 = arith.constant 0 : i32
    %c0_i32_0 = arith.constant 0 : i32
    %c0_i32_1 = arith.constant 0 : i32
    return %c0_i32, %c0_i32_0 : i32, i32
  }
  func.func @transform_30(%arg0: i32) -> (i32, i32) {
    %c0_i32 = arith.constant 0 : i32
    %c0_i32_0 = arith.constant 0 : i32
    %c0_i32_1 = arith.constant 0 : i32
    return %c0_i32, %c0_i32_0 : i32, i32
  }
  func.func @transform_31(%arg0: i32) -> (i32, i32) {
    %c0_i32 = arith.constant 0 : i32
    %c0_i32_0 = arith.constant 0 : i32
    %c0_i32_1 = arith.constant 0 : i32
    return %c0_i32, %c0_i32_0 : i32, i32
  }
  func.func @transform_32(%arg0: i32) -> (i32, i32) {
    %c0_i32 = arith.constant 0 : i32
    %c0_i32_0 = arith.constant 0 : i32
    %c0_i32_1 = arith.constant 0 : i32
    return %c0_i32, %c0_i32_0 : i32, i32
  }
  func.func @transform_33(%arg0: i32) -> (i32, i32) {
    %c0_i32 = arith.constant 0 : i32
    %c0_i32_0 = arith.constant 0 : i32
    %c0_i32_1 = arith.constant 0 : i32
    return %c0_i32, %c0_i32_0 : i32, i32
  }
  func.func @transform_34(%arg0: i32) -> (i32, i32, i32, i32) {
    %c0_i32 = arith.constant 0 : i32
    %c0_i32_0 = arith.constant 0 : i32
    %c0_i32_1 = arith.constant 0 : i32
    %c0_i32_2 = arith.constant 0 : i32
    return %arg0, %c0_i32, %c0_i32_0, %c0_i32_1 : i32, i32, i32, i32
  }
}

</mosaic_0001>

<bundles_post_ra>
// kernel: forward.1
= control target key start
LH: loop header
LB: loop body
LE: loop exit
PB: predicated region body
PF: predicated region fallthrough
CT: control target
= control target key end

     0   :  { %s17878_s6 = smov 1   ;;  %s17879_s10 = smov 2   ;;  %s19980_s0 = inlined_call_operand.smem [shape: u32[35], index: -1, kind: input, shape index: {}] }
   0x1   :  { %s17982_s5 = sld [smem:[%s19980_s0]]   ;;  %s17880_s14 = smov 3  }
   0x2   :  { %s17987_s9 = sld [smem:[%s19980_s0 + %s17878_s6]]   ;;  %s17881_s18 = smov 4  }
   0x3   :  { %s17992_s13 = sld [smem:[%s19980_s0 + %s17879_s10]]   ;;  %s17882_s22 = smov 5  }
   0x4   :  { %s17997_s17 = sld [smem:[%s19980_s0 + %s17880_s14]]   ;;  %s17883_s26 = smov 6  }
   0x5   :  { %s18002_s21 = sld [smem:[%s19980_s0 + %s17881_s18]]   ;;  %s17884_s30 = smov 7  }
   0x6   :  { %s18007_s25 = sld [smem:[%s19980_s0 + %s17882_s22]]   ;;  %s17885_s4 = smov 8  }
   0x7   :  { %20043 = sst [smem:[#allocation69_spill]] %s17982_s5  ;;  %s17886_s10 = smov 9  }
   0x8   :  { %20044 = sst [smem:[#allocation70_spill]] %s17987_s9  ;;  %s17887_s15 = smov 10  }
   0x9   :  { %20045 = sst [smem:[#allocation71_spill]] %s17992_s13  ;;  %s17888_s20 = smov 11  }
   0xa   :  { %20046 = sst [smem:[#allocation72_spill]] %s17997_s17  ;;  %s17890_s1 = smov 13  }
   0xb   :  { %s18012_s29 = sld [smem:[%s19980_s0 + %s17883_s26]]   ;;  %s17889_s26 = smov 12  }
   0xc   :  { %20047 = sst [smem:[#allocation73_spill]] %s18007_s25  ;;  %s17891_s7 = smov 14  }
   0xd   :  { %s18017_s3 = sld [smem:[%s19980_s0 + %s17884_s30]]   ;;  %s17893_s22 = smov 16  }
   0xe   :  { %s18022_s8 = sld [smem:[%s19980_s0 + %s17885_s4]]   ;;  %s17894_s28 = smov 17  }
   0xf   :  { %s18027_s14 = sld [smem:[%s19980_s0 + %s17886_s10]]  }
  0x10   :  { %s18032_s19 = sld [smem:[%s19980_s0 + %s17887_s15]]   ;;  %s17892_s15 = smov 15  }
  0x11   :  { %s18037_s24 = sld [smem:[%s19980_s0 + %s17888_s20]]  }
  0x12   :  { %s18042_s30 = sld [smem:[%s19980_s0 + %s17889_s26]]  }
  0x13   :  { %20048 = sst [smem:[#allocation74_spill]] %s18017_s3 }
  0x14   :  { %20049 = sst [smem:[#allocation75_spill]] %s18022_s8 }
  0x15   :  { %20050 = sst [smem:[#allocation76_spill]] %s18027_s14 }
  0x16   :  { %s18047_s6 = sld [smem:[%s19980_s0 + %s17890_s1]]  }
  0x17   :  { %20051 = sst [smem:[#allocation77_spill]] %s18037_s24 }
  0x18   :  { %s18052_s12 = sld [smem:[%s19980_s0 + %s17891_s7]]   ;;  %s17895_s7 = smov 18  }
  0x19   :  { %s18057_s20 = sld [smem:[%s19980_s0 + %s17892_s15]]   ;;  %s17896_s15 = smov 19  }
  0x1a   :  { %s18062_s27 = sld [smem:[%s19980_s0 + %s17893_s22]]   ;;  %s17897_s22 = smov 20  }
  0x1b   :  { %s18067_s4 = sld [smem:[%s19980_s0 + %s17894_s28]]   ;;  %s17898_s28 = smov 21  }
  0x1c   :  { %20052 = sst [smem:[#allocation78_spill]] %s18047_s6 }
  0x1d   :  { %s18072_s5 = sld [smem:[%s19980_s0 + %s17895_s7]]   ;;  %s17899_s7 = smov 22  }
  0x1e   :  { %20053 = sst [smem:[#allocation79_spill]] %s18052_s12 }
  0x1f   :  { %20054 = sst [smem:[#allocation80_spill]] %s18057_s20 }
  0x20   :  { %s18077_s20 = sld [smem:[%s19980_s0 + %s17896_s15]]   ;;  %s17900_s15 = smov 23  }
  0x21   :  { %20055 = sst [smem:[#allocation81_spill]] %s18067_s4 }
  0x22   :  { %s18082_s6 = sld [smem:[%s19980_s0 + %s17897_s22]]   ;;  %s17901_s22 = smov 24  }
  0x23   :  { %20056 = sst [smem:[#allocation82_spill]] %s18072_s5 }
  0x24   :  { %s18087_s4 = sld [smem:[%s19980_s0 + %s17898_s28]]   ;;  %s17902_s28 = smov 25  }
  0x25   :  { %s18092_s24 = sld [smem:[%s19980_s0 + %s17899_s7]]   ;;  %s17903_s7 = smov 26  }
  0x26   :  { %20057 = sst [smem:[#allocation83_spill]] %s18077_s20 }
  0x27   :  { %s18097_s20 = sld [smem:[%s19980_s0 + %s17900_s15]]   ;;  %s17904_s15 = smov 27  }
  0x28   :  { %20058 = sst [smem:[#allocation84_spill]] %s18082_s6 }
  0x29   :  { %s18102_s6 = sld [smem:[%s19980_s0 + %s17901_s22]]   ;;  %s17905_s22 = smov 28  }
  0x2a   :  { %20059 = sst [smem:[#allocation85_spill]] %s18087_s4 }
  0x2b   :  { %20060 = sst [smem:[#allocation86_spill]] %s18092_s24 }
  0x2c   :  { %s18107_s14 = sld [smem:[%s19980_s0 + %s17902_s28]]   ;;  %s17906_s28 = smov 29  }
  0x2d   :  { %s18112_s24 = sld [smem:[%s19980_s0 + %s17903_s7]]   ;;  %s17907_s7 = smov 30  }
  0x2e   :  { %s18117_s3 = sld [smem:[%s19980_s0 + %s17904_s15]]   ;;  %s17908_s15 = smov 31  }
  0x2f   :  { %20061 = sst [smem:[#allocation87_spill]] %s18102_s6 }
  0x30   :  { %s18122_s6 = sld [smem:[%s19980_s0 + %s17905_s22]]   ;;  %s17909_s22 = smov 32  }
  0x31   :  { %s18127_s25 = sld [smem:[%s19980_s0 + %s17906_s28]]   ;;  %s17910_s28 = smov 33  }
  0x32   :  { %s18137_s17 = sld [smem:[%s19980_s0 + %s17908_s15]]  }
  0x33   :  { %20062 = sst [smem:[#allocation88_spill]] %s18112_s24 }
  0x34   :  { %20063 = sst [smem:[#allocation89_spill]] %s18117_s3 }
  0x35   :  { %s18132_s24 = sld [smem:[%s19980_s0 + %s17907_s7]]   ;;  %s17911_s7 = smov 34  }
  0x36   :  { %20064 = sst [smem:[#allocation90_spill]] %s18122_s6 }
  0x37   :  { %s18142_s6 = sld [smem:[%s19980_s0 + %s17909_s22]]  }
  0x38   :  { %s18147_s9 = sld [smem:[%s19980_s0 + %s17910_s28]]  }
  0x3b   :  { %20065 = sst [smem:[#allocation91_spill]] %s18132_s24 }
  0x3c   :  { %s18152_s24 = sld [smem:[%s19980_s0 + %s17911_s7]]  }
  0x3d   :  { %74 = vsyncpa [#allocation11], 0 }
  0x3e   :  { %75 = vsyncpa [#allocation13], 0 }
  0x3f   :  { %76 = vsyncpa [#allocation16], 0 }
  0x40   :  { %77 = vsyncpa [#allocation19], 0 }
  0x41   :  { %78 = vsyncpa [#allocation22], 0 }
  0x42   :  { %79 = vsyncpa [#allocation25], 0 }
  0x43   :  { %80 = vsyncpa [#allocation28], 0 }
  0x44   :  { %81 = vsyncpa [#allocation31], 0 }
  0x45   :  { %82 = vsyncpa [#allocation34], 0 }
  0x46   :  { %83 = vsyncpa [#allocation37], 0 }
  0x47   :  { %84 = vsyncpa [#allocation40], 0 }
  0x48   :  { %85 = vsyncpa [#allocation43], 0 }
  0x49   :  { %86 = vsyncpa [#allocation46], 0 }
  0x4a   :  { %87 = vsyncpa [#allocation49], 0 }
  0x4b   :  { %88 = vsyncpa [#allocation52], 0  ;;  %s18154_s15 = smov 0  }
  0x4c LB: > { %s20066_s12 = sld [smem:[#allocation79_spill]]  ;;  %s20067_s8 = sld [smem:[#allocation75_spill]]  ;;  %s17876_s15 = sphi %s18154_s15, %s94_s15  }
  0x4d   : > { %s20068_s5 = sld [smem:[#allocation82_spill]]  ;;  %s20069_s4 = sld [smem:[#allocation85_spill]] }
  0x4e   : > { %s20070_s3 = sld [smem:[#allocation89_spill]]  ;;  %s20071_s13 = sld [smem:[#allocation71_spill]] }
  0x4f   : > { %s17912_s0 = smov [#allocation12]   ;;  %s18160_s18 = sadd.s32 4294967295, %s17876_s15  }
  0x50   : > { %s870_s16 = sshll.u32 %s17912_s0, 4  ;;  %p14054_p0 = scmp.ge.s32.totalorder %s17876_s15, 1  ;;  %s18165_s16 = int_to_ptr.vmem [resolvable:$true] %s870_s16 }
  0x51   : > { %p844_p1 = scmp.lt.s32.totalorder %s17876_s15, 3  ;;  %p19997_p2 = scmp.eq.s32.totalorder %s18160_s18, 0 }
  0x52   : > { %s17913_s23 = smov [#allocation15]   ;;  %s17914_s1 = smov [#allocation18]  }
  0x53   : > { %p18167_p3 = pnand %p14054_p0, %p844_p1  ;;  %s893_s26 = sshll.u32 %s17913_s23, 4  ;;  %s18173_s26 = int_to_ptr.vmem [resolvable:$true] %s893_s26 }
  0x54   : > { %s917_s2 = sshll.u32 %s17914_s1, 4  ;;  %s17915_s7 = smov [#allocation21]   ;;  %s18181_s2 = int_to_ptr.vmem [resolvable:$true] %s917_s2 }
  0x55   : > { %s20072_s22 = scalar_select %p18167_p3, 1, 0 }
  0x56   : > { %p16583_p4 = pneg %p18167_p3  ;;  %s18183_s10 = sshll.u32 %s17915_s7, 4  ;;  %s942_s10 = int_to_ptr.vmem [resolvable:$true] %s18183_s10 }
  0x57   : > { %s16998_s11 = scalar_lea.hbm %s20071_s13, 64 }
  0x58   : > { %p18177_p5 = pnand %p19997_p2, %p16583_p4  ;;  %p16999_p6 = scmp.ne.s32.totalorder %s20071_s13, %s16998_s11 }
  0x59   : > { %p17005_p10 = scmp.lt.u32.totalorder %s16998_s11, %s20071_s13 }
  0x5a   : > { %p18189_p7 = pneg %p18177_p5 }
  0x5c   : > { %p17001_p8 = pnand %p18189_p7, %p16999_p6 }
  0x5e   : > { %p17002_p9 = pneg %p17001_p8 }
  0x60   : > { %p17007_p11 = pnand %p17005_p10, %p17002_p9 }
  0x62   : > { %17010 = shalt.err (!%p17007_p11)
}
  0x63   : > { %s17011_s23 = scalar_lea.vmem %s18165_s16, 64  ;;  %p17019_p1 = scmp.lt.s32.totalorder %s18165_s16, %s18165_s16 }
  0x64   : > { %p17012_p12 = scmp.ne.s32.totalorder %s18165_s16, %s17011_s23  ;;  %p17020_p4 = scmp.lt.s32.totalorder %s17011_s23, %s17011_s23 }
  0x66   : > { %p17014_p13 = pnand %p17012_p12, %p18189_p7  ;;  %p17021_p2 = por %p17020_p4, %p17019_p1 }
  0x68   : > { %p17015_p0 = pneg %p17014_p13 }
  0x6a   : > { %p17022_p3 = pnand %p17021_p2, %p17015_p0 }
  0x6c   : > { %17025 = shalt.err (!%p17022_p3)
}
  0x6d   : > { %16589 = dma.hbm_to_vmem [thread:$0]  (!%p18177_p5), %s20071_s13, 64, %s18165_s16, [#allocation13]  }
  0x6e   : > { %s17026_s1 = scalar_lea.hbm %s18002_s21, 576 }
  0x6f   : > { %p17027_p6 = scmp.ne.s32.totalorder %s18002_s21, %s17026_s1  ;;  %p17033_p10 = scmp.lt.u32.totalorder %s17026_s1, %s18002_s21 }
  0x71   : > { %p17029_p8 = pnand %p17027_p6, %p18189_p7 }
  0x73   : > { %p17030_p9 = pneg %p17029_p8 }
  0x75   : > { %p17035_p11 = pnand %p17033_p10, %p17030_p9 }
  0x77   : > { %17038 = shalt.err (!%p17035_p11)
}
  0x78   : > { %s17039_s7 = scalar_lea.vmem %s18173_s26, 576  ;;  %p17047_p13 = scmp.lt.s32.totalorder %s18173_s26, %s18173_s26 }
  0x79   : > { %p17040_p2 = scmp.ne.s32.totalorder %s18173_s26, %s17039_s7  ;;  %p17048_p0 = scmp.lt.s32.totalorder %s17039_s7, %s17039_s7 }
  0x7b   : > { %p17042_p3 = pnand %p17040_p2, %p18189_p7  ;;  %p17049_p1 = por %p17048_p0, %p17047_p13 }
  0x7d   : > { %p17043_p12 = pneg %p17042_p3 }
  0x7f   : > { %p17050_p4 = pnand %p17049_p1, %p17043_p12 }
  0x81   : > { %17053 = shalt.err (!%p17050_p4)
}
  0x82   : > { %s19999_s16 = smov 64   ;;  %s20000_s11 = smov 4  }
  0x83   : > { %16595 = dma.hbm_to_vmem [thread:$0]  (!%p18177_p5), %s18002_s21, 576, %s18173_s26, [#allocation16], %s19999_s16, %s19999_s16, %s20000_s11  }
  0x84   : > { %s17054_s23 = scalar_lea.hbm %s18012_s29, 576 }
  0x85   : > { %p17055_p6 = scmp.ne.s32.totalorder %s18012_s29, %s17054_s23  ;;  %p17061_p10 = scmp.lt.u32.totalorder %s17054_s23, %s18012_s29 }
  0x87   : > { %p17057_p8 = pnand %p17055_p6, %p18189_p7 }
  0x89   : > { %p17058_p9 = pneg %p17057_p8 }
  0x8b   : > { %p17063_p11 = pnand %p17061_p10, %p17058_p9 }
  0x8d   : > { %17066 = shalt.err (!%p17063_p11)
}
  0x8e   : > { %s17067_s1 = scalar_lea.vmem %s18181_s2, 576  ;;  %p17075_p13 = scmp.lt.s32.totalorder %s18181_s2, %s18181_s2 }
  0x8f   : > { %p17068_p2 = scmp.ne.s32.totalorder %s18181_s2, %s17067_s1  ;;  %p17076_p0 = scmp.lt.s32.totalorder %s17067_s1, %s17067_s1 }
  0x91   : > { %p17070_p3 = pnand %p17068_p2, %p18189_p7  ;;  %p17077_p1 = por %p17076_p0, %p17075_p13 }
  0x93   : > { %p17071_p12 = pneg %p17070_p3 }
  0x95   : > { %p17078_p4 = pnand %p17077_p1, %p17071_p12 }
  0x97   : > { %17081 = shalt.err (!%p17078_p4)
}
  0x98   : > { %16601 = dma.hbm_to_vmem [thread:$0]  (!%p18177_p5), %s18012_s29, 576, %s18181_s2, [#allocation19], %s19999_s16, %s19999_s16, %s20000_s11  }
  0x99   : > { %s17082_s26 = scalar_lea.hbm %s20067_s8, 1152 }
  0x9a   : > { %p17083_p6 = scmp.ne.s32.totalorder %s20067_s8, %s17082_s26  ;;  %p17089_p10 = scmp.lt.u32.totalorder %s17082_s26, %s20067_s8 }
  0x9c   : > { %p17085_p8 = pnand %p17083_p6, %p18189_p7 }
  0x9e   : > { %p17086_p9 = pneg %p17085_p8 }
  0xa0   : > { %p17091_p11 = pnand %p17089_p10, %p17086_p9 }
  0xa2   : > { %17094 = shalt.err (!%p17091_p11)
}
  0xa3   : > { %s17095_s7 = scalar_lea.vmem %s942_s10, 1152  ;;  %p17103_p13 = scmp.lt.s32.totalorder %s942_s10, %s942_s10 }
  0xa4   : > { %p17096_p2 = scmp.ne.s32.totalorder %s942_s10, %s17095_s7  ;;  %p17104_p0 = scmp.lt.s32.totalorder %s17095_s7, %s17095_s7 }
  0xa6   : > { %p17098_p3 = pnand %p17096_p2, %p18189_p7  ;;  %p17105_p1 = por %p17104_p0, %p17103_p13 }
  0xa8   : > { %p17099_p12 = pneg %p17098_p3 }
  0xaa   : > { %p17106_p4 = pnand %p17105_p1, %p17099_p12 }
  0xac   : > { %17109 = shalt.err (!%p17106_p4)
}
  0xad   : > { %s20003_s2 = smov 128   ;;  %s20005_s23 = smov 8  }
  0xae   : > { %16607 = dma.hbm_to_vmem [thread:$0]  (!%p18177_p5), %s20067_s8, 1152, %s942_s10, [#allocation22], %s20003_s2, %s20003_s2, %s20005_s23  }
  0xaf   : > { %s17920_s1 = smov [#allocation24]   ;;  %s17921_s7 = smov [#allocation27]  }
  0xb0   : > { %s965_s26 = sshll.u32 %s17920_s1, 4  ;;  %s989_s16 = sshll.u32 %s17921_s7, 4  ;;  %s966_s26 = int_to_ptr.vmem [resolvable:$true] %s965_s26  ;;  %s990_s16 = int_to_ptr.vmem [resolvable:$true] %s989_s16 }
  0xb1   : > { %s17110_s11 = scalar_lea.hbm %s18032_s19, 1152 }
  0xb2   : > { %p17111_p6 = scmp.ne.s32.totalorder %s18032_s19, %s17110_s11  ;;  %p17117_p10 = scmp.lt.u32.totalorder %s17110_s11, %s18032_s19 }
  0xb4   : > { %p17113_p8 = pnand %p17111_p6, %p18189_p7 }
  0xb6   : > { %p17114_p9 = pneg %p17113_p8 }
  0xb8   : > { %p17119_p11 = pnand %p17117_p10, %p17114_p9 }
  0xba   : > { %17122 = shalt.err (!%p17119_p11)
}
  0xbb   : > { %s17123_s13 = scalar_lea.vmem %s966_s26, 1152  ;;  %p17131_p13 = scmp.lt.s32.totalorder %s966_s26, %s966_s26 }
  0xbc   : > { %p17124_p2 = scmp.ne.s32.totalorder %s966_s26, %s17123_s13  ;;  %p17132_p0 = scmp.lt.s32.totalorder %s17123_s13, %s17123_s13 }
  0xbe   : > { %p17126_p3 = pnand %p17124_p2, %p18189_p7  ;;  %p17133_p1 = por %p17132_p0, %p17131_p13 }
  0xc0   : > { %p17127_p12 = pneg %p17126_p3 }
  0xc2   : > { %p17134_p4 = pnand %p17133_p1, %p17127_p12 }
  0xc4   : > { %17137 = shalt.err (!%p17134_p4)
}
  0xc5   : > { %16613 = dma.hbm_to_vmem [thread:$0]  (!%p18177_p5), %s18032_s19, 1152, %s966_s26, [#allocation25], %s20003_s2, %s20003_s2, %s20005_s23  }
  0xc6   : > { %s17138_s10 = scalar_lea.hbm %s18042_s30, 4608 }
  0xc7   : > { %p17139_p6 = scmp.ne.s32.totalorder %s18042_s30, %s17138_s10  ;;  %p17145_p10 = scmp.lt.u32.totalorder %s17138_s10, %s18042_s30 }
  0xc9   : > { %p17141_p8 = pnand %p17139_p6, %p18189_p7 }
  0xcb   : > { %p17142_p9 = pneg %p17141_p8 }
  0xcd   : > { %p17147_p11 = pnand %p17145_p10, %p17142_p9 }
  0xcf   : > { %17150 = shalt.err (!%p17147_p11)
}
  0xd0   : > { %s17151_s13 = scalar_lea.vmem %s990_s16, 4608  ;;  %p17159_p13 = scmp.lt.s32.totalorder %s990_s16, %s990_s16 }
  0xd1   : > { %p17152_p2 = scmp.ne.s32.totalorder %s990_s16, %s17151_s13  ;;  %p17160_p0 = scmp.lt.s32.totalorder %s17151_s13, %s17151_s13 }
  0xd3   : > { %p17154_p3 = pnand %p17152_p2, %p18189_p7  ;;  %p17161_p1 = por %p17160_p0, %p17159_p13 }
  0xd5   : > { %p17155_p12 = pneg %p17154_p3 }
  0xd7   : > { %p17162_p4 = pnand %p17161_p1, %p17155_p12 }
  0xd9   : > { %17165 = shalt.err (!%p17162_p4)
}
  0xda   : > { %16619 = dma.hbm_to_vmem [thread:$0]  (!%p18177_p5), %s18042_s30, 4608, %s990_s16, [#allocation28], %s20003_s2, %s20003_s2, %s20005_s23  }
  0xdb   : > { %s17922_s11 = smov [#allocation30]   ;;  %s17923_s26 = smov [#allocation33]  }
  0xdc   : > { %s1016_s1 = sshll.u32 %s17922_s11, 4  ;;  %s1037_s7 = sshll.u32 %s17923_s26, 4  ;;  %s1017_s1 = int_to_ptr.vmem [resolvable:$true] %s1016_s1  ;;  %s1038_s7 = int_to_ptr.vmem [resolvable:$true] %s1037_s7 }
  0xdd   : > { %s17166_s10 = scalar_lea.hbm %s20066_s12, 128 }
  0xde   : > { %p17167_p6 = scmp.ne.s32.totalorder %s20066_s12, %s17166_s10  ;;  %p17173_p10 = scmp.lt.u32.totalorder %s17166_s10, %s20066_s12 }
  0xe0   : > { %p17169_p8 = pnand %p17167_p6, %p18189_p7 }
  0xe2   : > { %p17170_p9 = pneg %p17169_p8 }
  0xe4   : > { %p17175_p11 = pnand %p17173_p10, %p17170_p9 }
  0xe6   : > { %17178 = shalt.err (!%p17175_p11)
}
  0xe7   : > { %s17179_s13 = scalar_lea.vmem %s1017_s1, 128  ;;  %p17187_p13 = scmp.lt.s32.totalorder %s1017_s1, %s1017_s1 }
  0xe8   : > { %p17180_p2 = scmp.ne.s32.totalorder %s1017_s1, %s17179_s13  ;;  %p17188_p0 = scmp.lt.s32.totalorder %s17179_s13, %s17179_s13 }
  0xea   : > { %p17182_p3 = pnand %p17180_p2, %p18189_p7  ;;  %p17189_p1 = por %p17188_p0, %p17187_p13 }
  0xec   : > { %p17183_p12 = pneg %p17182_p3 }
  0xee   : > { %p17190_p4 = pnand %p17189_p1, %p17183_p12 }
  0xf0   : > { %17193 = shalt.err (!%p17190_p4)
}
  0xf1   : > { %16625 = dma.hbm_to_vmem [thread:$0]  (!%p18177_p5), %s20066_s12, 128, %s1017_s1, [#allocation31]  }
  0xf2   : > { %s17194_s16 = scalar_lea.hbm %s18062_s27, 5504 }
  0xf3   : > { %p17195_p6 = scmp.ne.s32.totalorder %s18062_s27, %s17194_s16  ;;  %p17201_p10 = scmp.lt.u32.totalorder %s17194_s16, %s18062_s27 }
  0xf5   : > { %p17197_p8 = pnand %p17195_p6, %p18189_p7 }
  0xf7   : > { %p17198_p9 = pneg %p17197_p8 }
  0xf9   : > { %p17203_p11 = pnand %p17201_p10, %p17198_p9 }
  0xfb   : > { %17206 = shalt.err (!%p17203_p11)
}
  0xfc   : > { %s17207_s11 = scalar_lea.vmem %s1038_s7, 5504  ;;  %p17215_p13 = scmp.lt.s32.totalorder %s1038_s7, %s1038_s7 }
  0xfd   : > { %p17208_p2 = scmp.ne.s32.totalorder %s1038_s7, %s17207_s11  ;;  %p17216_p0 = scmp.lt.s32.totalorder %s17207_s11, %s17207_s11 }
  0xff   : > { %p17210_p3 = pnand %p17208_p2, %p18189_p7  ;;  %p17217_p1 = por %p17216_p0, %p17215_p13 }
 0x101   : > { %p17211_p12 = pneg %p17210_p3 }
 0x103   : > { %p17218_p4 = pnand %p17217_p1, %p17211_p12 }
 0x105   : > { %17221 = shalt.err (!%p17218_p4)
}
 0x106   : > { %16631 = dma.hbm_to_vmem [thread:$0]  (!%p18177_p5), %s18062_s27, 5504, %s1038_s7, [#allocation34], %s20003_s2, %s20003_s2, %s20005_s23  }
 0x107   : > { %s17924_s1 = smov [#allocation36]   ;;  %s17925_s10 = smov [#allocation39]  }
 0x108   : > { %s1063_s26 = sshll.u32 %s17924_s1, 4  ;;  %s1092_s13 = sshll.u32 %s17925_s10, 4  ;;  %s1064_s26 = int_to_ptr.vmem [resolvable:$true] %s1063_s26  ;;  %s1093_s13 = int_to_ptr.vmem [resolvable:$true] %s1092_s13 }
 0x109   : > { %s17222_s16 = scalar_lea.hbm %s20068_s5, 256 }
 0x10a   : > { %p17223_p6 = scmp.ne.s32.totalorder %s20068_s5, %s17222_s16  ;;  %p17229_p10 = scmp.lt.u32.totalorder %s17222_s16, %s20068_s5 }
 0x10c   : > { %p17225_p8 = pnand %p17223_p6, %p18189_p7 }
 0x10e   : > { %p17226_p9 = pneg %p17225_p8 }
 0x110   : > { %p17231_p11 = pnand %p17229_p10, %p17226_p9 }
 0x112   : > { %17234 = shalt.err (!%p17231_p11)
}
 0x113   : > { %s17235_s11 = scalar_lea.vmem %s1064_s26, 256  ;;  %p17243_p13 = scmp.lt.s32.totalorder %s1064_s26, %s1064_s26 }
 0x114   : > { %p17236_p2 = scmp.ne.s32.totalorder %s1064_s26, %s17235_s11  ;;  %p17244_p0 = scmp.lt.s32.totalorder %s17235_s11, %s17235_s11 }
 0x116   : > { %p17238_p3 = pnand %p17236_p2, %p18189_p7  ;;  %p17245_p1 = por %p17244_p0, %p17243_p13 }
 0x118   : > { %p17239_p12 = pneg %p17238_p3 }
 0x11a   : > { %p17246_p4 = pnand %p17245_p1, %p17239_p12 }
 0x11c   : > { %17249 = shalt.err (!%p17246_p4)
}
 0x11d   : > { %16637 = dma.hbm_to_vmem [thread:$0]  (!%p18177_p5), %s20068_s5, 256, %s1064_s26, [#allocation37], %s20003_s2, %s20003_s2, %s20005_s23  }
 0x11e   : > { %s17250_s7 = scalar_lea.hbm %s20069_s4, 1280 }
 0x11f   : > { %p17251_p6 = scmp.ne.s32.totalorder %s20069_s4, %s17250_s7  ;;  %p17257_p10 = scmp.lt.u32.totalorder %s17250_s7, %s20069_s4 }
 0x121   : > { %p17253_p8 = pnand %p17251_p6, %p18189_p7 }
 0x123   : > { %p17254_p9 = pneg %p17253_p8 }
 0x125   : > { %p17259_p11 = pnand %p17257_p10, %p17254_p9 }
 0x127   : > { %17262 = shalt.err (!%p17259_p11)
}
 0x128   : > { %s17263_s1 = scalar_lea.vmem %s1093_s13, 1280  ;;  %p17271_p13 = scmp.lt.s32.totalorder %s1093_s13, %s1093_s13 }
 0x129   : > { %p17264_p2 = scmp.ne.s32.totalorder %s1093_s13, %s17263_s1  ;;  %p17272_p0 = scmp.lt.s32.totalorder %s17263_s1, %s17263_s1 }
 0x12b   : > { %p17266_p3 = pnand %p17264_p2, %p18189_p7  ;;  %p17273_p1 = por %p17272_p0, %p17271_p13 }
 0x12d   : > { %p17267_p12 = pneg %p17266_p3 }
 0x12f   : > { %p17274_p4 = pnand %p17273_p1, %p17267_p12 }
 0x131   : > { %17277 = shalt.err (!%p17274_p4)
}
 0x132   : > { %16643 = dma.hbm_to_vmem [thread:$0]  (!%p18177_p5), %s20069_s4, 1280, %s1093_s13, [#allocation40], %s20003_s2, %s20003_s2, %s20005_s23  }
 0x133   : > { %s17926_s26 = smov [#allocation42]   ;;  %s17927_s16 = smov [#allocation45]  }
 0x134   : > { %s1118_s10 = sshll.u32 %s17926_s26, 4  ;;  %s1144_s11 = sshll.u32 %s17927_s16, 4  ;;  %s1119_s10 = int_to_ptr.vmem [resolvable:$true] %s1118_s10  ;;  %s1145_s11 = int_to_ptr.vmem [resolvable:$true] %s1144_s11 }
 0x135   : > { %s17278_s7 = scalar_lea.hbm %s18097_s20, 256 }
 0x136   : > { %p17279_p6 = scmp.ne.s32.totalorder %s18097_s20, %s17278_s7  ;;  %p17285_p10 = scmp.lt.u32.totalorder %s17278_s7, %s18097_s20 }
 0x138   : > { %p17281_p8 = pnand %p17279_p6, %p18189_p7 }
 0x13a   : > { %p17282_p9 = pneg %p17281_p8 }
 0x13c   : > { %p17287_p11 = pnand %p17285_p10, %p17282_p9 }
 0x13e   : > { %17290 = shalt.err (!%p17287_p11)
}
 0x13f   : > { %s17291_s1 = scalar_lea.vmem %s1119_s10, 256  ;;  %p17299_p13 = scmp.lt.s32.totalorder %s1119_s10, %s1119_s10 }
 0x140   : > { %p17292_p2 = scmp.ne.s32.totalorder %s1119_s10, %s17291_s1  ;;  %p17300_p0 = scmp.lt.s32.totalorder %s17291_s1, %s17291_s1 }
 0x142   : > { %p17294_p3 = pnand %p17292_p2, %p18189_p7  ;;  %p17301_p1 = por %p17300_p0, %p17299_p13 }
 0x144   : > { %p17295_p12 = pneg %p17294_p3 }
 0x146   : > { %p17302_p4 = pnand %p17301_p1, %p17295_p12 }
 0x148   : > { %17305 = shalt.err (!%p17302_p4)
}
 0x149   : > { %16649 = dma.hbm_to_vmem [thread:$0]  (!%p18177_p5), %s18097_s20, 256, %s1119_s10, [#allocation43], %s20003_s2, %s20003_s2, %s20005_s23  }
 0x14a   : > { %s17306_s13 = scalar_lea.hbm %s18107_s14, 1792 }
 0x14b   : > { %p17307_p6 = scmp.ne.s32.totalorder %s18107_s14, %s17306_s13  ;;  %p17313_p10 = scmp.lt.u32.totalorder %s17306_s13, %s18107_s14 }
 0x14d   : > { %p17309_p8 = pnand %p17307_p6, %p18189_p7 }
 0x14f   : > { %p17310_p9 = pneg %p17309_p8 }
 0x151   : > { %p17315_p11 = pnand %p17313_p10, %p17310_p9 }
 0x153   : > { %17318 = shalt.err (!%p17315_p11)
}
 0x154   : > { %s17319_s26 = scalar_lea.vmem %s1145_s11, 1792  ;;  %p17327_p13 = scmp.lt.s32.totalorder %s1145_s11, %s1145_s11 }
 0x155   : > { %p17320_p2 = scmp.ne.s32.totalorder %s1145_s11, %s17319_s26  ;;  %p17328_p0 = scmp.lt.s32.totalorder %s17319_s26, %s17319_s26 }
 0x157   : > { %p17322_p3 = pnand %p17320_p2, %p18189_p7  ;;  %p17329_p1 = por %p17328_p0, %p17327_p13 }
 0x159   : > { %p17323_p12 = pneg %p17322_p3 }
 0x15b   : > { %p17330_p4 = pnand %p17329_p1, %p17323_p12 }
 0x15d   : > { %17333 = shalt.err (!%p17330_p4)
}
 0x15e   : > { %16655 = dma.hbm_to_vmem [thread:$0]  (!%p18177_p5), %s18107_s14, 1792, %s1145_s11, [#allocation46], %s20003_s2, %s20003_s2, %s20005_s23  }
 0x15f   : > { %s17928_s10 = smov [#allocation48]   ;;  %s17929_s7 = smov [#allocation51]  }
 0x160   : > { %s1170_s16 = sshll.u32 %s17928_s10, 4  ;;  %s1196_s1 = sshll.u32 %s17929_s7, 4  ;;  %s1171_s16 = int_to_ptr.vmem [resolvable:$true] %s1170_s16  ;;  %s1197_s1 = int_to_ptr.vmem [resolvable:$true] %s1196_s1 }
 0x161   : > { %s17334_s13 = scalar_lea.hbm %s20070_s3, 512 }
 0x162   : > { %p17335_p6 = scmp.ne.s32.totalorder %s20070_s3, %s17334_s13  ;;  %p17341_p10 = scmp.lt.u32.totalorder %s17334_s13, %s20070_s3 }
 0x164   : > { %p17337_p8 = pnand %p17335_p6, %p18189_p7 }
 0x166   : > { %p17338_p9 = pneg %p17337_p8 }
 0x168   : > { %p17343_p11 = pnand %p17341_p10, %p17338_p9 }
 0x16a   : > { %17346 = shalt.err (!%p17343_p11)
}
 0x16b   : > { %s17347_s26 = scalar_lea.vmem %s1171_s16, 512  ;;  %p17355_p13 = scmp.lt.s32.totalorder %s1171_s16, %s1171_s16 }
 0x16c   : > { %p17348_p2 = scmp.ne.s32.totalorder %s1171_s16, %s17347_s26  ;;  %p17356_p0 = scmp.lt.s32.totalorder %s17347_s26, %s17347_s26 }
 0x16e   : > { %p17350_p3 = pnand %p17348_p2, %p18189_p7  ;;  %p17357_p1 = por %p17356_p0, %p17355_p13 }
 0x170   : > { %p17351_p12 = pneg %p17350_p3 }
 0x172   : > { %p17358_p4 = pnand %p17357_p1, %p17351_p12 }
 0x174   : > { %17361 = shalt.err (!%p17358_p4)
}
 0x175   : > { %16661 = dma.hbm_to_vmem [thread:$0]  (!%p18177_p5), %s20070_s3, 512, %s1171_s16, [#allocation49], %s20003_s2, %s20003_s2, %s20005_s23  }
 0x176   : > { %s17362_s11 = scalar_lea.hbm %s18127_s25, 512 }
 0x177   : > { %p17363_p6 = scmp.ne.s32.totalorder %s18127_s25, %s17362_s11  ;;  %p17369_p10 = scmp.lt.u32.totalorder %s17362_s11, %s18127_s25 }
 0x179   : > { %p17365_p8 = pnand %p17363_p6, %p18189_p7 }
 0x17b   : > { %p17366_p9 = pneg %p17365_p8 }
 0x17d   : > { %p17371_p11 = pnand %p17369_p10, %p17366_p9 }
 0x17f   : > { %17374 = shalt.err (!%p17371_p11)
}
 0x180   : > { %s17375_s10 = scalar_lea.vmem %s1197_s1, 512  ;;  %p17383_p13 = scmp.lt.s32.totalorder %s1197_s1, %s1197_s1 }
 0x181   : > { %p17376_p2 = scmp.ne.s32.totalorder %s1197_s1, %s17375_s10  ;;  %p17384_p0 = scmp.lt.s32.totalorder %s17375_s10, %s17375_s10 }
 0x183   : > { %p17378_p3 = pnand %p17376_p2, %p18189_p7  ;;  %p17385_p1 = por %p17384_p0, %p17383_p13 }
 0x185   : > { %p17379_p12 = pneg %p17378_p3 }
 0x187   : > { %p17386_p4 = pnand %p17385_p1, %p17379_p12 }
 0x189   : > { %17389 = shalt.err (!%p17386_p4)
}
 0x18a   : > { %s20075_s16 = sld [smem:[#allocation70_spill]]  ;;  %s17930_s7 = smov [#allocation10]  }
 0x18b   : > { %16667 = dma.hbm_to_vmem [thread:$0]  (!%p18177_p5), %s18127_s25, 512, %s1197_s1, [#allocation52], %s20003_s2, %s20003_s2, %s20005_s23  }
 0x18c   : > { %s856_s13 = sshll.u32 %s17930_s7, 4  ;;  %s17931_s26 = smov [#allocation14]   ;;  %s857_s13 = int_to_ptr.vmem [resolvable:$true] %s856_s13 }
 0x18d   : > { %s880_s11 = sshll.u32 %s17931_s26, 4  ;;  %s881_s11 = int_to_ptr.vmem [resolvable:$true] %s880_s11 }
 0x190   : > { %s17390_s10 = scalar_lea.hbm %s20075_s16, 576 }
 0x191   : > { %p17391_p6 = scmp.ne.s32.totalorder %s20075_s16, %s17390_s10  ;;  %p17397_p10 = scmp.lt.u32.totalorder %s17390_s10, %s20075_s16 }
 0x193   : > { %p17393_p8 = pnand %p17391_p6, %p18189_p7 }
 0x195   : > { %p17394_p9 = pneg %p17393_p8 }
 0x197   : > { %p17399_p11 = pnand %p17397_p10, %p17394_p9 }
 0x199   : > { %17402 = shalt.err (!%p17399_p11)
}
 0x19a   : > { %s17403_s3 = scalar_lea.vmem %s857_s13, 576  ;;  %p17411_p13 = scmp.lt.s32.totalorder %s857_s13, %s857_s13 }
 0x19b   : > { %p17404_p2 = scmp.ne.s32.totalorder %s857_s13, %s17403_s3  ;;  %p17412_p0 = scmp.lt.s32.totalorder %s17403_s3, %s17403_s3 }
 0x19d   : > { %p17406_p3 = pnand %p17404_p2, %p18189_p7  ;;  %p17413_p1 = por %p17412_p0, %p17411_p13 }
 0x19f   : > { %p17407_p12 = pneg %p17406_p3 }
 0x1a1   : > { %p17414_p4 = pnand %p17413_p1, %p17407_p12 }
 0x1a3   : > { %17417 = shalt.err (!%p17414_p4)
}
 0x1a4   : > { %s20076_s1 = smov 4   ;;  %s20077_s7 = smov 64  }
 0x1a5   : > { %s20078_s26 = sld [smem:[#allocation72_spill]] }
 0x1a6   : > { %16586 = dma.hbm_to_vmem [thread:$0]  (!%p18177_p5), %s20075_s16, 576, %s857_s13, [#allocation11], %s20077_s7, %s20077_s7, %s20076_s1  }
 0x1ab   : > { %s17418_s10 = scalar_lea.hbm %s20078_s26, 13824 }
 0x1ac   : > { %p17419_p6 = scmp.ne.s32.totalorder %s20078_s26, %s17418_s10  ;;  %p17425_p10 = scmp.lt.u32.totalorder %s17418_s10, %s20078_s26 }
 0x1ae   : > { %p17421_p8 = pnand %p17419_p6, %p18189_p7 }
 0x1b0   : > { %p17422_p9 = pneg %p17421_p8 }
 0x1b2   : > { %p17427_p11 = pnand %p17425_p10, %p17422_p9 }
 0x1b4   : > { %17430 = shalt.err (!%p17427_p11)
}
 0x1b5   : > { %s17431_s3 = scalar_lea.vmem %s881_s11, 13824  ;;  %p17439_p13 = scmp.lt.s32.totalorder %s881_s11, %s881_s11 }
 0x1b6   : > { %p17432_p2 = scmp.ne.s32.totalorder %s881_s11, %s17431_s3  ;;  %p17440_p0 = scmp.lt.s32.totalorder %s17431_s3, %s17431_s3 }
 0x1b8   : > { %p17434_p3 = pnand %p17432_p2, %p18189_p7  ;;  %p17441_p1 = por %p17440_p0, %p17439_p13 }
 0x1ba   : > { %p17435_p12 = pneg %p17434_p3 }
 0x1bc   : > { %p17442_p4 = pnand %p17441_p1, %p17435_p12 }
 0x1be   : > { %17445 = shalt.err (!%p17442_p4)
}
 0x1bf   : > { %s17932_s13 = smov 384   ;;  %s20079_s1 = sld [smem:[#allocation73_spill]] }
 0x1c0   : > { %s17933_s7 = smov 24   ;;  %s17934_s10 = smov [#allocation17]  }
 0x1c1   : > { %16592 = dma.hbm_to_vmem [thread:$0]  (!%p18177_p5), %s20078_s26, 13824, %s881_s11, [#allocation13], %s17932_s13, %s17932_s13, %s17933_s7  }
 0x1c2   : > { %s907_s2 = sshll.u32 %s17934_s10, 4  ;;  %s17935_s23 = smov [#allocation20]   ;;  %s908_s2 = int_to_ptr.vmem [resolvable:$true] %s907_s2 }
 0x1c3   : > { %s931_s4 = sshll.u32 %s17935_s23, 4  ;;  %s932_s4 = int_to_ptr.vmem [resolvable:$true] %s931_s4 }
 0x1c5   : > { %s17446_s5 = scalar_lea.hbm %s20079_s1, 64 }
 0x1c6   : > { %p17447_p6 = scmp.ne.s32.totalorder %s20079_s1, %s17446_s5  ;;  %p17453_p10 = scmp.lt.u32.totalorder %s17446_s5, %s20079_s1 }
 0x1c8   : > { %p17449_p8 = pnand %p17447_p6, %p18189_p7 }
 0x1ca   : > { %p17450_p9 = pneg %p17449_p8 }
 0x1cc   : > { %p17455_p11 = pnand %p17453_p10, %p17450_p9 }
 0x1ce   : > { %17458 = shalt.err (!%p17455_p11)
}
 0x1cf   : > { %s17459_s3 = scalar_lea.vmem %s908_s2, 64  ;;  %p17467_p13 = scmp.lt.s32.totalorder %s908_s2, %s908_s2 }
 0x1d0   : > { %p17460_p2 = scmp.ne.s32.totalorder %s908_s2, %s17459_s3  ;;  %p17468_p0 = scmp.lt.s32.totalorder %s17459_s3, %s17459_s3 }
 0x1d2   : > { %p17462_p3 = pnand %p17460_p2, %p18189_p7  ;;  %p17469_p1 = por %p17468_p0, %p17467_p13 }
 0x1d4   : > { %p17463_p12 = pneg %p17462_p3 }
 0x1d6   : > { %p17470_p4 = pnand %p17469_p1, %p17463_p12 }
 0x1d8   : > { %17473 = shalt.err (!%p17470_p4)
}
 0x1d9   : > { %s20080_s23 = sld [smem:[#allocation74_spill]] }
 0x1da   : > { %16598 = dma.hbm_to_vmem [thread:$0]  (!%p18177_p5), %s20079_s1, 64, %s908_s2, [#allocation16]  }
 0x1df   : > { %s17474_s5 = scalar_lea.hbm %s20080_s23, 64 }
 0x1e0   : > { %p17475_p6 = scmp.ne.s32.totalorder %s20080_s23, %s17474_s5  ;;  %p17481_p10 = scmp.lt.u32.totalorder %s17474_s5, %s20080_s23 }
 0x1e2   : > { %p17477_p8 = pnand %p17475_p6, %p18189_p7 }
 0x1e4   : > { %p17478_p9 = pneg %p17477_p8 }
 0x1e6   : > { %p17483_p11 = pnand %p17481_p10, %p17478_p9 }
 0x1e8   : > { %17486 = shalt.err (!%p17483_p11)
}
 0x1e9   : > { %s17487_s11 = scalar_lea.vmem %s932_s4, 64  ;;  %p17495_p13 = scmp.lt.s32.totalorder %s932_s4, %s932_s4 }
 0x1ea   : > { %p17488_p2 = scmp.ne.s32.totalorder %s932_s4, %s17487_s11  ;;  %p17496_p0 = scmp.lt.s32.totalorder %s17487_s11, %s17487_s11 }
 0x1ec   : > { %p17490_p3 = pnand %p17488_p2, %p18189_p7  ;;  %p17497_p1 = por %p17496_p0, %p17495_p13 }
 0x1ee   : > { %p17491_p12 = pneg %p17490_p3 }
 0x1f0   : > { %p17498_p4 = pnand %p17497_p1, %p17491_p12 }
 0x1f2   : > { %17501 = shalt.err (!%p17498_p4)
}
 0x1f3   : > { %s20081_s2 = sld [smem:[#allocation76_spill]]  ;;  %s17936_s13 = smov [#allocation23]  }
 0x1f4   : > { %16604 = dma.hbm_to_vmem [thread:$0]  (!%p18177_p5), %s20080_s23, 64, %s932_s4, [#allocation19]  }
 0x1f5   : > { %s955_s7 = sshll.u32 %s17936_s13, 4  ;;  %s17937_s10 = smov [#allocation26]   ;;  %s956_s7 = int_to_ptr.vmem [resolvable:$true] %s955_s7 }
 0x1f6   : > { %s979_s3 = sshll.u32 %s17937_s10, 4  ;;  %s980_s3 = int_to_ptr.vmem [resolvable:$true] %s979_s3 }
 0x1f9   : > { %s17502_s5 = scalar_lea.hbm %s20081_s2, 128 }
 0x1fa   : > { %p17503_p6 = scmp.ne.s32.totalorder %s20081_s2, %s17502_s5  ;;  %p17509_p10 = scmp.lt.u32.totalorder %s17502_s5, %s20081_s2 }
 0x1fc   : > { %p17505_p8 = pnand %p17503_p6, %p18189_p7 }
 0x1fe   : > { %p17506_p9 = pneg %p17505_p8 }
 0x200   : > { %p17511_p11 = pnand %p17509_p10, %p17506_p9 }
 0x202   : > { %17514 = shalt.err (!%p17511_p11)
}
 0x203   : > { %s17515_s11 = scalar_lea.vmem %s956_s7, 128  ;;  %p17523_p13 = scmp.lt.s32.totalorder %s956_s7, %s956_s7 }
 0x204   : > { %p17516_p2 = scmp.ne.s32.totalorder %s956_s7, %s17515_s11  ;;  %p17524_p0 = scmp.lt.s32.totalorder %s17515_s11, %s17515_s11 }
 0x206   : > { %p17518_p3 = pnand %p17516_p2, %p18189_p7  ;;  %p17525_p1 = por %p17524_p0, %p17523_p13 }
 0x208   : > { %p17519_p12 = pneg %p17518_p3 }
 0x20a   : > { %p17526_p4 = pnand %p17525_p1, %p17519_p12 }
 0x20c   : > { %17529 = shalt.err (!%p17526_p4)
}
 0x20d   : > { %s20082_s4 = sld [smem:[#allocation77_spill]] }
 0x20e   : > { %16610 = dma.hbm_to_vmem [thread:$0]  (!%p18177_p5), %s20081_s2, 128, %s956_s7, [#allocation22]  }
 0x213   : > { %s17530_s13 = scalar_lea.hbm %s20082_s4, 128 }
 0x214   : > { %p17531_p6 = scmp.ne.s32.totalorder %s20082_s4, %s17530_s13  ;;  %p17537_p10 = scmp.lt.u32.totalorder %s17530_s13, %s20082_s4 }
 0x216   : > { %p17533_p8 = pnand %p17531_p6, %p18189_p7 }
 0x218   : > { %p17534_p9 = pneg %p17533_p8 }
 0x21a   : > { %p17539_p11 = pnand %p17537_p10, %p17534_p9 }
 0x21c   : > { %17542 = shalt.err (!%p17539_p11)
}
 0x21d   : > { %s17543_s10 = scalar_lea.vmem %s980_s3, 128  ;;  %p17551_p13 = scmp.lt.s32.totalorder %s980_s3, %s980_s3 }
 0x21e   : > { %p17544_p2 = scmp.ne.s32.totalorder %s980_s3, %s17543_s10  ;;  %p17552_p0 = scmp.lt.s32.totalorder %s17543_s10, %s17543_s10 }
 0x220   : > { %p17546_p3 = pnand %p17544_p2, %p18189_p7  ;;  %p17553_p1 = por %p17552_p0, %p17551_p13 }
 0x222   : > { %p17547_p12 = pneg %p17546_p3 }
 0x224   : > { %p17554_p4 = pnand %p17553_p1, %p17547_p12 }
 0x226   : > { %17557 = shalt.err (!%p17554_p4)
}
 0x227   : > { %s20083_s7 = sld [smem:[#allocation78_spill]]  ;;  %s17938_s5 = smov [#allocation29]  }
 0x228   : > { %16616 = dma.hbm_to_vmem [thread:$0]  (!%p18177_p5), %s20082_s4, 128, %s980_s3, [#allocation25]  }
 0x229   : > { %s1002_s11 = sshll.u32 %s17938_s5, 4  ;;  %s17939_s13 = smov [#allocation32]   ;;  %s1003_s11 = int_to_ptr.vmem [resolvable:$true] %s1002_s11 }
 0x22a   : > { %s1027_s1 = sshll.u32 %s17939_s13, 4  ;;  %s1028_s1 = int_to_ptr.vmem [resolvable:$true] %s1027_s1 }
 0x22d   : > { %s17558_s2 = scalar_lea.hbm %s20083_s7, 1280 }
 0x22e   : > { %p17559_p6 = scmp.ne.s32.totalorder %s20083_s7, %s17558_s2  ;;  %p17565_p10 = scmp.lt.u32.totalorder %s17558_s2, %s20083_s7 }
 0x230   : > { %p17561_p8 = pnand %p17559_p6, %p18189_p7 }
 0x232   : > { %p17562_p9 = pneg %p17561_p8 }
 0x234   : > { %p17567_p11 = pnand %p17565_p10, %p17562_p9 }
 0x236   : > { %17570 = shalt.err (!%p17567_p11)
}
 0x237   : > { %s17571_s10 = scalar_lea.vmem %s1003_s11, 1280  ;;  %p17579_p13 = scmp.lt.s32.totalorder %s1003_s11, %s1003_s11 }
 0x238   : > { %p17572_p2 = scmp.ne.s32.totalorder %s1003_s11, %s17571_s10  ;;  %p17580_p0 = scmp.lt.s32.totalorder %s17571_s10, %s17571_s10 }
 0x23a   : > { %p17574_p3 = pnand %p17572_p2, %p18189_p7  ;;  %p17581_p1 = por %p17580_p0, %p17579_p13 }
 0x23c   : > { %p17575_p12 = pneg %p17574_p3 }
 0x23e   : > { %p17582_p4 = pnand %p17581_p1, %p17575_p12 }
 0x240   : > { %17585 = shalt.err (!%p17582_p4)
}
 0x241   : > { %s20084_s3 = smov 8   ;;  %s20085_s5 = smov 128  }
 0x242   : > { %s20086_s2 = sld [smem:[#allocation80_spill]] }
 0x243   : > { %16622 = dma.hbm_to_vmem [thread:$0]  (!%p18177_p5), %s20083_s7, 1280, %s1003_s11, [#allocation28], %s20085_s5, %s20085_s5, %s20084_s3  }
 0x248   : > { %s17586_s13 = scalar_lea.hbm %s20086_s2, 128 }
 0x249   : > { %p17587_p6 = scmp.ne.s32.totalorder %s20086_s2, %s17586_s13  ;;  %p17593_p10 = scmp.lt.u32.totalorder %s17586_s13, %s20086_s2 }
 0x24b   : > { %p17589_p8 = pnand %p17587_p6, %p18189_p7 }
 0x24d   : > { %p17590_p9 = pneg %p17589_p8 }
 0x24f   : > { %p17595_p11 = pnand %p17593_p10, %p17590_p9 }
 0x251   : > { %17598 = shalt.err (!%p17595_p11)
}
 0x252   : > { %s17599_s10 = scalar_lea.vmem %s1028_s1, 128  ;;  %p17607_p13 = scmp.lt.s32.totalorder %s1028_s1, %s1028_s1 }
 0x253   : > { %p17600_p2 = scmp.ne.s32.totalorder %s1028_s1, %s17599_s10  ;;  %p17608_p0 = scmp.lt.s32.totalorder %s17599_s10, %s17599_s10 }
 0x255   : > { %p17602_p3 = pnand %p17600_p2, %p18189_p7  ;;  %p17609_p1 = por %p17608_p0, %p17607_p13 }
 0x257   : > { %p17603_p12 = pneg %p17602_p3 }
 0x259   : > { %p17610_p4 = pnand %p17609_p1, %p17603_p12 }
 0x25b   : > { %17613 = shalt.err (!%p17610_p4)
}
 0x25c   : > { %s20087_s11 = sld [smem:[#allocation81_spill]]  ;;  %s17940_s13 = smov [#allocation35]  }
 0x25d   : > { %16628 = dma.hbm_to_vmem [thread:$0]  (!%p18177_p5), %s20086_s2, 128, %s1028_s1, [#allocation31]  }
 0x25e   : > { %s1050_s4 = sshll.u32 %s17940_s13, 4  ;;  %s17941_s7 = smov [#allocation38]   ;;  %s1051_s4 = int_to_ptr.vmem [resolvable:$true] %s1050_s4 }
 0x25f   : > { %s1079_s8 = sshll.u32 %s17941_s7, 4  ;;  %s1080_s8 = int_to_ptr.vmem [resolvable:$true] %s1079_s8 }
 0x262   : > { %s17614_s12 = scalar_lea.hbm %s20087_s11, 2304 }
 0x263   : > { %p17615_p6 = scmp.ne.s32.totalorder %s20087_s11, %s17614_s12  ;;  %p17621_p10 = scmp.lt.u32.totalorder %s17614_s12, %s20087_s11 }
 0x265   : > { %p17617_p8 = pnand %p17615_p6, %p18189_p7 }
 0x267   : > { %p17618_p9 = pneg %p17617_p8 }
 0x269   : > { %p17623_p11 = pnand %p17621_p10, %p17618_p9 }
 0x26b   : > { %17626 = shalt.err (!%p17623_p11)
}
 0x26c   : > { %s17627_s10 = scalar_lea.vmem %s1051_s4, 2304  ;;  %p17635_p13 = scmp.lt.s32.totalorder %s1051_s4, %s1051_s4 }
 0x26d   : > { %p17628_p2 = scmp.ne.s32.totalorder %s1051_s4, %s17627_s10  ;;  %p17636_p0 = scmp.lt.s32.totalorder %s17627_s10, %s17627_s10 }
 0x26f   : > { %p17630_p3 = pnand %p17628_p2, %p18189_p7  ;;  %p17637_p1 = por %p17636_p0, %p17635_p13 }
 0x271   : > { %p17631_p12 = pneg %p17630_p3 }
 0x273   : > { %p17638_p4 = pnand %p17637_p1, %p17631_p12 }
 0x275   : > { %17641 = shalt.err (!%p17638_p4)
}
 0x276   : > { %s20088_s12 = sld [smem:[#allocation84_spill]] }
 0x277   : > { %16634 = dma.hbm_to_vmem [thread:$0]  (!%p18177_p5), %s20087_s11, 2304, %s1051_s4, [#allocation34], %s20085_s5, %s20085_s5, %s20084_s3  }
 0x27c   : > { %s17642_s1 = scalar_lea.hbm %s20088_s12, 256 }
 0x27d   : > { %p17643_p6 = scmp.ne.s32.totalorder %s20088_s12, %s17642_s1  ;;  %p17649_p10 = scmp.lt.u32.totalorder %s17642_s1, %s20088_s12 }
 0x27f   : > { %p17645_p8 = pnand %p17643_p6, %p18189_p7 }
 0x281   : > { %p17646_p9 = pneg %p17645_p8 }
 0x283   : > { %p17651_p11 = pnand %p17649_p10, %p17646_p9 }
 0x285   : > { %17654 = shalt.err (!%p17651_p11)
}
 0x286   : > { %s17655_s7 = scalar_lea.vmem %s1080_s8, 256  ;;  %p17663_p13 = scmp.lt.s32.totalorder %s1080_s8, %s1080_s8 }
 0x287   : > { %p17656_p2 = scmp.ne.s32.totalorder %s1080_s8, %s17655_s7  ;;  %p17664_p0 = scmp.lt.s32.totalorder %s17655_s7, %s17655_s7 }
 0x289   : > { %p17658_p3 = pnand %p17656_p2, %p18189_p7  ;;  %p17665_p1 = por %p17664_p0, %p17663_p13 }
 0x28b   : > { %p17659_p12 = pneg %p17658_p3 }
 0x28d   : > { %p17666_p4 = pnand %p17665_p1, %p17659_p12 }
 0x28f   : > { %17669 = shalt.err (!%p17666_p4)
}
 0x290   : > { %s20089_s4 = sld [smem:[#allocation86_spill]]  ;;  %s17942_s13 = smov [#allocation41]  }
 0x291   : > { %16640 = dma.hbm_to_vmem [thread:$0]  (!%p18177_p5), %s20088_s12, 256, %s1080_s8, [#allocation37], %s20085_s5, %s20085_s5, %s20084_s3  }
 0x292   : > { %s1105_s10 = sshll.u32 %s17942_s13, 4  ;;  %s17943_s1 = smov [#allocation44]   ;;  %s1106_s10 = int_to_ptr.vmem [resolvable:$true] %s1105_s10 }
 0x293   : > { %s1131_s2 = sshll.u32 %s17943_s1, 4  ;;  %s1132_s2 = int_to_ptr.vmem [resolvable:$true] %s1131_s2 }
 0x296   : > { %s17670_s7 = scalar_lea.hbm %s20089_s4, 384 }
 0x297   : > { %p17671_p6 = scmp.ne.s32.totalorder %s20089_s4, %s17670_s7  ;;  %p17677_p10 = scmp.lt.u32.totalorder %s17670_s7, %s20089_s4 }
 0x299   : > { %p17673_p8 = pnand %p17671_p6, %p18189_p7 }
 0x29b   : > { %p17674_p9 = pneg %p17673_p8 }
 0x29d   : > { %p17679_p11 = pnand %p17677_p10, %p17674_p9 }
 0x29f   : > { %17682 = shalt.err (!%p17679_p11)
}
 0x2a0   : > { %s17683_s11 = scalar_lea.vmem %s1106_s10, 384  ;;  %p17691_p13 = scmp.lt.s32.totalorder %s1106_s10, %s1106_s10 }
 0x2a1   : > { %p17684_p2 = scmp.ne.s32.totalorder %s1106_s10, %s17683_s11  ;;  %p17692_p0 = scmp.lt.s32.totalorder %s17683_s11, %s17683_s11 }
 0x2a3   : > { %p17686_p3 = pnand %p17684_p2, %p18189_p7  ;;  %p17693_p1 = por %p17692_p0, %p17691_p13 }
 0x2a5   : > { %p17687_p12 = pneg %p17686_p3 }
 0x2a7   : > { %p17694_p4 = pnand %p17693_p1, %p17687_p12 }
 0x2a9   : > { %17697 = shalt.err (!%p17694_p4)
}
 0x2aa   : > { %s20090_s8 = sld [smem:[#allocation87_spill]] }
 0x2ab   : > { %16646 = dma.hbm_to_vmem [thread:$0]  (!%p18177_p5), %s20089_s4, 384, %s1106_s10, [#allocation40], %s20085_s5, %s20085_s5, %s20084_s3  }
 0x2b0   : > { %s17698_s13 = scalar_lea.hbm %s20090_s8, 256 }
 0x2b1   : > { %p17699_p6 = scmp.ne.s32.totalorder %s20090_s8, %s17698_s13  ;;  %p17705_p10 = scmp.lt.u32.totalorder %s17698_s13, %s20090_s8 }
 0x2b3   : > { %p17701_p8 = pnand %p17699_p6, %p18189_p7 }
 0x2b5   : > { %p17702_p9 = pneg %p17701_p8 }
 0x2b7   : > { %p17707_p11 = pnand %p17705_p10, %p17702_p9 }
 0x2b9   : > { %17710 = shalt.err (!%p17707_p11)
}
 0x2ba   : > { %s17711_s11 = scalar_lea.vmem %s1132_s2, 256  ;;  %p17719_p13 = scmp.lt.s32.totalorder %s1132_s2, %s1132_s2 }
 0x2bb   : > { %p17712_p2 = scmp.ne.s32.totalorder %s1132_s2, %s17711_s11  ;;  %p17720_p0 = scmp.lt.s32.totalorder %s17711_s11, %s17711_s11 }
 0x2bd   : > { %p17714_p3 = pnand %p17712_p2, %p18189_p7  ;;  %p17721_p1 = por %p17720_p0, %p17719_p13 }
 0x2bf   : > { %p17715_p12 = pneg %p17714_p3 }
 0x2c1   : > { %p17722_p4 = pnand %p17721_p1, %p17715_p12 }
 0x2c3   : > { %17725 = shalt.err (!%p17722_p4)
}
 0x2c4   : > { %s20091_s10 = sld [smem:[#allocation88_spill]]  ;;  %s17944_s1 = smov [#allocation47]  }
 0x2c5   : > { %16652 = dma.hbm_to_vmem [thread:$0]  (!%p18177_p5), %s20090_s8, 256, %s1132_s2, [#allocation43], %s20085_s5, %s20085_s5, %s20084_s3  }
 0x2c6   : > { %s1157_s7 = sshll.u32 %s17944_s1, 4  ;;  %s17945_s13 = smov [#allocation50]   ;;  %s1158_s7 = int_to_ptr.vmem [resolvable:$true] %s1157_s7 }
 0x2c7   : > { %s1183_s4 = sshll.u32 %s17945_s13, 4  ;;  %s1184_s4 = int_to_ptr.vmem [resolvable:$true] %s1183_s4 }
 0x2ca   : > { %s17726_s11 = scalar_lea.hbm %s20091_s10, 4608 }
 0x2cb   : > { %p17727_p6 = scmp.ne.s32.totalorder %s20091_s10, %s17726_s11  ;;  %p17733_p10 = scmp.lt.u32.totalorder %s17726_s11, %s20091_s10 }
 0x2cd   : > { %p17729_p8 = pnand %p17727_p6, %p18189_p7 }
 0x2cf   : > { %p17730_p9 = pneg %p17729_p8 }
 0x2d1   : > { %p17735_p11 = pnand %p17733_p10, %p17730_p9 }
 0x2d3   : > { %17738 = shalt.err (!%p17735_p11)
}
 0x2d4   : > { %s17739_s12 = scalar_lea.vmem %s1158_s7, 4608  ;;  %p17747_p13 = scmp.lt.s32.totalorder %s1158_s7, %s1158_s7 }
 0x2d5   : > { %p17740_p2 = scmp.ne.s32.totalorder %s1158_s7, %s17739_s12  ;;  %p17748_p0 = scmp.lt.s32.totalorder %s17739_s12, %s17739_s12 }
 0x2d7   : > { %p17742_p3 = pnand %p17740_p2, %p18189_p7  ;;  %p17749_p1 = por %p17748_p0, %p17747_p13 }
 0x2d9   : > { %p17743_p12 = pneg %p17742_p3 }
 0x2db   : > { %p17750_p4 = pnand %p17749_p1, %p17743_p12 }
 0x2dd   : > { %17753 = shalt.err (!%p17750_p4)
}
 0x2de   : > { %s20092_s2 = sld [smem:[#allocation90_spill]] }
 0x2df   : > { %16658 = dma.hbm_to_vmem [thread:$0]  (!%p18177_p5), %s20091_s10, 4608, %s1158_s7, [#allocation46], %s20085_s5, %s20085_s5, %s20084_s3  }
 0x2e4   : > { %s17754_s1 = scalar_lea.hbm %s20092_s2, 4608 }
 0x2e5   : > { %p17755_p6 = scmp.ne.s32.totalorder %s20092_s2, %s17754_s1  ;;  %p17761_p10 = scmp.lt.u32.totalorder %s17754_s1, %s20092_s2 }
 0x2e7   : > { %p17757_p8 = pnand %p17755_p6, %p18189_p7 }
 0x2e9   : > { %p17758_p9 = pneg %p17757_p8 }
 0x2eb   : > { %p17763_p11 = pnand %p17761_p10, %p17758_p9 }
 0x2ed   : > { %17766 = shalt.err (!%p17763_p11)
}
 0x2ee   : > { %s17767_s12 = scalar_lea.vmem %s1184_s4, 4608  ;;  %p17775_p13 = scmp.lt.s32.totalorder %s1184_s4, %s1184_s4 }
 0x2ef   : > { %p17768_p2 = scmp.ne.s32.totalorder %s1184_s4, %s17767_s12  ;;  %p17776_p0 = scmp.lt.s32.totalorder %s17767_s12, %s17767_s12 }
 0x2f1   : > { %p17770_p3 = pnand %p17768_p2, %p18189_p7  ;;  %p17777_p1 = por %p17776_p0, %p17775_p13 }
 0x2f3   : > { %p17771_p12 = pneg %p17770_p3 }
 0x2f5   : > { %p17778_p4 = pnand %p17777_p1, %p17771_p12 }
 0x2f7   : > { %17781 = shalt.err (!%p17778_p4)
}
 0x2f8   : > { %16664 = dma.hbm_to_vmem [thread:$0]  (!%p18177_p5), %s20092_s2, 4608, %s1184_s4, [#allocation49], %s20085_s5, %s20085_s5, %s20084_s3  }
 0x2f9   : > { %s17946_s7 = smov [#allocation53]   ;;  %s17782_s11 = scalar_lea.hbm %s18137_s17, 512 }
 0x2fa   : > { %s1212_s13 = sshll.u32 %s17946_s7, 4  ;;  %p17783_p6 = scmp.ne.s32.totalorder %s18137_s17, %s17782_s11  ;;  %s1213_s13 = int_to_ptr.vmem [resolvable:$true] %s1212_s13 }
 0x2fb   : > { %p17789_p10 = scmp.lt.u32.totalorder %s17782_s11, %s18137_s17 }
 0x2fc   : > { %p17785_p8 = pnand %p17783_p6, %p18189_p7 }
 0x2fe   : > { %p17786_p9 = pneg %p17785_p8 }
 0x300   : > { %p17791_p11 = pnand %p17789_p10, %p17786_p9 }
 0x302   : > { %17794 = shalt.err (!%p17791_p11)
}
 0x303   : > { %s17795_s1 = scalar_lea.vmem %s1213_s13, 512  ;;  %p17803_p13 = scmp.lt.s32.totalorder %s1213_s13, %s1213_s13 }
 0x304   : > { %p17796_p2 = scmp.ne.s32.totalorder %s1213_s13, %s17795_s1  ;;  %p17804_p0 = scmp.lt.s32.totalorder %s17795_s1, %s17795_s1 }
 0x306   : > { %p17798_p3 = pnand %p17796_p2, %p18189_p7  ;;  %p17805_p1 = por %p17804_p0, %p17803_p13 }
 0x308   : > { %p17799_p12 = pneg %p17798_p3 }
 0x30a   : > { %p17806_p4 = pnand %p17805_p1, %p17799_p12 }
 0x30c   : > { %17809 = shalt.err (!%p17806_p4)
}
 0x30d   : > { %16670 = dma.hbm_to_vmem [thread:$0]  (!%p18177_p5), %s18137_s17, 512, %s1213_s13, [#allocation52], %s20085_s5, %s20085_s5, %s20084_s3  }
 0x30e   : > { %p20093_p6 = scmp.ne.s32.totalorder %s20072_s22, 0 }
 0x310   : > { %1241 = sbr.rel (%p20093_p6) target bundleno = 6585 (0x19b9), region = 156 }
 0x317   : > { %p20094_p8 = scmp.eq.s32.totalorder %s18160_s18, 0 }
 0x319   : > { %17815 = dma.done.wait (%p20094_p8), [#allocation11], 576   ;;  %p20095_p7 = pmov %p20094_p8 }
 0x31b   : > { %17817 = vsyncadd (%p20095_p7), [#allocation11], 4294966720  ;;  %p20096_p9 = pmov %p20095_p7 }
 0x31c   : > { %p20097_p10 = pmov %p20095_p7 }
 0x31d   : > { %17819 = dma.done.wait (%p20096_p9), [#allocation13], 13888  }
 0x31e   : > { %17821 = vsyncadd (%p20097_p10), [#allocation13], 4294953408  ;;  %p20098_p11 = pmov %p20095_p7 }
 0x31f   : > { %p20099_p5 = pmov %p20095_p7 }
 0x320   : > { %17823 = dma.done.wait (%p20098_p11), [#allocation16], 640  }
 0x321   : > { %17825 = vsyncadd (%p20099_p5), [#allocation16], 4294966656  ;;  %p20100_p2 = pmov %p20099_p5 }
 0x323   : > { %17827 = dma.done.wait (%p20100_p2), [#allocation19], 640   ;;  %p20101_p3 = pmov %p20100_p2 }
 0x324   : > { %p20102_p12 = pmov %p20100_p2 }
 0x325   : > { %17829 = vsyncadd (%p20101_p3), [#allocation19], 4294966656 }
 0x326   : > { %17831 = dma.done.wait (%p20102_p12), [#allocation22], 1280   ;;  %p20103_p13 = pmov %p20100_p2 }
 0x327   : > { %p20104_p0 = pmov %p20100_p2 }
 0x328   : > { %17833 = vsyncadd (%p20103_p13), [#allocation22], 4294966016 }
 0x329   : > { %17835 = dma.done.wait (%p20104_p0), [#allocation25], 1280   ;;  %p20105_p1 = pmov %p20104_p0 }
 0x32a   : > { %p20106_p4 = pmov %p20104_p0 }
 0x32b   : > { %17837 = vsyncadd (%p20105_p1), [#allocation25], 4294966016 }
 0x32c   : > { %17839 = dma.done.wait (%p20106_p4), [#allocation28], 5888   ;;  %p20107_p6 = pmov %p20104_p0 }
 0x32d   : > { %p20108_p8 = pmov %p20104_p0 }
 0x32e   : > { %17841 = vsyncadd (%p20107_p6), [#allocation28], 4294961408 }
 0x32f   : > { %17843 = dma.done.wait (%p20108_p8), [#allocation31], 256   ;;  %p20109_p7 = pmov %p20104_p0 }
 0x330   : > { %p20110_p9 = pmov %p20104_p0 }
 0x331   : > { %17845 = vsyncadd (%p20109_p7), [#allocation31], 4294967040 }
 0x332   : > { %17847 = dma.done.wait (%p20110_p9), [#allocation34], 7808   ;;  %p20111_p10 = pmov %p20104_p0 }
 0x333   : > { %p20112_p11 = pmov %p20104_p0 }
 0x334   : > { %17849 = vsyncadd (%p20111_p10), [#allocation34], 4294959488 }
 0x335   : > { %17851 = dma.done.wait (%p20112_p11), [#allocation37], 512   ;;  %p20113_p5 = pmov %p20104_p0 }
 0x336   : > { %p20114_p2 = pmov %p20104_p0 }
 0x337   : > { %17853 = vsyncadd (%p20113_p5), [#allocation37], 4294966784 }
 0x338   : > { %17855 = dma.done.wait (%p20114_p2), [#allocation40], 1664   ;;  %p20115_p3 = pmov %p20104_p0 }
 0x339   : > { %p20116_p12 = pmov %p20104_p0 }
 0x33a   : > { %17857 = vsyncadd (%p20115_p3), [#allocation40], 4294965632 }
 0x33b   : > { %17859 = dma.done.wait (%p20116_p12), [#allocation43], 512   ;;  %p20117_p13 = pmov %p20104_p0 }
 0x33d   : > { %17861 = vsyncadd (%p20117_p13), [#allocation43], 4294966784 }
 0x33e   : > { %17863 = dma.done.wait (%p20104_p0), [#allocation46], 6400   ;;  %p20118_p1 = pmov %p20104_p0 }
 0x33f   : > { %p20119_p4 = pmov %p20104_p0 }
 0x340   : > { %17865 = vsyncadd (%p20118_p1), [#allocation46], 4294960896 }
 0x341   : > { %17867 = dma.done.wait (%p20119_p4), [#allocation49], 5120   ;;  %p20120_p6 = pmov %p20104_p0 }
 0x342   : > { %p20121_p8 = pmov %p20104_p0 }
 0x343   : > { %17869 = vsyncadd (%p20120_p6), [#allocation49], 4294962176 }
 0x344   : > { %17871 = dma.done.wait (%p20121_p8), [#allocation52], 1024   ;;  %p20122_p7 = pmov %p20104_p0 }
 0x345   : > { %v17947_v0 = vmov 0   ;;  %v1530_v1 = vld [vmem:[#allocation10 + $0xc] sm:$0xf]  ;;  %v1474_v2 = vld [vmem:[#allocation10 + $0x4] sm:$0xf]  ;;  %v1710_v11 = vld [vmem:[#allocation14 + $0x8] sm:$0xff]  ;;  %v1455_v29 = vlaneseq }
 0x346   : > { %17873 = vsyncadd (%p20122_p7), [#allocation52], 4294966272  ;;  %16834 = vset.pattern.permute.xlu1 %v17947_v0  ;;  %16833 = vset.pattern.permute.xlu0 %v17947_v0  ;;  %v1558_v3 = vld [vmem:[#allocation10 + $0x10] sm:$0xf]  ;;  %v1502_v4 = vld [vmem:[#allocation10 + $0x8] sm:$0xf] }
 0x347   : > { %1533 = vperm.xlu1 %16834, %v1530_v1   ;;  %1477 = vperm.xlu0 %16833, %v1474_v2   ;;  %v1614_v5 = vld [vmem:[#allocation10 + $0x18] sm:$0xf]  ;;  %v1586_v6 = vld [vmem:[#allocation10 + $0x14] sm:$0xf]  ;;  %v1670_v7 = vld [vmem:[#allocation10 + $0x20] sm:$0xf] }
 0x348   : > { %v1642_v8 = vld [vmem:[#allocation10 + $0x1c] sm:$0xf]  ;;  %v1448_v9 = vld [vmem:[#allocation10] sm:$0xf]  ;;  %v1697_v10 = vld [vmem:[#allocation12] sm:$0xf] }
 0x349   : > { %v1713_v12 = vld [vmem:[#allocation14 + $0x20] sm:$0xff]  ;;  %v1712_v15 = vld [vmem:[#allocation14 + $0x18] sm:$0xff]  ;;  %v1719_v17 = vld [vmem:[#allocation14 + $0x50] sm:$0xff]  ;;  %s20123_s22 = sld [smem:[#allocation69_spill]]  ;;  %p1438_p9 = scmp.lt.s32.totalorder %s18160_s18, 1  ;;  %v18645_v30 = vshrl.u32 %v1455_v29, 7 }
 0x34a   : > { %v1709_v13 = vld [vmem:[#allocation14] sm:$0xff]  ;;  %v18622_v14 = vpack.c.bf16 %v1713_v12, %v1710_v11  ;;  %v1716_v16 = vld [vmem:[#allocation14 + $0x38] sm:$0xff]  ;;  %v1715_v20 = vld [vmem:[#allocation14 + $0x30] sm:$0xff]  ;;  %s17948_s3 = smov 127   ;;  %s17949_s5 = smov 126   ;;  %vm1492_vm0 = vcmask 1039360  }
 0x34b   : > { %1561 = vperm.xlu1 %16834, %v1558_v3   ;;  %1505 = vperm.xlu0 %16833, %v1502_v4   ;;  %v18624_v18 = vpack.c.bf16 %v1712_v15, %v1709_v13  ;;  %v18626_v19 = vpack.c.bf16 %v1719_v17, %v1716_v16  ;;  %v1718_v21 = vld [vmem:[#allocation14 + $0x48] sm:$0xff]  ;;  %v1725_v23 = vld [vmem:[#allocation14 + $0x80] sm:$0xff]  ;;  %v1724_v27 = vld [vmem:[#allocation14 + $0x78] sm:$0xff]  ;;  %s20173_s18 = smov (!%p1438_p9, %s18160_s18), 1  ;;  %20124 = vst [vmem:[#allocation92_spill] sm:$0xff] %v18645_v30  ;;  %v1465_v37 = vsub.s32 2, %v18645_v30 }
 0x34c   : > { %v1722_v22 = vld [vmem:[#allocation14 + $0x68] sm:$0xff]  ;;  %15663 = vmatprep.subr.bf16.mxu0 %v18622_v14  ;;  %v18630_v24 = vpack.c.bf16 %v1718_v21, %v1715_v20  ;;  %v1721_v26 = vld [vmem:[#allocation14 + $0x60] sm:$0xff]  ;;  %s16466_s28 = smul.u32 3, %s20173_s18  ;;  %v1728_v31 = vld [vmem:[#allocation14 + $0x98] sm:$0xff]  ;;  %v1461_v38 = vsub.s32 1, %v18645_v30  ;;  %v18661_v46 = vsub.s32 0, %v18645_v30 }
 0x34d   : > { %15665 = vmatpush1.bf16.msra.mxu0 %v18624_v18  ;;  %v18633_v25 = vpack.c.bf16 %v1725_v23, %v1722_v22  ;;  %v18636_v28 = vpack.c.bf16 %v1724_v27, %v1721_v26  ;;  %v1731_v32 = vld [vmem:[#allocation14 + $0xb0] sm:$0xff]  ;;  %v1730_v35 = vld [vmem:[#allocation14 + $0xa8] sm:$0xff]  ;;  %v1737_v41 = vld [vmem:[#allocation14 + $0xe0] sm:$0xff]  ;;  %s17950_s4 = smov 110   ;;  %s17951_s12 = smov 109   ;;  %vm1520_vm1 = vcmask 1031168  }
 0x34e   : > { %15667 = vmatprep.subr.bf16.mxu0 %v18626_v19  ;;  %v18648_v33 = vpack.c.bf16 %v1731_v32, %v1728_v31  ;;  %v1727_v34 = vld [vmem:[#allocation14 + $0x90] sm:$0xff]  ;;  %v1734_v40 = vld [vmem:[#allocation14 + $0xc8] sm:$0xff]  ;;  %v1733_v43 = vld [vmem:[#allocation14 + $0xc0] sm:$0xff]  ;;  %20125 = vst [vmem:[#allocation93_spill] sm:$0xff] %v18661_v46  ;;  %s17952_s7 = smov 108   ;;  %s17953_s13 = smov 92  }
 0x34f   : > { %1617 = vperm.xlu1 %16834, %v1614_v5   ;;  %1589 = vperm.xlu0 %16833, %v1586_v6   ;;  %s1441_s0 = scalar_lea.vmem %s20123_s22, %s16466_s28  ;;  %v18650_v36 = vpack.c.bf16 %v1730_v35, %v1727_v34  ;;  %v18656_v42 = vpack.c.bf16 %v1737_v41, %v1734_v40  ;;  %v1736_v44 = vld [vmem:[#allocation14 + $0xd8] sm:$0xff]  ;;  %v1743_v50 = vld [vmem:[#allocation14 + $0x110] sm:$0xff]  ;;  %v1742_v53 = vld [vmem:[#allocation14 + $0x108] sm:$0xff]  ;;  %s17954_s11 = smov 91   ;;  %vm1548_vm2 = vcmask 900096   ;;  %vm1576_vm3 = vcmask 891904  }
 0x350   : > { %v1447_v39 = vld [vmem:[%s1441_s0] sm:$0x7]  ;;  %v18658_v45 = vpack.c.bf16 %v1736_v44, %v1733_v43  ;;  %v1740_v49 = vld [vmem:[#allocation14 + $0xf8] sm:$0xff]  ;;  %v1739_v52 = vld [vmem:[#allocation14 + $0xf0] sm:$0xff]  ;;  %s17955_s1 = smov 90   ;;  %vm1604_vm4 = vcmask 883712  }
 0x351   : > { %15669 = vmatpush1.bf16.msra.mxu0 %v18630_v24  ;;  %v18663_v47 = vrot.slane %v1447_v39, %v1465_v37  ;;  %v18665_v48 = vrot.slane %v1447_v39, %v1461_v38  ;;  %v18669_v51 = vpack.c.bf16 %v1743_v50, %v1740_v49  ;;  %v18671_v55 = vpack.c.bf16 %v1742_v53, %v1739_v52  ;;  %v1746_v59 = vld [vmem:[#allocation14 + $0x128] sm:$0xff]  ;;  %v1749_v60 = vld [vmem:[#allocation14 + $0x140] sm:$0xff]  ;;  %v1748_v63 = vld [vmem:[#allocation14 + $0x138] sm:$0xff]  ;;  %s17959_s22 = smov 117   ;;  %s17960_s28 = smov 118  }
 0x352   : > { %15671 = vmatprep.subr.bf16.mxu0 %v18633_v25  ;;  %v18676_v58 = vrot.slane %v1447_v39, %v18661_v46  ;;  %v18682_v61 = vpack.c.bf16 %v1749_v60, %v1746_v59  ;;  %v1745_v62 = vld [vmem:[#allocation14 + $0x120] sm:$0xff]  ;;  %v1752_v4 = vld [vmem:[#allocation14 + $0x158] sm:$0xff]  ;;  %v1755_v5 = vld [vmem:[#allocation14 + $0x170] sm:$0xff]  ;;  %vm1632_vm5 = vcmask 752640   ;;  %vm1660_vm6 = vcmask 744448   ;;  %s17961_s0 = smov 107  }
 0x353   : > { %1673 = vperm.xlu1 %16834, %v1670_v7   ;;  %1645 = vperm.xlu0 %16833, %v1642_v8   ;;  %v18684_v1 = vpack.c.bf16 %v1748_v63, %v1745_v62  ;;  %v18692_v6 = vpack.c.bf16 %v1755_v5, %v1752_v4  ;;  %v1751_v7 = vld [vmem:[#allocation14 + $0x150] sm:$0xff]  ;;  %v1754_v8 = vld [vmem:[#allocation14 + $0x168] sm:$0xff]  ;;  %v1761_v15 = vld [vmem:[#allocation14 + $0x1a0] sm:$0xff]  ;;  %vm1688_vm7 = vcmask 736256   ;;  %vm1817_vm8 = vcmask 261120  }
 0x354   : > { %v1758_v13 = vld [vmem:[#allocation14 + $0x188] sm:$0xff]  ;;  %v1757_v21 = vld [vmem:[#allocation14 + $0x180] sm:$0xff]  ;;  %v1760_v22 = vld [vmem:[#allocation14 + $0x198] sm:$0xff]  ;;  %vm17958_vm9 = vmmov 0   ;;  %vm2108_vm10 = vcmask 699392   ;;  %vm2130_vm11 = vcmask 1043456  }
 0x355   : > { %15673 = vmatpush1.bf16.msra.mxu0 %v18636_v28  ;;  %v18704_v20 = vpack.c.bf16 %v1761_v15, %v1758_v13  ;;  %v1759_v23 = vld [vmem:[#allocation14 + $0x190] sm:$0xff]  ;;  %v18706_v26 = vpack.c.bf16 %v1760_v22, %v1757_v21  ;;  %v1762_v27 = vld [vmem:[#allocation14 + $0x1a8] sm:$0xff]  ;;  %v1764_v34 = vld [vmem:[#allocation14 + $0x1b8] sm:$0xff]  ;;  %vm2126_vm12 = vcmask 31744   ;;  %vm7629_vm13 = vcmask 64512  }
 0x356   : > { %15675 = vmatprep.subr.bf16.mxu0 %v18648_v33  ;;  %v1711_v29 = vld [vmem:[#allocation14 + $0x10] sm:$0xff]  ;;  %v1714_v31 = vld [vmem:[#allocation14 + $0x28] sm:$0xff]  ;;  %v18710_v32 = vpack.c.bf16 %v1762_v27, %v1759_v23  ;;  %v1765_v41 = vld [vmem:[#allocation14 + $0x1c0] sm:$0xff]  ;;  %vm8388_vm14 = vcmask 1045504   ;;  %vm8385_vm15 = vcmask 703488  }
 0x357   : > { %1451 = vperm.xlu0 %16833, %v1448_v9   ;;  %v18694_v9 = vpack.c.bf16 %v1754_v8, %v1751_v7  ;;  %v1767_v35 = vld [vmem:[#allocation14 + $0x1d0] sm:$0xff]  ;;  %v18714_v37 = vpack.c.bf16 %v1714_v31, %v1711_v29  ;;  %v1766_v40 = vld [vmem:[#allocation14 + $0x1c8] sm:$0xff]  ;;  %v1768_v49 = vld [vmem:[#allocation14 + $0x1d8] sm:$0xff] }
 0x358   : > { %v18716_v38 = vpack.c.bf16 %v1767_v35, %v1764_v34  ;;  %v1763_v39 = vld [vmem:[#allocation14 + $0x1b0] sm:$0xff]  ;;  %15735 = vmatprep.subr.bf16.mxu1 %v18710_v32  ;;  %v1717_v50 = vld [vmem:[#allocation14 + $0x40] sm:$0xff]  ;;  %v1720_v52 = vld [vmem:[#allocation14 + $0x58] sm:$0xff] }
 0x359   : > { %15677 = vmatpush1.bf16.msra.mxu0 %v18650_v36  ;;  %v18719_v44 = vpack.c.bf16 %v1766_v40, %v1763_v39  ;;  %15737 = vmatpush3.bf16.msra.mxu1 %v18714_v37  ;;  %v1770_v59 = vld [vmem:[#allocation14 + $0x1e8] sm:$0xff]  ;;  %v1773_v60 = vld [vmem:[#allocation14 + $0x200] sm:$0xff]  ;;  %v1723_v7 = vld [vmem:[#allocation14 + $0x70] sm:$0xff] }
 0x35a   : > { %15679 = vmatprep.subr.bf16.mxu0 %v18656_v42  ;;  %v18732_v62 = vpack.c.bf16 %v1773_v60, %v1770_v59  ;;  %v1769_v63 = vld [vmem:[#allocation14 + $0x1e0] sm:$0xff]  ;;  %v1774_v5 = vld [vmem:[#allocation14 + $0x208] sm:$0xff]  ;;  %v1776_v15 = vld [vmem:[#allocation14 + $0x218] sm:$0xff] }
 0x35b   : > { %1700 = vperm.xlu0 %16833, %v1697_v10   ;;  %v1726_v8 = vld [vmem:[#allocation14 + $0x88] sm:$0xff]  ;;  %v1775_v21 = vld [vmem:[#allocation14 + $0x210] sm:$0xff]  ;;  %v1777_v23 = vld [vmem:[#allocation14 + $0x220] sm:$0xff] }
 0x35c   : > { %v18743_v13 = vpack.c.bf16 %v1726_v8, %v1723_v7  ;;  %v1778_v22 = vld [vmem:[#allocation14 + $0x228] sm:$0xff]  ;;  %v1780_v31 = vld [vmem:[#allocation14 + $0x238] sm:$0xff]  ;;  %v1729_v34 = vld [vmem:[#allocation14 + $0xa0] sm:$0xff] }
 0x35d   : > { %15681 = vmatpush1.bf16.msra.mxu0 %v18658_v45  ;;  %v18752_v29 = vpack.c.bf16 %v1778_v22, %v1775_v21  ;;  %v1732_v35 = vld [vmem:[#allocation14 + $0xb8] sm:$0xff]  ;;  %v18757_v40 = vpack.c.bf16 %v1780_v31, %v1777_v23  ;;  %v1783_v59 = vld [vmem:[#allocation14 + $0x250] sm:$0xff]  ;;  %v1790_v22 = vld [vmem:[#allocation14 + $0x288] sm:$0xff] }
 0x35e   : > { %15683 = vmatprep.subr.bf16.mxu0 %v18669_v51  ;;  %v1789_v23 = vld [vmem:[#allocation14 + $0x280] sm:$0xff] }
 0x35f   : > { %20128 = vst [vmem:[#allocation96_spill] sm:$0xff] %v18752_v29 }
 0x361   : > { %15685 = vmatpush1.bf16.msra.mxu0 %v18671_v55 }
 0x362   : > { %15687 = vmatprep.subr.bf16.mxu0 %v18682_v61 }
 0x365   : > { %15689 = vmatpush1.bf16.msra.mxu0 %v18684_v1 }
 0x366   : > { %15691 = vmatprep.subr.bf16.mxu0 %v18692_v6 }
 0x369   : > { %15693 = vmatpush1.bf16.msra.mxu0 %v18694_v9 }
 0x36a   : > { %15695 = vmatprep.subr.bf16.mxu0 %v18704_v20 }
 0x36d   : > { %15697 = vmatpush1.bf16.msra.mxu0 %v18706_v26 }
 0x36e   : > { %15699 = vmatprep.subr.bf16.mxu0 %v18716_v38 }
 0x371   : > { %15701 = vmatpush1.bf16.msra.mxu0 %v18719_v44 }
 0x372   : > { %15703 = vmatprep.subr.bf16.mxu0 %v18732_v62 }
 0x3c6   : > { %v1478_v54 = vpop.permute.xlu0 %1477  ;;  %v1534_v12 = vpop.permute.xlu1 %1533 }
 0x3c7   : > { %v1482_v56 = vmul.f32 %v1478_v54, %v18663_v47  ;;  %v1481_v57 = vmul.f32 %v1478_v54, %v18665_v48  ;;  %v1480_v3 = vmul.f32 %v1478_v54, %v18676_v58  ;;  %v1538_v16 = vmul.f32 %v1534_v12, %v18663_v47 }
 0x3c8   : > { %v1537_v17 = vmul.f32 %v1534_v12, %v18665_v48  ;;  %v1536_v54 = vmul.f32 %v1534_v12, %v18676_v58 }
 0x3c9   : > { %1490 = vrot.lane.b32.xlu0 %v1482_v56, %s17948_s3  ;;  %1488 = vrot.lane.b32.xlu1 %v1481_v57, %s17948_s3  ;;  %v18726_v56 = vpack.c.bf16 %v1768_v49, %v1765_v41  ;;  %v18728_v57 = vpack.c.bf16 %v1720_v52, %v1717_v50  ;;  %v18759_v41 = vpack.c.bf16 %v1732_v35, %v1729_v34  ;;  %v1785_v49 = vld [vmem:[#allocation14 + $0x260] sm:$0xff]  ;;  %v1792_v34 = vld [vmem:[#allocation14 + $0x298] sm:$0xff] }
 0x3ca   : > { %v1506_v0 = vpop.permute.xlu0 %1505  ;;  %v1562_v43 = vpop.permute.xlu1 %1561  ;;  %v1741_v35 = vld [vmem:[#allocation14 + $0x100] sm:$0xff] }
 0x3cb   : > { %v1509_v2 = vmul.f32 %v1506_v0, %v18665_v48  ;;  %v1508_v10 = vmul.f32 %v1506_v0, %v18676_v58  ;;  %v1510_v11 = vmul.f32 %v1506_v0, %v18663_v47  ;;  %v1565_v53 = vmul.f32 %v1562_v43, %v18665_v48  ;;  %v1772_v0 = vld [vmem:[#allocation14 + $0x1f8] sm:$0xff]  ;;  %15739 = vmatprep.subr.bf16.mxu1 %v18726_v56 }
 0x3cc   : > { %v18736_v4 = vpack.c.bf16 %v1772_v0, %v1769_v63  ;;  %15741 = vmatpush3.bf16.msra.mxu1 %v18728_v57  ;;  %20129 = vst [vmem:[#allocation97_spill] sm:$0xff] %v18759_v41  ;;  %v1786_v0 = vld [vmem:[#allocation14 + $0x268] sm:$0xff] }
 0x3cd   : > { %1516 = vrot.lane.b32.xlu0 %v1509_v2, %s17949_s5  ;;  %1486 = vrot.lane.b32.xlu1 %v1480_v3, %s17948_s3  ;;  %v1771_v2 = vld [vmem:[#allocation14 + $0x1f0] sm:$0xff]  ;;  %v1564_v3 = vmul.f32 %v1562_v43, %v18676_v58  ;;  %v18773_v7 = vpack.c.bf16 %v1786_v0, %v1783_v59  ;;  %v1797_v59 = vld [vmem:[#allocation14 + $0x2c0] sm:$0xff] }
 0x3ce   : > { %20126 = vst [vmem:[#allocation94_spill] sm:$0xff] %v18736_v4  ;;  %v18741_v12 = vpack.c.bf16 %v1774_v5, %v1771_v2  ;;  %15705 = vmatpush1.bf16.msra.mxu0 %v18736_v4  ;;  %v1618_v50 = vpop.permute.xlu1 %1617  ;;  %v1735_v2 = vld [vmem:[#allocation14 + $0xd0] sm:$0xff]  ;;  %v1793_v0 = vld [vmem:[#allocation14 + $0x2a0] sm:$0xff] }
 0x3cf   : > { %v1621_v60 = vmul.f32 %v1618_v50, %v18665_v48  ;;  %20132 = vst [vmem:[#allocation100_spill] sm:$0xff] %v18773_v7 }
 0x3d0   : > { %15743 = vmatprep.subr.bf16.mxu1 %v18741_v12 }
 0x3d1   : > { %1514 = vrot.lane.b32.xlu0 %v1508_v10, %s17949_s5  ;;  %1518 = vrot.lane.b32.xlu1 %v1510_v11, %s17949_s5  ;;  %v1590_v10 = vpop.permute.xlu0 %1589  ;;  %v1566_v11 = vmul.f32 %v1562_v43, %v18663_v47  ;;  %v1782_v43 = vld [vmem:[#allocation14 + $0x248] sm:$0xff] }
 0x3d2   : > { %v1594_v27 = vmul.f32 %v1590_v10, %v18663_v47  ;;  %v1593_v39 = vmul.f32 %v1590_v10, %v18665_v48  ;;  %15745 = vmatpush3.bf16.msra.mxu1 %v18743_v13  ;;  %v18764_v52 = vpack.c.bf16 %v1785_v49, %v1782_v43  ;;  %v1592_v5 = vmul.f32 %v1590_v10, %v18676_v58  ;;  %v1787_v10 = vld [vmem:[#allocation14 + $0x270] sm:$0xff] }
 0x3d3   : > { %15747 = vmatprep.subr.bf16.mxu1 %v18757_v40  ;;  %v18784_v31 = vpack.c.bf16 %v1790_v22, %v1787_v10  ;;  %v18789_v49 = vpack.c.bf16 %v1792_v34, %v1789_v23  ;;  %v1747_v10 = vld [vmem:[#allocation14 + $0x130] sm:$0xff]  ;;  %v1750_v22 = vld [vmem:[#allocation14 + $0x148] sm:$0xff]  ;;  %v1674_v23 = vpop.permute.xlu1 %1673 }
 0x3d4   : > { %20130 = vst [vmem:[#allocation98_spill] sm:$0xff] %v18764_v52 }
 0x3d5   : > { %1546 = vrot.lane.b32.xlu0 %v1538_v16, %s17950_s4  ;;  %1544 = vrot.lane.b32.xlu1 %v1537_v17, %s17950_s4  ;;  %v1779_v16 = vld [vmem:[#allocation14 + $0x230] sm:$0xff]  ;;  %20135 = vst [vmem:[#allocation103_spill] sm:$0xff] %v18784_v31  ;;  %20136 = vst [vmem:[#allocation104_spill] sm:$0xff] %v18789_v49 }
 0x3d6   : > { %v18748_v17 = vpack.c.bf16 %v1779_v16, %v1776_v15  ;;  %15749 = vmatpush3.bf16.msra.mxu1 %v18759_v41  ;;  %v1788_v15 = vld [vmem:[#allocation14 + $0x278] sm:$0xff]  ;;  %v1791_v16 = vld [vmem:[#allocation14 + $0x290] sm:$0xff] }
 0x3d7   : > { %v18780_v21 = vpack.c.bf16 %v1791_v16, %v1788_v15  ;;  %15751 = vmatprep.subr.bf16.mxu1 %v18773_v7  ;;  %v1798_v16 = vld [vmem:[#allocation14 + $0x2c8] sm:$0xff] }
 0x3d8   : > { %20127 = vst [vmem:[#allocation95_spill] sm:$0xff] %v18748_v17  ;;  %15707 = vmatprep.subr.bf16.mxu0 %v18748_v17 }
 0x3d9   : > { %1572 = vrot.lane.b32.xlu0 %v1565_v53, %s17951_s12  ;;  %1542 = vrot.lane.b32.xlu1 %v1536_v54, %s17950_s4  ;;  %v1781_v53 = vld [vmem:[#allocation14 + $0x240] sm:$0xff]  ;;  %v1784_v54 = vld [vmem:[#allocation14 + $0x258] sm:$0xff]  ;;  %20134 = vst [vmem:[#allocation102_spill] sm:$0xff] %v18780_v21 }
 0x3da   : > { %15709 = vmatpush1.bf16.msra.mxu0 %v18752_v29  ;;  %v18768_v63 = vpack.c.bf16 %v1784_v54, %v1781_v53  ;;  %v1794_v54 = vld [vmem:[#allocation14 + $0x2a8] sm:$0xff] }
 0x3db   : > { %15711 = vmatprep.subr.bf16.mxu0 %v18764_v52 }
 0x3dc   : > { %20131 = vst [vmem:[#allocation99_spill] sm:$0xff] %v18768_v63 }
 0x3dd   : > { %1570 = vrot.lane.b32.xlu0 %v1564_v3, %s17951_s12  ;;  %1574 = vrot.lane.b32.xlu1 %v1566_v11, %s17951_s12  ;;  %v1738_v3 = vld [vmem:[#allocation14 + $0xe8] sm:$0xff]  ;;  %v1646_v11 = vpop.permute.xlu0 %1645 }
 0x3de   : > { %v18775_v8 = vpack.c.bf16 %v1738_v3, %v1735_v2  ;;  %15713 = vmatpush1.bf16.msra.mxu0 %v18768_v63  ;;  %v1649_v43 = vmul.f32 %v1646_v11, %v18665_v48  ;;  %v1796_v2 = vld [vmem:[#allocation14 + $0x2b8] sm:$0xff]  ;;  %v1795_v3 = vld [vmem:[#allocation14 + $0x2b0] sm:$0xff]  ;;  %v1648_v34 = vmul.f32 %v1646_v11, %v18676_v58  ;;  %v1650_v46 = vmul.f32 %v1646_v11, %v18663_v47 }
 0x3df   : > { %15715 = vmatprep.subr.bf16.mxu0 %v18780_v21  ;;  %v18800_v15 = vpack.c.bf16 %v1796_v2, %v1793_v0  ;;  %v1801_v0 = vld [vmem:[#allocation14 + $0x2e0] sm:$0xff]  ;;  %v1678_v2 = vmul.f32 %v1674_v23, %v18663_v47  ;;  %v1677_v11 = vmul.f32 %v1674_v23, %v18665_v48 }
 0x3e0   : > { %20133 = vst [vmem:[#allocation101_spill] sm:$0xff] %v18775_v8  ;;  %15753 = vmatpush3.bf16.msra.mxu1 %v18775_v8 }
 0x3e1   : > { %1602 = vrot.lane.b32.xlu0 %v1594_v27, %s17952_s7  ;;  %1600 = vrot.lane.b32.xlu1 %v1593_v39, %s17952_s7  ;;  %v1622_v27 = vmul.f32 %v1618_v50, %v18663_v47  ;;  %v1744_v39 = vld [vmem:[#allocation14 + $0x118] sm:$0xff]  ;;  %20139 = vst [vmem:[#allocation107_spill] sm:$0xff] %v18800_v15 }
 0x3e2   : > { %v18791_v53 = vpack.c.bf16 %v1744_v39, %v1741_v35  ;;  %15717 = vmatpush1.bf16.msra.mxu0 %v18784_v31  ;;  %15755 = vmatprep.subr.bf16.mxu1 %v18789_v49  ;;  %v18807_v35 = vpack.c.bf16 %v1750_v22, %v1747_v10  ;;  %v1803_v39 = vld [vmem:[#allocation14 + $0x2f0] sm:$0xff]  ;;  %v1753_v10 = vld [vmem:[#allocation14 + $0x160] sm:$0xff]  ;;  %v1756_v22 = vld [vmem:[#allocation14 + $0x178] sm:$0xff] }
 0x3e4   : > { %20137 = vst [vmem:[#allocation105_spill] sm:$0xff] %v18791_v53  ;;  %15757 = vmatpush3.bf16.msra.mxu1 %v18791_v53  ;;  %20141 = vst [vmem:[#allocation109_spill] sm:$0xff] %v18807_v35 }
 0x3e5   : > { %1628 = vrot.lane.b32.xlu0 %v1621_v60, %s17953_s13  ;;  %1598 = vrot.lane.b32.xlu1 %v1592_v5, %s17952_s7  ;;  %v18796_v60 = vpack.c.bf16 %v1797_v59, %v1794_v54  ;;  %v1620_v5 = vmul.f32 %v1618_v50, %v18676_v58  ;;  %v1800_v50 = vld [vmem:[#allocation14 + $0x2d8] sm:$0xff]  ;;  %v1799_v54 = vld [vmem:[#allocation14 + $0x2d0] sm:$0xff]  ;;  %v1802_v59 = vld [vmem:[#allocation14 + $0x2e8] sm:$0xff] }
 0x3e7   : > { %20138 = vst [vmem:[#allocation106_spill] sm:$0xff] %v18796_v60  ;;  %15719 = vmatprep.subr.bf16.mxu0 %v18796_v60 }
 0x3e8   : > { %15721 = vmatpush1.bf16.msra.mxu0 %v18800_v15 }
 0x3e9   : > { %1656 = vrot.lane.b32.xlu0 %v1649_v43, %s17954_s11  ;;  %1630 = vrot.lane.b32.xlu1 %v1622_v27, %s17953_s13  ;;  %v18805_v27 = vpack.c.bf16 %v1798_v16, %v1795_v3  ;;  %v18812_v43 = vpack.c.bf16 %v1803_v39, %v1800_v50  ;;  %v18816_v3 = vpack.c.bf16 %v1802_v59, %v1799_v54  ;;  %v1804_v16 = vld [vmem:[#allocation14 + $0x2f8] sm:$0xff]  ;;  %v1806_v50 = vld [vmem:[#allocation14 + $0x308] sm:$0xff]  ;;  %v1809_v39 = vld [vmem:[#allocation14 + $0x320] sm:$0xff]  ;;  %v1452_v59 = vpop.permute.xlu0 %1451 }
 0x3ea   : > { %v18826_v30 = vpack.c.bf16 %v1809_v39, %v1806_v50  ;;  %v1676_v54 = vmul.f32 %v1674_v23, %v18676_v58 }
 0x3eb   : > { %20140 = vst [vmem:[#allocation108_spill] sm:$0xff] %v18805_v27  ;;  %20142 = vst [vmem:[#allocation110_spill] sm:$0xff] %v18812_v43  ;;  %15759 = vmatprep.subr.bf16.mxu1 %v18805_v27  ;;  %15723 = vmatprep.subr.bf16.mxu0 %v18812_v43  ;;  %v1470_v27 = vmul.f32 %v18676_v58, %v1452_v59 }
 0x3ec   : > { %20143 = vst [vmem:[#allocation111_spill] sm:$0xff] %v18816_v3  ;;  %15761 = vmatpush3.bf16.msra.mxu1 %v18807_v35  ;;  %15725 = vmatpush1.bf16.msra.mxu0 %v18816_v3  ;;  %20146 = vst [vmem:[#allocation114_spill] sm:$0xff] %v18826_v30 }
 0x3ed   : > { %1654 = vrot.lane.b32.xlu0 %v1648_v34, %s17954_s11  ;;  %1626 = vrot.lane.b32.xlu1 %v1620_v5, %s17953_s13  ;;  %v18821_v5 = vpack.c.bf16 %v1804_v16, %v1801_v0  ;;  %v18823_v34 = vpack.c.bf16 %v1756_v22, %v1753_v10  ;;  %v18837_v0 = vpop.permute.xlu0 %1700 }
 0x3ee   : > { %15727 = vmatprep.subr.bf16.mxu0 %v18826_v30 }
 0x3ef   : > { %20144 = vst [vmem:[#allocation112_spill] sm:$0xff] %v18821_v5  ;;  %20145 = vst [vmem:[#allocation113_spill] sm:$0xff] %v18823_v34  ;;  %15763 = vmatprep.subr.bf16.mxu1 %v18821_v5  ;;  %v1471_v5 = vmul.f32 %v18665_v48, %v1452_v59 }
 0x3f0   : > { %15765 = vmatpush3.bf16.msra.mxu1 %v18823_v34 }
 0x3f1   : > { %1686 = vrot.lane.b32.xlu0 %v1678_v2, %s17955_s1  ;;  %1658 = vrot.lane.b32.xlu1 %v1650_v46, %s17954_s11 }
 0x3f5   : > { %1684 = vrot.lane.b32.xlu1 %v1677_v11, %s17955_s1 }
 0x3f9   : > { %1682 = vrot.lane.b32.xlu1 %v1676_v54, %s17955_s1 }
 0x43b   : > { %v1491_v2 = vpop.permute.xlu0 %1490  ;;  %v1489_v16 = vpop.permute.xlu1 %1488 }
 0x43c   : > { %v1494_v31 = vsel %vm1492_vm0, %v1489_v16, %v1491_v2 }
 0x43d   : > { %v1499_v63 = vadd.f32 %v1494_v31, %v1471_v5 }
 0x43f   : > { %v1517_v46 = vpop.permute.xlu0 %1516  ;;  %v1487_v10 = vpop.permute.xlu1 %1486 }
 0x440   : > { %v1493_v35 = vsel %vm1492_vm0, %v1487_v10, %v1489_v16  ;;  %v1472_v16 = vmul.f32 %v18663_v47, %v1452_v59 }
 0x441   : > { %v1498_v8 = vadd.f32 %v1493_v35, %v1470_v27 }
 0x443   : > { %v1515_v22 = vpop.permute.xlu0 %1514  ;;  %v1519_v50 = vpop.permute.xlu1 %1518 }
 0x444   : > { %v1522_v21 = vsel %vm1520_vm1, %v1517_v46, %v1519_v50  ;;  %v1521_v29 = vsel %vm1520_vm1, %v1515_v22, %v1517_v46  ;;  %v1500_v46 = vadd.f32 %v1491_v2, %v1472_v16 }
 0x445   : > { %v1527_v17 = vadd.f32 %v1522_v21, %v1499_v63  ;;  %v1526_v10 = vadd.f32 %v1521_v29, %v1498_v8 }
 0x446   : > { %v1528_v21 = vadd.f32 %v1519_v50, %v1500_v46  ;;  %v1808_v46 = vld [vmem:[#allocation14 + $0x318] sm:$0xff] }
 0x447   : > { %v1547_v39 = vpop.permute.xlu0 %1546  ;;  %v1545_v30 = vpop.permute.xlu1 %1544 }
 0x448   : > { %v1550_v49 = vsel %vm1548_vm2, %v1545_v30, %v1547_v39  ;;  %v1556_v8 = vadd.f32 %v1547_v39, %v1528_v21  ;;  %v1811_v21 = vld [vmem:[#allocation14 + $0x330] sm:$0xff] }
 0x449   : > { %v1555_v31 = vadd.f32 %v1550_v49, %v1527_v17 }
 0x44b   : > { %v1573_v3 = vpop.permute.xlu0 %1572  ;;  %v1543_v43 = vpop.permute.xlu1 %1542 }
 0x44c   : > { %v1549_v48 = vsel %vm1548_vm2, %v1543_v43, %v1545_v30 }
 0x44d   : > { %v1554_v22 = vadd.f32 %v1549_v48, %v1526_v10 }
 0x44f   : > { %v1571_v15 = vpop.permute.xlu0 %1570  ;;  %v1575_v34 = vpop.permute.xlu1 %1574 }
 0x450   : > { %v1578_v4 = vsel %vm1576_vm3, %v1573_v3, %v1575_v34  ;;  %v1577_v5 = vsel %vm1576_vm3, %v1571_v15, %v1573_v3  ;;  %v1584_v3 = vadd.f32 %v1575_v34, %v1556_v8  ;;  %v1810_v8 = vld [vmem:[#allocation14 + $0x328] sm:$0xff] }
 0x451   : > { %v1583_v41 = vadd.f32 %v1578_v4, %v1555_v31  ;;  %v1582_v35 = vadd.f32 %v1577_v5, %v1554_v22  ;;  %v1805_v5 = vld [vmem:[#allocation14 + $0x300] sm:$0xff]  ;;  %v1812_v22 = vld [vmem:[#allocation14 + $0x338] sm:$0xff] }
 0x453   : > { %v1603_v11 = vpop.permute.xlu0 %1602  ;;  %v1601_v60 = vpop.permute.xlu1 %1600 }
 0x454   : > { %v1606_v7 = vsel %vm1604_vm4, %v1601_v60, %v1603_v11  ;;  %v1612_v50 = vadd.f32 %v1603_v11, %v1584_v3  ;;  %v17957_v3 = vmov 0.0|0.0  }
 0x455   : > { %v1611_v43 = vadd.f32 %v1606_v7, %v1583_v41 }
 0x457   : > { %v1629_v23 = vpop.permute.xlu0 %1628  ;;  %v1599_v54 = vpop.permute.xlu1 %1598 }
 0x458   : > { %v1605_v63 = vsel %vm1604_vm4, %v1599_v54, %v1601_v60 }
 0x459   : > { %v1610_v49 = vadd.f32 %v1605_v63, %v1582_v35  ;;  %v1815_v63 = vld [vmem:[#allocation14 + $0x350] sm:$0xff]  ;;  %v1814_v35 = vld [vmem:[#allocation14 + $0x348] sm:$0xff] }
 0x45b   : > { %v1657_v53 = vpop.permute.xlu0 %1656  ;;  %v1631_v52 = vpop.permute.xlu1 %1630 }
 0x45c   : > { %v1634_v30 = vsel %vm1632_vm5, %v1629_v23, %v1631_v52  ;;  %v1640_v7 = vadd.f32 %v1631_v52, %v1612_v50 }
 0x45d   : > { %v1639_v15 = vadd.f32 %v1634_v30, %v1611_v43  ;;  %v18860_v30 = vpack.c.bf16 %v1808_v46, %v1805_v5  ;;  %v18865_v43 = vpack.c.bf16 %v1814_v35, %v1811_v21 }
 0x45f   : > { %v1627_v58 = vpop.permute.xlu1 %1626  ;;  %v1655_v27 = vpop.permute.xlu0 %1654 }
 0x460   : > { %v1633_v17 = vsel %vm1632_vm5, %v1627_v58, %v1629_v23  ;;  %v1661_v41 = vsel %vm1660_vm6, %v1655_v27, %v1657_v53  ;;  %v18862_v27 = vpack.c.bf16 %v1815_v63, %v1812_v22 }
 0x461   : > { %v1638_v4 = vadd.f32 %v1633_v17, %v1610_v49 }
 0x463   : > { %v1659_v47 = vpop.permute.xlu1 %1658  ;;  %v1687_v59 = vpop.permute.xlu0 %1686  ;;  %v1666_v23 = vadd.f32 %v1661_v41, %v1638_v4  ;;  %v1813_v4 = vld [vmem:[#allocation14 + $0x340] sm:$0xff] }
 0x464   : > { %v1662_v29 = vsel %vm1660_vm6, %v1657_v53, %v1659_v47  ;;  %v1668_v31 = vadd.f32 %v1659_v47, %v1640_v7  ;;  %v17956_v47 = vmov 0.0  }
 0x465   : > { %v1667_v2 = vadd.f32 %v1662_v29, %v1639_v15  ;;  %v1807_v29 = vld [vmem:[#allocation14 + $0x310] sm:$0xff] }
 0x466   : > { %v1696_v52 = vadd.f32 %v1687_v59, %v1668_v31  ;;  %v18872_v49 = vpack.c.bf16 %v1810_v8, %v1807_v29  ;;  %v2114_v29 = vld [vmem:[#allocation15 + $0x4] sm:$0xf] }
 0x467   : > { %v1685_v60 = vpop.permute.xlu1 %1684 }
 0x468   : > { %v1690_v54 = vsel %vm1688_vm7, %v1685_v60, %v1687_v59  ;;  %v1705_v17 = vadd.f32 %v18837_v0, %v1696_v52  ;;  %v1816_v59 = vld [vmem:[#allocation14 + $0x358] sm:$0xff] }
 0x469   : > { %v1695_v48 = vadd.f32 %v1690_v54, %v1667_v2 }
 0x46a   : > { %v1708_v15 = vmax.f32 %v1705_v17, 0.0 }
 0x46b   : > { %v1683_v16 = vpop.permute.xlu1 %1682  ;;  %v1704_v10 = vadd.f32 %v18837_v0, %v1695_v48 }
 0x46c   : > { %v1689_v39 = vsel %vm1688_vm7, %v1683_v16, %v1685_v60 }
 0x46d   : > { %v1694_v58 = vadd.f32 %v1689_v39, %v1666_v23  ;;  %v1707_v34 = vmax.f32 %v1704_v10, 0.0 }
 0x46f   : > { %1885 = vmatprep.mubr.f32.mxu0 %v1707_v34  ;;  %2027 = vmatprep.mubr.f32.mxu1 %v1707_v34  ;;  %v1703_v11 = vadd.f32 %v18837_v0, %v1694_v58  ;;  %v18877_v0 = vpack.c.bf16 %v1816_v59, %v1813_v4 }
 0x471   : > { %v1706_v53 = vmax.f32 %v1703_v11, 0.0  ;;  %v3604_v11 = vld [vmem:[#allocation17] sm:$0xf] }
 0x473   : > { %1886 = vmatmul.mubr.f32.vlgmr.msra.gmra.mrb[0].mxu0 %v1706_v53  ;;  %2028 = vmatmul.mubr.f32.vlgmr.msra.gmra.mrb[0].mxu1 %v1706_v53 }
 0x474   : > { %15729 = vmatpush1.bf16.msra.mxu0 %v18860_v30  ;;  %1956 = vmatprep.mubr.f32.mxu0 %v17956_v47 }
 0x475   : > { %15731 = vmatprep.subr.bf16.mxu0 %v18862_v27  ;;  %2201 = vmatprep.mubr.f32.mxu1 %v17956_v47 }
 0x478   : > { %15733 = vmatpush1.bf16.msra.mxu0 %v18865_v43 }
 0x479   : > { %15766 = vmatprep.subr.bf16.mxu0 %v17957_v3 }
 0x47b   : > { %14117 = vmatmul.mubr.msk.f32.vlgmr.msra.gmra.mrb[0].mxu0 %vm1817_vm8, %v1708_v15 }
 0x47c   : > { %15768 = vmatpush3.bf16.msra.mxu0 %v18872_v49  ;;  %14964 = vmatprep.mubr.msk.f32.mxu0 %vm17958_vm9, %v17956_v47 }
 0x47d   : > { %15769 = vmatprep.subr.bf16.mxu0 %v17957_v3 }
 0x480   : > { %15771 = vmatpush3.bf16.msra.mxu0 %v18877_v0 }
 0x481   : > { %14987 = vmatprep.subr.mxu0 %v17956_v47 }
 0x483   : > { %14965 = vmatmul.mubr.msk.f32.vlgmr.msra.gmra.mrb[2].mxu0 %vm1817_vm8, %v1708_v15 }
 0x484   : > { %14989 = vmatprep.mubr.msk.f32.mxu0 %vm17958_vm9, %v17956_v47 }
 0x546   : > { %v14451_v2 = vpop.f32.mrb[0].mxu1 }
 0x547   : > { %v14452_v60 = vpop.f32.mrb[1].mxu1 }
 0x548   : > { %v14453_v54 = vadd.f32 %v14452_v60, %v14451_v2  ;;  %v2112_v60 = vld [vmem:[#allocation15] sm:$0xf] }
 0x54e   : > { %v1958_v50 = vpop.f32.mrb[0].mxu0 }
 0x54f   : > { %v1960_v48 = vpop.f32.mrb[1].mxu0 }
 0x550   : > { %v18887_v41 = vcombine.low %v1958_v50, %v1960_v48  ;;  %v18889_v7 = vcombine.low %v1960_v48, %v1960_v48  ;;  %v2767_v48 = vld [vmem:[#allocation15 + $0x10] sm:$0xf] }
 0x552   : > { %2120 = vrot.lane.b32.xlu0 %v18889_v7, %s17948_s3 }
 0x556   : > { %v2099_v16 = vpop.f32.mrb[2].mxu0  ;;  %2118 = vrot.lane.b32.xlu0 %v18887_v41, %s17948_s3 }
 0x557   : > { %v2100_v23 = vadd.f32 %v14453_v54, %v2099_v16  ;;  %v14966_v10 = vpop.f32.mrb[3].mxu0 }
 0x559   : > { %2109 = vst.msk [vmem:[#allocation2 + $0x8] sm:$0xf] %vm2108_vm10, %v2100_v23 }
 0x560   : > { %v2111_v39 = vld [vmem:[#allocation2 + $0x8] sm:$0xf] }
 0x561   : > { %v2429_v31 = vld [vmem:[#allocation2 + $0x8] sm:$0xf]  ;;  %2122 = vrot.lane.b32.xlu1 %v2111_v39, %s17948_s3 }
 0x562   : > { %2439 = vrot.lane.b32.xlu0 %v2429_v31, %s17949_s5  ;;  %v2597_v58 = vld [vmem:[#allocation2 + $0x8] sm:$0xf] }
 0x563   : > { %v2765_v34 = vld [vmem:[#allocation2 + $0x8] sm:$0xf] }
 0x564   : > { %v2933_v5 = vld [vmem:[#allocation2 + $0x8] sm:$0xf] }
 0x565   : > { %2437 = vrot.lane.b32.xlu1 %v18889_v7, %s17949_s5  ;;  %v3101_v46 = vld [vmem:[#allocation2 + $0x8] sm:$0xf] }
 0x566   : > { %2605 = vrot.lane.b32.xlu0 %v18889_v7, %s17950_s4  ;;  %v3269_v22 = vld [vmem:[#allocation2 + $0x8] sm:$0xf] }
 0x567   : > { %v3437_v63 = vld [vmem:[#allocation2 + $0x8] sm:$0xf] }
 0x569   : > { %2435 = vrot.lane.b32.xlu1 %v18887_v41, %s17949_s5 }
 0x56a   : > { %2603 = vrot.lane.b32.xlu0 %v18887_v41, %s17950_s4 }
 0x56d   : > { %2607 = vrot.lane.b32.xlu1 %v2597_v58, %s17950_s4 }
 0x56e   : > { %2775 = vrot.lane.b32.xlu0 %v2765_v34, %s17951_s12 }
 0x571   : > { %2773 = vrot.lane.b32.xlu1 %v18889_v7, %s17951_s12 }
 0x572   : > { %2941 = vrot.lane.b32.xlu0 %v18889_v7, %s17952_s7 }
 0x575   : > { %2771 = vrot.lane.b32.xlu1 %v18887_v41, %s17951_s12 }
 0x576   : > { %2939 = vrot.lane.b32.xlu0 %v18887_v41, %s17952_s7 }
 0x579   : > { %2943 = vrot.lane.b32.xlu1 %v2933_v5, %s17952_s7 }
 0x57a   : > { %3111 = vrot.lane.b32.xlu0 %v3101_v46, %s17953_s13 }
 0x57d   : > { %3109 = vrot.lane.b32.xlu1 %v18889_v7, %s17953_s13 }
 0x57e   : > { %3277 = vrot.lane.b32.xlu0 %v18889_v7, %s17954_s11 }
 0x581   : > { %3107 = vrot.lane.b32.xlu1 %v18887_v41, %s17953_s13 }
 0x582   : > { %3275 = vrot.lane.b32.xlu0 %v18887_v41, %s17954_s11 }
 0x585   : > { %3279 = vrot.lane.b32.xlu1 %v3269_v22, %s17954_s11 }
 0x586   : > { %3447 = vrot.lane.b32.xlu0 %v3437_v63, %s17955_s1 }
 0x589   : > { %3445 = vrot.lane.b32.xlu1 %v18889_v7, %s17955_s1 }
 0x58a   : > { %3607 = vperm.xlu0 %16833, %v3604_v11   ;;  %v2935_v11 = vld [vmem:[#allocation15 + $0x14] sm:$0xf] }
 0x58d   : > { %3443 = vrot.lane.b32.xlu1 %v18887_v41, %s17955_s1 }
 0x5c4   : > { %v2121_v52 = vpop.permute.xlu0 %2120 }
 0x5c8   : > { %v2119_v53 = vpop.permute.xlu0 %2118 }
 0x5c9   : > { %v2124_v8 = vsel %vm1492_vm0, %v2119_v53, %v2121_v52 }
 0x5d3   : > { %v2123_v21 = vpop.permute.xlu1 %2122 }
 0x5d4   : > { %v2440_v35 = vpop.permute.xlu0 %2439  ;;  %v2125_v17 = vsel %vm1492_vm0, %v2121_v52, %v2123_v21  ;;  %v2599_v52 = vld [vmem:[#allocation15 + $0xc] sm:$0xf] }
 0x5d5   : > { %14119 = vmatprep.subr.msk.mxu1 %vm2130_vm11, %v2125_v17 }
 0x5d6   : > { %14120 = vmatpush1.msk.msra.mxu1 %vm2130_vm11, %v2124_v8 }
 0x5d7   : > { %14121 = vmatmul.mubr.msk.f32.vlgmr.msra.gmra.mrb[2].mxu1 %vm2126_vm12, %v2114_v29  ;;  %14967 = vmatprep.subr.mxu1 %v17956_v47  ;;  %v2438_v15 = vpop.permute.xlu1 %2437 }
 0x5d8   : > { %v2606_v4 = vpop.permute.xlu0 %2605  ;;  %14968 = vmatpush3.msk.msra.mxu1 %vm2130_vm11, %v2123_v21  ;;  %14969 = vmatprep.mubr.msk.f32.mxu1 %vm17958_vm9, %v17956_v47  ;;  %v2442_v16 = vsel %vm1520_vm1, %v2438_v15, %v2440_v35 }
 0x5d9   : > { %14124 = vmatprep.subr.msk.mxu1 %vm2130_vm11, %v18889_v7 }
 0x5db   : > { %14970 = vmatmul.mubr.msk.f32.vlgmr.msra.gmra.mrb[4].mxu1 %vm2126_vm12, %v2114_v29  ;;  %v2436_v59 = vpop.permute.xlu1 %2435 }
 0x5dc   : > { %v2604_v2 = vpop.permute.xlu0 %2603  ;;  %14125 = vmatpush1.msk.msra.mxu1 %vm2130_vm11, %v18887_v41  ;;  %2351 = vmatprep.mubr.f32.mxu1 %v17956_v47  ;;  %v2441_v23 = vsel %vm1520_vm1, %v2436_v59, %v2438_v15  ;;  %v3271_v59 = vld [vmem:[#allocation15 + $0x1c] sm:$0xf] }
 0x5dd   : > { %14972 = vmatprep.subr.mxu1 %v17956_v47  ;;  %v2609_v46 = vsel %vm1548_vm2, %v2604_v2, %v2606_v4 }
 0x5df   : > { %14126 = vmatmul.mubr.msk.f32.vlgmr.msra.gmra.mrb[2].mxu1 %vm2126_vm12, %v2112_v60  ;;  %v2608_v54 = vpop.permute.xlu1 %2607 }
 0x5e0   : > { %v2776_v50 = vpop.permute.xlu0 %2775  ;;  %14973 = vmatpush3.msk.msra.mxu1 %vm2130_vm11, %v2111_v39  ;;  %14974 = vmatprep.mubr.msk.f32.mxu1 %vm17958_vm9, %v17956_v47  ;;  %v2431_v39 = vld [vmem:[#allocation15 + $0x8] sm:$0xf]  ;;  %v2610_v5 = vsel %vm1548_vm2, %v2606_v4, %v2608_v54 }
 0x5e1   : > { %14129 = vmatprep.subr.msk.mxu1 %vm2130_vm11, %v2442_v16  ;;  %14988 = vmatpush3.msk.msra.mxu0 %vm2130_vm11, %v2776_v50  ;;  %v3439_v16 = vld [vmem:[#allocation15 + $0x20] sm:$0xf] }
 0x5e2   : > { %14992 = vmatprep.subr.mxu0 %v17956_v47  ;;  %14990 = vmatmul.mubr.msk.f32.vlgmr.msra.gmra.mrb[4].mxu0 %vm2126_vm12, %v2767_v48 }
 0x5e3   : > { %14975 = vmatmul.mubr.msk.f32.vlgmr.msra.gmra.mrb[6].mxu1 %vm2126_vm12, %v2112_v60  ;;  %v2774_v10 = vpop.permute.xlu1 %2773  ;;  %14994 = vmatprep.mubr.msk.f32.mxu0 %vm17958_vm9, %v17956_v47 }
 0x5e4   : > { %v2942_v31 = vpop.permute.xlu0 %2941  ;;  %14130 = vmatpush1.msk.msra.mxu1 %vm2130_vm11, %v2441_v23  ;;  %2516 = vmatprep.mubr.f32.mxu1 %v17956_v47  ;;  %v2778_v17 = vsel %vm1576_vm3, %v2774_v10, %v2776_v50 }
 0x5e5   : > { %14977 = vmatprep.subr.mxu1 %v17956_v47 }
 0x5e7   : > { %14131 = vmatmul.mubr.msk.f32.vlgmr.msra.gmra.mrb[2].mxu1 %vm2126_vm12, %v2431_v39  ;;  %v2772_v58 = vpop.permute.xlu1 %2771 }
 0x5e8   : > { %v2940_v34 = vpop.permute.xlu0 %2939  ;;  %14978 = vmatpush3.msk.msra.mxu1 %vm2130_vm11, %v2440_v35  ;;  %14979 = vmatprep.mubr.msk.f32.mxu1 %vm17958_vm9, %v17956_v47  ;;  %v3103_v35 = vld [vmem:[#allocation15 + $0x18] sm:$0xf]  ;;  %v2777_v29 = vsel %vm1576_vm3, %v2772_v58, %v2774_v10 }
 0x5e9   : > { %14134 = vmatprep.subr.msk.mxu1 %vm2130_vm11, %v2610_v5  ;;  %v2945_v2 = vsel %vm1604_vm4, %v2940_v34, %v2942_v31 }
 0x5eb   : > { %14980 = vmatmul.mubr.msk.f32.vlgmr.msra.gmra.mrb[8].mxu1 %vm2126_vm12, %v2431_v39  ;;  %v2944_v22 = vpop.permute.xlu1 %2943 }
 0x5ec   : > { %v3112_v63 = vpop.permute.xlu0 %3111  ;;  %14135 = vmatpush1.msk.msra.mxu1 %vm2130_vm11, %v2609_v46  ;;  %14993 = vmatpush3.msk.msra.mxu0 %vm2130_vm11, %v2944_v22  ;;  %v2946_v15 = vsel %vm1604_vm4, %v2942_v31, %v2944_v22 }
 0x5ed   : > { %2684 = vmatprep.mubr.f32.mxu1 %v17956_v47  ;;  %14982 = vmatprep.subr.mxu1 %v17956_v47 }
 0x5ee   : > { %14997 = vmatprep.subr.mxu0 %v17956_v47  ;;  %14995 = vmatmul.mubr.msk.f32.vlgmr.msra.gmra.mrb[6].mxu0 %vm2126_vm12, %v2935_v11 }
 0x5ef   : > { %14136 = vmatmul.mubr.msk.f32.vlgmr.msra.gmra.mrb[2].mxu1 %vm2126_vm12, %v2599_v52  ;;  %v3110_v53 = vpop.permute.xlu1 %3109  ;;  %14998 = vmatpush3.msk.msra.mxu0 %vm2130_vm11, %v3112_v63 }
 0x5f0   : > { %v3278_v21 = vpop.permute.xlu0 %3277  ;;  %14983 = vmatpush3.msk.msra.mxu1 %vm2130_vm11, %v2608_v54  ;;  %14984 = vmatprep.mubr.msk.f32.mxu1 %vm17958_vm9, %v17956_v47  ;;  %v3114_v54 = vsel %vm1632_vm5, %v3110_v53, %v3112_v63 }
 0x5f1   : > { %14139 = vmatprep.subr.msk.mxu1 %vm2130_vm11, %v2778_v17  ;;  %14999 = vmatprep.mubr.msk.f32.mxu0 %vm17958_vm9, %v17956_v47 }
 0x5f2   : > { %15000 = vmatmul.mubr.msk.f32.vlgmr.msra.gmra.mrb[8].mxu0 %vm2126_vm12, %v3103_v35  ;;  %15002 = vmatprep.subr.mxu0 %v17956_v47 }
 0x5f3   : > { %14985 = vmatmul.mubr.msk.f32.vlgmr.msra.gmra.mrb[10].mxu1 %vm2126_vm12, %v2599_v52  ;;  %v3108_v8 = vpop.permute.xlu1 %3107  ;;  %15004 = vmatprep.mubr.msk.f32.mxu0 %vm17958_vm9, %v17956_v47 }
 0x5f4   : > { %14140 = vmatpush1.msk.msra.mxu1 %vm2130_vm11, %v2777_v29  ;;  %2852 = vmatprep.mubr.f32.mxu1 %v17956_v47  ;;  %v3276_v4 = vpop.permute.xlu0 %3275 }
 0x5f5   : > { %14144 = vmatprep.subr.msk.mxu1 %vm2130_vm11, %v2946_v15 }
 0x5f7   : > { %14141 = vmatmul.mubr.msk.f32.vlgmr.msra.gmra.mrb[2].mxu1 %vm2126_vm12, %v2767_v48  ;;  %v3280_v60 = vpop.permute.xlu1 %3279  ;;  %v3113_v48 = vsel %vm1632_vm5, %v3108_v8, %v3110_v53 }
 0x5f8   : > { %14145 = vmatpush1.msk.msra.mxu1 %vm2130_vm11, %v2945_v2  ;;  %15003 = vmatpush3.msk.msra.mxu0 %vm2130_vm11, %v3280_v60  ;;  %v3448_v50 = vpop.permute.xlu0 %3447  ;;  %v3282_v23 = vsel %vm1660_vm6, %v3278_v21, %v3280_v60 }
 0x5f9   : > { %14149 = vmatprep.subr.msk.mxu1 %vm2130_vm11, %v3114_v54  ;;  %15005 = vmatmul.mubr.msk.f32.vlgmr.msra.gmra.mrb[10].mxu0 %vm2126_vm12, %v3271_v59 }
 0x5fa   : > { %15007 = vmatprep.subr.mxu0 %v17956_v47  ;;  %15009 = vmatprep.mubr.msk.f32.mxu0 %vm17958_vm9, %v17956_v47 }
 0x5fb   : > { %15008 = vmatpush3.msk.msra.mxu0 %vm2130_vm11, %v3448_v50  ;;  %3020 = vmatprep.mubr.f32.mxu1 %v17956_v47 }
 0x5fc   : > { %15773 = vmatprep.subr.bf16.mxu0 %v18622_v14  ;;  %v3446_v14 = vpop.permute.xlu1 %3445 }
 0x5fd   : > { %15010 = vmatmul.mubr.msk.f32.vlgmr.msra.gmra.mrb[12].mxu0 %vm2126_vm12, %v3439_v16 }
 0x5fe   : > { %15775 = vmatpush1.bf16.msra.mxu0 %v18624_v18  ;;  %v3281_v18 = vsel %vm1660_vm6, %v3276_v4, %v3278_v21 }
 0x5ff   : > { %14146 = vmatmul.mubr.msk.f32.vlgmr.msra.gmra.mrb[2].mxu1 %vm2126_vm12, %v2935_v11  ;;  %15777 = vmatprep.subr.bf16.mxu0 %v18626_v19  ;;  %v3450_v19 = vsel %vm1688_vm7, %v3446_v14, %v3448_v50 }
 0x600   : > { %14150 = vmatpush1.msk.msra.mxu1 %vm2130_vm11, %v3113_v48  ;;  %3188 = vmatprep.mubr.f32.mxu1 %v17956_v47 }
 0x601   : > { %14154 = vmatprep.subr.msk.mxu1 %vm2130_vm11, %v3282_v23 }
 0x602   : > { %15779 = vmatpush1.bf16.msra.mxu0 %v18630_v24  ;;  %v3444_v24 = vpop.permute.xlu1 %3443 }
 0x603   : > { %15781 = vmatprep.subr.bf16.mxu0 %v18633_v25  ;;  %v3449_v25 = vsel %vm1688_vm7, %v3444_v24, %v3446_v14 }
 0x606   : > { %15783 = vmatpush1.bf16.msra.mxu0 %v18636_v28  ;;  %v20147_v28 = vld [vmem:[#allocation97_spill] sm:$0xff] }
 0x607   : > { %14151 = vmatmul.mubr.msk.f32.vlgmr.msra.gmra.mrb[2].mxu1 %vm2126_vm12, %v3103_v35  ;;  %15785 = vmatprep.subr.bf16.mxu0 %v18648_v33  ;;  %v20148_v33 = vld [vmem:[#allocation100_spill] sm:$0xff] }
 0x608   : > { %14155 = vmatpush1.msk.msra.mxu1 %vm2130_vm11, %v3281_v18  ;;  %3356 = vmatprep.mubr.f32.mxu1 %v17956_v47 }
 0x609   : > { %14159 = vmatprep.subr.msk.mxu1 %vm2130_vm11, %v3450_v19 }
 0x60a   : > { %15787 = vmatpush1.bf16.msra.mxu0 %v18650_v36  ;;  %v20149_v36 = vld [vmem:[#allocation94_spill] sm:$0xff] }
 0x60b   : > { %15789 = vmatprep.subr.bf16.mxu0 %v18656_v42  ;;  %v20150_v42 = vld [vmem:[#allocation95_spill] sm:$0xff] }
 0x60e   : > { %15791 = vmatpush1.bf16.msra.mxu0 %v18658_v45  ;;  %v20151_v45 = vld [vmem:[#allocation101_spill] sm:$0xff] }
 0x60f   : > { %14156 = vmatmul.mubr.msk.f32.vlgmr.msra.gmra.mrb[2].mxu1 %vm2126_vm12, %v3271_v59  ;;  %15793 = vmatprep.subr.bf16.mxu0 %v18669_v51  ;;  %v20152_v51 = vld [vmem:[#allocation104_spill] sm:$0xff] }
 0x610   : > { %14160 = vmatpush1.msk.msra.mxu1 %vm2130_vm11, %v3449_v25  ;;  %3524 = vmatprep.mubr.f32.mxu1 %v17956_v47 }
 0x611   : > { %15845 = vmatprep.subr.bf16.mxu1 %v18710_v32  ;;  %v20160_v32 = vld [vmem:[#allocation112_spill] sm:$0xff] }
 0x612   : > { %15795 = vmatpush1.bf16.msra.mxu0 %v18671_v55  ;;  %v20153_v55 = vld [vmem:[#allocation96_spill] sm:$0xff] }
 0x613   : > { %15797 = vmatprep.subr.bf16.mxu0 %v18682_v61  ;;  %v20154_v61 = vld [vmem:[#allocation98_spill] sm:$0xff] }
 0x616   : > { %15799 = vmatpush1.bf16.msra.mxu0 %v18684_v1  ;;  %v20155_v1 = vld [vmem:[#allocation105_spill] sm:$0xff] }
 0x617   : > { %14161 = vmatmul.mubr.msk.f32.vlgmr.msra.gmra.mrb[2].mxu1 %vm2126_vm12, %v3439_v16  ;;  %15801 = vmatprep.subr.bf16.mxu0 %v18692_v6  ;;  %v20156_v6 = vld [vmem:[#allocation108_spill] sm:$0xff]  ;;  %v3608_v16 = vpop.permute.xlu0 %3607 }
 0x618   : > { %15847 = vmatpush3.bf16.msra.mxu1 %v18714_v37  ;;  %v20161_v37 = vld [vmem:[#allocation103_spill] sm:$0xff] }
 0x619   : > { %15849 = vmatprep.subr.bf16.mxu1 %v18726_v56  ;;  %v20164_v56 = vld [vmem:[#allocation107_spill] sm:$0xff] }
 0x61a   : > { %15803 = vmatpush1.bf16.msra.mxu0 %v18694_v9  ;;  %v20157_v9 = vld [vmem:[#allocation99_spill] sm:$0xff] }
 0x61b   : > { %15805 = vmatprep.subr.bf16.mxu0 %v18704_v20  ;;  %v20158_v20 = vld [vmem:[#allocation102_spill] sm:$0xff] }
 0x61c   : > { %15851 = vmatpush3.bf16.msra.mxu1 %v18728_v57  ;;  %v20165_v57 = vld [vmem:[#allocation110_spill] sm:$0xff] }
 0x61d   : > { %15853 = vmatprep.subr.bf16.mxu1 %v18741_v12  ;;  %v20167_v12 = vld [vmem:[#allocation114_spill] sm:$0xff] }
 0x61e   : > { %15807 = vmatpush1.bf16.msra.mxu0 %v18706_v26  ;;  %v20159_v26 = vld [vmem:[#allocation109_spill] sm:$0xff] }
 0x61f   : > { %15809 = vmatprep.subr.bf16.mxu0 %v18716_v38  ;;  %v20162_v38 = vld [vmem:[#allocation106_spill] sm:$0xff] }
 0x620   : > { %15855 = vmatpush3.bf16.msra.mxu1 %v18743_v13 }
 0x621   : > { %15857 = vmatprep.subr.bf16.mxu1 %v18757_v40 }
 0x622   : > { %15811 = vmatpush1.bf16.msra.mxu0 %v18719_v44  ;;  %v20163_v44 = vld [vmem:[#allocation113_spill] sm:$0xff] }
 0x623   : > { %15813 = vmatprep.subr.bf16.mxu0 %v18732_v62  ;;  %v20166_v62 = vld [vmem:[#allocation111_spill] sm:$0xff] }
 0x624   : > { %15859 = vmatpush3.bf16.msra.mxu1 %v20147_v28 }
 0x625   : > { %15861 = vmatprep.subr.bf16.mxu1 %v20148_v33 }
 0x626   : > { %15815 = vmatpush1.bf16.msra.mxu0 %v20149_v36 }
 0x627   : > { %15817 = vmatprep.subr.bf16.mxu0 %v20150_v42 }
 0x628   : > { %15863 = vmatpush3.bf16.msra.mxu1 %v20151_v45 }
 0x629   : > { %15865 = vmatprep.subr.bf16.mxu1 %v20152_v51 }
 0x62a   : > { %15819 = vmatpush1.bf16.msra.mxu0 %v20153_v55 }
 0x62b   : > { %15821 = vmatprep.subr.bf16.mxu0 %v20154_v61 }
 0x62c   : > { %15867 = vmatpush3.bf16.msra.mxu1 %v20155_v1 }
 0x62d   : > { %15869 = vmatprep.subr.bf16.mxu1 %v20156_v6 }
 0x62e   : > { %15823 = vmatpush1.bf16.msra.mxu0 %v20157_v9 }
 0x62f   : > { %15825 = vmatprep.subr.bf16.mxu0 %v20158_v20 }
 0x630   : > { %15871 = vmatpush3.bf16.msra.mxu1 %v20159_v26 }
 0x631   : > { %15873 = vmatprep.subr.bf16.mxu1 %v20160_v32 }
 0x632   : > { %15827 = vmatpush1.bf16.msra.mxu0 %v20161_v37  ;;  %v5507_v37 = vld [vmem:[#allocation20] sm:$0xf] }
 0x633   : > { %15829 = vmatprep.subr.bf16.mxu0 %v20162_v38  ;;  %v5517_v38 = vld [vmem:[#allocation2 + $0x8] sm:$0xf] }
 0x634   : > { %15875 = vmatpush3.bf16.msra.mxu1 %v20163_v44 }
 0x635   : > { %15876 = vmatprep.subr.bf16.mxu1 %v17957_v3 }
 0x636   : > { %15831 = vmatpush1.bf16.msra.mxu0 %v20164_v56 }
 0x637   : > { %15833 = vmatprep.subr.bf16.mxu0 %v20165_v57 }
 0x63a   : > { %15835 = vmatpush1.bf16.msra.mxu0 %v20166_v62 }
 0x63b   : > { %15837 = vmatprep.subr.bf16.mxu0 %v20167_v12 }
 0x6ae   : > { %v2274_v13 = vpop.f32.mrb[4].mxu1 }
 0x6af   : > { %v14971_v40 = vpop.f32.mrb[5].mxu1 }
 0x6b5   : > { %v2925_v10 = vpop.f32.mrb[4].mxu0 }
 0x6b6   : > { %v2424_v31 = vpop.f32.mrb[6].mxu1  ;;  %v14991_v39 = vpop.f32.mrb[5].mxu0 }
 0x6b7   : > { %v2425_v58 = vadd.f32 %v2424_v31, %v2274_v13  ;;  %v14976_v34 = vpop.f32.mrb[7].mxu1  ;;  %v4019_v13 = vld [vmem:[#allocation18 + $0x4] sm:$0xf]  ;;  %v4017_v31 = vld [vmem:[#allocation18] sm:$0xf] }
 0x6be   : > { %v2589_v5 = vpop.f32.mrb[8].mxu1 }
 0x6bf   : > { %v2595_v46 = vadd.f32 %v2589_v5, %v2425_v58  ;;  %v14981_v22 = vpop.f32.mrb[9].mxu1 }
 0x6c1   : > { %v3093_v63 = vpop.f32.mrb[6].mxu0 }
 0x6c2   : > { %v14996_v11 = vpop.f32.mrb[7].mxu0 }
 0x6c3   : > { %v4334_v11 = vld [vmem:[#allocation18 + $0x8] sm:$0xf] }
 0x6c5   : > { %v3261_v52 = vpop.f32.mrb[8].mxu0 }
 0x6c6   : > { %v2757_v53 = vpop.f32.mrb[10].mxu1  ;;  %v15001_v21 = vpop.f32.mrb[9].mxu0 }
 0x6c7   : > { %v2763_v35 = vadd.f32 %v2757_v53, %v2595_v46  ;;  %v14986_v17 = vpop.f32.mrb[11].mxu1 }
 0x6c9   : > { %v2931_v29 = vadd.f32 %v2925_v10, %v2763_v35 }
 0x6cb   : > { %v3099_v8 = vadd.f32 %v3093_v63, %v2931_v29  ;;  %v4670_v63 = vld [vmem:[#allocation18 + $0x10] sm:$0xf] }
 0x6cc   : > { %v3429_v15 = vpop.f32.mrb[10].mxu0 }
 0x6cd   : > { %v3267_v4 = vadd.f32 %v3261_v52, %v3099_v8  ;;  %v15006_v59 = vpop.f32.mrb[11].mxu0  ;;  %v4838_v8 = vld [vmem:[#allocation18 + $0x14] sm:$0xf] }
 0x6cf   : > { %v3435_v2 = vadd.f32 %v3429_v15, %v3267_v4  ;;  %v4502_v15 = vld [vmem:[#allocation18 + $0xc] sm:$0xf] }
 0x6d0   : > { %v3597_v60 = vpop.f32.mrb[12].mxu0 }
 0x6d1   : > { %v3603_v54 = vadd.f32 %v3597_v60, %v3435_v2  ;;  %v15011_v50 = vpop.f32.mrb[13].mxu0  ;;  %v5006_v2 = vld [vmem:[#allocation18 + $0x18] sm:$0xf] }
 0x6d3   : > { %v3612_v25 = vadd.f32 %v3608_v16, %v3603_v54 }
 0x6d5   : > { %v3615_v28 = vmax.f32 %v3612_v25, 0.0 }
 0x6ea   : > { %v3526_v48 = vpop.f32.mrb[2].mxu1 }
 0x6eb   : > { %v3610_v23 = vadd.f32 %v3608_v16, %v3526_v48  ;;  %v3528_v14 = vpop.f32.mrb[3].mxu1 }
 0x6ec   : > { %v3611_v18 = vadd.f32 %v3608_v16, %v3528_v14  ;;  %v5174_v14 = vld [vmem:[#allocation18 + $0x1c] sm:$0xf] }
 0x6ed   : > { %v3613_v24 = vmax.f32 %v3610_v23, 0.0 }
 0x6ee   : > { %v3614_v19 = vmax.f32 %v3611_v18, 0.0 }
 0x6f0   : > { %3791 = vmatprep.mubr.f32.mxu0 %v3614_v19  ;;  %3933 = vmatprep.mubr.f32.mxu1 %v3614_v19 }
 0x6f1   : > { %3792 = vmatmul.mubr.f32.vlgmr.msra.gmra.mrb[14].mxu0 %v3613_v24  ;;  %3934 = vmatmul.mubr.f32.vlgmr.msra.gmra.mrb[12].mxu1 %v3613_v24 }
 0x6f2   : > { %15878 = vmatpush3.bf16.msra.mxu1 %v18872_v49  ;;  %15839 = vmatpush1.bf16.msra.mxu0 %v18860_v30 }
 0x6f3   : > { %15879 = vmatprep.subr.bf16.mxu1 %v17957_v3  ;;  %15841 = vmatprep.subr.bf16.mxu0 %v18862_v27 }
 0x6f4   : > { %15020 = vmatprep.mubr.msk.f32.mxu1 %vm17958_vm9, %v17956_v47  ;;  %3862 = vmatprep.mubr.f32.mxu0 %v17956_v47 }
 0x6f6   : > { %15881 = vmatpush3.bf16.msra.mxu1 %v18877_v0  ;;  %15843 = vmatpush1.bf16.msra.mxu0 %v18865_v43 }
 0x6f7   : > { %15043 = vmatprep.subr.mxu0 %v17956_v47 }
 0x6f9   : > { %15021 = vmatmul.mubr.msk.f32.vlgmr.msra.gmra.mrb[14].mxu1 %vm1817_vm8, %v3615_v28  ;;  %14164 = vmatmul.mubr.msk.f32.vlgmr.msra.gmra.mrb[14].mxu0 %vm1817_vm8, %v3615_v28  ;;  %v5342_v28 = vld [vmem:[#allocation18 + $0x20] sm:$0xf] }
 0x6fa   : > { %4104 = vmatprep.mubr.f32.mxu1 %v17956_v47  ;;  %15045 = vmatprep.mubr.msk.f32.mxu0 %vm17958_vm9, %v17956_v47 }
 0x7c4   : > { %v14509_v30 = vpop.f32.mrb[12].mxu1 }
 0x7c5   : > { %v14510_v27 = vpop.f32.mrb[13].mxu1 }
 0x7c6   : > { %v14511_v49 = vadd.f32 %v14510_v27, %v14509_v30 }
 0x7cc   : > { %v4005_v33 = vpop.f32.mrb[14].mxu1  ;;  %v3864_v36 = vpop.f32.mrb[14].mxu0 }
 0x7cd   : > { %v4006_v0 = vadd.f32 %v14511_v49, %v4005_v33  ;;  %v15022_v42 = vpop.f32.mrb[15].mxu1  ;;  %v3866_v43 = vpop.f32.mrb[15].mxu0 }
 0x7ce   : > { %v4011_v45 = vcombine.low %v3864_v36, %v3866_v43  ;;  %v16996_v51 = vcombine.low %v3866_v43, %v3866_v43  ;;  %v5539_v43 = vld [vmem:[#allocation14 + $0x8] sm:$0xff] }
 0x7cf   : > { %4014 = vst.msk [vmem:[#allocation3 + $0x8] sm:$0xf] %vm2108_vm10, %v4006_v0 }
 0x7d0   : > { %4025 = vrot.lane.b32.xlu1 %v16996_v51, %s17948_s3 }
 0x7d4   : > { %4023 = vrot.lane.b32.xlu1 %v4011_v45, %s17948_s3 }
 0x7d6   : > { %v4016_v55 = vld [vmem:[#allocation3 + $0x8] sm:$0xf] }
 0x7d7   : > { %4027 = vrot.lane.b32.xlu0 %v4016_v55, %s17948_s3  ;;  %v4332_v61 = vld [vmem:[#allocation3 + $0x8] sm:$0xf] }
 0x7d8   : > { %4342 = vrot.lane.b32.xlu1 %v4332_v61, %s17949_s5  ;;  %v4500_v1 = vld [vmem:[#allocation3 + $0x8] sm:$0xf] }
 0x7d9   : > { %v4668_v6 = vld [vmem:[#allocation3 + $0x8] sm:$0xf] }
 0x7da   : > { %v4836_v9 = vld [vmem:[#allocation3 + $0x8] sm:$0xf] }
 0x7db   : > { %4340 = vrot.lane.b32.xlu0 %v16996_v51, %s17949_s5  ;;  %v5004_v20 = vld [vmem:[#allocation3 + $0x8] sm:$0xf] }
 0x7dc   : > { %4508 = vrot.lane.b32.xlu1 %v16996_v51, %s17950_s4  ;;  %v5172_v26 = vld [vmem:[#allocation3 + $0x8] sm:$0xf] }
 0x7dd   : > { %v5340_v32 = vld [vmem:[#allocation3 + $0x8] sm:$0xf] }
 0x7de   : > { %v5541_v61 = vld [vmem:[#allocation14 + $0x18] sm:$0xff] }
 0x7df   : > { %4338 = vrot.lane.b32.xlu0 %v4011_v45, %s17949_s5 }
 0x7e0   : > { %4506 = vrot.lane.b32.xlu1 %v4011_v45, %s17950_s4 }
 0x7e3   : > { %4510 = vrot.lane.b32.xlu0 %v4500_v1, %s17950_s4 }
 0x7e4   : > { %4678 = vrot.lane.b32.xlu1 %v4668_v6, %s17951_s12  ;;  %v5545_v6 = vld [vmem:[#allocation14 + $0x38] sm:$0xff] }
 0x7e7   : > { %4676 = vrot.lane.b32.xlu0 %v16996_v51, %s17951_s12 }
 0x7e8   : > { %4844 = vrot.lane.b32.xlu1 %v16996_v51, %s17952_s7 }
 0x7eb   : > { %4674 = vrot.lane.b32.xlu0 %v4011_v45, %s17951_s12 }
 0x7ec   : > { %4842 = vrot.lane.b32.xlu1 %v4011_v45, %s17952_s7 }
 0x7ef   : > { %4846 = vrot.lane.b32.xlu0 %v4836_v9, %s17952_s7  ;;  %v5548_v9 = vld [vmem:[#allocation14 + $0x50] sm:$0xff] }
 0x7f0   : > { %5014 = vrot.lane.b32.xlu1 %v5004_v20, %s17953_s13  ;;  %v15886_v20 = vpack.c.bf16 %v5548_v9, %v5545_v6  ;;  %v5592_v6 = vld [vmem:[#allocation14 + $0x1b0] sm:$0xff]  ;;  %v5595_v9 = vld [vmem:[#allocation14 + $0x1c8] sm:$0xff] }
 0x7f3   : > { %5012 = vrot.lane.b32.xlu0 %v16996_v51, %s17953_s13 }
 0x7f4   : > { %5180 = vrot.lane.b32.xlu1 %v16996_v51, %s17954_s11 }
 0x7f7   : > { %5010 = vrot.lane.b32.xlu0 %v4011_v45, %s17953_s13 }
 0x7f8   : > { %5178 = vrot.lane.b32.xlu1 %v4011_v45, %s17954_s11 }
 0x7fb   : > { %5182 = vrot.lane.b32.xlu0 %v5172_v26, %s17954_s11  ;;  %v5544_v26 = vld [vmem:[#allocation14 + $0x30] sm:$0xff] }
 0x7fc   : > { %5350 = vrot.lane.b32.xlu1 %v5340_v32, %s17955_s1  ;;  %v5547_v32 = vld [vmem:[#allocation14 + $0x48] sm:$0xff] }
 0x7ff   : > { %5348 = vrot.lane.b32.xlu0 %v16996_v51, %s17955_s1 }
 0x800   : > { %5510 = vperm.xlu1 %16834, %v5507_v37   ;;  %v5551_v37 = vld [vmem:[#allocation14 + $0x68] sm:$0xff] }
 0x803   : > { %5346 = vrot.lane.b32.xlu0 %v4011_v45, %s17955_s1 }
 0x804   : > { %5525 = vrot.lane.b32.xlu1 %v5517_v38, %s17951_s12  ;;  %v15888_v38 = vpack.c.bf16 %v5547_v32, %v5544_v26  ;;  %v15920_v26 = vpack.c.bf16 %v5595_v9, %v5592_v6  ;;  %v5600_v32 = vld [vmem:[#allocation14 + $0x1f0] sm:$0xff] }
 0x807   : > { %5523 = vrot.lane.b32.xlu0 %v18889_v7, %s17951_s12 }
 0x80b   : > { %5521 = vrot.lane.b32.xlu0 %v18887_v41, %s17951_s12 }
 0x842   : > { %v4026_v44 = vpop.permute.xlu1 %4025 }
 0x846   : > { %v4024_v56 = vpop.permute.xlu1 %4023 }
 0x847   : > { %v4029_v62 = vsel %vm1492_vm0, %v4024_v56, %v4026_v44  ;;  %v5550_v56 = vld [vmem:[#allocation14 + $0x60] sm:$0xff] }
 0x849   : > { %v4028_v57 = vpop.permute.xlu0 %4027 }
 0x84a   : > { %v4030_v12 = vsel %vm1492_vm0, %v4026_v44, %v4028_v57  ;;  %v4343_v40 = vpop.permute.xlu1 %4342  ;;  %v5554_v44 = vld [vmem:[#allocation14 + $0x80] sm:$0xff] }
 0x84b   : > { %14166 = vmatprep.subr.msk.mxu1 %vm2130_vm11, %v4030_v12 }
 0x84c   : > { %14167 = vmatpush1.msk.msra.mxu1 %vm2130_vm11, %v4029_v62  ;;  %v15890_v62 = vpack.c.bf16 %v5554_v44, %v5551_v37  ;;  %v5603_v37 = vld [vmem:[#allocation14 + $0x208] sm:$0xff] }
 0x84d   : > { %v4341_v10 = vpop.permute.xlu0 %4340  ;;  %14168 = vmatmul.mubr.msk.f32.vlgmr.msra.gmra.mrb[16].mxu1 %vm2126_vm12, %v4019_v13  ;;  %15023 = vmatprep.subr.mxu1 %v17956_v47  ;;  %v15962_v44 = vpack.c.bf16 %v5603_v37, %v5600_v32  ;;  %v5629_v37 = vld [vmem:[#allocation14 + $0x2d8] sm:$0xff] }
 0x84e   : > { %15024 = vmatpush3.msk.msra.mxu1 %vm2130_vm11, %v4028_v57  ;;  %15025 = vmatprep.mubr.msk.f32.mxu1 %vm17958_vm9, %v17956_v47  ;;  %v4509_v41 = vpop.permute.xlu1 %4508  ;;  %v4345_v34 = vsel %vm1520_vm1, %v4341_v10, %v4343_v40  ;;  %v5553_v57 = vld [vmem:[#allocation14 + $0x78] sm:$0xff] }
 0x84f   : > { %14171 = vmatprep.subr.msk.mxu1 %vm2130_vm11, %v16996_v51  ;;  %v5538_v51 = vld [vmem:[#allocation14] sm:$0xff]  ;;  %v15892_v12 = vpack.c.bf16 %v5553_v57, %v5550_v56  ;;  %v5552_v57 = vld [vmem:[#allocation14 + $0x70] sm:$0xff] }
 0x850   : > { %v15884_v1 = vpack.c.bf16 %v5541_v61, %v5538_v51  ;;  %v5596_v51 = vld [vmem:[#allocation14 + $0x1d0] sm:$0xff]  ;;  %v5602_v56 = vld [vmem:[#allocation14 + $0x200] sm:$0xff] }
 0x851   : > { %v4339_v7 = vpop.permute.xlu0 %4338  ;;  %15026 = vmatmul.mubr.msk.f32.vlgmr.msra.gmra.mrb[18].mxu1 %vm2126_vm12, %v4019_v13  ;;  %v5557_v13 = vld [vmem:[#allocation14 + $0x98] sm:$0xff] }
 0x852   : > { %14172 = vmatpush1.msk.msra.mxu1 %vm2130_vm11, %v4011_v45  ;;  %4254 = vmatprep.mubr.f32.mxu1 %v17956_v47  ;;  %v4507_v39 = vpop.permute.xlu1 %4506  ;;  %v4344_v46 = vsel %vm1520_vm1, %v4339_v7, %v4341_v10  ;;  %v5542_v45 = vld [vmem:[#allocation14 + $0x20] sm:$0xff]  ;;  %v5559_v7 = vld [vmem:[#allocation14 + $0xa8] sm:$0xff] }
 0x853   : > { %15028 = vmatprep.subr.mxu1 %v17956_v47  ;;  %v4512_v17 = vsel %vm1548_vm2, %v4507_v39, %v4509_v41 }
 0x855   : > { %v4511_v58 = vpop.permute.xlu0 %4510  ;;  %14173 = vmatmul.mubr.msk.f32.vlgmr.msra.gmra.mrb[16].mxu1 %vm2126_vm12, %v4017_v31 }
 0x856   : > { %15029 = vmatpush3.msk.msra.mxu1 %vm2130_vm11, %v4016_v55  ;;  %15030 = vmatprep.mubr.msk.f32.mxu1 %vm17958_vm9, %v17956_v47  ;;  %v4679_v5 = vpop.permute.xlu1 %4678  ;;  %v4513_v21 = vsel %vm1548_vm2, %v4509_v41, %v4511_v58  ;;  %v15882_v55 = vpack.c.bf16 %v5542_v45, %v5539_v43  ;;  %v5556_v41 = vld [vmem:[#allocation14 + $0x90] sm:$0xff]  ;;  %v5593_v45 = vld [vmem:[#allocation14 + $0x1b8] sm:$0xff] }
 0x857   : > { %14176 = vmatprep.subr.msk.mxu1 %vm2130_vm11, %v4345_v34  ;;  %15044 = vmatpush3.msk.msra.mxu0 %vm2130_vm11, %v4679_v5  ;;  %v15896_v39 = vpack.c.bf16 %v5559_v7, %v5556_v41  ;;  %v5562_v34 = vld [vmem:[#allocation14 + $0xc0] sm:$0xff]  ;;  %v15918_v61 = vpack.c.bf16 %v5596_v51, %v5593_v45  ;;  %v5576_v45 = vld [vmem:[#allocation14 + $0x130] sm:$0xff] }
 0x858   : > { %15048 = vmatprep.subr.mxu0 %v17956_v47  ;;  %15046 = vmatmul.mubr.msk.f32.vlgmr.msra.gmra.mrb[16].mxu0 %vm2126_vm12, %v4670_v63  ;;  %v5606_v41 = vld [vmem:[#allocation14 + $0x220] sm:$0xff] }
 0x859   : > { %v4677_v22 = vpop.permute.xlu0 %4676  ;;  %15031 = vmatmul.mubr.msk.f32.vlgmr.msra.gmra.mrb[20].mxu1 %vm2126_vm12, %v4017_v31  ;;  %15050 = vmatprep.mubr.msk.f32.mxu0 %vm17958_vm9, %v17956_v47  ;;  %v5563_v31 = vld [vmem:[#allocation14 + $0xc8] sm:$0xff] }
 0x85a   : > { %14177 = vmatpush1.msk.msra.mxu1 %vm2130_vm11, %v4344_v46  ;;  %4419 = vmatprep.mubr.f32.mxu1 %v17956_v47  ;;  %v4845_v52 = vpop.permute.xlu1 %4844  ;;  %v4681_v60 = vsel %vm1576_vm3, %v4677_v22, %v4679_v5  ;;  %v5565_v5 = vld [vmem:[#allocation14 + $0xd8] sm:$0xff] }
 0x85b   : > { %15033 = vmatprep.subr.mxu1 %v17956_v47 }
 0x85d   : > { %v4675_v53 = vpop.permute.xlu0 %4674  ;;  %14178 = vmatmul.mubr.msk.f32.vlgmr.msra.gmra.mrb[16].mxu1 %vm2126_vm12, %v4334_v11 }
 0x85e   : > { %15034 = vmatpush3.msk.msra.mxu1 %vm2130_vm11, %v4343_v40  ;;  %15035 = vmatprep.mubr.msk.f32.mxu1 %vm17958_vm9, %v17956_v47  ;;  %v4843_v35 = vpop.permute.xlu1 %4842  ;;  %v4680_v50 = vsel %vm1576_vm3, %v4675_v53, %v4677_v22  ;;  %v5560_v40 = vld [vmem:[#allocation14 + $0xb0] sm:$0xff]  ;;  %v15900_v22 = vpack.c.bf16 %v5565_v5, %v5562_v34 }
 0x85f   : > { %14181 = vmatprep.subr.msk.mxu1 %vm2130_vm11, %v4513_v21  ;;  %v4848_v18 = vsel %vm1604_vm4, %v4843_v35, %v4845_v52  ;;  %v15894_v10 = vpack.c.bf16 %v5560_v40, %v5557_v13  ;;  %v5568_v53 = vld [vmem:[#allocation14 + $0xf0] sm:$0xff]  ;;  %v5571_v21 = vld [vmem:[#allocation14 + $0x108] sm:$0xff]  ;;  %v5598_v40 = vld [vmem:[#allocation14 + $0x1e0] sm:$0xff] }
 0x860   : > { %v15904_v35 = vpack.c.bf16 %v5571_v21, %v5568_v53  ;;  %v5615_v53 = vld [vmem:[#allocation14 + $0x268] sm:$0xff] }
 0x861   : > { %v4847_v29 = vpop.permute.xlu0 %4846  ;;  %15036 = vmatmul.mubr.msk.f32.vlgmr.msra.gmra.mrb[22].mxu1 %vm2126_vm12, %v4334_v11  ;;  %v5572_v11 = vld [vmem:[#allocation14 + $0x110] sm:$0xff] }
 0x862   : > { %15049 = vmatpush3.msk.msra.mxu0 %vm2130_vm11, %v4847_v29  ;;  %14182 = vmatpush1.msk.msra.mxu1 %vm2130_vm11, %v4512_v17  ;;  %v5015_v4 = vpop.permute.xlu1 %5014  ;;  %v4849_v48 = vsel %vm1604_vm4, %v4845_v52, %v4847_v29  ;;  %v5575_v17 = vld [vmem:[#allocation14 + $0x128] sm:$0xff]  ;;  %v5578_v29 = vld [vmem:[#allocation14 + $0x140] sm:$0xff] }
 0x863   : > { %4587 = vmatprep.mubr.f32.mxu1 %v17956_v47  ;;  %15038 = vmatprep.subr.mxu1 %v17956_v47 }
 0x864   : > { %15051 = vmatmul.mubr.msk.f32.vlgmr.msra.gmra.mrb[18].mxu0 %vm2126_vm12, %v4838_v8  ;;  %15053 = vmatprep.subr.mxu0 %v17956_v47 }
 0x865   : > { %v5013_v59 = vpop.permute.xlu0 %5012  ;;  %14183 = vmatmul.mubr.msk.f32.vlgmr.msra.gmra.mrb[16].mxu1 %vm2126_vm12, %v4502_v15  ;;  %15054 = vmatpush3.msk.msra.mxu0 %vm2130_vm11, %v5015_v4 }
 0x866   : > { %15039 = vmatpush3.msk.msra.mxu1 %vm2130_vm11, %v4511_v58  ;;  %15040 = vmatprep.mubr.msk.f32.mxu1 %vm17958_vm9, %v17956_v47  ;;  %v5181_v54 = vpop.permute.xlu1 %5180  ;;  %v5017_v24 = vsel %vm1632_vm5, %v5013_v59, %v5015_v4  ;;  %v5566_v58 = vld [vmem:[#allocation14 + $0xe0] sm:$0xff]  ;;  %v5577_v4 = vld [vmem:[#allocation14 + $0x138] sm:$0xff] }
 0x867   : > { %14186 = vmatprep.subr.msk.mxu1 %vm2130_vm11, %v4681_v60  ;;  %15055 = vmatprep.mubr.msk.f32.mxu0 %vm17958_vm9, %v17956_v47  ;;  %v15898_v46 = vpack.c.bf16 %v5566_v58, %v5563_v31  ;;  %v5584_v60 = vld [vmem:[#allocation14 + $0x170] sm:$0xff]  ;;  %v5609_v31 = vld [vmem:[#allocation14 + $0x238] sm:$0xff] }
 0x868   : > { %15058 = vmatprep.subr.mxu0 %v17956_v47  ;;  %15056 = vmatmul.mubr.msk.f32.vlgmr.msra.gmra.mrb[20].mxu0 %vm2126_vm12, %v5006_v2  ;;  %v5608_v58 = vld [vmem:[#allocation14 + $0x230] sm:$0xff]  ;;  %v15966_v34 = vpack.c.bf16 %v5609_v31, %v5606_v41  ;;  %v5638_v41 = vld [vmem:[#allocation14 + $0x320] sm:$0xff] }
 0x869   : > { %v5011_v16 = vpop.permute.xlu0 %5010  ;;  %15041 = vmatmul.mubr.msk.f32.vlgmr.msra.gmra.mrb[24].mxu1 %vm2126_vm12, %v4502_v15  ;;  %15060 = vmatprep.mubr.msk.f32.mxu0 %vm17958_vm9, %v17956_v47  ;;  %v5574_v15 = vld [vmem:[#allocation14 + $0x120] sm:$0xff] }
 0x86a   : > { %14187 = vmatpush1.msk.msra.mxu1 %vm2130_vm11, %v4680_v50  ;;  %4755 = vmatprep.mubr.f32.mxu1 %v17956_v47  ;;  %v5179_v23 = vpop.permute.xlu1 %5178  ;;  %v5016_v30 = vsel %vm1632_vm5, %v5011_v16, %v5013_v59  ;;  %v15908_v59 = vpack.c.bf16 %v5577_v4, %v5574_v15  ;;  %v5580_v50 = vld [vmem:[#allocation14 + $0x150] sm:$0xff]  ;;  %v5583_v16 = vld [vmem:[#allocation14 + $0x168] sm:$0xff] }
 0x86b   : > { %14191 = vmatprep.subr.msk.mxu1 %vm2130_vm11, %v4849_v48  ;;  %v5184_v33 = vsel %vm1660_vm6, %v5179_v23, %v5181_v54  ;;  %v15912_v48 = vpack.c.bf16 %v5583_v16, %v5580_v50  ;;  %v5588_v23 = vld [vmem:[#allocation14 + $0x190] sm:$0xff]  ;;  %v5621_v50 = vld [vmem:[#allocation14 + $0x298] sm:$0xff] }
 0x86c   : > { %v5617_v16 = vld [vmem:[#allocation14 + $0x278] sm:$0xff] }
 0x86d   : > { %v5183_v19 = vpop.permute.xlu0 %5182  ;;  %14188 = vmatmul.mubr.msk.f32.vlgmr.msra.gmra.mrb[16].mxu1 %vm2126_vm12, %v4670_v63  ;;  %v5569_v63 = vld [vmem:[#allocation14 + $0xf8] sm:$0xff] }
 0x86e   : > { %15059 = vmatpush3.msk.msra.mxu0 %vm2130_vm11, %v5183_v19  ;;  %14192 = vmatpush1.msk.msra.mxu1 %vm2130_vm11, %v4848_v18  ;;  %v5351_v25 = vpop.permute.xlu1 %5350  ;;  %v5185_v27 = vsel %vm1660_vm6, %v5181_v54, %v5183_v19  ;;  %v15902_v52 = vpack.c.bf16 %v5572_v11, %v5569_v63  ;;  %v5587_v19 = vld [vmem:[#allocation14 + $0x188] sm:$0xff]  ;;  %v5604_v63 = vld [vmem:[#allocation14 + $0x210] sm:$0xff] }
 0x86f   : > { %14196 = vmatprep.subr.msk.mxu1 %vm2130_vm11, %v5017_v24  ;;  %15061 = vmatmul.mubr.msk.f32.vlgmr.msra.gmra.mrb[22].mxu0 %vm2126_vm12, %v5174_v14  ;;  %v5590_v24 = vld [vmem:[#allocation14 + $0x1a0] sm:$0xff]  ;;  %v5607_v11 = vld [vmem:[#allocation14 + $0x228] sm:$0xff] }
 0x870   : > { %15063 = vmatprep.subr.mxu0 %v17956_v47  ;;  %15065 = vmatprep.mubr.msk.f32.mxu0 %vm17958_vm9, %v17956_v47 }
 0x871   : > { %15064 = vmatpush3.msk.msra.mxu0 %vm2130_vm11, %v5351_v25  ;;  %4923 = vmatprep.mubr.f32.mxu1 %v17956_v47  ;;  %v5349_v49 = vpop.permute.xlu0 %5348 }
 0x872   : > { %v5353_v36 = vsel %vm1688_vm7, %v5349_v49, %v5351_v25  ;;  %15883 = vmatprep.subr.bf16.mxu0 %v15882_v55  ;;  %v5540_v25 = vld [vmem:[#allocation14 + $0x10] sm:$0xff]  ;;  %v5546_v55 = vld [vmem:[#allocation14 + $0x40] sm:$0xff] }
 0x873   : > { %15066 = vmatmul.mubr.msk.f32.vlgmr.msra.gmra.mrb[24].mxu0 %vm2126_vm12, %v5342_v28 }
 0x874   : > { %15885 = vmatpush1.bf16.msra.mxu0 %v15884_v1  ;;  %v5549_v1 = vld [vmem:[#allocation14 + $0x58] sm:$0xff] }
 0x875   : > { %14193 = vmatmul.mubr.msk.f32.vlgmr.msra.gmra.mrb[16].mxu1 %vm2126_vm12, %v4838_v8  ;;  %v5347_v0 = vpop.permute.xlu0 %5346  ;;  %15887 = vmatprep.subr.bf16.mxu0 %v15886_v20  ;;  %v15906_v8 = vpack.c.bf16 %v5578_v29, %v5575_v17  ;;  %v15960_v20 = vpack.c.bf16 %v5549_v1, %v5546_v55  ;;  %v5611_v17 = vld [vmem:[#allocation14 + $0x248] sm:$0xff]  ;;  %v5614_v29 = vld [vmem:[#allocation14 + $0x260] sm:$0xff]  ;;  %v5625_v1 = vld [vmem:[#allocation14 + $0x2b8] sm:$0xff] }
 0x876   : > { %14197 = vmatpush1.msk.msra.mxu1 %vm2130_vm11, %v5016_v30  ;;  %5091 = vmatprep.mubr.f32.mxu1 %v17956_v47  ;;  %v5352_v42 = vsel %vm1688_vm7, %v5347_v0, %v5349_v49  ;;  %v5543_v30 = vld [vmem:[#allocation14 + $0x28] sm:$0xff]  ;;  %v5589_v49 = vld [vmem:[#allocation14 + $0x198] sm:$0xff]  ;;  %v5594_v0 = vld [vmem:[#allocation14 + $0x1c0] sm:$0xff]  ;;  %v15930_v4 = vpack.c.bf16 %v5614_v29, %v5611_v17 }
 0x877   : > { %14201 = vmatprep.subr.msk.mxu1 %vm2130_vm11, %v5185_v27  ;;  %v5586_v27 = vld [vmem:[#allocation14 + $0x180] sm:$0xff]  ;;  %v5579_v55 = vld [vmem:[#allocation14 + $0x148] sm:$0xff] }
 0x878   : > { %15889 = vmatpush1.bf16.msra.mxu0 %v15888_v38  ;;  %v5599_v38 = vld [vmem:[#allocation14 + $0x1e8] sm:$0xff]  ;;  %v15980_v6 = vpack.c.bf16 %v5579_v55, %v5576_v45  ;;  %v5637_v45 = vld [vmem:[#allocation14 + $0x318] sm:$0xff] }
 0x879   : > { %15891 = vmatprep.subr.bf16.mxu0 %v15890_v62  ;;  %v5555_v62 = vld [vmem:[#allocation14 + $0x88] sm:$0xff]  ;;  %v5641_v55 = vld [vmem:[#allocation14 + $0x338] sm:$0xff] }
 0x87a   : > { %v15964_v13 = vpack.c.bf16 %v5555_v62, %v5552_v57  ;;  %v5585_v57 = vld [vmem:[#allocation14 + $0x178] sm:$0xff]  ;;  %v5628_v62 = vld [vmem:[#allocation14 + $0x2d0] sm:$0xff] }
 0x87c   : > { %15893 = vmatpush1.bf16.msra.mxu0 %v15892_v12  ;;  %v15922_v12 = vpack.c.bf16 %v5602_v56, %v5599_v38  ;;  %v5632_v38 = vld [vmem:[#allocation14 + $0x2f0] sm:$0xff] }
 0x87d   : > { %14198 = vmatmul.mubr.msk.f32.vlgmr.msra.gmra.mrb[16].mxu1 %vm2126_vm12, %v5006_v2  ;;  %15895 = vmatprep.subr.bf16.mxu0 %v15894_v10  ;;  %v5581_v2 = vld [vmem:[#allocation14 + $0x158] sm:$0xff]  ;;  %v15942_v56 = vpack.c.bf16 %v5632_v38, %v5629_v37 }
 0x87e   : > { %14202 = vmatpush1.msk.msra.mxu1 %vm2130_vm11, %v5184_v33  ;;  %5259 = vmatprep.mubr.f32.mxu1 %v17956_v47  ;;  %v15910_v54 = vpack.c.bf16 %v5584_v60, %v5581_v2  ;;  %v15956_v33 = vpack.c.bf16 %v5543_v30, %v5540_v25  ;;  %v5601_v10 = vld [vmem:[#allocation14 + $0x1f8] sm:$0xff]  ;;  %v5610_v2 = vld [vmem:[#allocation14 + $0x240] sm:$0xff]  ;;  %v5619_v30 = vld [vmem:[#allocation14 + $0x288] sm:$0xff] }
 0x87f   : > { %14206 = vmatprep.subr.msk.mxu1 %vm2130_vm11, %v5353_v36  ;;  %v15916_v36 = vpack.c.bf16 %v5589_v49, %v5586_v27  ;;  %v15924_v7 = vpack.c.bf16 %v5601_v10, %v5598_v40  ;;  %v5613_v60 = vld [vmem:[#allocation14 + $0x258] sm:$0xff]  ;;  %v5635_v10 = vld [vmem:[#allocation14 + $0x308] sm:$0xff] }
 0x880   : > { %15897 = vmatpush1.bf16.msra.mxu0 %v15896_v39  ;;  %v5605_v39 = vld [vmem:[#allocation14 + $0x218] sm:$0xff] }
 0x881   : > { %15899 = vmatprep.subr.bf16.mxu0 %v15898_v46  ;;  %v15926_v5 = vpack.c.bf16 %v5608_v58, %v5605_v39  ;;  %v5558_v46 = vld [vmem:[#allocation14 + $0xa0] sm:$0xff]  ;;  %v5573_v25 = vld [vmem:[#allocation14 + $0x118] sm:$0xff] }
 0x882   : > { %v5645_v38 = vld [vmem:[#allocation14 + $0x358] sm:$0xff] }
 0x884   : > { %15901 = vmatpush1.bf16.msra.mxu0 %v15900_v22  ;;  %v5561_v22 = vld [vmem:[#allocation14 + $0xb8] sm:$0xff] }
 0x885   : > { %14203 = vmatmul.mubr.msk.f32.vlgmr.msra.gmra.mrb[16].mxu1 %vm2126_vm12, %v5174_v14  ;;  %15903 = vmatprep.subr.bf16.mxu0 %v15902_v52  ;;  %v5591_v14 = vld [vmem:[#allocation14 + $0x1a8] sm:$0xff]  ;;  %v5612_v52 = vld [vmem:[#allocation14 + $0x250] sm:$0xff]  ;;  %v15968_v21 = vpack.c.bf16 %v5561_v22, %v5558_v46 }
 0x886   : > { %14207 = vmatpush1.msk.msra.mxu1 %vm2130_vm11, %v5352_v42  ;;  %5427 = vmatprep.mubr.f32.mxu1 %v17956_v47  ;;  %v15954_v18 = vpack.c.bf16 %v5591_v14, %v5588_v23  ;;  %v5597_v42 = vld [vmem:[#allocation14 + $0x1d8] sm:$0xff]  ;;  %v15970_v15 = vpack.c.bf16 %v5615_v53, %v5612_v52  ;;  %v15932_v14 = vpack.c.bf16 %v5613_v60, %v5610_v2 }
 0x887   : > { %v15958_v43 = vpack.c.bf16 %v5597_v42, %v5594_v0  ;;  %v5623_v42 = vld [vmem:[#allocation14 + $0x2a8] sm:$0xff] }
 0x888   : > { %15905 = vmatpush1.bf16.msra.mxu0 %v15904_v35  ;;  %15955 = vmatprep.subr.bf16.mxu1 %v15954_v18  ;;  %v15928_v35 = vpack.c.bf16 %v5607_v11, %v5604_v63  ;;  %v5570_v18 = vld [vmem:[#allocation14 + $0x100] sm:$0xff] }
 0x889   : > { %15907 = vmatprep.subr.bf16.mxu0 %v15906_v8  ;;  %v5564_v8 = vld [vmem:[#allocation14 + $0xd0] sm:$0xff]  ;;  %v15976_v27 = vpack.c.bf16 %v5573_v25, %v5570_v18  ;;  %v5511_v18 = vpop.permute.xlu1 %5510 }
 0x88c   : > { %15909 = vmatpush1.bf16.msra.mxu0 %v15908_v59  ;;  %v5567_v59 = vld [vmem:[#allocation14 + $0xe8] sm:$0xff] }
 0x88d   : > { %14208 = vmatmul.mubr.msk.f32.vlgmr.msra.gmra.mrb[16].mxu1 %vm2126_vm12, %v5342_v28  ;;  %15911 = vmatprep.subr.bf16.mxu0 %v15910_v54  ;;  %v15914_v28 = vpack.c.bf16 %v5590_v24, %v5587_v19  ;;  %v5618_v54 = vld [vmem:[#allocation14 + $0x280] sm:$0xff]  ;;  %v15972_v23 = vpack.c.bf16 %v5567_v59, %v5564_v8 }
 0x88e   : > { %15957 = vmatpush3.bf16.msra.mxu1 %v15956_v33  ;;  %v15974_v19 = vpack.c.bf16 %v5621_v50, %v5618_v54  ;;  %v5624_v33 = vld [vmem:[#allocation14 + $0x2b0] sm:$0xff] }
 0x88f   : > { %15959 = vmatprep.subr.bf16.mxu1 %v15958_v43  ;;  %v5626_v43 = vld [vmem:[#allocation14 + $0x2c0] sm:$0xff] }
 0x890   : > { %15913 = vmatpush1.bf16.msra.mxu0 %v15912_v48  ;;  %v5620_v48 = vld [vmem:[#allocation14 + $0x290] sm:$0xff]  ;;  %v15938_v51 = vpack.c.bf16 %v5626_v43, %v5623_v42  ;;  %v5639_v42 = vld [vmem:[#allocation14 + $0x328] sm:$0xff]  ;;  %v5634_v43 = vld [vmem:[#allocation14 + $0x300] sm:$0xff] }
 0x891   : > { %15915 = vmatprep.subr.bf16.mxu0 %v15914_v28  ;;  %v15934_v24 = vpack.c.bf16 %v5620_v48, %v5617_v16  ;;  %v5616_v28 = vld [vmem:[#allocation14 + $0x270] sm:$0xff] }
 0x892   : > { %15961 = vmatpush3.bf16.msra.mxu1 %v15960_v20  ;;  %v15936_v49 = vpack.c.bf16 %v5619_v30, %v5616_v28  ;;  %v5630_v20 = vld [vmem:[#allocation14 + $0x2e0] sm:$0xff] }
 0x893   : > { %15963 = vmatprep.subr.bf16.mxu1 %v15962_v44  ;;  %v5582_v44 = vld [vmem:[#allocation14 + $0x160] sm:$0xff] }
 0x894   : > { %15917 = vmatpush1.bf16.msra.mxu0 %v15916_v36  ;;  %v5627_v36 = vld [vmem:[#allocation14 + $0x2c8] sm:$0xff] }
 0x895   : > { %15919 = vmatprep.subr.bf16.mxu0 %v15918_v61  ;;  %v15978_v0 = vpack.c.bf16 %v5627_v36, %v5624_v33  ;;  %v5622_v61 = vld [vmem:[#allocation14 + $0x2a0] sm:$0xff]  ;;  %v5636_v33 = vld [vmem:[#allocation14 + $0x310] sm:$0xff] }
 0x896   : > { %15965 = vmatpush3.bf16.msra.mxu1 %v15964_v13  ;;  %v15940_v9 = vpack.c.bf16 %v5625_v1, %v5622_v61  ;;  %v15984_v13 = vpack.c.bf16 %v5585_v57, %v5582_v44  ;;  %v5644_v61 = vld [vmem:[#allocation14 + $0x350] sm:$0xff] }
 0x897   : > { %15967 = vmatprep.subr.bf16.mxu1 %v15966_v34  ;;  %v15950_v37 = vpack.c.bf16 %v5644_v61, %v5641_v55  ;;  %v5640_v44 = vld [vmem:[#allocation14 + $0x330] sm:$0xff] }
 0x898   : > { %15921 = vmatpush1.bf16.msra.mxu0 %v15920_v26  ;;  %v5633_v26 = vld [vmem:[#allocation14 + $0x2f8] sm:$0xff] }
 0x899   : > { %15923 = vmatprep.subr.bf16.mxu0 %v15922_v12  ;;  %v15982_v32 = vpack.c.bf16 %v5633_v26, %v5630_v20  ;;  %v5631_v12 = vld [vmem:[#allocation14 + $0x2e8] sm:$0xff]  ;;  %v5642_v20 = vld [vmem:[#allocation14 + $0x340] sm:$0xff] }
 0x89a   : > { %15969 = vmatpush3.bf16.msra.mxu1 %v15968_v21  ;;  %v15944_v40 = vpack.c.bf16 %v5631_v12, %v5628_v62  ;;  %v15990_v57 = vpack.c.bf16 %v5645_v38, %v5642_v20  ;;  %v7096_v38 = vld [vmem:[#allocation21 + $0x38] sm:$0xff] }
 0x89b   : > { %15971 = vmatprep.subr.bf16.mxu1 %v15970_v15 }
 0x89c   : > { %15925 = vmatpush1.bf16.msra.mxu0 %v15924_v7  ;;  %v15946_v7 = vpack.c.bf16 %v5638_v41, %v5635_v10 }
 0x89d   : > { %15927 = vmatprep.subr.bf16.mxu0 %v15926_v5 }
 0x89e   : > { %15973 = vmatpush3.bf16.msra.mxu1 %v15972_v23 }
 0x89f   : > { %15975 = vmatprep.subr.bf16.mxu1 %v15974_v19 }
 0x8a0   : > { %15929 = vmatpush1.bf16.msra.mxu0 %v15928_v35 }
 0x8a1   : > { %15931 = vmatprep.subr.bf16.mxu0 %v15930_v4 }
 0x8a2   : > { %15977 = vmatpush3.bf16.msra.mxu1 %v15976_v27 }
 0x8a3   : > { %15979 = vmatprep.subr.bf16.mxu1 %v15978_v0 }
 0x8a4   : > { %15933 = vmatpush1.bf16.msra.mxu0 %v15932_v14  ;;  %v5524_v14 = vpop.permute.xlu0 %5523 }
 0x8a5   : > { %15935 = vmatprep.subr.bf16.mxu0 %v15934_v24  ;;  %v5526_v24 = vpop.permute.xlu1 %5525 }
 0x8a6   : > { %15981 = vmatpush3.bf16.msra.mxu1 %v15980_v6  ;;  %v5528_v0 = vsel %vm1576_vm3, %v5524_v14, %v5526_v24  ;;  %v15987_v6 = vpack.c.bf16 %v5639_v42, %v5636_v33 }
 0x8a7   : > { %15983 = vmatprep.subr.bf16.mxu1 %v15982_v32 }
 0x8a8   : > { %15937 = vmatpush1.bf16.msra.mxu0 %v15936_v49  ;;  %v5522_v19 = vpop.permute.xlu0 %5521 }
 0x8a9   : > { %15939 = vmatprep.subr.bf16.mxu0 %v15938_v51  ;;  %v5527_v27 = vsel %vm1576_vm3, %v5522_v19, %v5524_v14 }
 0x8aa   : > { %15985 = vmatpush3.bf16.msra.mxu1 %v15984_v13 }
 0x8ab   : > { %15986 = vmatprep.subr.bf16.mxu1 %v17957_v3 }
 0x8ac   : > { %15941 = vmatpush1.bf16.msra.mxu0 %v15940_v9  ;;  %v15948_v9 = vpack.c.bf16 %v5637_v45, %v5634_v43  ;;  %v6760_v45 = vld [vmem:[#allocation21 + $0x28] sm:$0xff] }
 0x8ad   : > { %15943 = vmatprep.subr.bf16.mxu0 %v15942_v56  ;;  %v5643_v56 = vld [vmem:[#allocation14 + $0x348] sm:$0xff] }
 0x8ae   : > { %v15952_v62 = vpack.c.bf16 %v5643_v56, %v5640_v44 }
 0x8b0   : > { %15945 = vmatpush1.bf16.msra.mxu0 %v15944_v40 }
 0x8b1   : > { %15947 = vmatprep.subr.bf16.mxu0 %v15946_v7 }
 0x924   : > { %v4177_v31 = vpop.f32.mrb[18].mxu1 }
 0x925   : > { %v15027_v39 = vpop.f32.mrb[19].mxu1 }
 0x92b   : > { %v4828_v46 = vpop.f32.mrb[16].mxu0 }
 0x92c   : > { %v4327_v58 = vpop.f32.mrb[20].mxu1  ;;  %v15047_v22 = vpop.f32.mrb[17].mxu0 }
 0x92d   : > { %v4328_v34 = vadd.f32 %v4327_v58, %v4177_v31  ;;  %v15032_v5 = vpop.f32.mrb[21].mxu1 }
 0x934   : > { %v4492_v63 = vpop.f32.mrb[22].mxu1 }
 0x935   : > { %v4498_v11 = vadd.f32 %v4492_v63, %v4328_v34  ;;  %v15037_v52 = vpop.f32.mrb[23].mxu1 }
 0x937   : > { %v4996_v53 = vpop.f32.mrb[18].mxu0 }
 0x938   : > { %v15052_v21 = vpop.f32.mrb[19].mxu0 }
 0x93b   : > { %v5164_v35 = vpop.f32.mrb[20].mxu0 }
 0x93c   : > { %v4660_v17 = vpop.f32.mrb[24].mxu1  ;;  %v15057_v29 = vpop.f32.mrb[21].mxu0 }
 0x93d   : > { %v4666_v8 = vadd.f32 %v4660_v17, %v4498_v11  ;;  %v15042_v15 = vpop.f32.mrb[25].mxu1  ;;  %v7429_v29 = vld [vmem:[#allocation23] sm:$0xff] }
 0x93f   : > { %v4834_v4 = vadd.f32 %v4828_v46, %v4666_v8 }
 0x941   : > { %v5002_v59 = vadd.f32 %v4996_v53, %v4834_v4 }
 0x942   : > { %v5332_v2 = vpop.f32.mrb[22].mxu0 }
 0x943   : > { %v5170_v60 = vadd.f32 %v5164_v35, %v5002_v59  ;;  %v15062_v54 = vpop.f32.mrb[23].mxu0 }
 0x945   : > { %v5338_v50 = vadd.f32 %v5332_v2, %v5170_v60  ;;  %v5941_v60 = vld [vmem:[#allocation21 + $0x8] sm:$0xff] }
 0x946   : > { %v5500_v16 = vpop.f32.mrb[24].mxu0 }
 0x947   : > { %v5506_v48 = vadd.f32 %v5500_v16, %v5338_v50  ;;  %v15067_v23 = vpop.f32.mrb[25].mxu0 }
 0x948   : > { %v5939_v23 = vld [vmem:[#allocation21] sm:$0xff] }
 0x949   : > { %v5515_v26 = vadd.f32 %v5511_v18, %v5506_v48 }
 0x94b   : > { %v5534_v12 = vadd.f32 %v5526_v24, %v5515_v26 }
 0x94d   : > { %v5537_v13 = vmax.f32 %v5534_v12, 0.0  ;;  %v7264_v12 = vld [vmem:[#allocation21 + $0x40] sm:$0xff] }
 0x960   : > { %v5429_v25 = vpop.f32.mrb[16].mxu1 }
 0x961   : > { %v5513_v28 = vadd.f32 %v5511_v18, %v5429_v25  ;;  %v5431_v30 = vpop.f32.mrb[17].mxu1 }
 0x962   : > { %v5514_v49 = vadd.f32 %v5511_v18, %v5431_v30  ;;  %v6592_v30 = vld [vmem:[#allocation21 + $0x20] sm:$0xff] }
 0x963   : > { %v5532_v36 = vadd.f32 %v5527_v27, %v5513_v28  ;;  %v6256_v27 = vld [vmem:[#allocation21 + $0x10] sm:$0xff] }
 0x964   : > { %v5533_v51 = vadd.f32 %v5528_v0, %v5514_v49 }
 0x965   : > { %v5535_v32 = vmax.f32 %v5532_v36, 0.0 }
 0x966   : > { %v5536_v1 = vmax.f32 %v5533_v51, 0.0  ;;  %v6424_v51 = vld [vmem:[#allocation21 + $0x18] sm:$0xff] }
 0x968   : > { %5713 = vmatprep.mubr.f32.mxu0 %v5536_v1  ;;  %5855 = vmatprep.mubr.f32.mxu1 %v5536_v1  ;;  %v6928_v1 = vld [vmem:[#allocation21 + $0x30] sm:$0xff] }
 0x969   : > { %5714 = vmatmul.mubr.f32.vlgmr.msra.gmra.mrb[26].mxu0 %v5535_v32  ;;  %5856 = vmatmul.mubr.f32.vlgmr.msra.gmra.mrb[26].mxu1 %v5535_v32 }
 0x96a   : > { %15988 = vmatpush3.bf16.msra.mxu1 %v15987_v6  ;;  %15949 = vmatpush1.bf16.msra.mxu0 %v15948_v9 }
 0x96b   : > { %15989 = vmatprep.subr.bf16.mxu1 %v17957_v3  ;;  %15951 = vmatprep.subr.bf16.mxu0 %v15950_v37 }
 0x96c   : > { %15076 = vmatprep.mubr.msk.f32.mxu1 %vm17958_vm9, %v17956_v47  ;;  %5784 = vmatprep.mubr.f32.mxu0 %v17956_v47 }
 0x96e   : > { %15991 = vmatpush3.bf16.msra.mxu1 %v15990_v57  ;;  %15953 = vmatpush1.bf16.msra.mxu0 %v15952_v62 }
 0x96f   : > { %15099 = vmatprep.subr.mxu0 %v17956_v47 }
 0x971   : > { %15077 = vmatmul.mubr.msk.f32.vlgmr.msra.gmra.mrb[28].mxu1 %vm1817_vm8, %v5537_v13  ;;  %14211 = vmatmul.mubr.msk.f32.vlgmr.msra.gmra.mrb[26].mxu0 %vm1817_vm8, %v5537_v13 }
 0x972   : > { %6026 = vmatprep.mubr.f32.mxu1 %v17956_v47  ;;  %15101 = vmatprep.mubr.msk.f32.mxu0 %vm17958_vm9, %v17956_v47 }
 0xa3c   : > { %v14567_v40 = vpop.f32.mrb[26].mxu1 }
 0xa3d   : > { %v14568_v10 = vpop.f32.mrb[27].mxu1 }
 0xa3e   : > { %v14569_v41 = vadd.f32 %v14568_v10, %v14567_v40 }
 0xa44   : > { %v5927_v7 = vpop.f32.mrb[28].mxu1  ;;  %v5786_v31 = vpop.f32.mrb[26].mxu0 }
 0xa45   : > { %v5928_v39 = vadd.f32 %v14569_v41, %v5927_v7  ;;  %v15078_v58 = vpop.f32.mrb[29].mxu1  ;;  %v5788_v34 = vpop.f32.mrb[27].mxu0 }
 0xa46   : > { %v19228_v5 = vcombine.low %v5786_v31, %v5788_v34  ;;  %v19231_v46 = vcombine.low %v5788_v34, %v5788_v34  ;;  %v7473_v58 = vld [vmem:[#allocation27 + $0x100] sm:$0xff]  ;;  %v7474_v34 = vld [vmem:[#allocation27 + $0x108] sm:$0xff] }
 0xa47   : > { %5936 = vst.msk [vmem:[#allocation4 + $0x8] sm:$0xf] %vm2108_vm10, %v5928_v39 }
 0xa48   : > { %5947 = vrot.lane.b32.xlu1 %v19231_v46, %s17948_s3 }
 0xa4c   : > { %5945 = vrot.lane.b32.xlu1 %v19228_v5, %s17948_s3 }
 0xa4e   : > { %v5938_v22 = vld [vmem:[#allocation4 + $0x8] sm:$0xf] }
 0xa4f   : > { %5949 = vrot.lane.b32.xlu0 %v5938_v22, %s17948_s3  ;;  %v6254_v63 = vld [vmem:[#allocation4 + $0x8] sm:$0xf] }
 0xa50   : > { %6264 = vrot.lane.b32.xlu1 %v6254_v63, %s17949_s5  ;;  %v6422_v11 = vld [vmem:[#allocation4 + $0x8] sm:$0xf]  ;;  %v7458_v63 = vld [vmem:[#allocation27 + $0x88] sm:$0xff] }
 0xa51   : > { %v6590_v52 = vld [vmem:[#allocation4 + $0x8] sm:$0xf] }
 0xa52   : > { %v6758_v53 = vld [vmem:[#allocation4 + $0x8] sm:$0xf] }
 0xa53   : > { %6262 = vrot.lane.b32.xlu0 %v19231_v46, %s17949_s5  ;;  %v6926_v21 = vld [vmem:[#allocation4 + $0x8] sm:$0xf] }
 0xa54   : > { %6430 = vrot.lane.b32.xlu1 %v19231_v46, %s17950_s4  ;;  %v7094_v35 = vld [vmem:[#allocation4 + $0x8] sm:$0xf] }
 0xa55   : > { %v7262_v17 = vld [vmem:[#allocation4 + $0x8] sm:$0xf] }
 0xa57   : > { %6260 = vrot.lane.b32.xlu0 %v19228_v5, %s17949_s5 }
 0xa58   : > { %6428 = vrot.lane.b32.xlu1 %v19228_v5, %s17950_s4 }
 0xa5b   : > { %6432 = vrot.lane.b32.xlu0 %v6422_v11, %s17950_s4  ;;  %v16025_v11 = vpack.c.bf16 %v7474_v34, %v7473_v58  ;;  %s17962_s4 = smov 116  }
 0xa5c   : > { %6600 = vrot.lane.b32.xlu1 %v6590_v52, %s17951_s12 }
 0xa5f   : > { %6598 = vrot.lane.b32.xlu0 %v19231_v46, %s17951_s12 }
 0xa60   : > { %6766 = vrot.lane.b32.xlu1 %v19231_v46, %s17952_s7 }
 0xa63   : > { %6596 = vrot.lane.b32.xlu0 %v19228_v5, %s17951_s12  ;;  %s17963_s12 = smov 106  }
 0xa64   : > { %6764 = vrot.lane.b32.xlu1 %v19228_v5, %s17952_s7 }
 0xa67   : > { %6768 = vrot.lane.b32.xlu0 %v6758_v53, %s17952_s7  ;;  %v7441_v53 = vld [vmem:[#allocation27] sm:$0xff] }
 0xa68   : > { %6936 = vrot.lane.b32.xlu1 %v6926_v21, %s17953_s13  ;;  %v7442_v21 = vld [vmem:[#allocation27 + $0x8] sm:$0xff] }
 0xa6b   : > { %6934 = vrot.lane.b32.xlu0 %v19231_v46, %s17953_s13 }
 0xa6c   : > { %7102 = vrot.lane.b32.xlu1 %v19231_v46, %s17954_s11 }
 0xa6f   : > { %6932 = vrot.lane.b32.xlu0 %v19228_v5, %s17953_s13  ;;  %s17965_s13 = smov 121  }
 0xa70   : > { %7100 = vrot.lane.b32.xlu1 %v19228_v5, %s17954_s11 }
 0xa73   : > { %7104 = vrot.lane.b32.xlu0 %v7094_v35, %s17954_s11  ;;  %v15994_v35 = vpack.c.bf16 %v7442_v21, %v7441_v53  ;;  %s17966_s11 = smov 122  }
 0xa74   : > { %7272 = vrot.lane.b32.xlu1 %v7262_v17, %s17955_s1  ;;  %v7475_v17 = vld [vmem:[#allocation27 + $0x110] sm:$0xff] }
 0xa77   : > { %7270 = vrot.lane.b32.xlu0 %v19231_v46, %s17955_s1 }
 0xa78   : > { %7432 = vperm.xlu1 %16834, %v7429_v29   ;;  %v7476_v29 = vld [vmem:[#allocation27 + $0x118] sm:$0xff] }
 0xa7b   : > { %7268 = vrot.lane.b32.xlu0 %v19228_v5, %s17955_s1  ;;  %s17967_s1 = smov 120  }
 0xaba   : > { %v5948_v8 = vpop.permute.xlu1 %5947 }
 0xabe   : > { %v5946_v15 = vpop.permute.xlu1 %5945 }
 0xabf   : > { %v5951_v59 = vsel %vm1492_vm0, %v5946_v15, %v5948_v8  ;;  %v7460_v15 = vld [vmem:[#allocation27 + $0x98] sm:$0xff] }
 0xac1   : > { %v5950_v4 = vpop.permute.xlu0 %5949 }
 0xac2   : > { %v5952_v2 = vsel %vm1492_vm0, %v5948_v8, %v5950_v4  ;;  %v6265_v54 = vpop.permute.xlu1 %6264  ;;  %v7459_v8 = vld [vmem:[#allocation27 + $0x90] sm:$0xff]  ;;  %vm8628_vm0 = vcmask 654336  }
 0xac3   : > { %14213 = vmatprep.subr.msk.mxu1 %vm2130_vm11, %v5952_v2  ;;  %v7443_v2 = vld [vmem:[#allocation27 + $0x10] sm:$0xff] }
 0xac4   : > { %14214 = vmatpush1.msk.msra.mxu1 %vm2130_vm11, %v5951_v59  ;;  %v15996_v59 = vpack.c.bf16 %v7460_v15, %v7459_v8 }
 0xac5   : > { %v6263_v50 = vpop.permute.xlu0 %6262  ;;  %14215 = vmatmul.mubr.msk.f32.vlgmr.msra.gmra.mrb[30].mxu1 %vm2126_vm12, %v5941_v60  ;;  %15079 = vmatprep.subr.mxu1 %v17956_v47 }
 0xac6   : > { %15080 = vmatpush3.msk.msra.mxu1 %vm2130_vm11, %v5950_v4  ;;  %15081 = vmatprep.mubr.msk.f32.mxu1 %vm17958_vm9, %v17956_v47  ;;  %v6431_v16 = vpop.permute.xlu1 %6430  ;;  %v6267_v19 = vsel %vm1520_vm1, %v6263_v50, %v6265_v54  ;;  %v16028_v4 = vpack.c.bf16 %v7476_v29, %v7475_v17 }
 0xac7   : > { %14218 = vmatprep.subr.msk.mxu1 %vm2130_vm11, %v19231_v46 }
 0xac9   : > { %v6261_v48 = vpop.permute.xlu0 %6260  ;;  %15082 = vmatmul.mubr.msk.f32.vlgmr.msra.gmra.mrb[32].mxu1 %vm2126_vm12, %v5941_v60  ;;  %v7444_v60 = vld [vmem:[#allocation27 + $0x18] sm:$0xff] }
 0xaca   : > { %14219 = vmatpush1.msk.msra.mxu1 %vm2130_vm11, %v19228_v5  ;;  %6176 = vmatprep.mubr.f32.mxu1 %v17956_v47  ;;  %v6429_v14 = vpop.permute.xlu1 %6428  ;;  %v6266_v25 = vsel %vm1520_vm1, %v6261_v48, %v6263_v50  ;;  %v7461_v50 = vld [vmem:[#allocation27 + $0xa0] sm:$0xff]  ;;  %vm17964_vm1 = vmmov 1  }
 0xacb   : > { %15084 = vmatprep.subr.mxu1 %v17956_v47  ;;  %v6434_v42 = vsel %vm1548_vm2, %v6429_v14, %v6431_v16  ;;  %v7445_v48 = vld [vmem:[#allocation27 + $0x20] sm:$0xff]  ;;  %v7446_v14 = vld [vmem:[#allocation27 + $0x28] sm:$0xff] }
 0xacd   : > { %v6433_v18 = vpop.permute.xlu0 %6432  ;;  %14220 = vmatmul.mubr.msk.f32.vlgmr.msra.gmra.mrb[30].mxu1 %vm2126_vm12, %v5939_v23 }
 0xace   : > { %15085 = vmatpush3.msk.msra.mxu1 %vm2130_vm11, %v5938_v22  ;;  %15086 = vmatprep.mubr.msk.f32.mxu1 %vm17958_vm9, %v17956_v47  ;;  %v6601_v24 = vpop.permute.xlu1 %6600  ;;  %v6435_v36 = vsel %vm1548_vm2, %v6431_v16, %v6433_v18  ;;  %v7457_v22 = vld [vmem:[#allocation27 + $0x80] sm:$0xff]  ;;  %v7462_v16 = vld [vmem:[#allocation27 + $0xa8] sm:$0xff] }
 0xacf   : > { %14223 = vmatprep.subr.msk.mxu1 %vm2130_vm11, %v6267_v19  ;;  %15100 = vmatpush3.msk.msra.mxu0 %vm2130_vm11, %v6601_v24  ;;  %v15992_v52 = vpack.c.bf16 %v7458_v63, %v7457_v22  ;;  %v7464_v19 = vld [vmem:[#allocation27 + $0xb8] sm:$0xff] }
 0xad0   : > { %15104 = vmatprep.subr.mxu0 %v17956_v47  ;;  %15102 = vmatmul.mubr.msk.f32.vlgmr.msra.gmra.mrb[28].mxu0 %vm2126_vm12, %v6592_v30 }
 0xad1   : > { %v6599_v28 = vpop.permute.xlu0 %6598  ;;  %15087 = vmatmul.mubr.msk.f32.vlgmr.msra.gmra.mrb[34].mxu1 %vm2126_vm12, %v5939_v23  ;;  %15106 = vmatprep.mubr.msk.f32.mxu0 %vm17958_vm9, %v17956_v47  ;;  %v16000_v23 = vpack.c.bf16 %v7462_v16, %v7461_v50 }
 0xad2   : > { %14224 = vmatpush1.msk.msra.mxu1 %vm2130_vm11, %v6266_v25  ;;  %6341 = vmatprep.mubr.f32.mxu1 %v17956_v47  ;;  %v6767_v49 = vpop.permute.xlu1 %6766  ;;  %v6603_v6 = vsel %vm1576_vm3, %v6599_v28, %v6601_v24  ;;  %v16002_v24 = vpack.c.bf16 %v7446_v14, %v7445_v48 }
 0xad3   : > { %15089 = vmatprep.subr.mxu1 %v17956_v47 }
 0xad5   : > { %v6597_v33 = vpop.permute.xlu0 %6596  ;;  %14225 = vmatmul.mubr.msk.f32.vlgmr.msra.gmra.mrb[30].mxu1 %vm2126_vm12, %v6256_v27 }
 0xad6   : > { %15090 = vmatpush3.msk.msra.mxu1 %vm2130_vm11, %v6265_v54  ;;  %15091 = vmatprep.mubr.msk.f32.mxu1 %vm17958_vm9, %v17956_v47  ;;  %v6765_v0 = vpop.permute.xlu1 %6764  ;;  %v6602_v20 = vsel %vm1576_vm3, %v6597_v33, %v6599_v28  ;;  %v15998_v54 = vpack.c.bf16 %v7444_v60, %v7443_v2  ;;  %v7447_v28 = vld [vmem:[#allocation27 + $0x30] sm:$0xff]  ;;  %vm16168_vm3 = vmpackc.low %vm8388_vm14, %vm17964_vm1 }
 0xad7   : > { %14228 = vmatprep.subr.msk.mxu1 %vm2130_vm11, %v6435_v36  ;;  %v6770_v44 = vsel %vm1604_vm4, %v6765_v0, %v6767_v49  ;;  %v7449_v0 = vld [vmem:[#allocation27 + $0x40] sm:$0xff] }
 0xad9   : > { %v6769_v43 = vpop.permute.xlu0 %6768  ;;  %15092 = vmatmul.mubr.msk.f32.vlgmr.msra.gmra.mrb[36].mxu1 %vm2126_vm12, %v6256_v27  ;;  %v7465_v27 = vld [vmem:[#allocation27 + $0xc0] sm:$0xff] }
 0xada   : > { %15105 = vmatpush3.msk.msra.mxu0 %vm2130_vm11, %v6769_v43  ;;  %14229 = vmatpush1.msk.msra.mxu1 %vm2130_vm11, %v6434_v42  ;;  %v6937_v55 = vpop.permute.xlu1 %6936  ;;  %v6771_v32 = vsel %vm1604_vm4, %v6767_v49, %v6769_v43  ;;  %v7466_v49 = vld [vmem:[#allocation27 + $0xc8] sm:$0xff]  ;;  %v7467_v43 = vld [vmem:[#allocation27 + $0xd0] sm:$0xff]  ;;  %vm9605_vm4 = vcmask 343040  }
 0xadb   : > { %6509 = vmatprep.mubr.f32.mxu1 %v17956_v47  ;;  %15094 = vmatprep.subr.mxu1 %v17956_v47  ;;  %v16008_v36 = vpack.c.bf16 %v7466_v49, %v7465_v27  ;;  %v7450_v42 = vld [vmem:[#allocation27 + $0x48] sm:$0xff] }
 0xadc   : > { %15107 = vmatmul.mubr.msk.f32.vlgmr.msra.gmra.mrb[30].mxu0 %vm2126_vm12, %v6760_v45  ;;  %15109 = vmatprep.subr.mxu0 %v17956_v47 }
 0xadd   : > { %v6935_v61 = vpop.permute.xlu0 %6934  ;;  %14230 = vmatmul.mubr.msk.f32.vlgmr.msra.gmra.mrb[30].mxu1 %vm2126_vm12, %v6424_v51  ;;  %15110 = vmatpush3.msk.msra.mxu0 %vm2130_vm11, %v6937_v55 }
 0xade   : > { %15095 = vmatpush3.msk.msra.mxu1 %vm2130_vm11, %v6433_v18  ;;  %15096 = vmatprep.mubr.msk.f32.mxu1 %vm17958_vm9, %v17956_v47  ;;  %v7103_v9 = vpop.permute.xlu1 %7102  ;;  %v6939_v57 = vsel %vm1632_vm5, %v6935_v61, %v6937_v55  ;;  %v7463_v18 = vld [vmem:[#allocation27 + $0xb0] sm:$0xff] }
 0xadf   : > { %14233 = vmatprep.subr.msk.mxu1 %vm2130_vm11, %v6603_v6  ;;  %15111 = vmatprep.mubr.msk.f32.mxu0 %vm17958_vm9, %v17956_v47  ;;  %v16004_v25 = vpack.c.bf16 %v7464_v19, %v7463_v18  ;;  %v7469_v6 = vld [vmem:[#allocation27 + $0xe0] sm:$0xff] }
 0xae0   : > { %15114 = vmatprep.subr.mxu0 %v17956_v47  ;;  %15112 = vmatmul.mubr.msk.f32.vlgmr.msra.gmra.mrb[32].mxu0 %vm2126_vm12, %v6928_v1 }
 0xae1   : > { %v6933_v26 = vpop.permute.xlu0 %6932  ;;  %15097 = vmatmul.mubr.msk.f32.vlgmr.msra.gmra.mrb[38].mxu1 %vm2126_vm12, %v6424_v51  ;;  %15116 = vmatprep.mubr.msk.f32.mxu0 %vm17958_vm9, %v17956_v47  ;;  %v16010_v51 = vpack.c.bf16 %v7450_v42, %v7449_v0 }
 0xae2   : > { %14234 = vmatpush1.msk.msra.mxu1 %vm2130_vm11, %v6602_v20  ;;  %6677 = vmatprep.mubr.f32.mxu1 %v17956_v47  ;;  %v7101_v37 = vpop.permute.xlu1 %7100  ;;  %v6938_v13 = vsel %vm1632_vm5, %v6933_v26, %v6935_v61  ;;  %v7451_v61 = vld [vmem:[#allocation27 + $0x50] sm:$0xff]  ;;  %vm9623_vm5 = vcmask 130048  }
 0xae3   : > { %14238 = vmatprep.subr.msk.mxu1 %vm2130_vm11, %v6771_v32  ;;  %v7106_v41 = vsel %vm1660_vm6, %v7101_v37, %v7103_v9  ;;  %v7453_v32 = vld [vmem:[#allocation27 + $0x60] sm:$0xff]  ;;  %v7454_v37 = vld [vmem:[#allocation27 + $0x68] sm:$0xff] }
 0xae5   : > { %v7105_v56 = vpop.permute.xlu0 %7104  ;;  %14235 = vmatmul.mubr.msk.f32.vlgmr.msra.gmra.mrb[30].mxu1 %vm2126_vm12, %v6592_v30  ;;  %v7448_v30 = vld [vmem:[#allocation27 + $0x38] sm:$0xff] }
 0xae6   : > { %15115 = vmatpush3.msk.msra.mxu0 %vm2130_vm11, %v7105_v56  ;;  %14239 = vmatpush1.msk.msra.mxu1 %vm2130_vm11, %v6770_v44  ;;  %v7273_v62 = vpop.permute.xlu1 %7272  ;;  %v7107_v40 = vsel %vm1660_vm6, %v7103_v9, %v7105_v56  ;;  %v16006_v33 = vpack.c.bf16 %v7448_v30, %v7447_v28  ;;  %v7470_v9 = vld [vmem:[#allocation27 + $0xe8] sm:$0xff]  ;;  %v7471_v44 = vld [vmem:[#allocation27 + $0xf0] sm:$0xff]  ;;  %v7472_v56 = vld [vmem:[#allocation27 + $0xf8] sm:$0xff]  ;;  %vm12948_vm6 = vcmask 1041408  }
 0xae7   : > { %14243 = vmatprep.subr.msk.mxu1 %vm2130_vm11, %v6939_v57  ;;  %15117 = vmatmul.mubr.msk.f32.vlgmr.msra.gmra.mrb[34].mxu0 %vm2126_vm12, %v7096_v38  ;;  %v16016_v26 = vpack.c.bf16 %v7470_v9, %v7469_v6  ;;  %v16020_v57 = vpack.c.bf16 %v7472_v56, %v7471_v44  ;;  %v7622_v6 = vld [vmem:[#allocation24] sm:$0xff]  ;;  %v8093_v44 = vld [vmem:[#allocation24 + $0x30] sm:$0xff] }
 0xae8   : > { %15119 = vmatprep.subr.mxu0 %v17956_v47  ;;  %15121 = vmatprep.mubr.msk.f32.mxu0 %vm17958_vm9, %v17956_v47 }
 0xae9   : > { %15120 = vmatpush3.msk.msra.mxu0 %vm2130_vm11, %v7273_v62  ;;  %6845 = vmatprep.mubr.f32.mxu1 %v17956_v47  ;;  %v7271_v10 = vpop.permute.xlu0 %7270 }
 0xaea   : > { %v7275_v7 = vsel %vm1688_vm7, %v7271_v10, %v7273_v62  ;;  %15993 = vmatprep.subr.bf16.mxu0 %v15992_v52  ;;  %v7455_v62 = vld [vmem:[#allocation27 + $0x70] sm:$0xff] }
 0xaeb   : > { %15122 = vmatmul.mubr.msk.f32.vlgmr.msra.gmra.mrb[36].mxu0 %vm2126_vm12, %v7264_v12 }
 0xaec   : > { %15995 = vmatpush3.bf16.msra.mxu0 %v15994_v35 }
 0xaed   : > { %14240 = vmatmul.mubr.msk.f32.vlgmr.msra.gmra.mrb[30].mxu1 %vm2126_vm12, %v6760_v45  ;;  %v7269_v31 = vpop.permute.xlu0 %7268  ;;  %15997 = vmatprep.subr.bf16.mxu0 %v15996_v59  ;;  %v7468_v45 = vld [vmem:[#allocation27 + $0xd8] sm:$0xff] }
 0xaee   : > { %14244 = vmatpush1.msk.msra.mxu1 %vm2130_vm11, %v6938_v13  ;;  %7013 = vmatprep.mubr.f32.mxu1 %v17956_v47  ;;  %v7274_v39 = vsel %vm1688_vm7, %v7269_v31, %v7271_v10  ;;  %v16012_v55 = vpack.c.bf16 %v7468_v45, %v7467_v43  ;;  %v8610_v45 = vld [vmem:[#allocation32] sm:$0xff]  ;;  %vm16295_vm7 = vmpackc.low %vm12948_vm6, %vm17964_vm1 }
 0xaef   : > { %14248 = vmatprep.subr.msk.mxu1 %vm2130_vm11, %v7107_v40 }
 0xaf0   : > { %15999 = vmatpush3.bf16.msra.mxu0 %v15998_v54 }
 0xaf1   : > { %16001 = vmatprep.subr.bf16.mxu0 %v16000_v23 }
 0xaf4   : > { %16003 = vmatpush3.bf16.msra.mxu0 %v16002_v24 }
 0xaf5   : > { %14245 = vmatmul.mubr.msk.f32.vlgmr.msra.gmra.mrb[30].mxu1 %vm2126_vm12, %v6928_v1  ;;  %16005 = vmatprep.subr.bf16.mxu0 %v16004_v25  ;;  %v7452_v1 = vld [vmem:[#allocation27 + $0x58] sm:$0xff] }
 0xaf6   : > { %14249 = vmatpush1.msk.msra.mxu1 %vm2130_vm11, %v7106_v41  ;;  %7181 = vmatprep.mubr.f32.mxu1 %v17956_v47  ;;  %v16014_v20 = vpack.c.bf16 %v7452_v1, %v7451_v61 }
 0xaf7   : > { %14253 = vmatprep.subr.msk.mxu1 %vm2130_vm11, %v7275_v7  ;;  %v7433_v48 = vpop.permute.xlu1 %7432 }
 0xaf8   : > { %16007 = vmatpush3.bf16.msra.mxu0 %v16006_v33 }
 0xaf9   : > { %16009 = vmatprep.subr.bf16.mxu0 %v16008_v36 }
 0xafc   : > { %16011 = vmatpush3.bf16.msra.mxu0 %v16010_v51  ;;  %v8329_v51 = vld [vmem:[#allocation26] sm:$0xff] }
 0xafd   : > { %14250 = vmatmul.mubr.msk.f32.vlgmr.msra.gmra.mrb[30].mxu1 %vm2126_vm12, %v7096_v38  ;;  %16013 = vmatprep.subr.bf16.mxu0 %v16012_v55  ;;  %v16018_v38 = vpack.c.bf16 %v7454_v37, %v7453_v32  ;;  %v7624_v55 = vld [vmem:[#allocation24 + $0x8] sm:$0xff] }
 0xafe   : > { %14254 = vmatpush1.msk.msra.mxu1 %vm2130_vm11, %v7274_v39  ;;  %7349 = vmatprep.mubr.f32.mxu1 %v17956_v47 }
 0xaff   : > { %16024 = vmatprep.subr.bf16.mxu1 %v17957_v3 }
 0xb00   : > { %16015 = vmatpush3.bf16.msra.mxu0 %v16014_v20 }
 0xb01   : > { %16017 = vmatprep.subr.bf16.mxu0 %v16016_v26  ;;  %v7777_v26 = vld [vmem:[#allocation24 + $0x10] sm:$0xff] }
 0xb04   : > { %16019 = vmatpush3.bf16.msra.mxu0 %v16018_v38  ;;  %v7856_v38 = vld [vmem:[#allocation24 + $0x18] sm:$0xff] }
 0xb05   : > { %14255 = vmatmul.mubr.msk.f32.vlgmr.msra.gmra.mrb[30].mxu1 %vm2126_vm12, %v7264_v12  ;;  %v7456_v12 = vld [vmem:[#allocation27 + $0x78] sm:$0xff]  ;;  %16021 = vmatprep.subr.bf16.mxu0 %v16020_v57  ;;  %v8370_v57 = vld [vmem:[#allocation33 + $0x100] sm:$0xff] }
 0xb06   : > { %15132 = vmatprep.mubr.msk.f32.mxu1 %vm17958_vm9, %v17956_v47  ;;  %16026 = vmatpush3.bf16.msra.mxu1 %v16025_v11  ;;  %v16022_v13 = vpack.c.bf16 %v7456_v12, %v7455_v62  ;;  %v8371_v62 = vld [vmem:[#allocation33 + $0x108] sm:$0xff] }
 0xb07   : > { %16027 = vmatprep.subr.bf16.mxu1 %v17957_v3 }
 0xb08   : > { %16023 = vmatpush3.bf16.msra.mxu0 %v16022_v13  ;;  %v7935_v13 = vld [vmem:[#allocation24 + $0x20] sm:$0xff] }
 0xb09   : > { %15165 = vmatprep.subr.mxu0 %v17956_v47 }
 0xb0a   : > { %16029 = vmatpush3.bf16.msra.mxu1 %v16028_v4 }
 0xb0b   : > { %15135 = vmatprep.subr.mxu1 %v17956_v47 }
 0xb9c   : > { %v6099_v40 = vpop.f32.mrb[32].mxu1 }
 0xb9d   : > { %v15083_v10 = vpop.f32.mrb[33].mxu1 }
 0xb9e   : > { %v16063_v10 = vpack.c.bf16 %v8371_v62, %v8370_v57  ;;  %v8350_v57 = vld [vmem:[#allocation33 + $0x60] sm:$0xff]  ;;  %v8351_v62 = vld [vmem:[#allocation33 + $0x68] sm:$0xff] }
 0xba3   : > { %v6750_v39 = vpop.f32.mrb[28].mxu0 }
 0xba4   : > { %v6249_v41 = vpop.f32.mrb[34].mxu1  ;;  %v15103_v58 = vpop.f32.mrb[29].mxu0 }
 0xba5   : > { %v6250_v7 = vadd.f32 %v6249_v41, %v6099_v40  ;;  %v15088_v31 = vpop.f32.mrb[35].mxu1  ;;  %v8251_v40 = vld [vmem:[#allocation24 + $0x40] sm:$0xff]  ;;  %v8014_v58 = vld [vmem:[#allocation24 + $0x28] sm:$0xff] }
 0xba6   : > { %v8372_v41 = vld [vmem:[#allocation33 + $0x110] sm:$0xff]  ;;  %v8354_v31 = vld [vmem:[#allocation33 + $0x80] sm:$0xff] }
 0xbac   : > { %v6414_v34 = vpop.f32.mrb[36].mxu1 }
 0xbad   : > { %v6420_v22 = vadd.f32 %v6414_v34, %v6250_v7  ;;  %v15093_v63 = vpop.f32.mrb[37].mxu1  ;;  %v8373_v7 = vld [vmem:[#allocation33 + $0x118] sm:$0xff] }
 0xbae   : > { %v16066_v34 = vpack.c.bf16 %v8373_v7, %v8372_v41  ;;  %v8338_v63 = vld [vmem:[#allocation33] sm:$0xff]  ;;  %v8352_v41 = vld [vmem:[#allocation33 + $0x70] sm:$0xff]  ;;  %v8353_v7 = vld [vmem:[#allocation33 + $0x78] sm:$0xff] }
 0xbaf   : > { %v6918_v11 = vpop.f32.mrb[30].mxu0 }
 0xbb0   : > { %v15108_v52 = vpop.f32.mrb[31].mxu0 }
 0xbb1   : > { %v8374_v52 = vld [vmem:[#allocation33 + $0x120] sm:$0xff] }
 0xbb3   : > { %v7086_v53 = vpop.f32.mrb[32].mxu0 }
 0xbb4   : > { %v6582_v21 = vpop.f32.mrb[38].mxu1  ;;  %v15113_v35 = vpop.f32.mrb[33].mxu0 }
 0xbb5   : > { %v6588_v17 = vadd.f32 %v6582_v21, %v6420_v22  ;;  %v15098_v29 = vpop.f32.mrb[39].mxu1  ;;  %v8356_v21 = vld [vmem:[#allocation33 + $0x90] sm:$0xff]  ;;  %v8357_v35 = vld [vmem:[#allocation33 + $0x98] sm:$0xff] }
 0xbb7   : > { %v6756_v8 = vadd.f32 %v6750_v39, %v6588_v17  ;;  %v8355_v39 = vld [vmem:[#allocation33 + $0x88] sm:$0xff] }
 0xbb8   : > { %v16030_v22 = vpack.c.bf16 %v8355_v39, %v8354_v31  ;;  %v8172_v17 = vld [vmem:[#allocation24 + $0x38] sm:$0xff]  ;;  %v16060_v31 = vpack.c.bf16 %v8353_v7, %v8352_v41  ;;  %v9499_v7 = vld [vmem:[#allocation36 + $0x8] sm:$0xff] }
 0xbb9   : > { %v6924_v15 = vadd.f32 %v6918_v11, %v6756_v8  ;;  %v8339_v11 = vld [vmem:[#allocation33 + $0x8] sm:$0xff] }
 0xbba   : > { %v7254_v4 = vpop.f32.mrb[34].mxu0  ;;  %v16032_v29 = vpack.c.bf16 %v8339_v11, %v8338_v63 }
 0xbbb   : > { %v7092_v59 = vadd.f32 %v7086_v53, %v6924_v15  ;;  %v15118_v2 = vpop.f32.mrb[35].mxu0  ;;  %v8375_v53 = vld [vmem:[#allocation33 + $0x128] sm:$0xff]  ;;  %v16034_v15 = vpack.c.bf16 %v8357_v35, %v8356_v21 }
 0xbbc   : > { %v16069_v8 = vpack.c.bf16 %v8375_v53, %v8374_v52  ;;  %v8376_v2 = vld [vmem:[#allocation33 + $0x130] sm:$0xff] }
 0xbbd   : > { %v7260_v60 = vadd.f32 %v7254_v4, %v7092_v59  ;;  %v8340_v4 = vld [vmem:[#allocation33 + $0x10] sm:$0xff]  ;;  %v8341_v59 = vld [vmem:[#allocation33 + $0x18] sm:$0xff] }
 0xbbe   : > { %v7422_v54 = vpop.f32.mrb[36].mxu0 }
 0xbbf   : > { %v7428_v50 = vadd.f32 %v7422_v54, %v7260_v60  ;;  %v15123_v16 = vpop.f32.mrb[37].mxu0  ;;  %v8377_v60 = vld [vmem:[#allocation33 + $0x138] sm:$0xff]  ;;  %v8358_v54 = vld [vmem:[#allocation33 + $0xa0] sm:$0xff] }
 0xbc0   : > { %v16036_v16 = vpack.c.bf16 %v8341_v59, %v8340_v4 }
 0xbc1   : > { %v7437_v23 = vadd.f32 %v7433_v48, %v7428_v50  ;;  %v8359_v50 = vld [vmem:[#allocation33 + $0xa8] sm:$0xff] }
 0xbc3   : > { %v7440_v14 = vmax.f32 %v7437_v23, 0.0  ;;  %v16038_v23 = vpack.c.bf16 %v8359_v50, %v8358_v54 }
 0xbc5   : > { %15133 = vmatmul.mubr.msk.f32.vlgmr.msra.gmra.mrb[40].mxu1 %vm1817_vm8, %v7440_v14  ;;  %v8342_v14 = vld [vmem:[#allocation33 + $0x20] sm:$0xff] }
 0xbc6   : > { %15137 = vmatprep.mubr.msk.f32.mxu1 %vm17958_vm9, %v17956_v47 }
 0xbd8   : > { %v7351_v18 = vpop.f32.mrb[30].mxu1 }
 0xbd9   : > { %v7435_v19 = vadd.f32 %v7433_v48, %v7351_v18  ;;  %v7353_v24 = vpop.f32.mrb[31].mxu1  ;;  %v8343_v18 = vld [vmem:[#allocation33 + $0x28] sm:$0xff] }
 0xbda   : > { %v7436_v25 = vadd.f32 %v7433_v48, %v7353_v24  ;;  %v16072_v48 = vpack.c.bf16 %v8377_v60, %v8376_v2  ;;  %v8379_v24 = vld [vmem:[#allocation33 + $0x148] sm:$0xff] }
 0xbdb   : > { %v7438_v30 = vmax.f32 %v7435_v19, 0.0  ;;  %v8378_v19 = vld [vmem:[#allocation33 + $0x140] sm:$0xff] }
 0xbdc   : > { %v7439_v28 = vmax.f32 %v7436_v25, 0.0  ;;  %v8360_v25 = vld [vmem:[#allocation33 + $0xb0] sm:$0xff] }
 0xbde   : > { %7544 = vmatprep.mubr.f32.mxu0 %v7439_v28  ;;  %v8361_v28 = vld [vmem:[#allocation33 + $0xb8] sm:$0xff] }
 0xbdf   : > { %7545 = vmatmul.mubr.f32.vlgmr.msra.gmra.mrb[38].mxu0 %v7438_v30  ;;  %v16040_v30 = vpack.c.bf16 %v8343_v18, %v8342_v14 }
 0xbe0   : > { %15167 = vmatprep.mubr.msk.f32.mxu0 %vm17958_vm9, %v17956_v47 }
 0xc98   : > { %v7616_v27 = vpop.f32.mrb[40].mxu1 }
 0xc99   : > { %v15134_v49 = vpop.f32.mrb[41].mxu1 }
 0xc9a   : > { %v16042_v49 = vpack.c.bf16 %v8361_v28, %v8360_v25 }
 0xcb2   : > { %v14625_v33 = vpop.f32.mrb[38].mxu0 }
 0xcb3   : > { %v14626_v36 = vpop.f32.mrb[39].mxu0 }
 0xcb4   : > { %v14627_v0 = vadd.f32 %v14626_v36, %v14625_v33  ;;  %v8345_v33 = vld [vmem:[#allocation33 + $0x38] sm:$0xff]  ;;  %v8362_v36 = vld [vmem:[#allocation33 + $0xc0] sm:$0xff] }
 0xcb6   : > { %v7617_v42 = vadd.f32 %v14627_v0, %v7616_v27  ;;  %v16075_v27 = vpack.c.bf16 %v8379_v24, %v8378_v19  ;;  %v8363_v0 = vld [vmem:[#allocation33 + $0xc8] sm:$0xff] }
 0xcb8   : > { %7620 = vst.msk [vmem:[#allocation5] sm:$0xff] %vm1548_vm2, %v7617_v42 }
 0xcbf   : > { %v7621_v43 = vld [vmem:[#allocation5] sm:$0xff] }
 0xcc0   : > { %7778 = vrot.lane.b32.xlu1 %v7621_v43, %s17949_s5  ;;  %7626 = vrot.lane.b32.xlu0 %v7621_v43, %s17948_s3 }
 0xcc4   : > { %7936 = vrot.lane.b32.xlu1 %v7621_v43, %s17959_s22  ;;  %7857 = vrot.lane.b32.xlu0 %v7621_v43, %s17960_s28 }
 0xcc8   : > { %8173 = vrot.lane.b32.xlu1 %v7621_v43, %s17961_s0  ;;  %8015 = vrot.lane.b32.xlu0 %v7621_v43, %s17962_s4 }
 0xccc   : > { %8252 = vrot.lane.b32.xlu1 %v7621_v43, %s17963_s12  ;;  %8094 = vrot.lane.b32.xlu0 %v7621_v43, %s17952_s7 }
 0xcd0   : > { %8613 = vperm.xlu1 %16834, %v8610_v45   ;;  %8332 = vperm.xlu0 %16833, %v8329_v51   ;;  %v8346_v45 = vld [vmem:[#allocation33 + $0x40] sm:$0xff]  ;;  %v8347_v51 = vld [vmem:[#allocation33 + $0x48] sm:$0xff] }
 0xd32   : > { %v7779_v61 = vpop.permute.xlu1 %7778  ;;  %v7627_v1 = vpop.permute.xlu0 %7626 }
 0xd33   : > { %15136 = vmatpush3.msra.mxu1 %v7627_v1  ;;  %v8365_v1 = vld [vmem:[#allocation33 + $0xd8] sm:$0xff] }
 0xd34   : > { %15138 = vmatmul.mubr.msk.f32.vlgmr.msra.gmra.mrb[42].mxu1 %vm7629_vm13, %v7624_v55  ;;  %15140 = vmatprep.subr.mxu1 %v17956_v47  ;;  %v8380_v55 = vld [vmem:[#allocation33 + $0x150] sm:$0x3f] }
 0xd35   : > { %15141 = vmatpush3.msra.mxu1 %v7621_v43  ;;  %15142 = vmatprep.mubr.msk.f32.mxu1 %vm17958_vm9, %v17956_v47  ;;  %v16046_v43 = vpack.c.bf16 %v8363_v0, %v8362_v36  ;;  %v8620_v0 = vld [vmem:[#allocation29 + $0x10] sm:$0xff] }
 0xd36   : > { %v7937_v9 = vpop.permute.xlu1 %7936  ;;  %v7858_v20 = vpop.permute.xlu0 %7857  ;;  %15145 = vmatprep.subr.mxu1 %v17956_v47 }
 0xd38   : > { %15143 = vmatmul.mubr.msk.f32.vlgmr.msra.gmra.mrb[44].mxu1 %vm7629_vm13, %v7622_v6  ;;  %v16048_v6 = vpack.c.bf16 %v8347_v51, %v8346_v45  ;;  %v8622_v45 = vld [vmem:[#allocation29 + $0x20] sm:$0xff]  ;;  %v8623_v51 = vld [vmem:[#allocation29 + $0x28] sm:$0xff] }
 0xd39   : > { %15146 = vmatpush3.msra.mxu1 %v7779_v61  ;;  %15147 = vmatprep.mubr.msk.f32.mxu1 %vm17958_vm9, %v17956_v47  ;;  %v8364_v61 = vld [vmem:[#allocation33 + $0xd0] sm:$0xff] }
 0xd3a   : > { %v8016_v32 = vpop.permute.xlu0 %8015  ;;  %15150 = vmatprep.subr.mxu1 %v17956_v47  ;;  %v8174_v37 = vpop.permute.xlu1 %8173 }
 0xd3c   : > { %15148 = vmatmul.mubr.msk.f32.vlgmr.msra.gmra.mrb[46].mxu1 %vm7629_vm13, %v7777_v26  ;;  %v8348_v26 = vld [vmem:[#allocation33 + $0x50] sm:$0xff] }
 0xd3d   : > { %15151 = vmatpush3.msra.mxu1 %v7858_v20  ;;  %15152 = vmatprep.mubr.msk.f32.mxu1 %vm17958_vm9, %v17956_v47  ;;  %v16050_v20 = vpack.c.bf16 %v8365_v1, %v8364_v61  ;;  %v8624_v61 = vld [vmem:[#allocation29 + $0x30] sm:$0xff]  ;;  %v8625_v1 = vld [vmem:[#allocation29 + $0x38] sm:$0xff] }
 0xd3e   : > { %v8095_v56 = vpop.permute.xlu0 %8094  ;;  %15155 = vmatprep.subr.mxu1 %v17956_v47  ;;  %v8253_v12 = vpop.permute.xlu1 %8252 }
 0xd3f   : > { %15166 = vmatpush3.msra.mxu0 %v8095_v56 }
 0xd40   : > { %15153 = vmatmul.mubr.msk.f32.vlgmr.msra.gmra.mrb[48].mxu1 %vm7629_vm13, %v7856_v38  ;;  %15168 = vmatmul.mubr.msk.f32.vlgmr.msra.gmra.mrb[40].mxu0 %vm7629_vm13, %v8093_v44  ;;  %v8367_v38 = vld [vmem:[#allocation33 + $0xe8] sm:$0xff] }
 0xd41   : > { %15156 = vmatpush3.msra.mxu1 %v7937_v9  ;;  %15175 = vmatprep.subr.mxu0 %v17956_v47  ;;  %v8337_v9 = vld [vmem:[#allocation4 + $0x8] sm:$0xf] }
 0xd42   : > { %15176 = vmatpush3.msra.mxu0 %v8253_v12  ;;  %15157 = vmatprep.mubr.msk.f32.mxu1 %vm17958_vm9, %v17956_v47  ;;  %v8368_v12 = vld [vmem:[#allocation33 + $0xf0] sm:$0xff] }
 0xd43   : > { %15160 = vmatprep.subr.mxu1 %v17956_v47  ;;  %15177 = vmatprep.mubr.msk.f32.mxu0 %vm17958_vm9, %v17956_v47 }
 0xd44   : > { %16062 = vmatprep.subr.bf16.mxu0 %v17957_v3  ;;  %15158 = vmatmul.mubr.msk.f32.vlgmr.msra.gmra.mrb[50].mxu1 %vm7629_vm13, %v7935_v13  ;;  %v8369_v13 = vld [vmem:[#allocation33 + $0xf8] sm:$0xff] }
 0xd45   : > { %15161 = vmatpush3.msra.mxu1 %v8016_v32  ;;  %15178 = vmatmul.mubr.msk.f32.vlgmr.msra.gmra.mrb[42].mxu0 %vm7629_vm13, %v8251_v40  ;;  %v8349_v32 = vld [vmem:[#allocation33 + $0x58] sm:$0xff]  ;;  %v16056_v40 = vpack.c.bf16 %v8351_v62, %v8350_v57 }
 0xd46   : > { %16064 = vmatpush3.bf16.msra.mxu0 %v16063_v10  ;;  %15162 = vmatprep.mubr.msk.f32.mxu1 %vm17958_vm9, %v17956_v47  ;;  %v16052_v44 = vpack.c.bf16 %v8349_v32, %v8348_v26  ;;  %v16058_v10 = vpack.c.bf16 %v8369_v13, %v8368_v12  ;;  %v8707_v13 = vld [vmem:[#allocation35 + $0x10] sm:$0xff] }
 0xd47   : > { %15170 = vmatprep.subr.mxu1 %v17956_v47  ;;  %16065 = vmatprep.subr.bf16.mxu0 %v17957_v3 }
 0xd48   : > { %15163 = vmatmul.mubr.msk.f32.vlgmr.msra.gmra.mrb[52].mxu1 %vm7629_vm13, %v8014_v58  ;;  %15202 = vmatprep.mubr.msk.f32.mxu0 %vm17958_vm9, %v17956_v47 }
 0xd49   : > { %15171 = vmatpush3.msra.mxu1 %v8174_v37  ;;  %15172 = vmatprep.mubr.msk.f32.mxu1 %vm17958_vm9, %v17956_v47  ;;  %v8366_v37 = vld [vmem:[#allocation33 + $0xe0] sm:$0xff] }
 0xd4a   : > { %16067 = vmatpush3.bf16.msra.mxu0 %v16066_v34  ;;  %16031 = vmatprep.subr.bf16.mxu1 %v16030_v22  ;;  %v16054_v56 = vpack.c.bf16 %v8367_v38, %v8366_v37 }
 0xd4b   : > { %16068 = vmatprep.subr.bf16.mxu0 %v17957_v3 }
 0xd4c   : > { %15173 = vmatmul.mubr.msk.f32.vlgmr.msra.gmra.mrb[54].mxu1 %vm7629_vm13, %v8172_v17 }
 0xd4d   : > { %16033 = vmatpush3.bf16.msra.mxu1 %v16032_v29  ;;  %8456 = vmatprep.mubr.f32.mxu1 %v19231_v46  ;;  %v8344_v46 = vld [vmem:[#allocation33 + $0x30] sm:$0xff] }
 0xd4e   : > { %16070 = vmatpush3.bf16.msra.mxu0 %v16069_v8  ;;  %16035 = vmatprep.subr.bf16.mxu1 %v16034_v15  ;;  %v16044_v42 = vpack.c.bf16 %v8345_v33, %v8344_v46  ;;  %v8532_v33 = vld [vmem:[#allocation30] sm:$0xff] }
 0xd4f   : > { %16071 = vmatprep.subr.bf16.mxu0 %v17957_v3  ;;  %v8333_v32 = vpop.permute.xlu0 %8332  ;;  %v8614_v57 = vpop.permute.xlu1 %8613 }
 0xd51   : > { %16037 = vmatpush3.bf16.msra.mxu1 %v16036_v16 }
 0xd52   : > { %16073 = vmatpush3.bf16.msra.mxu0 %v16072_v48  ;;  %16039 = vmatprep.subr.bf16.mxu1 %v16038_v23 }
 0xd53   : > { %16074 = vmatprep.subr.bf16.mxu0 %v17957_v3 }
 0xd55   : > { %16041 = vmatpush3.bf16.msra.mxu1 %v16040_v30  ;;  %v8618_v30 = vld [vmem:[#allocation29] sm:$0xff] }
 0xd56   : > { %16076 = vmatpush3.bf16.msra.mxu0 %v16075_v27  ;;  %16043 = vmatprep.subr.bf16.mxu1 %v16042_v49  ;;  %v8619_v27 = vld [vmem:[#allocation29 + $0x8] sm:$0xff] }
 0xd57   : > { %15200 = vmatprep.subr.mxu0 %v17956_v47  ;;  %v16078_v36 = vpack.c.bf16 %v8619_v27, %v8618_v30  ;;  %v9233_v27 = vld [vmem:[#allocation35 + $0x68] sm:$0xff] }
 0xd59   : > { %16045 = vmatpush3.bf16.msra.mxu1 %v16044_v42  ;;  %v8621_v42 = vld [vmem:[#allocation29 + $0x18] sm:$0xff] }
 0xd5a   : > { %15201 = vmatpush3.msk.msra.mxu0 %vm8388_vm14, %v8380_v55  ;;  %16047 = vmatprep.subr.bf16.mxu1 %v16046_v43  ;;  %v16081_v43 = vpack.c.bf16 %v8621_v42, %v8620_v0  ;;  %v16084_v55 = vpack.c.bf16 %v8623_v51, %v8622_v45  ;;  %v9411_v0 = vld [vmem:[#allocation35 + $0x88] sm:$0xff]  ;;  %v9522_v42 = vld [vmem:[#allocation39 + $0x40] sm:$0xff] }
 0xd5b   : > { %15203 = vmatmul.mubr.msk.f32.vlgmr.msra.gmra.mrb[44].mxu0 %vm8385_vm15, %v8337_v9  ;;  %15205 = vmatprep.subr.mxu0 %v17956_v47  ;;  %v8626_v9 = vld [vmem:[#allocation29 + $0x40] sm:$0xff] }
 0xd5c   : > { %15207 = vmatprep.mubr.msk.f32.mxu0 %vm17958_vm9, %v17956_v47 }
 0xd5d   : > { %16049 = vmatpush3.bf16.msra.mxu1 %v16048_v6  ;;  %v16087_v6 = vpack.c.bf16 %v8625_v1, %v8624_v61 }
 0xd5e   : > { %16051 = vmatprep.subr.bf16.mxu1 %v16050_v20  ;;  %v8627_v20 = vld [vmem:[#allocation29 + $0x48] sm:$0xff] }
 0xd5f   : > { %v16090_v26 = vpack.c.bf16 %v8627_v20, %v8626_v9  ;;  %v10445_v9 = vld [vmem:[#allocation45] sm:$0xff]  ;;  %v10446_v20 = vld [vmem:[#allocation45 + $0x8] sm:$0xff] }
 0xd61   : > { %16053 = vmatpush3.bf16.msra.mxu1 %v16052_v44 }
 0xd62   : > { %16055 = vmatprep.subr.bf16.mxu1 %v16054_v56 }
 0xd65   : > { %16057 = vmatpush3.bf16.msra.mxu1 %v16056_v40 }
 0xd66   : > { %16059 = vmatprep.subr.bf16.mxu1 %v16058_v10 }
 0xd69   : > { %16061 = vmatpush3.bf16.msra.mxu1 %v16060_v31  ;;  %v9498_v31 = vld [vmem:[#allocation36] sm:$0xff] }
 0xd6c   : > { %8457 = vmatmul.mubr.f32.vlgmr.msra.gmra.mrb[56].mxu1 %v19228_v5 }
 0xd6d   : > { %15235 = vmatprep.mubr.msk.f32.mxu1 %vm7629_vm13, %v8707_v13 }
 0xe07   : > { %v7699_v39 = vpop.f32.mrb[42].mxu1 }
 0xe08   : > { %v15139_v58 = vpop.f32.mrb[43].mxu1 }
 0xe09   : > { %v9515_v58 = vld [vmem:[#allocation39 + $0x8] sm:$0xff] }
 0xe0b   : > { %v7772_v34 = vpop.f32.mrb[44].mxu1 }
 0xe0c   : > { %v7773_v22 = vadd.f32 %v7772_v34, %v7699_v39  ;;  %v15144_v63 = vpop.f32.mrb[45].mxu1  ;;  %v9514_v39 = vld [vmem:[#allocation39] sm:$0xff]  ;;  %v9516_v34 = vld [vmem:[#allocation39 + $0x10] sm:$0xff] }
 0xe0d   : > { %v9517_v63 = vld [vmem:[#allocation39 + $0x18] sm:$0xff] }
 0xe0f   : > { %v7850_v11 = vpop.f32.mrb[46].mxu1 }
 0xe10   : > { %v7854_v52 = vadd.f32 %v7850_v11, %v7773_v22  ;;  %v15149_v53 = vpop.f32.mrb[47].mxu1  ;;  %v16092_v22 = vpack.c.bf16 %v9515_v58, %v9514_v39  ;;  %v16096_v11 = vpack.c.bf16 %v9517_v63, %v9516_v34  ;;  %v10454_v39 = vld [vmem:[#allocation45 + $0x48] sm:$0xff]  ;;  %v10456_v34 = vld [vmem:[#allocation45 + $0x58] sm:$0xff]  ;;  %v10457_v63 = vld [vmem:[#allocation45 + $0x60] sm:$0xff] }
 0xe11   : > { %v9519_v53 = vld [vmem:[#allocation39 + $0x28] sm:$0xff] }
 0xe13   : > { %v7929_v21 = vpop.f32.mrb[48].mxu1  ;;  %v8166_v35 = vpop.f32.mrb[40].mxu0 }
 0xe14   : > { %v7933_v17 = vadd.f32 %v7929_v21, %v7854_v52  ;;  %v15154_v29 = vpop.f32.mrb[49].mxu1  ;;  %v15169_v8 = vpop.f32.mrb[41].mxu0  ;;  %v9518_v52 = vld [vmem:[#allocation39 + $0x20] sm:$0xff] }
 0xe15   : > { %v16100_v21 = vpack.c.bf16 %v9519_v53, %v9518_v52 }
 0xe17   : > { %v8008_v15 = vpop.f32.mrb[50].mxu1 }
 0xe18   : > { %v8012_v4 = vadd.f32 %v8008_v15, %v7933_v17  ;;  %v15159_v59 = vpop.f32.mrb[51].mxu1  ;;  %v8324_v2 = vpop.f32.mrb[42].mxu0  ;;  %v9521_v17 = vld [vmem:[#allocation39 + $0x38] sm:$0xff]  ;;  %v8708_v15 = vld [vmem:[#allocation35 + $0x18] sm:$0xff] }
 0xe19   : > { %v15179_v60 = vpop.f32.mrb[43].mxu0 }
 0xe1a   : > { %v8876_v60 = vld [vmem:[#allocation35 + $0x20] sm:$0xff] }
 0xe1b   : > { %v8087_v54 = vpop.f32.mrb[52].mxu1 }
 0xe1c   : > { %v8091_v5 = vadd.f32 %v8087_v54, %v8012_v4  ;;  %v15164_v50 = vpop.f32.mrb[53].mxu1  ;;  %v8704_v4 = vld [vmem:[#allocation35] sm:$0xff] }
 0xe1d   : > { %v8965_v50 = vld [vmem:[#allocation35 + $0x30] sm:$0xff] }
 0xe1e   : > { %v8170_v16 = vadd.f32 %v8166_v35, %v8091_v5  ;;  %v9520_v35 = vld [vmem:[#allocation39 + $0x30] sm:$0xff]  ;;  %v8877_v5 = vld [vmem:[#allocation35 + $0x28] sm:$0xff] }
 0xe1f   : > { %v8245_v48 = vpop.f32.mrb[54].mxu1  ;;  %v16104_v29 = vpack.c.bf16 %v9521_v17, %v9520_v35 }
 0xe20   : > { %v8249_v23 = vadd.f32 %v8245_v48, %v8170_v16  ;;  %v15174_v14 = vpop.f32.mrb[55].mxu1  ;;  %v8966_v48 = vld [vmem:[#allocation35 + $0x38] sm:$0xff] }
 0xe22   : > { %v8328_v18 = vadd.f32 %v8324_v2, %v8249_v23  ;;  %v8705_v2 = vld [vmem:[#allocation35 + $0x8] sm:$0xff]  ;;  %v9054_v23 = vld [vmem:[#allocation35 + $0x40] sm:$0xff] }
 0xe24   : > { %v8335_v37 = vadd.f32 %v8333_v32, %v8328_v18  ;;  %v9055_v18 = vld [vmem:[#allocation35 + $0x48] sm:$0xff] }
 0xe2e   : > { %v8528_v19 = vpop.f32.mrb[44].mxu0 }
 0xe2f   : > { %v15204_v24 = vpop.f32.mrb[45].mxu0 }
 0xe3f   : > { %v14683_v25 = vpop.f32.mrb[56].mxu1 }
 0xe40   : > { %v14684_v28 = vpop.f32.mrb[57].mxu1 }
 0xe41   : > { %v14685_v49 = vadd.f32 %v14684_v28, %v14683_v25  ;;  %v9144_v25 = vld [vmem:[#allocation35 + $0x58] sm:$0xff]  ;;  %v9232_v28 = vld [vmem:[#allocation35 + $0x60] sm:$0xff] }
 0xe43   : > { %v8529_v46 = vadd.f32 %v14685_v49, %v8528_v19  ;;  %v9143_v19 = vld [vmem:[#allocation35 + $0x50] sm:$0xff] }
 0xe44   : > { %v9321_v49 = vld [vmem:[#allocation35 + $0x70] sm:$0xff] }
 0xe45   : > { %15206 = vmatpush3.msk.msra.mxu0 %vm2130_vm11, %v8529_v46 }
 0xe46   : > { %15208 = vmatmul.mubr.msk.f32.vlgmr.msra.gmra.mrb[46].mxu0 %vm2126_vm12, %v8532_v33  ;;  %16077 = vmatprep.subr.bf16.mxu0 %v17957_v3  ;;  %v9322_v33 = vld [vmem:[#allocation35 + $0x78] sm:$0xff] }
 0xe47   : > { %16079 = vmatpush3.bf16.msra.mxu0 %v16078_v36  ;;  %15230 = vmatprep.mubr.msk.f32.mxu0 %vm17958_vm9, %v17956_v47  ;;  %v9410_v36 = vld [vmem:[#allocation35 + $0x80] sm:$0xff] }
 0xe48   : > { %16080 = vmatprep.subr.bf16.mxu0 %v17957_v3 }
 0xe4b   : > { %16082 = vmatpush3.bf16.msra.mxu0 %v16081_v43  ;;  %v9523_v43 = vld [vmem:[#allocation39 + $0x48] sm:$0xff] }
 0xe4c   : > { %16083 = vmatprep.subr.bf16.mxu0 %v17957_v3  ;;  %v16108_v45 = vpack.c.bf16 %v9523_v43, %v9522_v42 }
 0xe4f   : > { %16085 = vmatpush3.bf16.msra.mxu0 %v16084_v55 }
 0xe50   : > { %16086 = vmatprep.subr.bf16.mxu0 %v17957_v3 }
 0xe53   : > { %16088 = vmatpush3.bf16.msra.mxu0 %v16087_v6 }
 0xe54   : > { %16089 = vmatprep.subr.bf16.mxu0 %v17957_v3 }
 0xe57   : > { %16091 = vmatpush3.bf16.msra.mxu0 %v16090_v26 }
 0xe58   : > { %16093 = vmatprep.subr.bf16.mxu0 %v16092_v22 }
 0xf19   : > { %v8605_v38 = vpop.f32.mrb[46].mxu0 }
 0xf1a   : > { %v8609_v44 = vadd.f32 %v8605_v38, %v8335_v37  ;;  %v15209_v56 = vpop.f32.mrb[47].mxu0  ;;  %v16149_v37 = vpack.c.bf16 %v10446_v20, %v10445_v9 }
 0xf1b   : > { %v10448_v56 = vld [vmem:[#allocation45 + $0x18] sm:$0xff] }
 0xf1c   : > { %v8616_v62 = vadd.f32 %v8614_v57, %v8609_v44  ;;  %v10447_v44 = vld [vmem:[#allocation45 + $0x10] sm:$0xff] }
 0xf1d   : > { %v16152_v57 = vpack.c.bf16 %v10448_v56, %v10447_v44 }
 0xf1e   : > { %v8617_v12 = vmax.f32 %v8616_v62, 0.0  ;;  %v10449_v62 = vld [vmem:[#allocation45 + $0x20] sm:$0xff] }
 0xf20   : > { %15231 = vmatmul.mubr.msk.f32.vlgmr.msra.gmra.mrb[48].mxu0 %vm8628_vm0, %v8617_v12  ;;  %v10450_v12 = vld [vmem:[#allocation45 + $0x28] sm:$0xff] }
 0xf21   : > { %16095 = vmatpush3.bf16.msra.mxu0 %v16092_v22  ;;  %v16155_v13 = vpack.c.bf16 %v10450_v12, %v10449_v62 }
 0xf22   : > { %16097 = vmatprep.subr.bf16.mxu0 %v16096_v11 }
 0xf25   : > { %16099 = vmatpush3.bf16.msra.mxu0 %v16096_v11  ;;  %v10458_v11 = vld [vmem:[#allocation45 + $0x68] sm:$0x3f] }
 0xf26   : > { %16101 = vmatprep.subr.bf16.mxu0 %v16100_v21  ;;  %v16167_v52 = vpack.c.bf16 %v10458_v11, %v10457_v63  ;;  %v10535_v11 = vld [vmem:[#allocation42] sm:$0xff] }
 0xf29   : > { %16103 = vmatpush3.bf16.msra.mxu0 %v16100_v21 }
 0xf2a   : > { %16105 = vmatprep.subr.bf16.mxu0 %v16104_v29 }
 0xf2d   : > { %16107 = vmatpush3.bf16.msra.mxu0 %v16104_v29 }
 0xf2e   : > { %16109 = vmatprep.subr.bf16.mxu0 %v16108_v45 }
 0xf31   : > { %16111 = vmatpush3.bf16.msra.mxu0 %v16108_v45 }
 0xf32   : > { %16148 = vmatprep.subr.bf16.mxu0 %v17957_v3 }
 0xff3   : > { %v8698_v40 = vpop.f32.mrb[48].mxu0 }
 0xff4   : > { %8702 = vst.msk [vmem:[#allocation6] sm:$0xff] %vm1548_vm2, %v8698_v40  ;;  %v15232_v10 = vpop.f32.mrb[49].mxu0  ;;  %v10451_v40 = vld [vmem:[#allocation45 + $0x30] sm:$0xff] }
 0xff5   : > { %v10452_v10 = vld [vmem:[#allocation45 + $0x38] sm:$0xff] }
 0xffb   : > { %v19444_v41 = vld [vmem:[#allocation6] sm:$0xff] }
 0xffc   : > { %8878 = vrot.lane.b32.xlu1 %v19444_v41, %s17949_s5  ;;  %8710 = vrot.lane.b32.xlu0 %v19444_v41, %s17948_s3 }
0x1000   : > { %9056 = vrot.lane.b32.xlu1 %v19444_v41, %s17959_s22  ;;  %8967 = vrot.lane.b32.xlu0 %v19444_v41, %s17960_s28  ;;  %s17968_s22 = smov 114  }
0x1004   : > { %9234 = vrot.lane.b32.xlu1 %v19444_v41, %s17952_s7  ;;  %9145 = vrot.lane.b32.xlu0 %v19444_v41, %s17962_s4  ;;  %s20168_s7 = sld [smem:[#allocation83_spill]] }
0x1008   : > { %9412 = vrot.lane.b32.xlu1 %v19444_v41, %s17963_s12  ;;  %9323 = vrot.lane.b32.xlu0 %v19444_v41, %s17961_s0  ;;  %s17969_s0 = smov 115   ;;  %s17970_s12 = smov 124  }
0x100a   : > { %v14293_v35 = vld [vmem:[%s20168_s7 + $0x10] sm:$0xff]  ;;  %v14300_v42 = vld [vmem:[%s20168_s7 + $0x28] sm:$0xff]  ;;  %v14312_v12 = vld [vmem:[%s20168_s7 + $0x58] sm:$0xff] }
0x100b   : > { %v14303_v43 = vld [vmem:[%s20168_s7 + $0x30] sm:$0xff]  ;;  %v14324_v63 = vld [vmem:[%s20168_s7 + $0x88] sm:$0xff] }
0x100c   : > { %9507 = vperm.xlu1 %16834, %v9499_v7   ;;  %9502 = vperm.xlu0 %16833, %v9498_v31   ;;  %v16158_v7 = vpack.c.bf16 %v10452_v10, %v10451_v40  ;;  %v10453_v31 = vld [vmem:[#allocation45 + $0x40] sm:$0xff] }
0x100d   : > { %v16161_v58 = vpack.c.bf16 %v10454_v39, %v10453_v31  ;;  %v14316_v39 = vld [vmem:[%s20168_s7 + $0x68] sm:$0xff] }
0x106e   : > { %v8711_v8 = vpop.permute.xlu0 %8710  ;;  %v8879_v59 = vpop.permute.xlu1 %8878 }
0x106f   : > { %15233 = vmatprep.subr.mxu1 %v8711_v8 }
0x1070   : > { %15234 = vmatpush3.msra.mxu1 %v8711_v8 }
0x1071   : > { %15236 = vmatmul.mubr.msk.f32.vlgmr.msra.gmra.mrb[58].mxu1 %vm7629_vm13, %v8708_v15  ;;  %15238 = vmatprep.subr.mxu1 %v19444_v41  ;;  %v10430_v15 = vld [vmem:[#allocation38] sm:$0xff] }
0x1072   : > { %15239 = vmatpush3.msra.mxu1 %v19444_v41  ;;  %15240 = vmatprep.mubr.msk.f32.mxu1 %vm7629_vm13, %v8704_v4  ;;  %v8968_v54 = vpop.permute.xlu0 %8967  ;;  %v9057_v16 = vpop.permute.xlu1 %9056 }
0x1073   : > { %15243 = vmatprep.subr.mxu1 %v8879_v59 }
0x1076   : > { %v9146_v14 = vpop.permute.xlu0 %9145  ;;  %v9235_v24 = vpop.permute.xlu1 %9234 }
0x1079   : > { %15241 = vmatmul.mubr.msk.f32.vlgmr.msra.gmra.mrb[58].mxu1 %vm7629_vm13, %v8705_v2  ;;  %v10621_v2 = vld [vmem:[#allocation44 + $0x8] sm:$0xff] }
0x107a   : > { %15244 = vmatpush3.msra.mxu1 %v8879_v59  ;;  %15245 = vmatprep.mubr.msk.f32.mxu1 %vm7629_vm13, %v8876_v60  ;;  %v9324_v30 = vpop.permute.xlu0 %9323  ;;  %v9413_v46 = vpop.permute.xlu1 %9412  ;;  %v10620_v60 = vld [vmem:[#allocation44] sm:$0xff] }
0x107b   : > { %15248 = vmatprep.subr.mxu1 %v8968_v54 }
0x1081   : > { %15246 = vmatmul.mubr.msk.f32.vlgmr.msra.gmra.mrb[58].mxu1 %vm7629_vm13, %v8877_v5 }
0x1082   : > { %15249 = vmatpush3.msra.mxu1 %v8968_v54  ;;  %15250 = vmatprep.mubr.msk.f32.mxu1 %vm7629_vm13, %v8965_v50 }
0x1083   : > { %15253 = vmatprep.subr.mxu1 %v9057_v16 }
0x1089   : > { %15251 = vmatmul.mubr.msk.f32.vlgmr.msra.gmra.mrb[58].mxu1 %vm7629_vm13, %v8966_v48 }
0x108a   : > { %15254 = vmatpush3.msra.mxu1 %v9057_v16  ;;  %15255 = vmatprep.mubr.msk.f32.mxu1 %vm7629_vm13, %v9054_v23 }
0x108b   : > { %15258 = vmatprep.subr.mxu1 %v9146_v14  ;;  %v9508_v51 = vpop.permute.xlu1 %9507  ;;  %v9503_v61 = vpop.permute.xlu0 %9502 }
0x1091   : > { %15256 = vmatmul.mubr.msk.f32.vlgmr.msra.gmra.mrb[58].mxu1 %vm7629_vm13, %v9055_v18  ;;  %v14294_v18 = vld [vmem:[%s20168_s7 + $0x18] sm:$0xff] }
0x1092   : > { %15259 = vmatpush3.msra.mxu1 %v9146_v14  ;;  %15260 = vmatprep.mubr.msk.f32.mxu1 %vm7629_vm13, %v9143_v19  ;;  %v9610_v19 = vld [vmem:[%s20168_s7] sm:$0xff] }
0x1093   : > { %15263 = vmatprep.subr.mxu1 %v9235_v24 }
0x1099   : > { %15261 = vmatmul.mubr.msk.f32.vlgmr.msra.gmra.mrb[58].mxu1 %vm7629_vm13, %v9144_v25 }
0x109a   : > { %15264 = vmatpush3.msra.mxu1 %v9235_v24  ;;  %15265 = vmatprep.mubr.msk.f32.mxu1 %vm7629_vm13, %v9232_v28 }
0x109b   : > { %15268 = vmatprep.subr.mxu1 %v9324_v30 }
0x10a1   : > { %15266 = vmatmul.mubr.msk.f32.vlgmr.msra.gmra.mrb[58].mxu1 %vm7629_vm13, %v9233_v27  ;;  %v9611_v27 = vld [vmem:[%s20168_s7 + $0x8] sm:$0xff] }
0x10a2   : > { %15269 = vmatpush3.msra.mxu1 %v9324_v30  ;;  %15270 = vmatprep.mubr.msk.f32.mxu1 %vm7629_vm13, %v9321_v49  ;;  %v14299_v49 = vld [vmem:[%s20168_s7 + $0x20] sm:$0xff] }
0x10a3   : > { %15273 = vmatprep.subr.mxu1 %v9413_v46 }
0x10a9   : > { %15271 = vmatmul.mubr.msk.f32.vlgmr.msra.gmra.mrb[58].mxu1 %vm7629_vm13, %v9322_v33 }
0x10aa   : > { %15274 = vmatpush3.msra.mxu1 %v9413_v46  ;;  %15275 = vmatprep.mubr.msk.f32.mxu1 %vm7629_vm13, %v9410_v36 }
0x10b1   : > { %15276 = vmatmul.mubr.msk.f32.vlgmr.msra.gmra.mrb[58].mxu1 %vm7629_vm13, %v9411_v0 }
0x10b2   : > { %15305 = vmatprep.mubr.msk.f32.mxu1 %vm9623_vm5, %v14293_v35 }
0x1184   : > { %v15277_v55 = vpop.f32.mrb[58].mxu1 }
0x1185   : > { %v9511_v1 = vadd.f32 %v15277_v55, %v9508_v51  ;;  %v9487_v6 = vpop.f32.mrb[59].mxu1 }
0x1186   : > { %v9510_v26 = vadd.f32 %v9503_v61, %v9487_v6  ;;  %v14307_v6 = vld [vmem:[%s20168_s7 + $0x40] sm:$0xff] }
0x1187   : > { %v9513_v38 = vmax.f32 %v9511_v1, 0.0  ;;  %v14304_v1 = vld [vmem:[%s20168_s7 + $0x38] sm:$0xff] }
0x1188   : > { %v9512_v32 = vmax.f32 %v9510_v26, 0.0 }
0x118a   : > { %15298 = vmatprep.mubr.msk.f32.mxu0 %vm8628_vm0, %v9512_v32 }
0x118b   : > { %15299 = vmatmul.mubr.msk.f32.vlgmr.msra.gmra.mrb[50].mxu0 %vm8628_vm0, %v9513_v38  ;;  %v14311_v38 = vld [vmem:[%s20168_s7 + $0x50] sm:$0xff] }
0x118c   : > { %16150 = vmatpush3.bf16.msra.mxu0 %v16149_v37  ;;  %15392 = vmatprep.mubr.msk.f32.mxu0 %vm17958_vm9, %v17956_v47  ;;  %v10455_v47 = vld [vmem:[#allocation45 + $0x50] sm:$0xff]  ;;  %vm11852_vm9 = vcmask 162816  }
0x118d   : > { %16151 = vmatprep.subr.bf16.mxu0 %v17957_v3  ;;  %v16164_v22 = vpack.c.bf16 %v10456_v34, %v10455_v47  ;;  %v14308_v37 = vld [vmem:[%s20168_s7 + $0x48] sm:$0xff]  ;;  %v14320_v34 = vld [vmem:[%s20168_s7 + $0x78] sm:$0xff] }
0x1190   : > { %16153 = vmatpush3.bf16.msra.mxu0 %v16152_v57 }
0x1191   : > { %16154 = vmatprep.subr.bf16.mxu0 %v17957_v3 }
0x1194   : > { %16156 = vmatpush3.bf16.msra.mxu0 %v16155_v13  ;;  %v14315_v13 = vld [vmem:[%s20168_s7 + $0x60] sm:$0xff] }
0x1195   : > { %16157 = vmatprep.subr.bf16.mxu0 %v17957_v3 }
0x1198   : > { %16159 = vmatpush3.bf16.msra.mxu0 %v16158_v7 }
0x1199   : > { %16160 = vmatprep.subr.bf16.mxu0 %v17957_v3 }
0x119c   : > { %16162 = vmatpush3.bf16.msra.mxu0 %v16161_v58  ;;  %v14319_v58 = vld [vmem:[%s20168_s7 + $0x70] sm:$0xff] }
0x119d   : > { %16163 = vmatprep.subr.bf16.mxu0 %v17957_v3 }
0x11a0   : > { %16165 = vmatpush3.bf16.msra.mxu0 %v16164_v22  ;;  %v14323_v22 = vld [vmem:[%s20168_s7 + $0x80] sm:$0xff] }
0x11a1   : > { %16166 = vmatprep.subr.bf16.mxu0 %v17957_v3 }
0x11a4   : > { %16169 = vmatpush3.bf16.msk.msra.mxu0 %vm16168_vm3, %v16167_v52  ;;  %v10536_v52 = vld [vmem:[#allocation42 + $0x8] sm:$0xff] }
0x11a7   : > { %15393 = vmatmul.mubr.msk.f32.vlgmr.msra.gmra.mrb[52].mxu0 %vm1548_vm2, %v19444_v41  ;;  %v10431_v41 = vld [vmem:[#allocation38 + $0x8] sm:$0xff]  ;;  %vm10639_vm2 = vcmask 195584  }
0x125e   : > { %v15300_v53 = vpop.f32.mrb[50].mxu0 }
0x125f   : > { %9607 = vst.msk [vmem:[#allocation7 + $0x8] sm:$0xff] %vm9605_vm4, %v15300_v53  ;;  %v9596_v21 = vpop.f32.mrb[51].mxu0  ;;  %v10636_v53 = vld [vmem:[#allocation41] sm:$0xff] }
0x1260   : > { %9606 = vst.msk [vmem:[#allocation7] sm:$0xff] %vm9605_vm4, %v9596_v21  ;;  %v10637_v21 = vld [vmem:[#allocation41 + $0x8] sm:$0xff] }
0x1261   : > { %v16170_v35 = vpack.c.bf16 %v10637_v21, %v10636_v53 }
0x1263   : > { %16171 = vmatprep.subr.bf16.mxu0 %v16170_v35 }
0x1264   : > { %16173 = vmatpush3.bf16.msra.mxu0 %v16170_v35  ;;  %v11162_v35 = vld [vmem:[#allocation47 + $0x88] sm:$0xff] }
0x1266   : > { %v9609_v3 = vld [vmem:[#allocation7 + $0x8] sm:$0xff] }
0x1267   : > { %v9608_v17 = vld [vmem:[#allocation7] sm:$0xff] }
0x1268   : > { %v16840_v29 = vpack.i.bf16 %v9609_v3, %v9608_v17  ;;  %v16116_v8 = vpack.c.bf16 %v9609_v3, %v9608_v17  ;;  %v10638_v3 = vld [vmem:[#allocation41 + $0x10] sm:$0xff] }
0x1269   : > { %15404 = vmatprep.subr.mxu0 %v10638_v3 }
0x126a   : > { %16841 = vrot.lane.b32.xlu1 %v16840_v29, %s17949_s5  ;;  %16836 = vrot.lane.b32.xlu0 %v16840_v29, %s17948_s3 }
0x126b   : > { %15405 = vmatpush3.msra.mxu0 %v10638_v3  ;;  %v11163_v3 = vld [vmem:[#allocation47 + $0x90] sm:$0xff] }
0x126e   : > { %16851 = vrot.lane.b32.xlu1 %v16840_v29, %s17965_s13  ;;  %16846 = vrot.lane.b32.xlu0 %v16840_v29, %s17966_s11 }
0x1272   : > { %16861 = vrot.lane.b32.xlu1 %v16840_v29, %s17962_s4  ;;  %16856 = vrot.lane.b32.xlu0 %v16840_v29, %s17967_s1 }
0x1276   : > { %16871 = vrot.lane.b32.xlu1 %v16840_v29, %s17968_s22  ;;  %16866 = vrot.lane.b32.xlu0 %v16840_v29, %s17969_s0 }
0x127a   : > { %v19508_v4 = vpop.f32.mrb[52].mxu0  ;;  %10439 = vperm.xlu1 %16834, %v10431_v41   ;;  %10434 = vperm.xlu0 %16833, %v10430_v15  }
0x127b   : > { %v15394_v59 = vpop.f32.mrb[53].mxu0 }
0x127e   : > { %10629 = vperm.xlu1 %16834, %v10621_v2   ;;  %10624 = vperm.xlu0 %16833, %v10620_v60  }
0x12dc   : > { %v16837_v54 = vpop.permute.xlu0 %16836  ;;  %v16842_v16 = vpop.permute.xlu1 %16841 }
0x12dd   : > { %v16839_v5 = vunpack.i.h.bf16 %v16837_v54  ;;  %v16838_v50 = vunpack.i.l.bf16 %v16837_v54  ;;  %v16844_v23 = vunpack.i.h.bf16 %v16842_v16  ;;  %v16843_v14 = vunpack.i.l.bf16 %v16842_v16 }
0x12df   : > { %v16112_v48 = vpack.c.bf16 %v16839_v5, %v16838_v50  ;;  %v16120_v24 = vpack.c.bf16 %v16844_v23, %v16843_v14  ;;  %v10730_v23 = vld [vmem:[#allocation47 + $0x20] sm:$0xff] }
0x12e0   : > { %v16847_v25 = vpop.permute.xlu0 %16846  ;;  %v16852_v33 = vpop.permute.xlu1 %16851 }
0x12e1   : > { %16113 = vmatprep.subr.bf16.mxu1 %v16112_v48  ;;  %v16849_v28 = vunpack.i.h.bf16 %v16847_v25  ;;  %v16848_v30 = vunpack.i.l.bf16 %v16847_v25  ;;  %v16854_v36 = vunpack.i.h.bf16 %v16852_v33  ;;  %v16853_v0 = vunpack.i.l.bf16 %v16852_v33  ;;  %v11720_v25 = vld [vmem:[#allocation48] sm:$0xff] }
0x12e2   : > { %16115 = vmatpush3.bf16.msra.mxu1 %v16112_v48 }
0x12e3   : > { %16117 = vmatprep.subr.bf16.mxu1 %v16116_v8  ;;  %v16124_v46 = vpack.c.bf16 %v16849_v28, %v16848_v30  ;;  %v16128_v45 = vpack.c.bf16 %v16854_v36, %v16853_v0  ;;  %v11723_v28 = vld [vmem:[#allocation48 + $0x18] sm:$0xff]  ;;  %v11722_v30 = vld [vmem:[#allocation48 + $0x10] sm:$0xff] }
0x12e4   : > { %v16857_v51 = vpop.permute.xlu0 %16856  ;;  %v16862_v20 = vpop.permute.xlu1 %16861 }
0x12e5   : > { %15306 = vmatmul.mubr.msk.f32.vlgmr.msra.gmra.mrb[60].mxu1 %vm9623_vm5, %v14294_v18  ;;  %v16859_v55 = vunpack.i.h.bf16 %v16857_v51  ;;  %v16858_v61 = vunpack.i.l.bf16 %v16857_v51  ;;  %v16864_v26 = vunpack.i.h.bf16 %v16862_v20  ;;  %v16863_v32 = vunpack.i.l.bf16 %v16862_v20  ;;  %v10732_v51 = vld [vmem:[#allocation47 + $0x30] sm:$0xff] }
0x12e6   : > { %16119 = vmatpush3.bf16.msra.mxu1 %v16116_v8  ;;  %15312 = vmatprep.mubr.msk.f32.mxu1 %vm9623_vm5, %v9610_v19 }
0x12e7   : > { %16121 = vmatprep.subr.bf16.mxu1 %v16120_v24  ;;  %v16132_v9 = vpack.c.bf16 %v16859_v55, %v16858_v61  ;;  %v16136_v44 = vpack.c.bf16 %v16864_v26, %v16863_v32  ;;  %v10726_v26 = vld [vmem:[#allocation47 + $0x8] sm:$0xff]  ;;  %v10727_v32 = vld [vmem:[#allocation47 + $0x10] sm:$0xff] }
0x12e8   : > { %v16867_v56 = vpop.permute.xlu0 %16866  ;;  %v16872_v10 = vpop.permute.xlu1 %16871 }
0x12e9   : > { %v16869_v57 = vunpack.i.h.bf16 %v16867_v56  ;;  %v16868_v62 = vunpack.i.l.bf16 %v16867_v56  ;;  %v16874_v7 = vunpack.i.h.bf16 %v16872_v10  ;;  %v16873_v31 = vunpack.i.l.bf16 %v16872_v10  ;;  %v10937_v56 = vld [vmem:[#allocation47 + $0x40] sm:$0xff] }
0x12eb   : > { %v16140_v40 = vpack.c.bf16 %v16869_v57, %v16868_v62  ;;  %v16144_v47 = vpack.c.bf16 %v16874_v7, %v16873_v31  ;;  %v10940_v7 = vld [vmem:[#allocation47 + $0x58] sm:$0xff]  ;;  %v11049_v31 = vld [vmem:[#allocation47 + $0x60] sm:$0xff] }
0x12ed   : > { %15313 = vmatmul.mubr.msk.f32.vlgmr.msra.gmra.mrb[60].mxu1 %vm9623_vm5, %v9611_v27 }
0x12ee   : > { %16123 = vmatpush3.bf16.msra.mxu1 %v16120_v24  ;;  %15319 = vmatprep.mubr.msk.f32.mxu1 %vm9623_vm5, %v14299_v49  ;;  %v11721_v24 = vld [vmem:[#allocation48 + $0x8] sm:$0xff] }
0x12ef   : > { %16125 = vmatprep.subr.bf16.mxu1 %v16124_v46 }
0x12f5   : > { %15320 = vmatmul.mubr.msk.f32.vlgmr.msra.gmra.mrb[60].mxu1 %vm9623_vm5, %v14300_v42 }
0x12f6   : > { %16127 = vmatpush3.bf16.msra.mxu1 %v16124_v46  ;;  %15326 = vmatprep.mubr.msk.f32.mxu1 %vm9623_vm5, %v14303_v43 }
0x12f7   : > { %16129 = vmatprep.subr.bf16.mxu1 %v16128_v45 }
0x12f9   : > { %v10440_v17 = vpop.permute.xlu1 %10439  ;;  %v10435_v29 = vpop.permute.xlu0 %10434 }
0x12fd   : > { %15327 = vmatmul.mubr.msk.f32.vlgmr.msra.gmra.mrb[60].mxu1 %vm9623_vm5, %v14304_v1  ;;  %v10630_v59 = vpop.permute.xlu1 %10629  ;;  %v10625_v2 = vpop.permute.xlu0 %10624  ;;  %v10733_v1 = vld [vmem:[#allocation47 + $0x38] sm:$0xff] }
0x12fe   : > { %16131 = vmatpush3.bf16.msra.mxu1 %v16128_v45  ;;  %15333 = vmatprep.mubr.msk.f32.mxu1 %vm9623_vm5, %v14307_v6  ;;  %v10731_v45 = vld [vmem:[#allocation47 + $0x28] sm:$0xff]  ;;  %v10725_v6 = vld [vmem:[#allocation47] sm:$0xff] }
0x12ff   : > { %16133 = vmatprep.subr.bf16.mxu1 %v16132_v9 }
0x1305   : > { %15334 = vmatmul.mubr.msk.f32.vlgmr.msra.gmra.mrb[60].mxu1 %vm9623_vm5, %v14308_v37 }
0x1306   : > { %16135 = vmatpush3.bf16.msra.mxu1 %v16132_v9  ;;  %15340 = vmatprep.mubr.msk.f32.mxu1 %vm9623_vm5, %v14311_v38 }
0x1307   : > { %16137 = vmatprep.subr.bf16.mxu1 %v16136_v44 }
0x130d   : > { %15341 = vmatmul.mubr.msk.f32.vlgmr.msra.gmra.mrb[60].mxu1 %vm9623_vm5, %v14312_v12  ;;  %v10938_v12 = vld [vmem:[#allocation47 + $0x48] sm:$0xff] }
0x130e   : > { %16139 = vmatpush3.bf16.msra.mxu1 %v16136_v44  ;;  %15347 = vmatprep.mubr.msk.f32.mxu1 %vm9623_vm5, %v14315_v13  ;;  %v10728_v44 = vld [vmem:[#allocation47 + $0x18] sm:$0xff]  ;;  %v10939_v13 = vld [vmem:[#allocation47 + $0x50] sm:$0xff] }
0x130f   : > { %16141 = vmatprep.subr.bf16.mxu1 %v16140_v40 }
0x1315   : > { %15348 = vmatmul.mubr.msk.f32.vlgmr.msra.gmra.mrb[60].mxu1 %vm9623_vm5, %v14316_v39 }
0x1316   : > { %16143 = vmatpush3.bf16.msra.mxu1 %v16140_v40  ;;  %15354 = vmatprep.mubr.msk.f32.mxu1 %vm9623_vm5, %v14319_v58 }
0x1317   : > { %16145 = vmatprep.subr.bf16.mxu1 %v16144_v47 }
0x131d   : > { %15355 = vmatmul.mubr.msk.f32.vlgmr.msra.gmra.mrb[60].mxu1 %vm9623_vm5, %v14320_v34  ;;  %v11051_v34 = vld [vmem:[#allocation47 + $0x70] sm:$0xff] }
0x131e   : > { %16147 = vmatpush3.bf16.msra.mxu1 %v16144_v47  ;;  %15361 = vmatprep.mubr.msk.f32.mxu1 %vm9623_vm5, %v14323_v22  ;;  %v11050_v47 = vld [vmem:[#allocation47 + $0x68] sm:$0xff] }
0x131f   : > { %15395 = vmatprep.subr.mxu1 %v19508_v4 }
0x1325   : > { %15362 = vmatmul.mubr.msk.f32.vlgmr.msra.gmra.mrb[60].mxu1 %vm9623_vm5, %v14324_v63 }
0x1326   : > { %15396 = vmatpush3.msra.mxu1 %v19508_v4  ;;  %15397 = vmatprep.mubr.msk.f32.mxu1 %vm7629_vm13, %v10535_v11  ;;  %v11052_v11 = vld [vmem:[#allocation47 + $0x78] sm:$0xff] }
0x132d   : > { %15398 = vmatmul.mubr.msk.f32.vlgmr.msra.gmra.mrb[60].mxu1 %vm7629_vm13, %v10536_v52  ;;  %v11161_v52 = vld [vmem:[#allocation47 + $0x80] sm:$0xff] }
0x1400   : > { %v15399_v8 = vpop.f32.mrb[60].mxu1 }
0x1401   : > { %v16304_v41 = vadd.f32 %v15399_v8, %v10440_v17  ;;  %v10609_v15 = vpop.f32.mrb[61].mxu1  ;;  %v11164_v8 = vld [vmem:[#allocation47 + $0x98] sm:$0xff] }
0x1402   : > { %v16305_v4 = vadd.f32 %v10609_v15, %v10435_v29 }
0x1403   : > { %v10633_v60 = vadd.f32 %v16304_v41, %v10630_v59  ;;  %v11273_v41 = vld [vmem:[#allocation47 + $0xa0] sm:$0xff] }
0x1404   : > { %v10632_v54 = vadd.f32 %v16305_v4, %v10625_v2  ;;  %v11274_v4 = vld [vmem:[#allocation47 + $0xa8] sm:$0xff]  ;;  %v11275_v2 = vld [vmem:[#allocation47 + $0xb0] sm:$0xff] }
0x1405   : > { %v10635_v50 = vmax.f32 %v10633_v60, 0.0 }
0x1406   : > { %v10634_v5 = vmax.f32 %v10632_v54, 0.0 }
0x1408   : > { %15406 = vmatprep.mubr.msk.f32.mxu0 %vm10639_vm2, %v10634_v5  ;;  %v11276_v5 = vld [vmem:[#allocation47 + $0xb8] sm:$0xff] }
0x1409   : > { %15407 = vmatmul.mubr.msk.f32.vlgmr.msra.gmra.mrb[54].mxu0 %vm10639_vm2, %v10635_v50  ;;  %v11385_v50 = vld [vmem:[#allocation47 + $0xc0] sm:$0xff] }
0x140a   : > { %15413 = vmatprep.mubr.msk.f32.mxu0 %vm9623_vm5, %v10730_v23  ;;  %v11386_v23 = vld [vmem:[#allocation47 + $0xc8] sm:$0xff] }
0x14dc   : > { %v15408_v16 = vpop.f32.mrb[54].mxu0 }
0x14dd   : > { %10722 = vst.msk [vmem:[#allocation8 + $0x8] sm:$0xff] %vm9605_vm4, %v15408_v16  ;;  %v10712_v48 = vpop.f32.mrb[55].mxu0 }
0x14de   : > { %10721 = vst.msk [vmem:[#allocation8] sm:$0xff] %vm9605_vm4, %v10712_v48 }
0x14e4   : > { %v19553_v14 = vld [vmem:[#allocation8 + $0x8] sm:$0xff] }
0x14e5   : > { %v19555_v18 = vld [vmem:[#allocation8] sm:$0xff] }
0x14e6   : > { %v16880_v19 = vpack.i.bf16 %v19553_v14, %v19555_v18  ;;  %v16178_v43 = vpack.c.bf16 %v19553_v14, %v19555_v18 }
0x14e8   : > { %16881 = vrot.lane.b32.xlu1 %v16880_v19, %s17949_s5  ;;  %16876 = vrot.lane.b32.xlu0 %v16880_v19, %s17948_s3 }
0x14ec   : > { %16891 = vrot.lane.b32.xlu1 %v16880_v19, %s17965_s13  ;;  %16886 = vrot.lane.b32.xlu0 %v16880_v19, %s17966_s11  ;;  %s17971_s13 = smov 123  }
0x14f0   : > { %16901 = vrot.lane.b32.xlu1 %v16880_v19, %s17962_s4  ;;  %16896 = vrot.lane.b32.xlu0 %v16880_v19, %s17967_s1  ;;  %s20169_s4 = sld [smem:[#allocation91_spill]] }
0x14f4   : > { %16911 = vrot.lane.b32.xlu1 %v16880_v19, %s17968_s22  ;;  %16906 = vrot.lane.b32.xlu0 %v16880_v19, %s17969_s0  ;;  %v11387_v19 = vld [vmem:[#allocation47 + $0xd0] sm:$0xff]  ;;  %s17972_s22 = smov 119  }
0x14f8   : > { %11731 = vperm.xlu1 %16834, %v11721_v24   ;;  %11726 = vperm.xlu0 %16833, %v11720_v25   ;;  %v11388_v25 = vld [vmem:[#allocation47 + $0xd8] sm:$0xff] }
0x14fc   : > { %11741 = vperm.xlu1 %16834, %v11723_v28   ;;  %11736 = vperm.xlu0 %16833, %v11722_v30   ;;  %v11497_v28 = vld [vmem:[#allocation47 + $0xe0] sm:$0xff]  ;;  %v12936_v30 = vld [vmem:[%s18147_s9] sm:$0xff] }
0x155a   : > { %v16877_v27 = vpop.permute.xlu0 %16876  ;;  %v16882_v33 = vpop.permute.xlu1 %16881 }
0x155b   : > { %v16879_v49 = vunpack.i.h.bf16 %v16877_v27  ;;  %v16878_v46 = vunpack.i.l.bf16 %v16877_v27  ;;  %v16884_v0 = vunpack.i.h.bf16 %v16882_v33  ;;  %v16883_v42 = vunpack.i.l.bf16 %v16882_v33  ;;  %v12937_v27 = vld [vmem:[%s18147_s9 + $0x8] sm:$0xff] }
0x155c   : > { %v16286_v33 = vpack.c.bf16 %v12937_v27, %v12936_v30 }
0x155d   : > { %v16174_v36 = vpack.c.bf16 %v16879_v49, %v16878_v46  ;;  %v16182_v55 = vpack.c.bf16 %v16884_v0, %v16883_v42  ;;  %v11498_v49 = vld [vmem:[#allocation47 + $0xe8] sm:$0xff]  ;;  %v11499_v46 = vld [vmem:[#allocation47 + $0xf0] sm:$0xff]  ;;  %v11609_v0 = vld [vmem:[#allocation47 + $0x100] sm:$0xff] }
0x155e   : > { %v16887_v61 = vpop.permute.xlu0 %16886  ;;  %v16892_v38 = vpop.permute.xlu1 %16891  ;;  %v12938_v42 = vld [vmem:[%s18147_s9 + $0x10] sm:$0xff] }
0x155f   : > { %16175 = vmatprep.subr.bf16.mxu0 %v16174_v36  ;;  %v16889_v9 = vunpack.i.h.bf16 %v16887_v61  ;;  %v16888_v20 = vunpack.i.l.bf16 %v16887_v61  ;;  %v16894_v57 = vunpack.i.h.bf16 %v16892_v38  ;;  %v16893_v62 = vunpack.i.l.bf16 %v16892_v38  ;;  %v12940_v61 = vld [vmem:[%s18147_s9 + $0x20] sm:$0xff] }
0x1560   : > { %16177 = vmatpush3.bf16.msra.mxu0 %v16174_v36  ;;  %v11500_v36 = vld [vmem:[#allocation47 + $0xf8] sm:$0xff] }
0x1561   : > { %16179 = vmatprep.subr.bf16.mxu0 %v16178_v43  ;;  %v16186_v37 = vpack.c.bf16 %v16889_v9, %v16888_v20  ;;  %v16190_v40 = vpack.c.bf16 %v16894_v57, %v16893_v62  ;;  %v11752_v20 = vld [vmem:[%s20169_s4] sm:$0xff] }
0x1562   : > { %v16897_v10 = vpop.permute.xlu0 %16896  ;;  %v16902_v63 = vpop.permute.xlu1 %16901 }
0x1563   : > { %15414 = vmatmul.mubr.msk.f32.vlgmr.msra.gmra.mrb[56].mxu0 %vm9623_vm5, %v10731_v45  ;;  %v16899_v39 = vunpack.i.h.bf16 %v16897_v10  ;;  %v16898_v58 = vunpack.i.l.bf16 %v16897_v10  ;;  %v16904_v53 = vunpack.i.h.bf16 %v16902_v63  ;;  %v16903_v21 = vunpack.i.l.bf16 %v16902_v63  ;;  %v11610_v45 = vld [vmem:[#allocation47 + $0x108] sm:$0xff] }
0x1564   : > { %16181 = vmatpush3.bf16.msra.mxu0 %v16178_v43  ;;  %15416 = vmatprep.mubr.msk.f32.mxu0 %vm9623_vm5, %v10732_v51  ;;  %v12939_v43 = vld [vmem:[%s18147_s9 + $0x18] sm:$0xff] }
0x1565   : > { %16183 = vmatprep.subr.bf16.mxu0 %v16182_v55  ;;  %v16194_v22 = vpack.c.bf16 %v16899_v39, %v16898_v58  ;;  %v16198_v17 = vpack.c.bf16 %v16904_v53, %v16903_v21  ;;  %v11611_v51 = vld [vmem:[#allocation47 + $0x110] sm:$0xff] }
0x1566   : > { %v16907_v29 = vpop.permute.xlu0 %16906  ;;  %v16912_v54 = vpop.permute.xlu1 %16911 }
0x1567   : > { %15417 = vmatmul.mubr.msk.f32.gmra.mrb[58].mxu0 %vm9623_vm5, %v10733_v1  ;;  %v16909_v15 = vunpack.i.h.bf16 %v16907_v29  ;;  %v16908_v59 = vunpack.i.l.bf16 %v16907_v29  ;;  %v16914_v16 = vunpack.i.h.bf16 %v16912_v54  ;;  %v16913_v48 = vunpack.i.l.bf16 %v16912_v54  ;;  %v12941_v1 = vld [vmem:[%s18147_s9 + $0x28] sm:$0x3]  ;;  %v11866_v29 = vld [vmem:[#allocation50 + $0x20] sm:$0xff]  ;;  %v12907_v54 = vld [vmem:[#allocation51 + $0x8] sm:$0xff] }
0x1568   : > { %15423 = vmatprep.mubr.msk.f32.mxu0 %vm9623_vm5, %v10725_v6  ;;  %v11612_v6 = vld [vmem:[#allocation47 + $0x118] sm:$0xff]  ;;  %v16294_v9 = vpack.c.bf16 %v12941_v1, %v12940_v61 }
0x1569   : > { %v16202_v60 = vpack.c.bf16 %v16909_v15, %v16908_v59  ;;  %v16206_v24 = vpack.c.bf16 %v16914_v16, %v16913_v48  ;;  %v13134_v16 = vld [vmem:[%s18142_s6 + $0x10] sm:$0xff]  ;;  %v13133_v48 = vld [vmem:[%s18142_s6 + $0x8] sm:$0xff] }
0x156b   : > { %15424 = vmatmul.mubr.msk.f32.vlgmr.msra.gmra.mrb[56].mxu0 %vm9623_vm5, %v10726_v26  ;;  %v11753_v26 = vld [vmem:[%s20169_s4 + $0x8] sm:$0xff] }
0x156c   : > { %16185 = vmatpush3.bf16.msra.mxu0 %v16182_v55  ;;  %15426 = vmatprep.mubr.msk.f32.mxu0 %vm9623_vm5, %v10727_v32  ;;  %v16290_v55 = vpack.c.bf16 %v12939_v43, %v12938_v42  ;;  %v16210_v32 = vpack.c.bf16 %v11753_v26, %v11752_v20  ;;  %v11862_v20 = vld [vmem:[#allocation50 + $0x8] sm:$0xff]  ;;  %v11863_v26 = vld [vmem:[#allocation50 + $0x10] sm:$0xff] }
0x156d   : > { %16187 = vmatprep.subr.bf16.mxu0 %v16186_v37 }
0x156e   : > { %16211 = vmatprep.subr.bf16.mxu1 %v16210_v32 }
0x156f   : > { %15427 = vmatmul.mubr.msk.f32.gmra.mrb[58].mxu0 %vm9623_vm5, %v10728_v44  ;;  %16213 = vmatpush3.bf16.msra.mxu1 %v16210_v32 }
0x1570   : > { %15433 = vmatprep.mubr.msk.f32.mxu0 %vm9623_vm5, %v10937_v56 }
0x1573   : > { %15434 = vmatmul.mubr.msk.f32.vlgmr.msra.gmra.mrb[56].mxu0 %vm9623_vm5, %v10938_v12 }
0x1574   : > { %16189 = vmatpush3.bf16.msra.mxu0 %v16186_v37  ;;  %15436 = vmatprep.mubr.msk.f32.mxu0 %vm9623_vm5, %v10939_v13  ;;  %v11754_v37 = vld [vmem:[%s20169_s4 + $0x10] sm:$0xff] }
0x1575   : > { %16191 = vmatprep.subr.bf16.mxu0 %v16190_v40  ;;  %15503 = vmatprep.subr.mxu1 %v11754_v37 }
0x1576   : > { %15504 = vmatpush3.msra.mxu1 %v11754_v37 }
0x1577   : > { %15437 = vmatmul.mubr.msk.f32.gmra.mrb[58].mxu0 %vm9623_vm5, %v10940_v7  ;;  %v11732_v38 = vpop.permute.xlu1 %11731  ;;  %v11727_v44 = vpop.permute.xlu0 %11726 }
0x1578   : > { %15443 = vmatprep.mubr.msk.f32.mxu0 %vm9623_vm5, %v11049_v31 }
0x157b   : > { %15444 = vmatmul.mubr.msk.f32.vlgmr.msra.gmra.mrb[56].mxu0 %vm9623_vm5, %v11050_v47  ;;  %v11737_v10 = vpop.permute.xlu0 %11736 }
0x157c   : > { %16193 = vmatpush3.bf16.msra.mxu0 %v16190_v40  ;;  %15446 = vmatprep.mubr.msk.f32.mxu0 %vm9623_vm5, %v11051_v34 }
0x157d   : > { %16195 = vmatprep.subr.bf16.mxu0 %v16194_v22 }
0x157f   : > { %15447 = vmatmul.mubr.msk.f32.gmra.mrb[58].mxu0 %vm9623_vm5, %v11052_v11 }
0x1580   : > { %15453 = vmatprep.mubr.msk.f32.mxu0 %vm9623_vm5, %v11161_v52 }
0x1583   : > { %15454 = vmatmul.mubr.msk.f32.vlgmr.msra.gmra.mrb[56].mxu0 %vm9623_vm5, %v11162_v35 }
0x1584   : > { %16197 = vmatpush3.bf16.msra.mxu0 %v16194_v22  ;;  %15456 = vmatprep.mubr.msk.f32.mxu0 %vm9623_vm5, %v11163_v3 }
0x1585   : > { %16199 = vmatprep.subr.bf16.mxu0 %v16198_v17 }
0x1587   : > { %15457 = vmatmul.mubr.msk.f32.gmra.mrb[58].mxu0 %vm9623_vm5, %v11164_v8 }
0x1588   : > { %15463 = vmatprep.mubr.msk.f32.mxu0 %vm9623_vm5, %v11273_v41 }
0x158b   : > { %15464 = vmatmul.mubr.msk.f32.vlgmr.msra.gmra.mrb[56].mxu0 %vm9623_vm5, %v11274_v4 }
0x158c   : > { %16201 = vmatpush3.bf16.msra.mxu0 %v16198_v17  ;;  %15466 = vmatprep.mubr.msk.f32.mxu0 %vm9623_vm5, %v11275_v2  ;;  %v12906_v2 = vld [vmem:[#allocation51] sm:$0xff] }
0x158d   : > { %16203 = vmatprep.subr.bf16.mxu0 %v16202_v60 }
0x158f   : > { %15467 = vmatmul.mubr.msk.f32.gmra.mrb[58].mxu0 %vm9623_vm5, %v11276_v5  ;;  %v13132_v5 = vld [vmem:[%s18142_s6] sm:$0xff] }
0x1590   : > { %15473 = vmatprep.mubr.msk.f32.mxu0 %vm9623_vm5, %v11385_v50  ;;  %v12909_v50 = vld [vmem:[#allocation51 + $0x18] sm:$0xff] }
0x1593   : > { %15474 = vmatmul.mubr.msk.f32.vlgmr.msra.gmra.mrb[56].mxu0 %vm9623_vm5, %v11386_v23  ;;  %v13135_v23 = vld [vmem:[%s18142_s6 + $0x18] sm:$0xff] }
0x1594   : > { %16205 = vmatpush3.bf16.msra.mxu0 %v16202_v60  ;;  %15476 = vmatprep.mubr.msk.f32.mxu0 %vm9623_vm5, %v11387_v19  ;;  %v12908_v60 = vld [vmem:[#allocation51 + $0x10] sm:$0xff] }
0x1595   : > { %16207 = vmatprep.subr.bf16.mxu0 %v16206_v24 }
0x1597   : > { %15477 = vmatmul.mubr.msk.f32.gmra.mrb[58].mxu0 %vm9623_vm5, %v11388_v25 }
0x1598   : > { %15483 = vmatprep.mubr.msk.f32.mxu0 %vm9623_vm5, %v11497_v28 }
0x159b   : > { %15484 = vmatmul.mubr.msk.f32.vlgmr.msra.gmra.mrb[56].mxu0 %vm9623_vm5, %v11498_v49 }
0x159c   : > { %16209 = vmatpush3.bf16.msra.mxu0 %v16206_v24  ;;  %15486 = vmatprep.mubr.msk.f32.mxu0 %vm9623_vm5, %v11499_v46 }
0x159d   : > { %16287 = vmatprep.subr.bf16.mxu0 %v16286_v33 }
0x159f   : > { %15487 = vmatmul.mubr.msk.f32.gmra.mrb[58].mxu0 %vm9623_vm5, %v11500_v36  ;;  %v11867_v36 = vld [vmem:[#allocation50 + $0x28] sm:$0xff] }
0x15a0   : > { %15493 = vmatprep.mubr.msk.f32.mxu0 %vm9623_vm5, %v11609_v0  ;;  %v11868_v0 = vld [vmem:[#allocation50 + $0x30] sm:$0xff] }
0x15a3   : > { %15494 = vmatmul.mubr.msk.f32.vlgmr.msra.gmra.mrb[56].mxu0 %vm9623_vm5, %v11610_v45 }
0x15a4   : > { %16289 = vmatpush3.bf16.msra.mxu0 %v16286_v33  ;;  %15496 = vmatprep.mubr.msk.f32.mxu0 %vm9623_vm5, %v11611_v51  ;;  %v11869_v51 = vld [vmem:[#allocation50 + $0x38] sm:$0xff] }
0x15a5   : > { %16291 = vmatprep.subr.bf16.mxu0 %v16290_v55 }
0x15a7   : > { %15497 = vmatmul.mubr.msk.f32.gmra.mrb[58].mxu0 %vm9623_vm5, %v11612_v6 }
0x15a8   : > { %16293 = vmatpush3.bf16.msra.mxu0 %v16290_v55  ;;  %15649 = vmatprep.mubr.msk.f32.mxu0 %vm9605_vm4, %v19555_v18  ;;  %v11742_v18 = vpop.permute.xlu1 %11741  ;;  %v11861_v55 = vld [vmem:[#allocation50] sm:$0xff] }
0x15a9   : > { %16296 = vmatprep.subr.msk.bf16.mxu0 %vm16295_vm7, %v16294_v9 }
0x15ac   : > { %16299 = vmatpush3.bf16.msk.msra.mxu0 %vm16295_vm7, %v16294_v9 }
0x15af   : > { %15650 = vmatmul.mubr.msk.f32.vlgmr.msra.gmra.mrb[60].mxu0 %vm9605_vm4, %v19553_v14 }
0x1676   : > { %v15495_v56 = vpop.f32.mrb[56].mxu0 }
0x1677   : > { %v11745_v57 = vadd.f32 %v15495_v56, %v11732_v38  ;;  %v11697_v62 = vpop.f32.mrb[57].mxu0  ;;  %v11864_v56 = vld [vmem:[#allocation50 + $0x18] sm:$0xff] }
0x1678   : > { %v11744_v12 = vadd.f32 %v11727_v44, %v11697_v62 }
0x1679   : > { %v11749_v7 = vmax.f32 %v11745_v57, 0.0  ;;  %v12081_v57 = vld [vmem:[#allocation50 + $0x40] sm:$0xff] }
0x167a   : > { %v11748_v13 = vmax.f32 %v11744_v12, 0.0  ;;  %v15498_v40 = vpop.f32.mrb[58].mxu0 }
0x167b   : > { %v11747_v14 = vadd.f32 %v15498_v40, %v11742_v18  ;;  %v11707_v31 = vpop.f32.mrb[59].mxu0  ;;  %v12082_v40 = vld [vmem:[#allocation50 + $0x48] sm:$0xff] }
0x167c   : > { %v11746_v39 = vadd.f32 %v11737_v10, %v11707_v31  ;;  %15505 = vmatprep.mubr.msk.f32.mxu1 %vm10639_vm2, %v11748_v13  ;;  %v12083_v10 = vld [vmem:[#allocation50 + $0x50] sm:$0xff] }
0x167d   : > { %15506 = vmatmul.mubr.msk.f32.vlgmr.msra.gmra.mrb[62].mxu1 %vm10639_vm2, %v11749_v7  ;;  %v11751_v47 = vmax.f32 %v11747_v14, 0.0 }
0x167e   : > { %v11750_v58 = vmax.f32 %v11746_v39, 0.0 }
0x1680   : > { %15508 = vmatprep.mubr.msk.f32.mxu1 %vm10639_vm2, %v11750_v58  ;;  %v12084_v58 = vld [vmem:[#allocation50 + $0x58] sm:$0xff] }
0x1681   : > { %15509 = vmatmul.mubr.msk.f32.gmra.mrb[64].mxu1 %vm10639_vm2, %v11751_v47  ;;  %v12199_v47 = vld [vmem:[#allocation50 + $0x60] sm:$0xff] }
0x1682   : > { %v15651_v34 = vpop.f32.mrb[60].mxu0  ;;  %15519 = vmatprep.mubr.msk.f32.mxu1 %vm1817_vm8, %v11866_v29 }
0x1683   : > { %v13018_v22 = vpop.f32.mrb[61].mxu0 }
0x1684   : > { %v19622_v63 = vpack.c.bf16 %v15651_v34, %v13018_v22 }
0x1750   : > { %v15507_v11 = vpop.f32.mrb[62].mxu1 }
0x1751   : > { %11854 = vst.msk [vmem:[#allocation9 + $0x8] sm:$0xff] %vm11852_vm9, %v15507_v11  ;;  %v11833_v52 = vpop.f32.mrb[63].mxu1 }
0x1752   : > { %11853 = vst.msk [vmem:[#allocation9] sm:$0xff] %vm11852_vm9, %v11833_v52 }
0x1754   : > { %v15510_v53 = vpop.f32.mrb[64].mxu1 }
0x1755   : > { %11856 = vst.msk [vmem:[#allocation9 + $0x18] sm:$0xff] %vm11852_vm9, %v15510_v53  ;;  %v11843_v21 = vpop.f32.mrb[65].mxu1  ;;  %v12200_v53 = vld [vmem:[#allocation50 + $0x68] sm:$0xff] }
0x1756   : > { %11855 = vst.msk [vmem:[#allocation9 + $0x10] sm:$0xff] %vm11852_vm9, %v11843_v21  ;;  %v12201_v21 = vld [vmem:[#allocation50 + $0x70] sm:$0xff] }
0x1758   : > { %v11858_v35 = vld [vmem:[#allocation9 + $0x8] sm:$0xff] }
0x1759   : > { %v11857_v3 = vld [vmem:[#allocation9] sm:$0xff] }
0x175a   : > { %v16915_v17 = vpack.i.bf16 %v11858_v35, %v11857_v3  ;;  %v16222_v41 = vpack.c.bf16 %v11858_v35, %v11857_v3 }
0x175c   : > { %16916 = vrot.lane.b32.xlu0 %v16915_v17, %s17948_s3  ;;  %v11860_v8 = vld [vmem:[#allocation9 + $0x18] sm:$0xff] }
0x175d   : > { %v11859_v15 = vld [vmem:[#allocation9 + $0x10] sm:$0xff] }
0x175e   : > { %v16920_v59 = vpack.i.bf16 %v11860_v8, %v11859_v15  ;;  %v16226_v4 = vpack.c.bf16 %v11860_v8, %v11859_v15  ;;  %v12202_v8 = vld [vmem:[#allocation50 + $0x78] sm:$0xff] }
0x1760   : > { %16926 = vrot.lane.b32.xlu0 %v16915_v17, %s17949_s5  ;;  %16921 = vrot.lane.b32.xlu1 %v16920_v59, %s17948_s3  ;;  %s14418_s3 = sshll.u32 %s20173_s18, 6 }
0x1764   : > { %16936 = vrot.lane.b32.xlu0 %v16915_v17, %s17970_s12  ;;  %16931 = vrot.lane.b32.xlu1 %v16920_v59, %s17949_s5  ;;  %s19688_s5 = scalar_lea.vmem %s18152_s24, %s14418_s3 }
0x1768   : > { %16946 = vrot.lane.b32.xlu0 %v16915_v17, %s17971_s13  ;;  %16941 = vrot.lane.b32.xlu1 %v16920_v59, %s17970_s12 }
0x176c   : > { %16956 = vrot.lane.b32.xlu0 %v16915_v17, %s17966_s11  ;;  %16951 = vrot.lane.b32.xlu1 %v16920_v59, %s17971_s13 }
0x1770   : > { %16966 = vrot.lane.b32.xlu0 %v16915_v17, %s17967_s1  ;;  %16961 = vrot.lane.b32.xlu1 %v16920_v59, %s17966_s11 }
0x1774   : > { %16976 = vrot.lane.b32.xlu0 %v16915_v17, %s17972_s22  ;;  %16971 = vrot.lane.b32.xlu1 %v16920_v59, %s17967_s1 }
0x1778   : > { %16986 = vrot.lane.b32.xlu0 %v16915_v17, %s17960_s28  ;;  %16981 = vrot.lane.b32.xlu1 %v16920_v59, %s17972_s22 }
0x177c   : > { %12912 = vperm.xlu0 %16833, %v12906_v2   ;;  %16991 = vrot.lane.b32.xlu1 %v16920_v59, %s17960_s28 }
0x1780   : > { %12922 = vperm.xlu0 %16833, %v12908_v60   ;;  %12917 = vperm.xlu1 %16834, %v12907_v54   ;;  %v12318_v60 = vld [vmem:[#allocation50 + $0x88] sm:$0xff]  ;;  %v12319_v54 = vld [vmem:[#allocation50 + $0x90] sm:$0xff] }
0x1784   : > { %13138 = vperm.xlu0 %16833, %v13132_v5   ;;  %12927 = vperm.xlu1 %16834, %v12909_v50  }
0x1788   : > { %13148 = vperm.xlu0 %16833, %v13134_v16   ;;  %13143 = vperm.xlu1 %16834, %v13133_v48  }
0x178c   : > { %13153 = vperm.xlu1 %16834, %v13135_v23   ;;  %v12320_v23 = vld [vmem:[#allocation50 + $0x98] sm:$0xff] }
0x17ce   : > { %v16917_v19 = vpop.permute.xlu0 %16916 }
0x17cf   : > { %v16919_v24 = vunpack.i.h.bf16 %v16917_v19  ;;  %v16918_v25 = vunpack.i.l.bf16 %v16917_v19  ;;  %v12435_v19 = vld [vmem:[#allocation50 + $0xa0] sm:$0xff] }
0x17d1   : > { %v16214_v28 = vpack.c.bf16 %v16919_v24, %v16918_v25 }
0x17d2   : > { %v16922_v30 = vpop.permute.xlu1 %16921  ;;  %v16927_v33 = vpop.permute.xlu0 %16926 }
0x17d3   : > { %v16924_v27 = vunpack.i.h.bf16 %v16922_v30  ;;  %v16923_v49 = vunpack.i.l.bf16 %v16922_v30  ;;  %16215 = vmatprep.subr.bf16.mxu1 %v16214_v28  ;;  %v16929_v42 = vunpack.i.h.bf16 %v16927_v33  ;;  %v16928_v43 = vunpack.i.l.bf16 %v16927_v33 }
0x17d4   : > { %16217 = vmatpush3.bf16.msra.mxu1 %v16214_v28 }
0x17d5   : > { %v16218_v46 = vpack.c.bf16 %v16924_v27, %v16923_v49  ;;  %v16230_v61 = vpack.c.bf16 %v16929_v42, %v16928_v43  ;;  %v12436_v27 = vld [vmem:[#allocation50 + $0xa8] sm:$0xff]  ;;  %v12437_v49 = vld [vmem:[#allocation50 + $0xb0] sm:$0xff]  ;;  %v12438_v42 = vld [vmem:[#allocation50 + $0xb8] sm:$0xff] }
0x17d6   : > { %v16932_v45 = vpop.permute.xlu1 %16931  ;;  %v16937_v9 = vpop.permute.xlu0 %16936  ;;  %v12553_v43 = vld [vmem:[#allocation50 + $0xc0] sm:$0xff] }
0x17d7   : > { %16219 = vmatprep.subr.bf16.mxu1 %v16218_v46  ;;  %v16934_v1 = vunpack.i.h.bf16 %v16932_v45  ;;  %v16933_v6 = vunpack.i.l.bf16 %v16932_v45  ;;  %v16939_v32 = vunpack.i.h.bf16 %v16937_v9  ;;  %v16938_v37 = vunpack.i.l.bf16 %v16937_v9 }
0x17d8   : > { %16221 = vmatpush3.bf16.msra.mxu1 %v16218_v46 }
0x17d9   : > { %16223 = vmatprep.subr.bf16.mxu1 %v16222_v41  ;;  %v16234_v38 = vpack.c.bf16 %v16934_v1, %v16933_v6  ;;  %v16238_v62 = vpack.c.bf16 %v16939_v32, %v16938_v37  ;;  %v12554_v1 = vld [vmem:[#allocation50 + $0xc8] sm:$0xff]  ;;  %v12555_v6 = vld [vmem:[#allocation50 + $0xd0] sm:$0xff]  ;;  %v12556_v37 = vld [vmem:[#allocation50 + $0xd8] sm:$0xff] }
0x17da   : > { %v16942_v44 = vpop.permute.xlu1 %16941  ;;  %v16947_v13 = vpop.permute.xlu0 %16946 }
0x17db   : > { %15520 = vmatmul.mubr.msk.f32.vlgmr.msra.gmra.mrb[66].mxu1 %vm1817_vm8, %v11867_v36  ;;  %v16944_v12 = vunpack.i.h.bf16 %v16942_v44  ;;  %v16943_v18 = vunpack.i.l.bf16 %v16942_v44  ;;  %v16949_v7 = vunpack.i.h.bf16 %v16947_v13  ;;  %v16948_v14 = vunpack.i.l.bf16 %v16947_v13  ;;  %v12674_v13 = vld [vmem:[#allocation50 + $0xf8] sm:$0xff] }
0x17dc   : > { %16225 = vmatpush3.bf16.msra.mxu1 %v16222_v41  ;;  %15522 = vmatprep.mubr.msk.f32.mxu1 %vm1817_vm8, %v11868_v0  ;;  %v12317_v41 = vld [vmem:[#allocation50 + $0x80] sm:$0xff] }
0x17dd   : > { %16227 = vmatprep.subr.bf16.mxu1 %v16226_v4  ;;  %v16242_v31 = vpack.c.bf16 %v16944_v12, %v16943_v18  ;;  %v16246_v34 = vpack.c.bf16 %v16949_v7, %v16948_v14  ;;  %v12673_v12 = vld [vmem:[#allocation50 + $0xf0] sm:$0xff]  ;;  %v12792_v14 = vld [vmem:[#allocation50 + $0x118] sm:$0xff] }
0x17de   : > { %v16952_v39 = vpop.permute.xlu1 %16951  ;;  %v16957_v52 = vpop.permute.xlu0 %16956  ;;  %v12791_v7 = vld [vmem:[#allocation50 + $0x110] sm:$0xff] }
0x17df   : > { %15523 = vmatmul.mubr.msk.f32.gmra.mrb[68].mxu1 %vm1817_vm8, %v11869_v51  ;;  %v16954_v22 = vunpack.i.h.bf16 %v16952_v39  ;;  %v16953_v11 = vunpack.i.l.bf16 %v16952_v39  ;;  %v16959_v35 = vunpack.i.h.bf16 %v16957_v52  ;;  %v16958_v3 = vunpack.i.l.bf16 %v16957_v52  ;;  %v13028_v39 = vld [vmem:[#allocation53 + $0x8] sm:$0xff] }
0x17e0   : > { %16229 = vmatpush3.bf16.msra.mxu1 %v16226_v4  ;;  %15533 = vmatprep.mubr.msk.f32.mxu1 %vm1817_vm8, %v11861_v55 }
0x17e1   : > { %16231 = vmatprep.subr.bf16.mxu1 %v16230_v61  ;;  %v16250_v17 = vpack.c.bf16 %v16954_v22, %v16953_v11  ;;  %v16254_v15 = vpack.c.bf16 %v16959_v35, %v16958_v3  ;;  %v17973_v11 = vmov 1966171168  }
0x17e2   : > { %v16962_v29 = vpop.permute.xlu1 %16961  ;;  %v16967_v2 = vpop.permute.xlu0 %16966  ;;  %v13170_v52 = vunpack.c.l.s4 %v17973_v11 }
0x17e3   : > { %15534 = vmatmul.mubr.msk.f32.vlgmr.msra.gmra.mrb[66].mxu1 %vm1817_vm8, %v11862_v20  ;;  %v16964_v59 = vunpack.i.h.bf16 %v16962_v29  ;;  %v16963_v4 = vunpack.i.l.bf16 %v16962_v29  ;;  %v16969_v5 = vunpack.i.h.bf16 %v16967_v2  ;;  %v16968_v50 = vunpack.i.l.bf16 %v16967_v2 }
0x17e4   : > { %16233 = vmatpush3.bf16.msra.mxu1 %v16230_v61  ;;  %15536 = vmatprep.mubr.msk.f32.mxu1 %vm1817_vm8, %v11863_v26 }
0x17e5   : > { %16235 = vmatprep.subr.bf16.mxu1 %v16234_v38  ;;  %v16258_v16 = vpack.c.bf16 %v16964_v59, %v16963_v4  ;;  %v16262_v24 = vpack.c.bf16 %v16969_v5, %v16968_v50 }
0x17e6   : > { %v16972_v48 = vpop.permute.xlu1 %16971  ;;  %v16977_v30 = vpop.permute.xlu0 %16976 }
0x17e7   : > { %15537 = vmatmul.mubr.msk.f32.gmra.mrb[68].mxu1 %vm1817_vm8, %v11864_v56  ;;  %v16974_v25 = vunpack.i.h.bf16 %v16972_v48  ;;  %v16973_v28 = vunpack.i.l.bf16 %v16972_v48  ;;  %v16979_v46 = vunpack.i.h.bf16 %v16977_v30  ;;  %v16978_v33 = vunpack.i.l.bf16 %v16977_v30 }
0x17e8   : > { %16237 = vmatpush3.bf16.msra.mxu1 %v16234_v38  ;;  %15547 = vmatprep.mubr.msk.f32.mxu1 %vm1817_vm8, %v12081_v57  ;;  %v12671_v38 = vld [vmem:[#allocation50 + $0xe0] sm:$0xff] }
0x17e9   : > { %16239 = vmatprep.subr.bf16.mxu1 %v16238_v62  ;;  %v16266_v36 = vpack.c.bf16 %v16974_v25, %v16973_v28  ;;  %v16270_v45 = vpack.c.bf16 %v16979_v46, %v16978_v33 }
0x17ea   : > { %v16982_v0 = vpop.permute.xlu1 %16981  ;;  %v16987_v61 = vpop.permute.xlu0 %16986 }
0x17eb   : > { %15548 = vmatmul.mubr.msk.f32.vlgmr.msra.gmra.mrb[66].mxu1 %vm1817_vm8, %v12082_v40  ;;  %v16984_v51 = vunpack.i.h.bf16 %v16982_v0  ;;  %v16983_v55 = vunpack.i.l.bf16 %v16982_v0  ;;  %v16989_v9 = vunpack.i.h.bf16 %v16987_v61  ;;  %v16988_v20 = vunpack.i.l.bf16 %v16987_v61  ;;  %v12789_v40 = vld [vmem:[#allocation50 + $0x100] sm:$0xff] }
0x17ec   : > { %16241 = vmatpush3.bf16.msra.mxu1 %v16238_v62  ;;  %15550 = vmatprep.mubr.msk.f32.mxu1 %vm1817_vm8, %v12083_v10  ;;  %v12672_v62 = vld [vmem:[#allocation50 + $0xe8] sm:$0xff] }
0x17ed   : > { %16243 = vmatprep.subr.bf16.mxu1 %v16242_v31  ;;  %v16274_v26 = vpack.c.bf16 %v16984_v51, %v16983_v55  ;;  %v16278_v44 = vpack.c.bf16 %v16989_v9, %v16988_v20  ;;  %v12790_v10 = vld [vmem:[#allocation50 + $0x108] sm:$0xff] }
0x17ee   : > { %v16992_v32 = vpop.permute.xlu1 %16991 }
0x17ef   : > { %15551 = vmatmul.mubr.msk.f32.gmra.mrb[68].mxu1 %vm1817_vm8, %v12084_v58  ;;  %v16994_v56 = vunpack.i.h.bf16 %v16992_v32  ;;  %v16993_v57 = vunpack.i.l.bf16 %v16992_v32  ;;  %v13029_v58 = vld [vmem:[#allocation53 + $0x10] sm:$0xff] }
0x17f0   : > { %16245 = vmatpush3.bf16.msra.mxu1 %v16242_v31  ;;  %15561 = vmatprep.mubr.msk.f32.mxu1 %vm1817_vm8, %v12199_v47  ;;  %v13027_v31 = vld [vmem:[#allocation53] sm:$0xff]  ;;  %v13030_v47 = vld [vmem:[#allocation53 + $0x18] sm:$0xff] }
0x17f1   : > { %16247 = vmatprep.subr.bf16.mxu1 %v16246_v34  ;;  %v16282_v18 = vpack.c.bf16 %v16994_v56, %v16993_v57 }
0x17f3   : > { %15562 = vmatmul.mubr.msk.f32.vlgmr.msra.gmra.mrb[66].mxu1 %vm1817_vm8, %v12200_v53 }
0x17f4   : > { %16249 = vmatpush3.bf16.msra.mxu1 %v16246_v34  ;;  %15564 = vmatprep.mubr.msk.f32.mxu1 %vm1817_vm8, %v12201_v21  ;;  %v13171_v21 = vunpack.c.0.s8 %v13170_v52 }
0x17f5   : > { %16251 = vmatprep.subr.bf16.mxu1 %v16250_v17 }
0x17f7   : > { %15565 = vmatmul.mubr.msk.f32.gmra.mrb[68].mxu1 %vm1817_vm8, %v12202_v8 }
0x17f8   : > { %16253 = vmatpush3.bf16.msra.mxu1 %v16250_v17  ;;  %15575 = vmatprep.mubr.msk.f32.mxu1 %vm1817_vm8, %v12317_v41 }
0x17f9   : > { %16255 = vmatprep.subr.bf16.mxu1 %v16254_v15 }
0x17fb   : > { %15576 = vmatmul.mubr.msk.f32.vlgmr.msra.gmra.mrb[66].mxu1 %vm1817_vm8, %v12318_v60  ;;  %v12913_v22 = vpop.permute.xlu0 %12912 }
0x17fc   : > { %16257 = vmatpush3.bf16.msra.mxu1 %v16254_v15  ;;  %15578 = vmatprep.mubr.msk.f32.mxu1 %vm1817_vm8, %v12319_v54  ;;  %v20170_v15 = vld [vmem:[#allocation92_spill] sm:$0xff] }
0x17fd   : > { %16259 = vmatprep.subr.bf16.mxu1 %v16258_v16  ;;  %v19683_v59 = vsub.s32 %v13171_v21, %v20170_v15 }
0x17ff   : > { %15579 = vmatmul.mubr.msk.f32.gmra.mrb[68].mxu1 %vm1817_vm8, %v12320_v23  ;;  %v12918_v34 = vpop.permute.xlu1 %12917  ;;  %v12923_v53 = vpop.permute.xlu0 %12922 }
0x1800   : > { %16261 = vmatpush3.bf16.msra.mxu1 %v16258_v16  ;;  %15589 = vmatprep.mubr.msk.f32.mxu1 %vm1817_vm8, %v12435_v19 }
0x1801   : > { %16263 = vmatprep.subr.bf16.mxu1 %v16262_v24 }
0x1803   : > { %15590 = vmatmul.mubr.msk.f32.vlgmr.msra.gmra.mrb[66].mxu1 %vm1817_vm8, %v12436_v27  ;;  %v13139_v17 = vpop.permute.xlu0 %13138 }
0x1804   : > { %16265 = vmatpush3.bf16.msra.mxu1 %v16262_v24  ;;  %15592 = vmatprep.mubr.msk.f32.mxu1 %vm1817_vm8, %v12437_v49 }
0x1805   : > { %16267 = vmatprep.subr.bf16.mxu1 %v16266_v36 }
0x1807   : > { %15593 = vmatmul.mubr.msk.f32.gmra.mrb[68].mxu1 %vm1817_vm8, %v12438_v42  ;;  %v13149_v19 = vpop.permute.xlu0 %13148 }
0x1808   : > { %16269 = vmatpush3.bf16.msra.mxu1 %v16266_v36  ;;  %15603 = vmatprep.mubr.msk.f32.mxu1 %vm1817_vm8, %v12553_v43 }
0x1809   : > { %16271 = vmatprep.subr.bf16.mxu1 %v16270_v45 }
0x180b   : > { %15604 = vmatmul.mubr.msk.f32.vlgmr.msra.gmra.mrb[66].mxu1 %vm1817_vm8, %v12554_v1 }
0x180c   : > { %16273 = vmatpush3.bf16.msra.mxu1 %v16270_v45  ;;  %15606 = vmatprep.mubr.msk.f32.mxu1 %vm1817_vm8, %v12555_v6 }
0x180d   : > { %16275 = vmatprep.subr.bf16.mxu1 %v16274_v26 }
0x180f   : > { %15607 = vmatmul.mubr.msk.f32.gmra.mrb[68].mxu1 %vm1817_vm8, %v12556_v37 }
0x1810   : > { %16277 = vmatpush3.bf16.msra.mxu1 %v16274_v26  ;;  %15617 = vmatprep.mubr.msk.f32.mxu1 %vm1817_vm8, %v12671_v38 }
0x1811   : > { %16279 = vmatprep.subr.bf16.mxu1 %v16278_v44 }
0x1813   : > { %15618 = vmatmul.mubr.msk.f32.vlgmr.msra.gmra.mrb[66].mxu1 %vm1817_vm8, %v12672_v62 }
0x1814   : > { %16281 = vmatpush3.bf16.msra.mxu1 %v16278_v44  ;;  %15620 = vmatprep.mubr.msk.f32.mxu1 %vm1817_vm8, %v12673_v12 }
0x1815   : > { %16283 = vmatprep.subr.bf16.mxu1 %v16282_v18 }
0x1817   : > { %15621 = vmatmul.mubr.msk.f32.gmra.mrb[68].mxu1 %vm1817_vm8, %v12674_v13 }
0x1818   : > { %16285 = vmatpush3.bf16.msra.mxu1 %v16282_v18  ;;  %15631 = vmatprep.mubr.msk.f32.mxu1 %vm1817_vm8, %v12789_v40  ;;  %v20171_v18 = vld [vmem:[#allocation93_spill] sm:$0xff] }
0x1819   : > { %16301 = vmatprep.subr.bf16.mxu1 %v19622_v63 }
0x181b   : > { %15632 = vmatmul.mubr.msk.f32.vlgmr.msra.gmra.mrb[66].mxu1 %vm1817_vm8, %v12790_v10 }
0x181c   : > { %16303 = vmatpush3.bf16.msra.mxu1 %v19622_v63  ;;  %15634 = vmatprep.mubr.msk.f32.mxu1 %vm1817_vm8, %v12791_v7  ;;  %v12928_v63 = vpop.permute.xlu1 %12927 }
0x181f   : > { %15635 = vmatmul.mubr.msk.f32.gmra.mrb[68].mxu1 %vm1817_vm8, %v12792_v14  ;;  %vm13396_vm8 = vcmask 8192  }
0x1820   : > { %15656 = vmatprep.mubr.msk.f32.mxu1 %vm9623_vm5, %v13027_v31  ;;  %v13144_v35 = vpop.permute.xlu1 %13143 }
0x1823   : > { %15657 = vmatmul.mubr.msk.f32.vlgmr.msra.gmra.mrb[66].mxu1 %vm9623_vm5, %v13028_v39 }
0x1824   : > { %15659 = vmatprep.mubr.msk.f32.mxu1 %vm9623_vm5, %v13029_v58  ;;  %v13154_v16 = vpop.permute.xlu1 %13153 }
0x1827   : > { %15660 = vmatmul.mubr.msk.f32.gmra.mrb[68].mxu1 %vm9623_vm5, %v13030_v47 }
0x18f6   : > { %v15658_v3 = vpop.f32.mrb[66].mxu1 }
0x18f7   : > { %v16306_v29 = vadd.f32 %v15658_v3, %v12918_v34  ;;  %v13109_v8 = vpop.f32.mrb[67].mxu1 }
0x18f8   : > { %v16307_v41 = vadd.f32 %v13109_v8, %v12913_v22 }
0x18f9   : > { %v13157_v4 = vadd.f32 %v16306_v29, %v13144_v35 }
0x18fa   : > { %v13156_v2 = vadd.f32 %v16307_v41, %v13139_v17  ;;  %v15661_v60 = vpop.f32.mrb[68].mxu1 }
0x18fb   : > { %v13161_v54 = vmax.f32 %v13157_v4, 0.0  ;;  %v16308_v5 = vadd.f32 %v15661_v60, %v12928_v63  ;;  %v13119_v50 = vpop.f32.mrb[69].mxu1 }
0x18fc   : > { %v13160_v48 = vmax.f32 %v13156_v2, 0.0  ;;  %v16309_v23 = vadd.f32 %v13119_v50, %v12923_v53 }
0x18fd   : > { %v13217_v24 = vcombine.high %v13161_v54, %v13161_v54  ;;  %v13224_v25 = vrot.slane %v13161_v54, %v19683_v59  ;;  %v13159_v28 = vadd.f32 %v16308_v5, %v13154_v16 }
0x18fe   : > { %v13168_v30 = vcombine.high %v13160_v48, %v13160_v48  ;;  %v13175_v27 = vrot.slane %v13160_v48, %v19683_v59  ;;  %v13158_v49 = vadd.f32 %v16309_v23, %v13149_v19 }
0x18ff   : > { %v13231_v46 = vrot.slane %v13217_v24, %v19683_v59  ;;  %v13232_v33 = vcombine.high %v13224_v25, %v13224_v25  ;;  %v13240_v36 = vrot.slane %v13224_v25, %v19683_v59  ;;  %v13163_v0 = vmax.f32 %v13159_v28, 0.0 }
0x1900   : > { %v13182_v42 = vrot.slane %v13168_v30, %v19683_v59  ;;  %v13183_v43 = vcombine.high %v13175_v27, %v13175_v27  ;;  %v13191_v45 = vrot.slane %v13175_v27, %v19683_v59  ;;  %v13162_v51 = vmax.f32 %v13158_v49, 0.0 }
0x1901   : > { %v13233_v55 = vcombine.high %v13231_v46, %v13231_v46  ;;  %v19696_v61 = vrot.slane %v13231_v46, %v19683_v59  ;;  %v13254_v1 = vrot.slane %v13232_v33, %v19683_v59  ;;  %13405 = vst.msk [vmem:[%s19688_s5 + $0x10] sm:$0x1] %vm13396_vm8, %v13240_v36  ;;  %v13315_v6 = vcombine.high %v13163_v0, %v13163_v0 }
0x1902   : > { %v13184_v9 = vcombine.high %v13182_v42, %v13182_v42  ;;  %v19702_v20 = vrot.slane %v13182_v42, %v19683_v59  ;;  %v13205_v26 = vrot.slane %v13183_v43, %v19683_v59  ;;  %13397 = vst.msk [vmem:[%s19688_s5] sm:$0x1] %vm13396_vm8, %v13191_v45  ;;  %v13322_v32 = vrot.slane %v13163_v0, %v19683_v59 }
0x1903   : > { %v19709_v37 = vrot.slane %v13233_v55, %v19683_v59  ;;  %13406 = vst.msk [vmem:[%s19688_s5 + $0x12] sm:$0x1] %vm13396_vm8, %v13254_v1  ;;  %13409 = vst.msk [vmem:[%s19688_s5 + $0x18] sm:$0x1] %vm13396_vm8, %v19696_v61  ;;  %v13329_v38 = vrot.slane %v13315_v6, %v19683_v59  ;;  %v13266_v44 = vcombine.high %v13162_v51, %v13162_v51 }
0x1904   : > { %v13273_v56 = vrot.slane %v13162_v51, %v19683_v59  ;;  %v19719_v57 = vrot.slane %v13184_v9, %v19683_v59  ;;  %13398 = vst.msk [vmem:[%s19688_s5 + $0x2] sm:$0x1] %vm13396_vm8, %v13205_v26  ;;  %13401 = vst.msk [vmem:[%s19688_s5 + $0x8] sm:$0x1] %vm13396_vm8, %v19702_v20  ;;  %v13330_v62 = vcombine.high %v13322_v32, %v13322_v32 }
0x1905   : > { %v19727_v12 = vrot.slane %v13322_v32, %v19683_v59  ;;  %v13464_v13 = vrot.slane %v13240_v36, %v20171_v18  ;;  %13410 = vst.msk [vmem:[%s19688_s5 + $0x1a] sm:$0x1] %vm13396_vm8, %v19709_v37  ;;  %v13331_v40 = vcombine.high %v13329_v38, %v13329_v38  ;;  %v19734_v10 = vrot.slane %v13329_v38, %v19683_v59 }
0x1906   : > { %v13280_v7 = vrot.slane %v13266_v44, %v19683_v59  ;;  %v13281_v14 = vcombine.high %v13273_v56, %v13273_v56  ;;  %13402 = vst.msk [vmem:[%s19688_s5 + $0xa] sm:$0x1] %vm13396_vm8, %v19719_v57  ;;  %v19741_v31 = vrot.slane %v13330_v62, %v19683_v59  ;;  %v19747_v39 = vrot.slane %v13273_v56, %v19683_v59 }
0x1907   : > { %13421 = vst.msk [vmem:[%s19688_s5 + $0x30] sm:$0x1] %vm13396_vm8, %v19727_v12  ;;  %13573 = vrot.lane.b32.xlu0 %v13464_v13, %s17970_s12  ;;  %v13468_v58 = vrot.slane %v13254_v1, %v20171_v18  ;;  %v19752_v47 = vrot.slane %v13331_v40, %v19683_v59  ;;  %13425 = vst.msk [vmem:[%s19688_s5 + $0x38] sm:$0x1] %vm13396_vm8, %v19734_v10  ;;  %v13432_v11 = vrot.slane %v13191_v45, %v20171_v18 }
0x1908   : > { %v13282_v34 = vcombine.high %v13280_v7, %v13280_v7  ;;  %v19758_v22 = vrot.slane %v13280_v7, %v19683_v59  ;;  %v19761_v63 = vrot.slane %v13281_v14, %v19683_v59  ;;  %13422 = vst.msk [vmem:[%s19688_s5 + $0x32] sm:$0x1] %vm13396_vm8, %v19741_v31  ;;  %13413 = vst.msk [vmem:[%s19688_s5 + $0x20] sm:$0x1] %vm13396_vm8, %v19747_v39 }
0x1909   : > { %13575 = vrot.lane.b32.xlu1 %v13468_v58, %s17970_s12  ;;  %v13262_v52 = vcombine.high %v13240_v36, %v13240_v36  ;;  %v13264_v53 = vcombine.high %v13254_v1, %v13254_v1  ;;  %13426 = vst.msk [vmem:[%s19688_s5 + $0x3a] sm:$0x1] %vm13396_vm8, %v19752_v47  ;;  %v13213_v35 = vcombine.high %v13191_v45, %v13191_v45 }
0x190a   : > { %v19775_v21 = vrot.slane %v13282_v34, %v19683_v59  ;;  %13414 = vst.msk [vmem:[%s19688_s5 + $0x22] sm:$0x1] %vm13396_vm8, %v19761_v63  ;;  %13417 = vst.msk [vmem:[%s19688_s5 + $0x28] sm:$0x1] %vm13396_vm8, %v19758_v22  ;;  %v13215_v3 = vcombine.high %v13205_v26, %v13205_v26  ;;  %v13436_v17 = vrot.slane %v13205_v26, %v20171_v18 }
0x190b   : > { %13557 = vrot.lane.b32.xlu0 %v13432_v11, %s17970_s12  ;;  %13407 = vst.msk [vmem:[%s19688_s5 + $0x14] sm:$0x1] %vm13396_vm8, %v13262_v52  ;;  %13408 = vst.msk [vmem:[%s19688_s5 + $0x16] sm:$0x1] %vm13396_vm8, %v13264_v53  ;;  %v13263_v29 = vcombine.high %v19696_v61, %v19696_v61  ;;  %v13265_v8 = vcombine.high %v19709_v37, %v19709_v37  ;;  %v13472_v41 = vrot.slane %v13262_v52, %v20171_v18 }
0x190c   : > { %13418 = vst.msk [vmem:[%s19688_s5 + $0x2a] sm:$0x1] %vm13396_vm8, %v19775_v21  ;;  %13399 = vst.msk [vmem:[%s19688_s5 + $0x4] sm:$0x1] %vm13396_vm8, %v13213_v35  ;;  %v13214_v15 = vcombine.high %v19702_v20, %v19702_v20  ;;  %v13216_v59 = vcombine.high %v19719_v57, %v19719_v57  ;;  %v13476_v4 = vrot.slane %v13264_v53, %v20171_v18 }
0x190d   : > { %13400 = vst.msk [vmem:[%s19688_s5 + $0x6] sm:$0x1] %vm13396_vm8, %v13215_v3  ;;  %13559 = vrot.lane.b32.xlu1 %v13436_v17, %s17970_s12  ;;  %13411 = vst.msk [vmem:[%s19688_s5 + $0x1c] sm:$0x1] %vm13396_vm8, %v13263_v29  ;;  %v13360_v2 = vcombine.high %v19727_v12, %v19727_v12  ;;  %v13362_v60 = vcombine.high %v19741_v31, %v19741_v31  ;;  %v13311_v54 = vcombine.high %v19747_v39, %v19747_v39 }
0x190e   : > { %13412 = vst.msk [vmem:[%s19688_s5 + $0x1e] sm:$0x1] %vm13396_vm8, %v13265_v8  ;;  %13403 = vst.msk [vmem:[%s19688_s5 + $0xc] sm:$0x1] %vm13396_vm8, %v13214_v15  ;;  %v13313_v5 = vcombine.high %v19761_v63, %v19761_v63  ;;  %v13480_v50 = vrot.slane %v19696_v61, %v20171_v18  ;;  %v13312_v16 = vcombine.high %v19758_v22, %v19758_v22 }
0x190f   : > { %13577 = vrot.lane.b32.xlu0 %v13472_v41, %s17970_s12  ;;  %13404 = vst.msk [vmem:[%s19688_s5 + $0xe] sm:$0x1] %vm13396_vm8, %v13216_v59  ;;  %13423 = vst.msk [vmem:[%s19688_s5 + $0x34] sm:$0x1] %vm13396_vm8, %v13360_v2  ;;  %v13314_v48 = vcombine.high %v19775_v21, %v19775_v21  ;;  %v13484_v23 = vrot.slane %v19709_v37, %v20171_v18  ;;  %v13361_v19 = vcombine.high %v19734_v10, %v19734_v10 }
0x1910   : > { %13424 = vst.msk [vmem:[%s19688_s5 + $0x36] sm:$0x1] %vm13396_vm8, %v13362_v60  ;;  %13415 = vst.msk [vmem:[%s19688_s5 + $0x24] sm:$0x1] %vm13396_vm8, %v13311_v54  ;;  %v13363_v24 = vcombine.high %v19752_v47, %v19752_v47  ;;  %v13440_v25 = vrot.slane %v13213_v35, %v20171_v18  ;;  %v13444_v28 = vrot.slane %v13215_v3, %v20171_v18 }
0x1911   : > { %13579 = vrot.lane.b32.xlu1 %v13476_v4, %s17970_s12  ;;  %13416 = vst.msk [vmem:[%s19688_s5 + $0x26] sm:$0x1] %vm13396_vm8, %v13313_v5  ;;  %13419 = vst.msk [vmem:[%s19688_s5 + $0x2c] sm:$0x1] %vm13396_vm8, %v13312_v16  ;;  %v13448_v30 = vrot.slane %v19702_v20, %v20171_v18  ;;  %v13452_v27 = vrot.slane %v19719_v57, %v20171_v18  ;;  %v13488_v49 = vrot.slane %v13263_v29, %v20171_v18 }
0x1912   : > { %13420 = vst.msk [vmem:[%s19688_s5 + $0x2e] sm:$0x1] %vm13396_vm8, %v13314_v48  ;;  %13427 = vst.msk [vmem:[%s19688_s5 + $0x3c] sm:$0x1] %vm13396_vm8, %v13361_v19  ;;  %v13492_v46 = vrot.slane %v13265_v8, %v20171_v18  ;;  %v13528_v33 = vrot.slane %v19727_v12, %v20171_v18  ;;  %v13532_v36 = vrot.slane %v19741_v31, %v20171_v18 }
0x1913   : > { %13581 = vrot.lane.b32.xlu0 %v13480_v50, %s17970_s12  ;;  %13428 = vst.msk [vmem:[%s19688_s5 + $0x3e] sm:$0x1] %vm13396_vm8, %v13363_v24  ;;  %v13456_v0 = vrot.slane %v13214_v15, %v20171_v18  ;;  %v13460_v42 = vrot.slane %v13216_v59, %v20171_v18  ;;  %v13496_v43 = vrot.slane %v19747_v39, %v20171_v18 }
0x1914   : > { %v13500_v45 = vrot.slane %v19761_v63, %v20171_v18  ;;  %v13536_v51 = vrot.slane %v13360_v2, %v20171_v18  ;;  %v13540_v55 = vrot.slane %v13362_v60, %v20171_v18  ;;  %v13544_v61 = vrot.slane %v19734_v10, %v20171_v18 }
0x1915   : > { %13583 = vrot.lane.b32.xlu1 %v13484_v23, %s17970_s12  ;;  %v13548_v1 = vrot.slane %v19752_v47, %v20171_v18  ;;  %v13504_v6 = vrot.slane %v13311_v54, %v20171_v18  ;;  %v13508_v9 = vrot.slane %v13313_v5, %v20171_v18  ;;  %v13512_v20 = vrot.slane %v19758_v22, %v20171_v18 }
0x1916   : > { %v13516_v26 = vrot.slane %v19775_v21, %v20171_v18  ;;  %v13520_v32 = vrot.slane %v13312_v16, %v20171_v18  ;;  %v13524_v37 = vrot.slane %v13314_v48, %v20171_v18  ;;  %v13552_v38 = vrot.slane %v13361_v19, %v20171_v18 }
0x1917   : > { %13561 = vrot.lane.b32.xlu0 %v13440_v25, %s17970_s12  ;;  %v13556_v44 = vrot.slane %v13363_v24, %v20171_v18 }
0x1919   : > { %13563 = vrot.lane.b32.xlu1 %v13444_v28, %s17970_s12 }
0x191b   : > { %13565 = vrot.lane.b32.xlu0 %v13448_v30, %s17970_s12 }
0x191d   : > { %13567 = vrot.lane.b32.xlu1 %v13452_v27, %s17970_s12 }
0x191f   : > { %13585 = vrot.lane.b32.xlu0 %v13488_v49, %s17970_s12 }
0x1921   : > { %13587 = vrot.lane.b32.xlu1 %v13492_v46, %s17970_s12 }
0x1923   : > { %13605 = vrot.lane.b32.xlu0 %v13528_v33, %s17970_s12 }
0x1925   : > { %13607 = vrot.lane.b32.xlu1 %v13532_v36, %s17970_s12 }
0x1927   : > { %13569 = vrot.lane.b32.xlu0 %v13456_v0, %s17970_s12 }
0x1929   : > { %13571 = vrot.lane.b32.xlu1 %v13460_v42, %s17970_s12 }
0x192b   : > { %13589 = vrot.lane.b32.xlu0 %v13496_v43, %s17970_s12 }
0x192d   : > { %13591 = vrot.lane.b32.xlu1 %v13500_v45, %s17970_s12 }
0x192f   : > { %13609 = vrot.lane.b32.xlu0 %v13536_v51, %s17970_s12 }
0x1931   : > { %13611 = vrot.lane.b32.xlu1 %v13540_v55, %s17970_s12 }
0x1933   : > { %13613 = vrot.lane.b32.xlu0 %v13544_v61, %s17970_s12 }
0x1935   : > { %13615 = vrot.lane.b32.xlu1 %v13548_v1, %s17970_s12 }
0x1937   : > { %13593 = vrot.lane.b32.xlu0 %v13504_v6, %s17970_s12 }
0x1939   : > { %13595 = vrot.lane.b32.xlu1 %v13508_v9, %s17970_s12 }
0x193b   : > { %13597 = vrot.lane.b32.xlu0 %v13512_v20, %s17970_s12 }
0x193d   : > { %13599 = vrot.lane.b32.xlu1 %v13516_v26, %s17970_s12 }
0x193f   : > { %13601 = vrot.lane.b32.xlu0 %v13520_v32, %s17970_s12 }
0x1941   : > { %13603 = vrot.lane.b32.xlu1 %v13524_v37, %s17970_s12 }
0x1943   : > { %13617 = vrot.lane.b32.xlu0 %v13552_v38, %s17970_s12 }
0x1945   : > { %13619 = vrot.lane.b32.xlu1 %v13556_v44, %s17970_s12 }
0x1979   : > { %v13574_v56 = vpop.permute.xlu0 %13573 }
0x197a   : > { %13661 = vst.msk [vmem:[%s19688_s5 + $0x11] sm:$0x1] %vm13396_vm8, %v13574_v56 }
0x197b   : > { %v13576_v57 = vpop.permute.xlu1 %13575 }
0x197c   : > { %13662 = vst.msk [vmem:[%s19688_s5 + $0x13] sm:$0x1] %vm13396_vm8, %v13576_v57 }
0x197d   : > { %v13558_v62 = vpop.permute.xlu0 %13557 }
0x197e   : > { %13653 = vst.msk [vmem:[%s19688_s5 + $0x1] sm:$0x1] %vm13396_vm8, %v13558_v62 }
0x197f   : > { %v13560_v12 = vpop.permute.xlu1 %13559 }
0x1980   : > { %13654 = vst.msk [vmem:[%s19688_s5 + $0x3] sm:$0x1] %vm13396_vm8, %v13560_v12 }
0x1981   : > { %v13578_v18 = vpop.permute.xlu0 %13577 }
0x1982   : > { %13663 = vst.msk [vmem:[%s19688_s5 + $0x15] sm:$0x1] %vm13396_vm8, %v13578_v18 }
0x1983   : > { %v13580_v13 = vpop.permute.xlu1 %13579 }
0x1984   : > { %13664 = vst.msk [vmem:[%s19688_s5 + $0x17] sm:$0x1] %vm13396_vm8, %v13580_v13 }
0x1985   : > { %v13582_v40 = vpop.permute.xlu0 %13581 }
0x1986   : > { %13665 = vst.msk [vmem:[%s19688_s5 + $0x19] sm:$0x1] %vm13396_vm8, %v13582_v40 }
0x1987   : > { %v13584_v10 = vpop.permute.xlu1 %13583 }
0x1988   : > { %13666 = vst.msk [vmem:[%s19688_s5 + $0x1b] sm:$0x1] %vm13396_vm8, %v13584_v10 }
0x1989   : > { %v13562_v7 = vpop.permute.xlu0 %13561 }
0x198a   : > { %13655 = vst.msk [vmem:[%s19688_s5 + $0x5] sm:$0x1] %vm13396_vm8, %v13562_v7 }
0x198b   : > { %v13564_v14 = vpop.permute.xlu1 %13563 }
0x198c   : > { %13656 = vst.msk [vmem:[%s19688_s5 + $0x7] sm:$0x1] %vm13396_vm8, %v13564_v14 }
0x198d   : > { %v13566_v31 = vpop.permute.xlu0 %13565 }
0x198e   : > { %13657 = vst.msk [vmem:[%s19688_s5 + $0x9] sm:$0x1] %vm13396_vm8, %v13566_v31 }
0x198f   : > { %v13568_v39 = vpop.permute.xlu1 %13567 }
0x1990   : > { %13658 = vst.msk [vmem:[%s19688_s5 + $0xb] sm:$0x1] %vm13396_vm8, %v13568_v39 }
0x1991   : > { %v13586_v58 = vpop.permute.xlu0 %13585 }
0x1992   : > { %13667 = vst.msk [vmem:[%s19688_s5 + $0x1d] sm:$0x1] %vm13396_vm8, %v13586_v58 }
0x1993   : > { %v13588_v47 = vpop.permute.xlu1 %13587 }
0x1994   : > { %13668 = vst.msk [vmem:[%s19688_s5 + $0x1f] sm:$0x1] %vm13396_vm8, %v13588_v47 }
0x1995   : > { %v13606_v34 = vpop.permute.xlu0 %13605 }
0x1996   : > { %13677 = vst.msk [vmem:[%s19688_s5 + $0x31] sm:$0x1] %vm13396_vm8, %v13606_v34 }
0x1997   : > { %v13608_v22 = vpop.permute.xlu1 %13607 }
0x1998   : > { %13678 = vst.msk [vmem:[%s19688_s5 + $0x33] sm:$0x1] %vm13396_vm8, %v13608_v22 }
0x1999   : > { %v13570_v63 = vpop.permute.xlu0 %13569 }
0x199a   : > { %13659 = vst.msk [vmem:[%s19688_s5 + $0xd] sm:$0x1] %vm13396_vm8, %v13570_v63 }
0x199b   : > { %v13572_v11 = vpop.permute.xlu1 %13571 }
0x199c   : > { %13660 = vst.msk [vmem:[%s19688_s5 + $0xf] sm:$0x1] %vm13396_vm8, %v13572_v11 }
0x199d   : > { %v13590_v52 = vpop.permute.xlu0 %13589 }
0x199e   : > { %13669 = vst.msk [vmem:[%s19688_s5 + $0x21] sm:$0x1] %vm13396_vm8, %v13590_v52 }
0x199f   : > { %v13592_v53 = vpop.permute.xlu1 %13591 }
0x19a0   : > { %13670 = vst.msk [vmem:[%s19688_s5 + $0x23] sm:$0x1] %vm13396_vm8, %v13592_v53 }
0x19a1   : > { %v13610_v21 = vpop.permute.xlu0 %13609 }
0x19a2   : > { %13679 = vst.msk [vmem:[%s19688_s5 + $0x35] sm:$0x1] %vm13396_vm8, %v13610_v21 }
0x19a3   : > { %v13612_v35 = vpop.permute.xlu1 %13611 }
0x19a4   : > { %13680 = vst.msk [vmem:[%s19688_s5 + $0x37] sm:$0x1] %vm13396_vm8, %v13612_v35 }
0x19a5   : > { %v13614_v3 = vpop.permute.xlu0 %13613 }
0x19a6   : > { %13681 = vst.msk [vmem:[%s19688_s5 + $0x39] sm:$0x1] %vm13396_vm8, %v13614_v3 }
0x19a7   : > { %v13616_v17 = vpop.permute.xlu1 %13615 }
0x19a8   : > { %13682 = vst.msk [vmem:[%s19688_s5 + $0x3b] sm:$0x1] %vm13396_vm8, %v13616_v17 }
0x19a9   : > { %v13594_v29 = vpop.permute.xlu0 %13593 }
0x19aa   : > { %13671 = vst.msk [vmem:[%s19688_s5 + $0x25] sm:$0x1] %vm13396_vm8, %v13594_v29 }
0x19ab   : > { %v13596_v8 = vpop.permute.xlu1 %13595 }
0x19ac   : > { %13672 = vst.msk [vmem:[%s19688_s5 + $0x27] sm:$0x1] %vm13396_vm8, %v13596_v8 }
0x19ad   : > { %v13598_v41 = vpop.permute.xlu0 %13597 }
0x19ae   : > { %13673 = vst.msk [vmem:[%s19688_s5 + $0x29] sm:$0x1] %vm13396_vm8, %v13598_v41 }
0x19af   : > { %v13600_v15 = vpop.permute.xlu1 %13599 }
0x19b0   : > { %13674 = vst.msk [vmem:[%s19688_s5 + $0x2b] sm:$0x1] %vm13396_vm8, %v13600_v15 }
0x19b1   : > { %v13602_v59 = vpop.permute.xlu0 %13601 }
0x19b2   : > { %13675 = vst.msk [vmem:[%s19688_s5 + $0x2d] sm:$0x1] %vm13396_vm8, %v13602_v59 }
0x19b3   : > { %v13604_v4 = vpop.permute.xlu1 %13603 }
0x19b4   : > { %13676 = vst.msk [vmem:[%s19688_s5 + $0x2f] sm:$0x1] %vm13396_vm8, %v13604_v4 }
0x19b5   : > { %v13618_v2 = vpop.permute.xlu0 %13617 }
0x19b6   : > { %13683 = vst.msk [vmem:[%s19688_s5 + $0x3d] sm:$0x1] %vm13396_vm8, %v13618_v2 }
0x19b7   : > { %v13620_v60 = vpop.permute.xlu1 %13619 }
0x19b8   : > { %13684 = vst.msk [vmem:[%s19688_s5 + $0x3f] sm:$0x1] %vm13396_vm8, %v13620_v60 }
0x19b9 PF: > { %s94_s15 = sadd.s32 1, %s17876_s15  }
0x19ba   : > { %p91_p10 = scmp.ge.s32.totalorder %s94_s15, 4  }
0x19bc   :  { %93 = sbr.rel (!%p91_p10) target bundleno = 76 (0x4c), region = 409 }
0x19c3   :  { %13706 = vsyncpa [#allocation11], 1 }
0x19c4   :  { %13708 = vsyncpa [#allocation11 + $0x1], 1 }
0x19c5   :  { %13709 = vsyncpa [#allocation13], 1 }
0x19c6   :  { %13710 = vsyncpa [#allocation16], 1 }
0x19c7   :  { %13711 = vsyncpa [#allocation19], 1 }
0x19c8   :  { %13712 = vsyncpa [#allocation22], 1 }
0x19c9   :  { %13713 = vsyncpa [#allocation25], 1 }
0x19ca   :  { %13714 = vsyncpa [#allocation28], 1 }
0x19cb   :  { %13715 = vsyncpa [#allocation31], 1 }
0x19cc   :  { %13716 = vsyncpa [#allocation34], 1 }
0x19cd   :  { %13717 = vsyncpa [#allocation37], 1 }
0x19ce   :  { %13718 = vsyncpa [#allocation40], 1 }
0x19cf   :  { %13719 = vsyncpa [#allocation43], 1 }
0x19d0   :  { %13720 = vsyncpa [#allocation46], 1 }
0x19d1   :  { %13721 = vsyncpa [#allocation49], 1 }
0x19d2   :  { %13722 = vsyncpa [#allocation52], 1 }

</bundles_post_ra>
